<compile_context>
chip_gen: v5e
topology: v5e:2x2
jax: 0.10.0
libtpu: 0.0.40
codegen_flags: <defaults>
</compile_context>

<pallas_src>
import functools

import jax
import jax.numpy as jnp
from jax.experimental import pallas as pl
from jax.experimental.pallas import tpu as pltpu


# ----------------------------------------------------------------------------
# Fused Pallas kernels.
#   variant 1: C = relu( (A @ B) * scale + bias )   (convs; folded BatchNorm)
#   variant 2: C = relu( A @ B )                    (fc layers, no affine)
# Grid: (M/tm, N/tn, K/tk); K is the reduction axis (last, "arbitrary").
# ----------------------------------------------------------------------------
def _mm_affine_relu_kernel(a_ref, b_ref, s_ref, c_ref, o_ref, acc_ref):
    k = pl.program_id(2)

    @pl.when(k == 0)
    def _():
        acc_ref[...] = jnp.zeros_like(acc_ref)

    acc_ref[...] += jnp.dot(
        a_ref[...], b_ref[...], preferred_element_type=jnp.float32
    )

    @pl.when(k == pl.num_programs(2) - 1)
    def _():
        y = acc_ref[...] * s_ref[...] + c_ref[...]
        o_ref[...] = jnp.maximum(y, 0.0).astype(o_ref.dtype)


def _mm_relu_kernel(a_ref, b_ref, o_ref, acc_ref):
    k = pl.program_id(2)

    @pl.when(k == 0)
    def _():
        acc_ref[...] = jnp.zeros_like(acc_ref)

    acc_ref[...] += jnp.dot(
        a_ref[...], b_ref[...], preferred_element_type=jnp.float32
    )

    @pl.when(k == pl.num_programs(2) - 1)
    def _():
        o_ref[...] = jnp.maximum(acc_ref[...], 0.0).astype(o_ref.dtype)


def _round_up(x, m):
    return ((x + m - 1) // m) * m


def fused_matmul(a, b_p, scale=None, bias=None, *, tm, tn, tk,
                 out_dtype=jnp.float32, n_out=None):
    """relu((a @ b_p[:K]) [* scale + bias]) with a tiled Pallas TPU kernel.

    a     : (M, K) activations (any float dtype; cast to bf16, M padded to tm,
            K zero-padded up to b_p.shape[0]).
    b_p   : (Kp, Np) weights, PRE-padded and PRE-cast to bf16.
            Requires Kp % tk == 0 and Np % tn == 0.
    scale, bias : (1, Np) f32 per-column affine (folded BN), or both None.
    """
    M, K = a.shape
    Kp, Np = b_p.shape
    assert Kp >= K and Kp % tk == 0 and Np % tn == 0
    Mp = _round_up(M, tm)

    a_p = jnp.zeros((Mp, Kp), jnp.bfloat16).at[:M, :K].set(a.astype(jnp.bfloat16))

    grid = (Mp // tm, Np // tn, Kp // tk)
    common = dict(
        out_shape=jax.ShapeDtypeStruct((Mp, Np), out_dtype),
        compiler_params=pltpu.CompilerParams(
            dimension_semantics=("parallel", "parallel", "arbitrary")
        ),
    )

    if scale is not None:
        out = pl.pallas_call(
            _mm_affine_relu_kernel,
            grid_spec=pltpu.PrefetchScalarGridSpec(
                num_scalar_prefetch=0,
                grid=grid,
                in_specs=[
                    pl.BlockSpec((tm, tk), lambda i, j, k: (i, k)),
                    pl.BlockSpec((tk, tn), lambda i, j, k: (k, j)),
                    pl.BlockSpec((1, tn), lambda i, j, k: (0, j)),
                    pl.BlockSpec((1, tn), lambda i, j, k: (0, j)),
                ],
                out_specs=pl.BlockSpec((tm, tn), lambda i, j, k: (i, j)),
                scratch_shapes=[pltpu.VMEM((tm, tn), jnp.float32)],
            ),
            **common,
        )(a_p, b_p, scale, bias)
    else:
        out = pl.pallas_call(
            _mm_relu_kernel,
            grid_spec=pltpu.PrefetchScalarGridSpec(
                num_scalar_prefetch=0,
                grid=grid,
                in_specs=[
                    pl.BlockSpec((tm, tk), lambda i, j, k: (i, k)),
                    pl.BlockSpec((tk, tn), lambda i, j, k: (k, j)),
                ],
                out_specs=pl.BlockSpec((tm, tn), lambda i, j, k: (i, j)),
                scratch_shapes=[pltpu.VMEM((tm, tn), jnp.float32)],
            ),
            **common,
        )(a_p, b_p)

    if n_out is None:
        n_out = Np
    return out[:M, :n_out]


# ----------------------------------------------------------------------------
# Glue (plain JAX): im2col patch extraction, 2x2 max-pool, BN folding.
# ----------------------------------------------------------------------------
def im2col_3x3(x_nhwc):
    """(B, H, W, Cin) -> (B, H-2, W-2, Cin*9), flat index = cin*9 + kh*3 + kw
    (matches torch weight.reshape(Cout, Cin*KH*KW) ordering)."""
    B, H, W, C = x_nhwc.shape
    OH, OW = H - 2, W - 2
    slices = [
        x_nhwc[:, kh: kh + OH, kw: kw + OW, :]
        for kh in range(3)
        for kw in range(3)
    ]
    p = jnp.stack(slices, axis=-1)  # (B, OH, OW, Cin, 9), last dim = kh*3+kw
    return p.reshape(B, OH, OW, C * 9)


def maxpool2x2(x_nhwc):
    """nn.MaxPool2d(2, 2) semantics (floor division, drop trailing row/col)."""
    B, H, W, C = x_nhwc.shape
    Ho, Wo = H // 2, W // 2
    x = x_nhwc[:, : Ho * 2, : Wo * 2, :]
    return x.reshape(B, Ho, 2, Wo, 2, C).max(axis=(2, 4))


def bn_fold(gamma, beta, mean, var, eps=1e-5):
    """Eval-mode BatchNorm folded into a per-channel affine: y = x*scale + bias."""
    scale = gamma / jnp.sqrt(var + eps)
    bias = beta - mean * scale
    return scale, bias


# ----------------------------------------------------------------------------
# Model parameters (deterministic, shapes follow the torch module __init__).
# ----------------------------------------------------------------------------
def init_params(key):
    ks = jax.random.split(key, 12)
    p = {}
    p["conv1_w"] = jax.random.normal(ks[0], (128, 1, 3, 3), jnp.float32) * 0.1
    p["conv2_w"] = jax.random.normal(ks[1], (128, 128, 3, 3), jnp.float32) * 0.02
    p["fc1_w"] = jax.random.normal(ks[2], (2048, 128 * 5 * 5), jnp.float32) * 0.01
    p["fc2_w"] = jax.random.normal(ks[3], (100, 2048), jnp.float32) * 0.02
    p["bn1_gamma"] = 1.0 + 0.1 * jax.random.normal(ks[4], (128,), jnp.float32)
    p["bn1_beta"] = 0.1 * jax.random.normal(ks[5], (128,), jnp.float32)
    p["bn1_mean"] = 0.1 * jax.random.normal(ks[6], (128,), jnp.float32)
    p["bn1_var"] = 0.5 + jnp.abs(jax.random.normal(ks[7], (128,), jnp.float32))
    p["bn2_gamma"] = 1.0 + 0.1 * jax.random.normal(ks[8], (128,), jnp.float32)
    p["bn2_beta"] = 0.1 * jax.random.normal(ks[9], (128,), jnp.float32)
    p["bn2_mean"] = 0.1 * jax.random.normal(ks[10], (128,), jnp.float32)
    p["bn2_var"] = 0.5 + jnp.abs(jax.random.normal(ks[11], (128,), jnp.float32))
    return p


def prepare_params(p):
    """One-time prep: fold BN, transpose/pad/cast weights (hoisted out of fwd)."""
    q = {}
    s1, b1 = bn_fold(p["bn1_gamma"], p["bn1_beta"], p["bn1_mean"], p["bn1_var"])
    s2, b2 = bn_fold(p["bn2_gamma"], p["bn2_beta"], p["bn2_mean"], p["bn2_var"])
    q["bn1_scale"] = s1.reshape(1, 128).astype(jnp.float32)
    q["bn1_bias"] = b1.reshape(1, 128).astype(jnp.float32)
    q["bn2_scale"] = s2.reshape(1, 128).astype(jnp.float32)
    q["bn2_bias"] = b2.reshape(1, 128).astype(jnp.float32)

    # conv1: (128, 1, 3, 3) -> (9, 128), K padded 9 -> 16 (NOT 128).
    w1 = p["conv1_w"].reshape(128, 9).T
    q["w1"] = jnp.zeros((16, 128), jnp.bfloat16).at[:9, :].set(
        w1.astype(jnp.bfloat16))
    # conv2: (128, 128, 3, 3) -> (1152, 128), no padding needed.
    q["w2"] = p["conv2_w"].reshape(128, 1152).T.astype(jnp.bfloat16)
    # fc1: (2048, 3200) -> (3200, 2048).
    q["fc1_w"] = p["fc1_w"].T.astype(jnp.bfloat16)
    # fc2: (100, 2048) -> (2048, 100), N padded 100 -> 128.
    q["fc2_w"] = jnp.zeros((2048, 128), jnp.bfloat16).at[:, :100].set(
        p["fc2_w"].T.astype(jnp.bfloat16))
    return q


# ----------------------------------------------------------------------------
# Forward pass (eval mode).
# ----------------------------------------------------------------------------
def regular_model_mnist_forward(x_in, prep, seq_len):
    """x_in: (B, 1, 28, 28) NCHW float32  ->  (B, 100)."""
    B = x_in.shape[0]

    # TODO(synk): encoder is hydra-instantiated in the reference; treated as identity.
    x = jnp.transpose(x_in, (0, 2, 3, 1))  # NHWC (B, 28, 28, 1)

    # conv1 (1->128, 3x3, no bias) + bn1 + relu   -> (B, 26, 26, 128)
    patches = im2col_3x3(x).reshape(B * 26 * 26, 9)
    y = fused_matmul(patches, prep["w1"], prep["bn1_scale"], prep["bn1_bias"],
                     tm=256, tn=128, tk=16, out_dtype=jnp.bfloat16)
    y = y.reshape(B, 26, 26, 128)
    y = maxpool2x2(y)                                       # (B, 13, 13, 128)

    # conv2 (128->128, 3x3, no bias) + bn2 + relu -> (B, 11, 11, 128)
    patches = im2col_3x3(y).reshape(B * 11 * 11, 128 * 9)
    y = fused_matmul(patches, prep["w2"], prep["bn2_scale"], prep["bn2_bias"],
                     tm=128, tn=128, tk=1152, out_dtype=jnp.bfloat16)
    y = y.reshape(B, 11, 11, 128)
    y = maxpool2x2(y)                                       # (B, 5, 5, 128)
    # Dropout2d: identity in eval mode.

    # torch flatten order is NCHW -> (B, 128*5*5)
    flat = jnp.transpose(y, (0, 3, 1, 2)).reshape(B, 128 * 5 * 5)

    # fc1 (3200 -> 2048, no bias) + relu; Dropout: identity in eval mode.
    h = fused_matmul(flat, prep["fc1_w"],
                     tm=16, tn=512, tk=3200, out_dtype=jnp.bfloat16)

    # fc2 (2048 -> 100, no bias) + relu  (reference applies ReLU to fc2 output)
    logits = fused_matmul(h, prep["fc2_w"],
                          tm=16, tn=128, tk=2048,
                          out_dtype=jnp.float32, n_out=100)

    # TODO(synk): decoder is hydra-instantiated in the reference; treated as identity.
    # Every seq step is bit-identical in eval mode (encoder identity, dropout
    # identity), so torch.stack(out).sum(0) == seq_len * single_step.
    return (jnp.float32(seq_len) * logits).reshape(B, -1)   # (B, 100)


if __name__ == "__main__":
    key = jax.random.PRNGKey(0)
    k_param, k_data = jax.random.split(key)

    params = init_params(k_param)
    prep = prepare_params(params)

    seq_len = 2
    batch = 2
    # Spatial size 28x28 is dictated by the architecture (fc1 expects 128*5*5).
    x_in = jax.random.uniform(k_data, (batch, 1, 28, 28), jnp.float32)

    fwd = jax.jit(functools.partial(regular_model_mnist_forward, seq_len=seq_len))
    out = fwd(x_in, prep)
    out = jax.block_until_ready(out)

    assert out.shape == (batch, 100), out.shape
    assert bool(jnp.all(jnp.isfinite(out)))
    print("KERNEL_OK")
</pallas_src>

<mosaic_0001>
module attributes {stable_mosaic.version = 11 : i64} {
  func.func @_mm_affine_relu_kernel(%arg0: i32, %arg1: i32, %arg2: i32, %arg3: memref<256x16xbf16, #tpu.memory_space<vmem>>, %arg4: memref<16x128xbf16, #tpu.memory_space<vmem>>, %arg5: memref<1x128xf32, #tpu.memory_space<vmem>>, %arg6: memref<1x128xf32, #tpu.memory_space<vmem>>, %arg7: memref<256x128xbf16, #tpu.memory_space<vmem>>, %arg8: memref<256x128xf32, #tpu.memory_space<vmem>>) attributes {dimension_semantics = [#tpu.dimension_semantics<parallel>, #tpu.dimension_semantics<parallel>, #tpu.dimension_semantics<arbitrary>], iteration_bounds = array<i64: 6, 1, 1>, scalar_prefetch = 0 : i64, scratch_operands = 1 : i64, tpu.core_type = #tpu.core_type<tc>, window_params = [{transform_indices = @transform_0, window_bounds = array<i64: 256, 16>}, {transform_indices = @transform_1, window_bounds = array<i64: 16, 128>}, {transform_indices = @transform_2, window_bounds = array<i64: 1, 128>}, {transform_indices = @transform_3, window_bounds = array<i64: 1, 128>}, {transform_indices = @transform_4, window_bounds = array<i64: 256, 128>}]} {
    %c0_i32 = arith.constant 0 : i32
    %0 = arith.cmpi eq, %arg2, %c0_i32 : i32
    %1 = arith.extui %0 : i1 to i32
    %c0_i32_0 = arith.constant 0 : i32
    %2 = arith.cmpi ne, %1, %c0_i32_0 : i32
    scf.if %2 {
      %cst_10 = arith.constant 0.000000e+00 : f32
      %12 = vector.broadcast %cst_10 : f32 to vector<256x128xf32>
      %c0_11 = arith.constant 0 : index
      %c0_12 = arith.constant 0 : index
      %13 = vector.load %arg8[%c0_11, %c0_12] : memref<256x128xf32, #tpu.memory_space<vmem>>, vector<256x128xf32>
      tpu.vector_store %arg8[%c0_11, %c0_12], %12 {strides = array<i32>} : memref<256x128xf32, #tpu.memory_space<vmem>>, vector<256x128xf32>,
    } else {
    }
    %c0 = arith.constant 0 : index
    %c0_1 = arith.constant 0 : index
    %3 = vector.load %arg8[%c0, %c0_1] : memref<256x128xf32, #tpu.memory_space<vmem>>, vector<256x128xf32>
    %c0_2 = arith.constant 0 : index
    %c0_3 = arith.constant 0 : index
    %4 = vector.load %arg3[%c0_2, %c0_3] : memref<256x16xbf16, #tpu.memory_space<vmem>>, vector<256x16xbf16>
    %c0_4 = arith.constant 0 : index
    %c0_5 = arith.constant 0 : index
    %5 = vector.load %arg4[%c0_4, %c0_5] : memref<16x128xbf16, #tpu.memory_space<vmem>>, vector<16x128xbf16>
    %cst = arith.constant dense<0.000000e+00> : vector<256x128xf32>
    %6 = tpu.matmul %4, %5, %cst {dimension_numbers = #tpu.dot_dimension_numbers<[1], [0], [0], [1], [0, 0, 1, 1], [], []>} : vector<256x16xbf16>, vector<16x128xbf16>, vector<256x128xf32> -> vector<256x128xf32>
    %7 = arith.addf %3, %6 : vector<256x128xf32>
    %c0_6 = arith.constant 0 : index
    %c0_7 = arith.constant 0 : index
    %8 = vector.load %arg8[%c0_6, %c0_7] : memref<256x128xf32, #tpu.memory_space<vmem>>, vector<256x128xf32>
    tpu.vector_store %arg8[%c0_6, %c0_7], %7 {strides = array<i32>} : memref<256x128xf32, #tpu.memory_space<vmem>>, vector<256x128xf32>,
    %c0_i32_8 = arith.constant 0 : i32
    %9 = arith.cmpi eq, %arg2, %c0_i32_8 : i32
    %10 = arith.extui %9 : i1 to i32
    %c0_i32_9 = arith.constant 0 : i32
    %11 = arith.cmpi ne, %10, %c0_i32_9 : i32
    scf.if %11 {
      %c0_10 = arith.constant 0 : index
      %c0_11 = arith.constant 0 : index
      %12 = vector.load %arg8[%c0_10, %c0_11] : memref<256x128xf32, #tpu.memory_space<vmem>>, vector<256x128xf32>
      %c0_12 = arith.constant 0 : index
      %c0_13 = arith.constant 0 : index
      %13 = vector.load %arg5[%c0_12, %c0_13] : memref<1x128xf32, #tpu.memory_space<vmem>>, vector<1x128xf32>
      %14 = vector.broadcast %13 : vector<1x128xf32> to vector<256x128xf32>
      %15 = arith.mulf %12, %14 : vector<256x128xf32>
      %c0_14 = arith.constant 0 : index
      %c0_15 = arith.constant 0 : index
      %16 = vector.load %arg6[%c0_14, %c0_15] : memref<1x128xf32, #tpu.memory_space<vmem>>, vector<1x128xf32>
      %17 = vector.broadcast %16 : vector<1x128xf32> to vector<256x128xf32>
      %18 = arith.addf %15, %17 : vector<256x128xf32>
      %cst_16 = arith.constant 0.000000e+00 : f32
      %19 = vector.broadcast %cst_16 : f32 to vector<256x128xf32>
      %20 = arith.maximumf %18, %19 : vector<256x128xf32>
      %21 = arith.truncf %20 : vector<256x128xf32> to vector<256x128xbf16>
      %c0_17 = arith.constant 0 : index
      %c0_18 = arith.constant 0 : index
      %22 = vector.load %arg7[%c0_17, %c0_18] : memref<256x128xbf16, #tpu.memory_space<vmem>>, vector<256x128xbf16>
      tpu.vector_store %arg7[%c0_17, %c0_18], %21 {strides = array<i32>} : memref<256x128xbf16, #tpu.memory_space<vmem>>, vector<256x128xbf16>,
    } else {
    }
    return
  }
  func.func @transform_0(%arg0: i32, %arg1: i32, %arg2: i32) -> (i32, i32) {
    %c0_i32 = arith.constant 0 : i32
    return %arg0, %arg2 : i32, i32
  }
  func.func @transform_1(%arg0: i32, %arg1: i32, %arg2: i32) -> (i32, i32) {
    %c0_i32 = arith.constant 0 : i32
    return %arg2, %arg1 : i32, i32
  }
  func.func @transform_2(%arg0: i32, %arg1: i32, %arg2: i32) -> (i32, i32) {
    %c0_i32 = arith.constant 0 : i32
    %c0_i32_0 = arith.constant 0 : i32
    return %c0_i32, %arg1 : i32, i32
  }
  func.func @transform_3(%arg0: i32, %arg1: i32, %arg2: i32) -> (i32, i32) {
    %c0_i32 = arith.constant 0 : i32
    %c0_i32_0 = arith.constant 0 : i32
    return %c0_i32, %arg1 : i32, i32
  }
  func.func @transform_4(%arg0: i32, %arg1: i32, %arg2: i32) -> (i32, i32) {
    %c0_i32 = arith.constant 0 : i32
    return %arg0, %arg1 : i32, i32
  }
}

module attributes {stable_mosaic.version = 11 : i64} {
  func.func @_mm_affine_relu_kernel(%arg0: i32, %arg1: i32, %arg2: i32, %arg3: memref<128x1152xbf16, #tpu.memory_space<vmem>>, %arg4: memref<1152x128xbf16, #tpu.memory_space<vmem>>, %arg5: memref<1x128xf32, #tpu.memory_space<vmem>>, %arg6: memref<1x128xf32, #tpu.memory_space<vmem>>, %arg7: memref<128x128xbf16, #tpu.memory_space<vmem>>, %arg8: memref<128x128xf32, #tpu.memory_space<vmem>>) attributes {dimension_semantics = [#tpu.dimension_semantics<parallel>, #tpu.dimension_semantics<parallel>, #tpu.dimension_semantics<arbitrary>], iteration_bounds = array<i64: 2, 1, 1>, scalar_prefetch = 0 : i64, scratch_operands = 1 : i64, tpu.core_type = #tpu.core_type<tc>, window_params = [{transform_indices = @transform_0, window_bounds = array<i64: 128, 1152>}, {transform_indices = @transform_1, window_bounds = array<i64: 1152, 128>}, {transform_indices = @transform_2, window_bounds = array<i64: 1, 128>}, {transform_indices = @transform_3, window_bounds = array<i64: 1, 128>}, {transform_indices = @transform_4, window_bounds = array<i64: 128, 128>}]} {
    %c0_i32 = arith.constant 0 : i32
    %0 = arith.cmpi eq, %arg2, %c0_i32 : i32
    %1 = arith.extui %0 : i1 to i32
    %c0_i32_0 = arith.constant 0 : i32
    %2 = arith.cmpi ne, %1, %c0_i32_0 : i32
    scf.if %2 {
      %cst_10 = arith.constant 0.000000e+00 : f32
      %12 = vector.broadcast %cst_10 : f32 to vector<128x128xf32>
      %c0_11 = arith.constant 0 : index
      %c0_12 = arith.constant 0 : index
      %13 = vector.load %arg8[%c0_11, %c0_12] : memref<128x128xf32, #tpu.memory_space<vmem>>, vector<128x128xf32>
      tpu.vector_store %arg8[%c0_11, %c0_12], %12 {strides = array<i32>} : memref<128x128xf32, #tpu.memory_space<vmem>>, vector<128x128xf32>,
    } else {
    }
    %c0 = arith.constant 0 : index
    %c0_1 = arith.constant 0 : index
    %3 = vector.load %arg8[%c0, %c0_1] : memref<128x128xf32, #tpu.memory_space<vmem>>, vector<128x128xf32>
    %c0_2 = arith.constant 0 : index
    %c0_3 = arith.constant 0 : index
    %4 = vector.load %arg3[%c0_2, %c0_3] : memref<128x1152xbf16, #tpu.memory_space<vmem>>, vector<128x1152xbf16>
    %c0_4 = arith.constant 0 : index
    %c0_5 = arith.constant 0 : index
    %5 = vector.load %arg4[%c0_4, %c0_5] : memref<1152x128xbf16, #tpu.memory_space<vmem>>, vector<1152x128xbf16>
    %cst = arith.constant dense<0.000000e+00> : vector<128x128xf32>
    %6 = tpu.matmul %4, %5, %cst {dimension_numbers = #tpu.dot_dimension_numbers<[1], [0], [0], [1], [0, 0, 1, 1], [], []>} : vector<128x1152xbf16>, vector<1152x128xbf16>, vector<128x128xf32> -> vector<128x128xf32>
    %7 = arith.addf %3, %6 : vector<128x128xf32>
    %c0_6 = arith.constant 0 : index
    %c0_7 = arith.constant 0 : index
    %8 = vector.load %arg8[%c0_6, %c0_7] : memref<128x128xf32, #tpu.memory_space<vmem>>, vector<128x128xf32>
    tpu.vector_store %arg8[%c0_6, %c0_7], %7 {strides = array<i32>} : memref<128x128xf32, #tpu.memory_space<vmem>>, vector<128x128xf32>,
    %c0_i32_8 = arith.constant 0 : i32
    %9 = arith.cmpi eq, %arg2, %c0_i32_8 : i32
    %10 = arith.extui %9 : i1 to i32
    %c0_i32_9 = arith.constant 0 : i32
    %11 = arith.cmpi ne, %10, %c0_i32_9 : i32
    scf.if %11 {
      %c0_10 = arith.constant 0 : index
      %c0_11 = arith.constant 0 : index
      %12 = vector.load %arg8[%c0_10, %c0_11] : memref<128x128xf32, #tpu.memory_space<vmem>>, vector<128x128xf32>
      %c0_12 = arith.constant 0 : index
      %c0_13 = arith.constant 0 : index
      %13 = vector.load %arg5[%c0_12, %c0_13] : memref<1x128xf32, #tpu.memory_space<vmem>>, vector<1x128xf32>
      %14 = vector.broadcast %13 : vector<1x128xf32> to vector<128x128xf32>
      %15 = arith.mulf %12, %14 : vector<128x128xf32>
      %c0_14 = arith.constant 0 : index
      %c0_15 = arith.constant 0 : index
      %16 = vector.load %arg6[%c0_14, %c0_15] : memref<1x128xf32, #tpu.memory_space<vmem>>, vector<1x128xf32>
      %17 = vector.broadcast %16 : vector<1x128xf32> to vector<128x128xf32>
      %18 = arith.addf %15, %17 : vector<128x128xf32>
      %cst_16 = arith.constant 0.000000e+00 : f32
      %19 = vector.broadcast %cst_16 : f32 to vector<128x128xf32>
      %20 = arith.maximumf %18, %19 : vector<128x128xf32>
      %21 = arith.truncf %20 : vector<128x128xf32> to vector<128x128xbf16>
      %c0_17 = arith.constant 0 : index
      %c0_18 = arith.constant 0 : index
      %22 = vector.load %arg7[%c0_17, %c0_18] : memref<128x128xbf16, #tpu.memory_space<vmem>>, vector<128x128xbf16>
      tpu.vector_store %arg7[%c0_17, %c0_18], %21 {strides = array<i32>} : memref<128x128xbf16, #tpu.memory_space<vmem>>, vector<128x128xbf16>,
    } else {
    }
    return
  }
  func.func @transform_0(%arg0: i32, %arg1: i32, %arg2: i32) -> (i32, i32) {
    %c0_i32 = arith.constant 0 : i32
    return %arg0, %arg2 : i32, i32
  }
  func.func @transform_1(%arg0: i32, %arg1: i32, %arg2: i32) -> (i32, i32) {
    %c0_i32 = arith.constant 0 : i32
    return %arg2, %arg1 : i32, i32
  }
  func.func @transform_2(%arg0: i32, %arg1: i32, %arg2: i32) -> (i32, i32) {
    %c0_i32 = arith.constant 0 : i32
    %c0_i32_0 = arith.constant 0 : i32
    return %c0_i32, %arg1 : i32, i32
  }
  func.func @transform_3(%arg0: i32, %arg1: i32, %arg2: i32) -> (i32, i32) {
    %c0_i32 = arith.constant 0 : i32
    %c0_i32_0 = arith.constant 0 : i32
    return %c0_i32, %arg1 : i32, i32
  }
  func.func @transform_4(%arg0: i32, %arg1: i32, %arg2: i32) -> (i32, i32) {
    %c0_i32 = arith.constant 0 : i32
    return %arg0, %arg1 : i32, i32
  }
}

module attributes {stable_mosaic.version = 11 : i64} {
  func.func @_mm_relu_kernel(%arg0: i32, %arg1: i32, %arg2: i32, %arg3: memref<16x3200xbf16, #tpu.memory_space<vmem>>, %arg4: memref<3200x512xbf16, #tpu.memory_space<vmem>>, %arg5: memref<16x512xbf16, #tpu.memory_space<vmem>>, %arg6: memref<16x512xf32, #tpu.memory_space<vmem>>) attributes {dimension_semantics = [#tpu.dimension_semantics<parallel>, #tpu.dimension_semantics<parallel>, #tpu.dimension_semantics<arbitrary>], iteration_bounds = array<i64: 1, 4, 1>, scalar_prefetch = 0 : i64, scratch_operands = 1 : i64, tpu.core_type = #tpu.core_type<tc>, window_params = [{transform_indices = @transform_0, window_bounds = array<i64: 16, 3200>}, {transform_indices = @transform_1, window_bounds = array<i64: 3200, 512>}, {transform_indices = @transform_2, window_bounds = array<i64: 16, 512>}]} {
    %c0_i32 = arith.constant 0 : i32
    %0 = arith.cmpi eq, %arg2, %c0_i32 : i32
    %1 = arith.extui %0 : i1 to i32
    %c0_i32_0 = arith.constant 0 : i32
    %2 = arith.cmpi ne, %1, %c0_i32_0 : i32
    scf.if %2 {
      %cst_10 = arith.constant 0.000000e+00 : f32
      %12 = vector.broadcast %cst_10 : f32 to vector<16x512xf32>
      %c0_11 = arith.constant 0 : index
      %c0_12 = arith.constant 0 : index
      %13 = vector.load %arg6[%c0_11, %c0_12] : memref<16x512xf32, #tpu.memory_space<vmem>>, vector<16x512xf32>
      tpu.vector_store %arg6[%c0_11, %c0_12], %12 {strides = array<i32>} : memref<16x512xf32, #tpu.memory_space<vmem>>, vector<16x512xf32>,
    } else {
    }
    %c0 = arith.constant 0 : index
    %c0_1 = arith.constant 0 : index
    %3 = vector.load %arg6[%c0, %c0_1] : memref<16x512xf32, #tpu.memory_space<vmem>>, vector<16x512xf32>
    %c0_2 = arith.constant 0 : index
    %c0_3 = arith.constant 0 : index
    %4 = vector.load %arg3[%c0_2, %c0_3] : memref<16x3200xbf16, #tpu.memory_space<vmem>>, vector<16x3200xbf16>
    %c0_4 = arith.constant 0 : index
    %c0_5 = arith.constant 0 : index
    %5 = vector.load %arg4[%c0_4, %c0_5] : memref<3200x512xbf16, #tpu.memory_space<vmem>>, vector<3200x512xbf16>
    %cst = arith.constant dense<0.000000e+00> : vector<16x512xf32>
    %6 = tpu.matmul %4, %5, %cst {dimension_numbers = #tpu.dot_dimension_numbers<[1], [0], [0], [1], [0, 0, 1, 1], [], []>} : vector<16x3200xbf16>, vector<3200x512xbf16>, vector<16x512xf32> -> vector<16x512xf32>
    %7 = arith.addf %3, %6 : vector<16x512xf32>
    %c0_6 = arith.constant 0 : index
    %c0_7 = arith.constant 0 : index
    %8 = vector.load %arg6[%c0_6, %c0_7] : memref<16x512xf32, #tpu.memory_space<vmem>>, vector<16x512xf32>
    tpu.vector_store %arg6[%c0_6, %c0_7], %7 {strides = array<i32>} : memref<16x512xf32, #tpu.memory_space<vmem>>, vector<16x512xf32>,
    %c0_i32_8 = arith.constant 0 : i32
    %9 = arith.cmpi eq, %arg2, %c0_i32_8 : i32
    %10 = arith.extui %9 : i1 to i32
    %c0_i32_9 = arith.constant 0 : i32
    %11 = arith.cmpi ne, %10, %c0_i32_9 : i32
    scf.if %11 {
      %c0_10 = arith.constant 0 : index
      %c0_11 = arith.constant 0 : index
      %12 = vector.load %arg6[%c0_10, %c0_11] : memref<16x512xf32, #tpu.memory_space<vmem>>, vector<16x512xf32>
      %cst_12 = arith.constant 0.000000e+00 : f32
      %13 = vector.broadcast %cst_12 : f32 to vector<16x512xf32>
      %14 = arith.maximumf %12, %13 : vector<16x512xf32>
      %15 = arith.truncf %14 : vector<16x512xf32> to vector<16x512xbf16>
      %c0_13 = arith.constant 0 : index
      %c0_14 = arith.constant 0 : index
      %16 = vector.load %arg5[%c0_13, %c0_14] : memref<16x512xbf16, #tpu.memory_space<vmem>>, vector<16x512xbf16>
      tpu.vector_store %arg5[%c0_13, %c0_14], %15 {strides = array<i32>} : memref<16x512xbf16, #tpu.memory_space<vmem>>, vector<16x512xbf16>,
    } else {
    }
    return
  }
  func.func @transform_0(%arg0: i32, %arg1: i32, %arg2: i32) -> (i32, i32) {
    %c0_i32 = arith.constant 0 : i32
    return %arg0, %arg2 : i32, i32
  }
  func.func @transform_1(%arg0: i32, %arg1: i32, %arg2: i32) -> (i32, i32) {
    %c0_i32 = arith.constant 0 : i32
    return %arg2, %arg1 : i32, i32
  }
  func.func @transform_2(%arg0: i32, %arg1: i32, %arg2: i32) -> (i32, i32) {
    %c0_i32 = arith.constant 0 : i32
    return %arg0, %arg1 : i32, i32
  }
}

module attributes {stable_mosaic.version = 11 : i64} {
  func.func @_mm_relu_kernel(%arg0: i32, %arg1: i32, %arg2: i32, %arg3: memref<16x2048xbf16, #tpu.memory_space<vmem>>, %arg4: memref<2048x128xbf16, #tpu.memory_space<vmem>>, %arg5: memref<16x128xf32, #tpu.memory_space<vmem>>, %arg6: memref<16x128xf32, #tpu.memory_space<vmem>>) attributes {dimension_semantics = [#tpu.dimension_semantics<parallel>, #tpu.dimension_semantics<parallel>, #tpu.dimension_semantics<arbitrary>], iteration_bounds = array<i64: 1, 1, 1>, scalar_prefetch = 0 : i64, scratch_operands = 1 : i64, tpu.core_type = #tpu.core_type<tc>, window_params = [{transform_indices = @transform_0, window_bounds = array<i64: 16, 2048>}, {transform_indices = @transform_1, window_bounds = array<i64: 2048, 128>}, {transform_indices = @transform_2, window_bounds = array<i64: 16, 128>}]} {
    %c0_i32 = arith.constant 0 : i32
    %0 = arith.cmpi eq, %arg2, %c0_i32 : i32
    %1 = arith.extui %0 : i1 to i32
    %c0_i32_0 = arith.constant 0 : i32
    %2 = arith.cmpi ne, %1, %c0_i32_0 : i32
    scf.if %2 {
      %cst_10 = arith.constant 0.000000e+00 : f32
      %12 = vector.broadcast %cst_10 : f32 to vector<16x128xf32>
      %c0_11 = arith.constant 0 : index
      %c0_12 = arith.constant 0 : index
      %13 = vector.load %arg6[%c0_11, %c0_12] : memref<16x128xf32, #tpu.memory_space<vmem>>, vector<16x128xf32>
      tpu.vector_store %arg6[%c0_11, %c0_12], %12 {strides = array<i32>} : memref<16x128xf32, #tpu.memory_space<vmem>>, vector<16x128xf32>,
    } else {
    }
    %c0 = arith.constant 0 : index
    %c0_1 = arith.constant 0 : index
    %3 = vector.load %arg6[%c0, %c0_1] : memref<16x128xf32, #tpu.memory_space<vmem>>, vector<16x128xf32>
    %c0_2 = arith.constant 0 : index
    %c0_3 = arith.constant 0 : index
    %4 = vector.load %arg3[%c0_2, %c0_3] : memref<16x2048xbf16, #tpu.memory_space<vmem>>, vector<16x2048xbf16>
    %c0_4 = arith.constant 0 : index
    %c0_5 = arith.constant 0 : index
    %5 = vector.load %arg4[%c0_4, %c0_5] : memref<2048x128xbf16, #tpu.memory_space<vmem>>, vector<2048x128xbf16>
    %cst = arith.constant dense<0.000000e+00> : vector<16x128xf32>
    %6 = tpu.matmul %4, %5, %cst {dimension_numbers = #tpu.dot_dimension_numbers<[1], [0], [0], [1], [0, 0, 1, 1], [], []>} : vector<16x2048xbf16>, vector<2048x128xbf16>, vector<16x128xf32> -> vector<16x128xf32>
    %7 = arith.addf %3, %6 : vector<16x128xf32>
    %c0_6 = arith.constant 0 : index
    %c0_7 = arith.constant 0 : index
    %8 = vector.load %arg6[%c0_6, %c0_7] : memref<16x128xf32, #tpu.memory_space<vmem>>, vector<16x128xf32>
    tpu.vector_store %arg6[%c0_6, %c0_7], %7 {strides = array<i32>} : memref<16x128xf32, #tpu.memory_space<vmem>>, vector<16x128xf32>,
    %c0_i32_8 = arith.constant 0 : i32
    %9 = arith.cmpi eq, %arg2, %c0_i32_8 : i32
    %10 = arith.extui %9 : i1 to i32
    %c0_i32_9 = arith.constant 0 : i32
    %11 = arith.cmpi ne, %10, %c0_i32_9 : i32
    scf.if %11 {
      %c0_10 = arith.constant 0 : index
      %c0_11 = arith.constant 0 : index
      %12 = vector.load %arg6[%c0_10, %c0_11] : memref<16x128xf32, #tpu.memory_space<vmem>>, vector<16x128xf32>
      %cst_12 = arith.constant 0.000000e+00 : f32
      %13 = vector.broadcast %cst_12 : f32 to vector<16x128xf32>
      %14 = arith.maximumf %12, %13 : vector<16x128xf32>
      %c0_13 = arith.constant 0 : index
      %c0_14 = arith.constant 0 : index
      %15 = vector.load %arg5[%c0_13, %c0_14] : memref<16x128xf32, #tpu.memory_space<vmem>>, vector<16x128xf32>
      tpu.vector_store %arg5[%c0_13, %c0_14], %14 {strides = array<i32>} : memref<16x128xf32, #tpu.memory_space<vmem>>, vector<16x128xf32>,
    } else {
    }
    return
  }
  func.func @transform_0(%arg0: i32, %arg1: i32, %arg2: i32) -> (i32, i32) {
    %c0_i32 = arith.constant 0 : i32
    return %arg0, %arg2 : i32, i32
  }
  func.func @transform_1(%arg0: i32, %arg1: i32, %arg2: i32) -> (i32, i32) {
    %c0_i32 = arith.constant 0 : i32
    return %arg2, %arg1 : i32, i32
  }
  func.func @transform_2(%arg0: i32, %arg1: i32, %arg2: i32) -> (i32, i32) {
    %c0_i32 = arith.constant 0 : i32
    return %arg0, %arg1 : i32, i32
  }
}

</mosaic_0001>

<bundles_post_ra>
// kernel: regular_model_mnist_forward.4
= control target key start
LH: loop header
LB: loop body
LE: loop exit
PB: predicated region body
PF: predicated region fallthrough
CT: control target
= control target key end

     0   :  { %9 = vsyncpa [#allocation4], 0  ;;  %s1653_s0 = inlined_call_operand.vmem [shape: bf16[1536,16], index: 0, kind: input, shape index: {}]   ;;  %s1654_s1 = inlined_call_operand.hbm [shape: bf16[16,128], index: 1, kind: input, shape index: {}]   ;;  %s1655_s2 = inlined_call_operand.hbm [shape: f32[1,128], index: 2, kind: input, shape index: {}]   ;;  %s1656_s3 = inlined_call_operand.hbm [shape: f32[1,128], index: 3, kind: input, shape index: {}]   ;;  %s1657_s4 = inlined_call_operand.vmem [shape: bf16[1536,128], index: 4, kind: output, shape index: {}]  }
   0x1   :  { %10 = vsyncpa [#allocation6], 0  ;;  %s1448_s15 = smov 0   ;;  %s1450_s16 = smov 0  }
   0x2   :  { %s1452_s17 = smov 0  }
   0x3 LB: > { %s207_s20 = sshll.u32 %s1655_s2, 4  ;;  %s1021_s21 = sadd.s32 4294967295, %s1416_s17   ;;  %s1416_s17 = sphi %s1452_s17, %s16_s17   ;;  %s1412_s16 = sphi %s1450_s16, %s1662_s16   ;;  %s1408_s15 = sphi %s1448_s15, %s1661_s15   ;;  %s208_s20 = int_to_ptr.hbm [resolvable:$true] %s207_s20 }
   0x4   : > { %p1023_p0 = scmp.ge.s32.totalorder %s1416_s17, 1  ;;  %p176_p1 = scmp.lt.s32.totalorder %s1416_s17, 7 }
   0x5   : > { %p1469_p2 = scmp.eq.s32.totalorder %s1021_s21, 0  ;;  %s1418_s24 = smov [#allocation5]  }
   0x6   : > { %p1473_p3 = pnand %p1023_p0, %p176_p1  ;;  %s209_s25 = sshll.u32 %s1418_s24, 4  ;;  %s210_s25 = int_to_ptr.vmem [resolvable:$true] %s209_s25 }
   0x7   : > { %s35_s27 = sadd.s32 1, %s1412_s16  ;;  %s191_s30 = sshll.u32 %s1654_s1, 4  ;;  %s192_s30 = int_to_ptr.hbm [resolvable:$true] %s191_s30 }
   0x8   : > { %p1249_p4 = pneg %p1473_p3  ;;  %p37_p6 = scmp.ge.s32.totalorder %s35_s27, 6 }
   0x9   : > { %s1419_s5 = smov [#allocation3]   ;;  %s220_s9 = sshll.u32 %s1656_s3, 4  ;;  %s221_s9 = int_to_ptr.hbm [resolvable:$true] %s220_s9 }
   0xa   : > { %p1481_p5 = pnand %p1469_p2, %p1249_p4  ;;  %s1664_s27 = smov (%p37_p6, %s35_s27), 0 }
   0xb   : > { %s193_s6 = sshll.u32 %s1419_s5, 4  ;;  %s1420_s10 = smov 64   ;;  %s194_s6 = int_to_ptr.vmem [resolvable:$true] %s193_s6 }
   0xc   : > { %1255 = dma.hbm_to_vmem [thread:$0]  (!%p1481_p5), %s208_s20, 16, %s210_s25, [#allocation6]  }
   0xd   : > { %s1421_s11 = smov 4   ;;  %s1422_s12 = smov [#allocation7]  }
   0xe   : > { %1252 = dma.hbm_to_vmem [thread:$0]  (!%p1481_p5), %s192_s30, 128, %s194_s6, [#allocation4], %s1420_s10, %s1420_s10, %s1421_s11  }
   0xf   : > { %s222_s13 = sshll.u32 %s1422_s12, 4  ;;  %247 = sbr.rel (%p1473_p3) target bundleno = 230 (0xe6), region = 36  ;;  %s223_s13 = int_to_ptr.vmem [resolvable:$true] %s222_s13 }
  0x10   : > { %1258 = dma.hbm_to_vmem [thread:$0]  (!%p1481_p5), %s221_s9, 16, %s223_s13, [#allocation6]  }
  0x14   : > { %1399 = dma.done.wait (%p1469_p2), [#allocation4], 128  }
  0x15   : > { %1401 = vsyncadd (%p1469_p2), [#allocation4], 4294967168 }
  0x16   : > { %1403 = dma.done.wait (%p1469_p2), [#allocation6], 32  }
  0x17   : > { %1405 = vsyncadd (%p1469_p2), [#allocation6], 4294967264  ;;  %s1032_s14 = sshll.u32 %s1408_s15, 5  ;;  %v1138_v0 = vld [vmem:[#allocation3] sm:$0xff]  ;;  %vm498_vm0 = vcmask 130048  }
  0x18   : > { %p291_p7 = scmp.lt.s32.totalorder %s1032_s14, 191  ;;  %554 = vmatpush.bf16.msra.mxu0 %v1138_v0  ;;  %1234 = vmatpush.bf16.msra.mxu1 %v1138_v0  ;;  %v1553_v19 = vld [vmem:[#allocation5] ss:$0 sm:$0xff]  ;;  %v1556_v21 = vld [vmem:[#allocation7] ss:$0 sm:$0xff] }
  0x19   : > { %1235 = vmatpush.bf16.msra.mxu2 %v1138_v0  ;;  %1236 = vmatpush.bf16.msra.mxu3 %v1138_v0 }
  0x1a   : > { %s1666_s14 = smov (!%p291_p7, %s1032_s14), 191 }
  0x1b   : > { %s1033_s18 = sshll.u32 %s1666_s14, 2 }
  0x1c   : > { %s1519_s21 = scalar_lea.vmem %s1653_s0, %s1033_s18  ;;  %s1572_s23 = scalar_lea.vmem %s1657_s4, %s1033_s18 }
  0x1d   : > { %v1122_v1 = vld [vmem:[%s1519_s21] sm:$0xff]  ;;  %v1123_v5 = vld [vmem:[%s1519_s21 + $0x8] sm:$0xff]  ;;  %v1124_v9 = vld [vmem:[%s1519_s21 + $0x10] sm:$0xff] }
  0x1e   : > { %v1126_v2 = vld [vmem:[%s1519_s21 + $0x20] sm:$0xff]  ;;  %1104 = vmatmul.msk.bf16.vlgmr.msra.gmra.mxu0 %vm498_vm0, %v1122_v1  ;;  %v1127_v6 = vld [vmem:[%s1519_s21 + $0x28] sm:$0xff]  ;;  %v1128_v10 = vld [vmem:[%s1519_s21 + $0x30] sm:$0xff] }
  0x1f   : > { %v1130_v3 = vld [vmem:[%s1519_s21 + $0x40] sm:$0xff]  ;;  %1108 = vmatmul.msk.bf16.vlgmr.msra.gmra.mxu1 %vm498_vm0, %v1126_v2  ;;  %v1131_v7 = vld [vmem:[%s1519_s21 + $0x48] sm:$0xff]  ;;  %v1132_v11 = vld [vmem:[%s1519_s21 + $0x50] sm:$0xff] }
  0x20   : > { %v1134_v4 = vld [vmem:[%s1519_s21 + $0x60] sm:$0xff]  ;;  %1112 = vmatmul.msk.bf16.vlgmr.msra.gmra.mxu2 %vm498_vm0, %v1130_v3  ;;  %v1135_v8 = vld [vmem:[%s1519_s21 + $0x68] sm:$0xff]  ;;  %v1136_v12 = vld [vmem:[%s1519_s21 + $0x70] sm:$0xff] }
  0x21   : > { %1116 = vmatmul.msk.bf16.vlgmr.msra.gmra.mxu3 %vm498_vm0, %v1134_v4  ;;  %v1125_v13 = vld [vmem:[%s1519_s21 + $0x18] sm:$0xff] }
  0x22   : > { %v1129_v14 = vld [vmem:[%s1519_s21 + $0x38] sm:$0xff] }
  0x23   : > { %v1133_v15 = vld [vmem:[%s1519_s21 + $0x58] sm:$0xff] }
  0x24   : > { %v1137_v16 = vld [vmem:[%s1519_s21 + $0x78] sm:$0xff] }
  0x2e   : > { %1105 = vmatmul.msk.bf16.gmra.mxu0 %vm498_vm0, %v1123_v5 }
  0x2f   : > { %1109 = vmatmul.msk.bf16.gmra.mxu1 %vm498_vm0, %v1127_v6 }
  0x30   : > { %1113 = vmatmul.msk.bf16.gmra.mxu2 %vm498_vm0, %v1131_v7 }
  0x31   : > { %1117 = vmatmul.msk.bf16.gmra.mxu3 %vm498_vm0, %v1135_v8 }
  0x3e   : > { %1106 = vmatmul.msk.bf16.gmra.mxu0 %vm498_vm0, %v1124_v9 }
  0x3f   : > { %1110 = vmatmul.msk.bf16.gmra.mxu1 %vm498_vm0, %v1128_v10 }
  0x40   : > { %1114 = vmatmul.msk.bf16.gmra.mxu2 %vm498_vm0, %v1132_v11 }
  0x41   : > { %1118 = vmatmul.msk.bf16.gmra.mxu3 %vm498_vm0, %v1136_v12 }
  0x4e   : > { %1107 = vmatmul.msk.bf16.gmra.mxu0 %vm498_vm0, %v1125_v13 }
  0x4f   : > { %1111 = vmatmul.msk.bf16.gmra.mxu1 %vm498_vm0, %v1129_v14 }
  0x50   : > { %1115 = vmatmul.msk.bf16.gmra.mxu2 %vm498_vm0, %v1133_v15 }
  0x51   : > { %1119 = vmatmul.msk.bf16.gmra.mxu3 %vm498_vm0, %v1137_v16 }
  0x9b   : > { %v556_v17 = vpop.f32.mrf.mxu0 }
  0x9c   : > { %v576_v18 = vpop.f32.mrf.mxu1  ;;  %v739_v20 = vmul.f32 %v1553_v19, %v556_v17 }
  0x9d   : > { %v747_v22 = vmul.f32 %v1553_v19, %v576_v18 }
  0x9e   : > { %v775_v27 = vadd.f32 %v1556_v21, %v739_v20 }
  0x9f   : > { %v783_v28 = vadd.f32 %v1556_v21, %v747_v22 }
  0xa0   : > { %v807_v35 = vmax.f32 %v775_v27, 0.0 }
  0xa1   : > { %v815_v36 = vmax.f32 %v783_v28, 0.0 }
  0xa3   : > { %v596_v23 = vpop.f32.mrf.mxu2  ;;  %v558_v25 = vpop.f32.mrf.mxu0 }
  0xa4   : > { %v616_v24 = vpop.f32.mrf.mxu3  ;;  %v578_v26 = vpop.f32.mrf.mxu1  ;;  %v740_v29 = vmul.f32 %v1553_v19, %v558_v25  ;;  %v755_v33 = vmul.f32 %v1553_v19, %v596_v23 }
  0xa5   : > { %v748_v30 = vmul.f32 %v1553_v19, %v578_v26  ;;  %v763_v34 = vmul.f32 %v1553_v19, %v616_v24 }
  0xa6   : > { %v776_v31 = vadd.f32 %v1556_v21, %v740_v29  ;;  %v791_v43 = vadd.f32 %v1556_v21, %v755_v33 }
  0xa7   : > { %v784_v32 = vadd.f32 %v1556_v21, %v748_v30  ;;  %v799_v44 = vadd.f32 %v1556_v21, %v763_v34 }
  0xa8   : > { %v808_v37 = vmax.f32 %v776_v31, 0.0  ;;  %v823_v51 = vmax.f32 %v791_v43, 0.0 }
  0xa9   : > { %v816_v38 = vmax.f32 %v784_v32, 0.0  ;;  %v831_v52 = vmax.f32 %v799_v44, 0.0 }
  0xaa   : > { %v1142_v39 = vpack.c.bf16 %v808_v37, %v807_v35 }
  0xab   : > { %v1162_v40 = vpack.c.bf16 %v816_v38, %v815_v36  ;;  %v598_v41 = vpop.f32.mrf.mxu2  ;;  %v561_v47 = vpop.f32.mrf.mxu0 }
  0xac   : > { %v618_v42 = vpop.f32.mrf.mxu3  ;;  %v756_v45 = vmul.f32 %v1553_v19, %v598_v41  ;;  %v581_v48 = vpop.f32.mrf.mxu1  ;;  %1143 = vst [vmem:[%s1572_s23] sm:$0xff] %v1142_v39   ;;  %v741_v55 = vmul.f32 %v1553_v19, %v561_v47 }
  0xad   : > { %v764_v46 = vmul.f32 %v1553_v19, %v618_v42  ;;  %1222 = vst [vmem:[%s1572_s23 + $0x20] sm:$0xff] %v1162_v40   ;;  %v749_v56 = vmul.f32 %v1553_v19, %v581_v48 }
  0xae   : > { %v792_v49 = vadd.f32 %v1556_v21, %v756_v45  ;;  %v777_v63 = vadd.f32 %v1556_v21, %v741_v55 }
  0xaf   : > { %v800_v50 = vadd.f32 %v1556_v21, %v764_v46  ;;  %v785_v0 = vadd.f32 %v1556_v21, %v749_v56 }
  0xb0   : > { %v824_v53 = vmax.f32 %v792_v49, 0.0  ;;  %v809_v7 = vmax.f32 %v777_v63, 0.0 }
  0xb1   : > { %v832_v54 = vmax.f32 %v800_v50, 0.0  ;;  %v817_v8 = vmax.f32 %v785_v0, 0.0 }
  0xb2   : > { %v1182_v57 = vpack.c.bf16 %v824_v53, %v823_v51 }
  0xb3   : > { %v1202_v58 = vpack.c.bf16 %v832_v54, %v831_v52  ;;  %v601_v59 = vpop.f32.mrf.mxu2  ;;  %v563_v61 = vpop.f32.mrf.mxu0 }
  0xb4   : > { %v621_v60 = vpop.f32.mrf.mxu3  ;;  %1226 = vst [vmem:[%s1572_s23 + $0x40] sm:$0xff] %v1182_v57   ;;  %v583_v62 = vpop.f32.mrf.mxu1  ;;  %v742_v1 = vmul.f32 %v1553_v19, %v563_v61  ;;  %v757_v5 = vmul.f32 %v1553_v19, %v601_v59 }
  0xb5   : > { %1230 = vst [vmem:[%s1572_s23 + $0x60] sm:$0xff] %v1202_v58   ;;  %v750_v2 = vmul.f32 %v1553_v19, %v583_v62  ;;  %v765_v6 = vmul.f32 %v1553_v19, %v621_v60 }
  0xb6   : > { %v778_v3 = vadd.f32 %v1556_v21, %v742_v1  ;;  %v793_v15 = vadd.f32 %v1556_v21, %v757_v5 }
  0xb7   : > { %v786_v4 = vadd.f32 %v1556_v21, %v750_v2  ;;  %v801_v16 = vadd.f32 %v1556_v21, %v765_v6 }
  0xb8   : > { %v810_v9 = vmax.f32 %v778_v3, 0.0  ;;  %v825_v25 = vmax.f32 %v793_v15, 0.0 }
  0xb9   : > { %v818_v10 = vmax.f32 %v786_v4, 0.0  ;;  %v833_v26 = vmax.f32 %v801_v16, 0.0 }
  0xba   : > { %v1147_v11 = vpack.c.bf16 %v810_v9, %v809_v7 }
  0xbb   : > { %v1167_v12 = vpack.c.bf16 %v818_v10, %v817_v8  ;;  %v603_v13 = vpop.f32.mrf.mxu2  ;;  %v566_v20 = vpop.f32.mrf.mxu0 }
  0xbc   : > { %v623_v14 = vpop.f32.mrf.mxu3  ;;  %v758_v17 = vmul.f32 %v1553_v19, %v603_v13  ;;  %v586_v22 = vpop.f32.mrf.mxu1  ;;  %1219 = vst [vmem:[%s1572_s23 + $0x8] sm:$0xff] %v1147_v11   ;;  %v743_v29 = vmul.f32 %v1553_v19, %v566_v20 }
  0xbd   : > { %v766_v18 = vmul.f32 %v1553_v19, %v623_v14  ;;  %1223 = vst [vmem:[%s1572_s23 + $0x28] sm:$0xff] %v1167_v12   ;;  %v751_v30 = vmul.f32 %v1553_v19, %v586_v22 }
  0xbe   : > { %v794_v23 = vadd.f32 %v1556_v21, %v758_v17  ;;  %v779_v37 = vadd.f32 %v1556_v21, %v743_v29 }
  0xbf   : > { %v802_v24 = vadd.f32 %v1556_v21, %v766_v18  ;;  %v787_v38 = vadd.f32 %v1556_v21, %v751_v30 }
  0xc0   : > { %v826_v27 = vmax.f32 %v794_v23, 0.0  ;;  %v811_v45 = vmax.f32 %v779_v37, 0.0 }
  0xc1   : > { %v834_v28 = vmax.f32 %v802_v24, 0.0  ;;  %v819_v46 = vmax.f32 %v787_v38, 0.0 }
  0xc2   : > { %v1187_v31 = vpack.c.bf16 %v826_v27, %v825_v25 }
  0xc3   : > { %v1207_v32 = vpack.c.bf16 %v834_v28, %v833_v26  ;;  %v606_v33 = vpop.f32.mrf.mxu2  ;;  %v568_v35 = vpop.f32.mrf.mxu0 }
  0xc4   : > { %v626_v34 = vpop.f32.mrf.mxu3  ;;  %1227 = vst [vmem:[%s1572_s23 + $0x48] sm:$0xff] %v1187_v31   ;;  %v588_v36 = vpop.f32.mrf.mxu1  ;;  %v744_v39 = vmul.f32 %v1553_v19, %v568_v35  ;;  %v759_v43 = vmul.f32 %v1553_v19, %v606_v33 }
  0xc5   : > { %1231 = vst [vmem:[%s1572_s23 + $0x68] sm:$0xff] %v1207_v32   ;;  %v752_v40 = vmul.f32 %v1553_v19, %v588_v36  ;;  %v767_v44 = vmul.f32 %v1553_v19, %v626_v34 }
  0xc6   : > { %v780_v41 = vadd.f32 %v1556_v21, %v744_v39  ;;  %v795_v53 = vadd.f32 %v1556_v21, %v759_v43 }
  0xc7   : > { %v788_v42 = vadd.f32 %v1556_v21, %v752_v40  ;;  %v803_v54 = vadd.f32 %v1556_v21, %v767_v44 }
  0xc8   : > { %v812_v47 = vmax.f32 %v780_v41, 0.0  ;;  %v827_v61 = vmax.f32 %v795_v53, 0.0 }
  0xc9   : > { %v820_v48 = vmax.f32 %v788_v42, 0.0  ;;  %v835_v62 = vmax.f32 %v803_v54, 0.0 }
  0xca   : > { %v1152_v49 = vpack.c.bf16 %v812_v47, %v811_v45 }
  0xcb   : > { %v1172_v50 = vpack.c.bf16 %v820_v48, %v819_v46  ;;  %v608_v51 = vpop.f32.mrf.mxu2  ;;  %v571_v57 = vpop.f32.mrf.mxu0 }
  0xcc   : > { %v628_v52 = vpop.f32.mrf.mxu3  ;;  %v760_v55 = vmul.f32 %v1553_v19, %v608_v51  ;;  %v591_v58 = vpop.f32.mrf.mxu1  ;;  %1220 = vst [vmem:[%s1572_s23 + $0x10] sm:$0xff] %v1152_v49   ;;  %v745_v1 = vmul.f32 %v1553_v19, %v571_v57 }
  0xcd   : > { %v768_v56 = vmul.f32 %v1553_v19, %v628_v52  ;;  %1224 = vst [vmem:[%s1572_s23 + $0x30] sm:$0xff] %v1172_v50   ;;  %v753_v2 = vmul.f32 %v1553_v19, %v591_v58 }
  0xce   : > { %v796_v59 = vadd.f32 %v1556_v21, %v760_v55  ;;  %v781_v9 = vadd.f32 %v1556_v21, %v745_v1 }
  0xcf   : > { %v804_v60 = vadd.f32 %v1556_v21, %v768_v56  ;;  %v789_v10 = vadd.f32 %v1556_v21, %v753_v2 }
  0xd0   : > { %v828_v63 = vmax.f32 %v796_v59, 0.0  ;;  %v813_v17 = vmax.f32 %v781_v9, 0.0 }
  0xd1   : > { %v836_v0 = vmax.f32 %v804_v60, 0.0  ;;  %v821_v18 = vmax.f32 %v789_v10, 0.0 }
  0xd2   : > { %v1192_v3 = vpack.c.bf16 %v828_v63, %v827_v61 }
  0xd3   : > { %v1212_v4 = vpack.c.bf16 %v836_v0, %v835_v62  ;;  %v611_v5 = vpop.f32.mrf.mxu2  ;;  %v573_v7 = vpop.f32.mrf.mxu0 }
  0xd4   : > { %v631_v6 = vpop.f32.mrf.mxu3  ;;  %1228 = vst [vmem:[%s1572_s23 + $0x50] sm:$0xff] %v1192_v3   ;;  %v593_v8 = vpop.f32.mrf.mxu1  ;;  %v746_v11 = vmul.f32 %v1553_v19, %v573_v7  ;;  %v761_v15 = vmul.f32 %v1553_v19, %v611_v5 }
  0xd5   : > { %1232 = vst [vmem:[%s1572_s23 + $0x70] sm:$0xff] %v1212_v4   ;;  %v754_v12 = vmul.f32 %v1553_v19, %v593_v8  ;;  %v769_v16 = vmul.f32 %v1553_v19, %v631_v6 }
  0xd6   : > { %v782_v13 = vadd.f32 %v1556_v21, %v746_v11  ;;  %v797_v27 = vadd.f32 %v1556_v21, %v761_v15 }
  0xd7   : > { %v790_v14 = vadd.f32 %v1556_v21, %v754_v12  ;;  %v805_v28 = vadd.f32 %v1556_v21, %v769_v16 }
  0xd8   : > { %v814_v20 = vmax.f32 %v782_v13, 0.0  ;;  %v829_v33 = vmax.f32 %v797_v27, 0.0 }
  0xd9   : > { %v822_v22 = vmax.f32 %v790_v14, 0.0  ;;  %v837_v34 = vmax.f32 %v805_v28, 0.0 }
  0xda   : > { %v1157_v23 = vpack.c.bf16 %v814_v20, %v813_v17 }
  0xdb   : > { %v1177_v24 = vpack.c.bf16 %v822_v22, %v821_v18  ;;  %v613_v25 = vpop.f32.mrf.mxu2 }
  0xdc   : > { %v633_v26 = vpop.f32.mrf.mxu3  ;;  %v762_v29 = vmul.f32 %v1553_v19, %v613_v25  ;;  %1221 = vst [vmem:[%s1572_s23 + $0x18] sm:$0xff] %v1157_v23  }
  0xdd   : > { %v770_v30 = vmul.f32 %v1553_v19, %v633_v26  ;;  %1225 = vst [vmem:[%s1572_s23 + $0x38] sm:$0xff] %v1177_v24  }
  0xde   : > { %v798_v31 = vadd.f32 %v1556_v21, %v762_v29 }
  0xdf   : > { %v806_v32 = vadd.f32 %v1556_v21, %v770_v30 }
  0xe0   : > { %v830_v35 = vmax.f32 %v798_v31, 0.0 }
  0xe1   : > { %v838_v36 = vmax.f32 %v806_v32, 0.0 }
  0xe2   : > { %v1197_v37 = vpack.c.bf16 %v830_v35, %v829_v33 }
  0xe3   : > { %v1217_v38 = vpack.c.bf16 %v838_v36, %v837_v34 }
  0xe4   : > { %1229 = vst [vmem:[%s1572_s23 + $0x58] sm:$0xff] %v1197_v37  }
  0xe5   : > { %1233 = vst [vmem:[%s1572_s23 + $0x78] sm:$0xff] %v1217_v38  }
  0xe6 PF: > { %s16_s17 = sadd.s32 1, %s1416_s17   ;;  %s1661_s15 = smov %s1412_s16 }
  0xe7   : > { %p13_p8 = scmp.ge.s32.totalorder %s16_s17, 8   ;;  %s1662_s16 = smov %s1664_s27 }
  0xe9   :  { %15 = sbr.rel (!%p13_p8) target bundleno = 3 (0x3), region = 90 }
  0xee   :  { %931 = vsyncpa [#allocation4], 1 }
  0xef   :  { %933 = vsyncpa [#allocation4 + $0x1], 1 }
  0xf0   :  { %934 = vsyncpa [#allocation6], 1 }

// kernel: regular_model_mnist_forward.5
= control target key start
LH: loop header
LB: loop body
LE: loop exit
PB: predicated region body
PF: predicated region fallthrough
CT: control target
= control target key end

     0   :  { %s2955_s15 = smov 0   ;;  %s2957_s16 = smov 0   ;;  %s3493_s0 = inlined_call_operand.vmem [shape: bf16[256,1152], index: 0, kind: input, shape index: {}]   ;;  %s3494_s1 = inlined_call_operand.vmem [shape: bf16[1152,128], index: 1, kind: input, shape index: {}]   ;;  %s3495_s2 = inlined_call_operand.vmem [shape: f32[1,128], index: 2, kind: input, shape index: {}]   ;;  %s3496_s3 = inlined_call_operand.vmem [shape: f32[1,128], index: 3, kind: input, shape index: {}]   ;;  %s3497_s4 = inlined_call_operand.vmem [shape: bf16[256,128], index: 4, kind: output, shape index: {}]  }
   0x1   :  { %s2959_s17 = smov 0  }
   0x2 LB: > { %s33_s18 = sadd.s32 1, %s2924_s16  ;;  %p2081_p0 = scmp.ge.s32.totalorder %s2928_s17, 1  ;;  %s2928_s17 = sphi %s2959_s17, %s14_s17   ;;  %s2924_s16 = sphi %s2957_s16, %s3499_s16   ;;  %s2920_s15 = sphi %s2955_s15, %s3498_s15  }
   0x3   : > { %p35_p1 = scmp.ge.s32.totalorder %s33_s18, 2  ;;  %p224_p2 = scmp.lt.s32.totalorder %s2928_s17, 3 }
   0x5   : > { %s3501_s18 = smov (%p35_p1, %s33_s18), 0  ;;  %p225_p3 = pnand %p2081_p0, %p224_p2 }
   0x6   : > { %s2082_s25 = sshll.u32 (!%p225_p3), %s2920_s15, 4 }
   0x7   : > { %228 = sbr.rel (%p225_p3) target bundleno = 471 (0x1d7), region = 36  ;;  %p274_p4 = scmp.lt.s32.totalorder (!%p225_p3), %s2082_s25, 31 }
   0xc   : > { %v2743_v0 = vld [vmem:[%s3494_s1 + $0x38] sm:$0xff]  ;;  %v2742_v1 = vld [vmem:[%s3494_s1 + $0x30] sm:$0xff]  ;;  %v2741_v2 = vld [vmem:[%s3494_s1 + $0x28] sm:$0xff]  ;;  %s3503_s25 = smov (!%p274_p4, %s2082_s25), 31 }
   0xd   : > { %2855 = vmatpush.bf16.msra.mxu1 %v2743_v0  ;;  %2856 = vmatpush.bf16.msra.mxu2 %v2743_v0  ;;  %v2740_v3 = vld [vmem:[%s3494_s1 + $0x20] sm:$0xff]  ;;  %v2739_v4 = vld [vmem:[%s3494_s1 + $0x18] sm:$0xff]  ;;  %v2738_v5 = vld [vmem:[%s3494_s1 + $0x10] sm:$0xff]  ;;  %s2879_s6 = smul.u32 36, %s3503_s25  ;;  %s2085_s22 = sshll.u32 %s3503_s25, 2 }
   0xe   : > { %2857 = vmatpush.bf16.msra.mxu3 %v2743_v0  ;;  %1368 = vmatpush.bf16.msra.mxu0 %v2743_v0  ;;  %v2737_v6 = vld [vmem:[%s3494_s1 + $0x8] sm:$0xff]  ;;  %v2736_v7 = vld [vmem:[%s3494_s1] sm:$0xff]  ;;  %v2759_v16 = vld [vmem:[%s3494_s1 + $0xb8] sm:$0xff]  ;;  %s3433_s26 = scalar_lea.vmem %s3497_s4, %s2085_s22 }
   0xf   : > { %s3003_s11 = scalar_lea.vmem %s3493_s0, %s2879_s6  ;;  %v2751_v17 = vld [vmem:[%s3494_s1 + $0x78] sm:$0xff]  ;;  %v2758_v24 = vld [vmem:[%s3494_s1 + $0xb0] sm:$0xff]  ;;  %v2757_v28 = vld [vmem:[%s3494_s1 + $0xa8] sm:$0xff] }
  0x10   : > { %v2160_v8 = vld [vmem:[%s3003_s11 + $0x90] sm:$0xf]  ;;  %v2686_v9 = vld [vmem:[%s3003_s11 + $0xb0] sm:$0xf0]  ;;  %v2232_v10 = vld [vmem:[%s3003_s11 + $0x120] sm:$0xf] }
  0x11   : > { %2858 = vmatpush.bf16.msra.mxu1 %v2742_v1  ;;  %2859 = vmatpush.bf16.msra.mxu2 %v2742_v1  ;;  %v2704_v11 = vld [vmem:[%s3003_s11 + $0x140] sm:$0xf0]  ;;  %v2304_v12 = vld [vmem:[%s3003_s11 + $0x1b0] sm:$0xf]  ;;  %v2722_v13 = vld [vmem:[%s3003_s11 + $0x1d0] sm:$0xf0]  ;;  %v2161_v18 = vor.u32 %v2686_v9, %v2160_v8 }
  0x12   : > { %2860 = vmatpush.bf16.msra.mxu3 %v2742_v1  ;;  %1369 = vmatpush.bf16.msra.mxu0 %v2742_v1  ;;  %v2088_v14 = vld [vmem:[%s3003_s11] sm:$0xf]  ;;  %v2668_v15 = vld [vmem:[%s3003_s11 + $0x20] sm:$0xf0]  ;;  %v2233_v19 = vor.u32 %v2704_v11, %v2232_v10  ;;  %v2305_v20 = vor.u32 %v2722_v13, %v2304_v12  ;;  %v2767_v22 = vld [vmem:[%s3494_s1 + $0xf8] sm:$0xff] }
  0x13   : > { %v2089_v21 = vor.u32 %v2668_v15, %v2088_v14  ;;  %v2775_v23 = vld [vmem:[%s3494_s1 + $0x138] sm:$0xff]  ;;  %v2750_v25 = vld [vmem:[%s3494_s1 + $0x70] sm:$0xff]  ;;  %v2749_v29 = vld [vmem:[%s3494_s1 + $0x68] sm:$0xff] }
  0x14   : > { %v2766_v26 = vld [vmem:[%s3494_s1 + $0xf0] sm:$0xff]  ;;  %v2765_v30 = vld [vmem:[%s3494_s1 + $0xe8] sm:$0xff]  ;;  %v2756_v32 = vld [vmem:[%s3494_s1 + $0xa0] sm:$0xff] }
  0x15   : > { %2861 = vmatpush.bf16.msra.mxu1 %v2741_v2  ;;  %2862 = vmatpush.bf16.msra.mxu2 %v2741_v2  ;;  %v2774_v27 = vld [vmem:[%s3494_s1 + $0x130] sm:$0xff]  ;;  %v2773_v31 = vld [vmem:[%s3494_s1 + $0x128] sm:$0xff]  ;;  %v2748_v33 = vld [vmem:[%s3494_s1 + $0x60] sm:$0xff] }
  0x16   : > { %2863 = vmatpush.bf16.msra.mxu3 %v2741_v2  ;;  %1370 = vmatpush.bf16.msra.mxu0 %v2741_v2  ;;  %v2764_v34 = vld [vmem:[%s3494_s1 + $0xe0] sm:$0xff]  ;;  %v2196_v36 = vld [vmem:[%s3003_s11 + $0xd8] sm:$0xf]  ;;  %v2695_v37 = vld [vmem:[%s3003_s11 + $0xf8] sm:$0xf0] }
  0x17   : > { %v2772_v35 = vld [vmem:[%s3494_s1 + $0x120] sm:$0xff]  ;;  %v2268_v38 = vld [vmem:[%s3003_s11 + $0x168] sm:$0xf]  ;;  %v2713_v39 = vld [vmem:[%s3003_s11 + $0x188] sm:$0xf0]  ;;  %v2197_v46 = vor.u32 %v2695_v37, %v2196_v36 }
  0x18   : > { %v2340_v40 = vld [vmem:[%s3003_s11 + $0x1f8] sm:$0xf]  ;;  %v2731_v41 = vld [vmem:[%s3003_s11 + $0x218] sm:$0xf0]  ;;  %v2124_v42 = vld [vmem:[%s3003_s11 + $0x48] sm:$0xf]  ;;  %v2269_v47 = vor.u32 %v2713_v39, %v2268_v38 }
  0x19   : > { %2864 = vmatpush.bf16.msra.mxu1 %v2740_v3  ;;  %2865 = vmatpush.bf16.msra.mxu2 %v2740_v3  ;;  %v2677_v43 = vld [vmem:[%s3003_s11 + $0x68] sm:$0xf0]  ;;  %v2755_v44 = vld [vmem:[%s3494_s1 + $0x98] sm:$0xff]  ;;  %v2341_v48 = vor.u32 %v2731_v41, %v2340_v40  ;;  %v2754_v52 = vld [vmem:[%s3494_s1 + $0x90] sm:$0xff] }
  0x1a   : > { %2866 = vmatpush.bf16.msra.mxu3 %v2740_v3  ;;  %1371 = vmatpush.bf16.msra.mxu0 %v2740_v3  ;;  %v2747_v45 = vld [vmem:[%s3494_s1 + $0x58] sm:$0xff]  ;;  %v2125_v49 = vor.u32 %v2677_v43, %v2124_v42  ;;  %v2746_v53 = vld [vmem:[%s3494_s1 + $0x50] sm:$0xff]  ;;  %v2753_v56 = vld [vmem:[%s3494_s1 + $0x88] sm:$0xff] }
  0x1b   : > { %v2763_v50 = vld [vmem:[%s3494_s1 + $0xd8] sm:$0xff]  ;;  %v2762_v54 = vld [vmem:[%s3494_s1 + $0xd0] sm:$0xff]  ;;  %v2745_v57 = vld [vmem:[%s3494_s1 + $0x48] sm:$0xff] }
  0x1c   : > { %v2771_v51 = vld [vmem:[%s3494_s1 + $0x118] sm:$0xff]  ;;  %v2770_v55 = vld [vmem:[%s3494_s1 + $0x110] sm:$0xff]  ;;  %v2761_v58 = vld [vmem:[%s3494_s1 + $0xc8] sm:$0xff] }
  0x1d   : > { %2867 = vmatpush.bf16.msra.mxu1 %v2739_v4  ;;  %2868 = vmatpush.bf16.msra.mxu2 %v2739_v4  ;;  %v2769_v59 = vld [vmem:[%s3494_s1 + $0x108] sm:$0xff]  ;;  %v2752_v60 = vld [vmem:[%s3494_s1 + $0x80] sm:$0xff]  ;;  %v2791_v2 = vld [vmem:[%s3494_s1 + $0x1b8] sm:$0xff] }
  0x1e   : > { %2869 = vmatpush.bf16.msra.mxu3 %v2739_v4  ;;  %1372 = vmatpush.bf16.msra.mxu0 %v2739_v4  ;;  %v2744_v61 = vld [vmem:[%s3494_s1 + $0x40] sm:$0xff]  ;;  %v2090_v1 = vld [vmem:[%s3003_s11 + $0x24] sm:$0xf0]  ;;  %v2783_v3 = vld [vmem:[%s3494_s1 + $0x178] sm:$0xff] }
  0x1f   : > { %v2664_v62 = vld [vmem:[%s3003_s11 + $0x4] sm:$0xf]  ;;  %v2096_v4 = vld [vmem:[%s3003_s11 + $0x8] sm:$0xf]  ;;  %v2104_v8 = vld [vmem:[%s3003_s11 + $0x10] sm:$0xf] }
  0x20   : > { %v2760_v63 = vld [vmem:[%s3494_s1 + $0xc0] sm:$0xff]  ;;  %v2670_v9 = vld [vmem:[%s3003_s11 + $0x30] sm:$0xf0]  ;;  %v2799_v10 = vld [vmem:[%s3494_s1 + $0x1f8] sm:$0xff]  ;;  %v2093_v12 = vor.u32 %v2664_v62, %v2090_v1 }
  0x21   : > { %2870 = vmatpush.bf16.msra.mxu1 %v2738_v5  ;;  %2871 = vmatpush.bf16.msra.mxu2 %v2738_v5  ;;  %v2768_v0 = vld [vmem:[%s3494_s1 + $0x100] sm:$0xff]  ;;  %v2807_v11 = vld [vmem:[%s3494_s1 + $0x238] sm:$0xff]  ;;  %v2105_v15 = vor.u32 %v2670_v9, %v2104_v8  ;;  %v2682_v40 = vld [vmem:[%s3003_s11 + $0x94] sm:$0xf] }
  0x22   : > { %2872 = vmatpush.bf16.msra.mxu3 %v2738_v5  ;;  %1373 = vmatpush.bf16.msra.mxu0 %v2738_v5  ;;  %v2669_v5 = vld [vmem:[%s3003_s11 + $0x28] sm:$0xf0]  ;;  %v2788_v36 = vld [vmem:[%s3494_s1 + $0x1a0] sm:$0xff]  ;;  %v2162_v41 = vld [vmem:[%s3003_s11 + $0xb4] sm:$0xf0] }
  0x23   : > { %v2097_v13 = vor.u32 %v2669_v5, %v2096_v4  ;;  %v2796_v37 = vld [vmem:[%s3494_s1 + $0x1e0] sm:$0xff]  ;;  %v2168_v42 = vld [vmem:[%s3003_s11 + $0x98] sm:$0xf]  ;;  %v2687_v43 = vld [vmem:[%s3003_s11 + $0xb8] sm:$0xf0] }
  0x24   : > { %v2780_v38 = vld [vmem:[%s3494_s1 + $0x160] sm:$0xff]  ;;  %v2212_v62 = vld [vmem:[%s3003_s11 + $0xe8] sm:$0xf]  ;;  %v2786_v4 = vld [vmem:[%s3494_s1 + $0x190] sm:$0xff] }
  0x25   : > { %2873 = vmatpush.bf16.msra.mxu1 %v2737_v6  ;;  %2874 = vmatpush.bf16.msra.mxu2 %v2737_v6  ;;  %v2804_v39 = vld [vmem:[%s3494_s1 + $0x220] sm:$0xff]  ;;  %v2794_v5 = vld [vmem:[%s3494_s1 + $0x1d0] sm:$0xff]  ;;  %v2234_v9 = vld [vmem:[%s3003_s11 + $0x144] sm:$0xf0] }
  0x26   : > { %2875 = vmatpush.bf16.msra.mxu3 %v2737_v6  ;;  %1374 = vmatpush.bf16.msra.mxu0 %v2737_v6  ;;  %v2665_v6 = vld [vmem:[%s3003_s11 + $0xc] sm:$0xf]  ;;  %v2700_v8 = vld [vmem:[%s3003_s11 + $0x124] sm:$0xf] }
  0x29   : > { %2876 = vmatpush.bf16.msra.mxu1 %v2736_v7  ;;  %2877 = vmatpush.bf16.msra.mxu2 %v2736_v7 }
  0x2a   : > { %2878 = vmatpush.bf16.msra.mxu3 %v2736_v7  ;;  %1375 = vmatpush.bf16.msra.mxu0 %v2736_v7  ;;  %v2098_v7 = vld [vmem:[%s3003_s11 + $0x2c] sm:$0xf0] }
  0x2b   : > { %v2101_v14 = vor.u32 %v2665_v6, %v2098_v7  ;;  %v2778_v6 = vld [vmem:[%s3494_s1 + $0x150] sm:$0xff] }
  0x2c   : > { %1386 = vmatmul.bf16.vlgmr.msra.gmra.mxu1 %v2161_v18  ;;  %1396 = vmatmul.bf16.vlgmr.msra.gmra.mxu2 %v2233_v19  ;;  %v2798_v18 = vld [vmem:[%s3494_s1 + $0x1f0] sm:$0xff] }
  0x2d   : > { %1466 = vmatpush.bf16.msrb.mxu2 %v2759_v16  ;;  %1417 = vmatpush.bf16.msrb.mxu1 %v2751_v17  ;;  %v2790_v16 = vld [vmem:[%s3494_s1 + $0x1b0] sm:$0xff] }
  0x2e   : > { %1406 = vmatmul.bf16.vlgmr.msra.gmra.mxu3 %v2305_v20  ;;  %1376 = vmatmul.bf16.vlgmr.msra.gmra.mxu0 %v2089_v21  ;;  %v2782_v17 = vld [vmem:[%s3494_s1 + $0x170] sm:$0xff]  ;;  %v2789_v20 = vld [vmem:[%s3494_s1 + $0x1a8] sm:$0xff] }
  0x2f   : > { %1515 = vmatpush.bf16.msrb.mxu3 %v2767_v22  ;;  %1564 = vmatpush.bf16.msrb.mxu0 %v2775_v23  ;;  %v2806_v19 = vld [vmem:[%s3494_s1 + $0x230] sm:$0xff]  ;;  %v2781_v21 = vld [vmem:[%s3494_s1 + $0x168] sm:$0xff] }
  0x30   : > { %v2797_v22 = vld [vmem:[%s3494_s1 + $0x1e8] sm:$0xff]  ;;  %v2802_v7 = vld [vmem:[%s3494_s1 + $0x210] sm:$0xff] }
  0x31   : > { %1467 = vmatpush.bf16.msrb.mxu2 %v2758_v24  ;;  %1418 = vmatpush.bf16.msrb.mxu1 %v2750_v25  ;;  %v2805_v23 = vld [vmem:[%s3494_s1 + $0x228] sm:$0xff]  ;;  %v2126_v25 = vld [vmem:[%s3003_s11 + $0x6c] sm:$0xf0] }
  0x32   : > { %v2673_v24 = vld [vmem:[%s3003_s11 + $0x4c] sm:$0xf] }
  0x33   : > { %1516 = vmatpush.bf16.msrb.mxu3 %v2766_v26  ;;  %1565 = vmatpush.bf16.msrb.mxu0 %v2774_v27  ;;  %v2132_v26 = vld [vmem:[%s3003_s11 + $0x50] sm:$0xf]  ;;  %v2678_v27 = vld [vmem:[%s3003_s11 + $0x70] sm:$0xf0] }
  0x35   : > { %1468 = vmatpush.bf16.msrb.mxu2 %v2757_v28  ;;  %1419 = vmatpush.bf16.msrb.mxu1 %v2749_v29  ;;  %v2674_v28 = vld [vmem:[%s3003_s11 + $0x54] sm:$0xf]  ;;  %v2134_v29 = vld [vmem:[%s3003_s11 + $0x74] sm:$0xf0] }
  0x37   : > { %1517 = vmatpush.bf16.msrb.mxu3 %v2765_v30  ;;  %1566 = vmatpush.bf16.msrb.mxu0 %v2773_v31  ;;  %v2140_v30 = vld [vmem:[%s3003_s11 + $0x58] sm:$0xf]  ;;  %v2679_v31 = vld [vmem:[%s3003_s11 + $0x78] sm:$0xf0] }
  0x39   : > { %1469 = vmatpush.bf16.msrb.mxu2 %v2756_v32  ;;  %1420 = vmatpush.bf16.msrb.mxu1 %v2748_v33  ;;  %v2129_v32 = vor.u32 %v2673_v24, %v2126_v25  ;;  %v2133_v33 = vor.u32 %v2678_v27, %v2132_v26  ;;  %v2709_v24 = vld [vmem:[%s3003_s11 + $0x16c] sm:$0xf]  ;;  %v2270_v25 = vld [vmem:[%s3003_s11 + $0x18c] sm:$0xf0]  ;;  %v2714_v27 = vld [vmem:[%s3003_s11 + $0x190] sm:$0xf0] }
  0x3a   : > { %v2276_v26 = vld [vmem:[%s3003_s11 + $0x170] sm:$0xf] }
  0x3b   : > { %1518 = vmatpush.bf16.msrb.mxu3 %v2764_v34  ;;  %1567 = vmatpush.bf16.msrb.mxu0 %v2772_v35  ;;  %v2137_v34 = vor.u32 %v2674_v28, %v2134_v29  ;;  %v2141_v35 = vor.u32 %v2679_v31, %v2140_v30  ;;  %v2710_v28 = vld [vmem:[%s3003_s11 + $0x174] sm:$0xf]  ;;  %v2278_v29 = vld [vmem:[%s3003_s11 + $0x194] sm:$0xf0]  ;;  %v2715_v31 = vld [vmem:[%s3003_s11 + $0x198] sm:$0xf0] }
  0x3c   : > { %1391 = vmatmul.bf16.gmra.mxu1 %v2197_v46  ;;  %1401 = vmatmul.bf16.gmra.mxu2 %v2269_v47  ;;  %v2176_v46 = vld [vmem:[%s3003_s11 + $0xa0] sm:$0xf]  ;;  %v2688_v47 = vld [vmem:[%s3003_s11 + $0xc0] sm:$0xf0]  ;;  %v2284_v30 = vld [vmem:[%s3003_s11 + $0x178] sm:$0xf] }
  0x3d   : > { %1470 = vmatpush.bf16.msrb.mxu2 %v2755_v44  ;;  %1421 = vmatpush.bf16.msrb.mxu1 %v2747_v45  ;;  %v2683_v44 = vld [vmem:[%s3003_s11 + $0x9c] sm:$0xf]  ;;  %v2170_v45 = vld [vmem:[%s3003_s11 + $0xbc] sm:$0xf0] }
  0x3e   : > { %1411 = vmatmul.bf16.gmra.mxu3 %v2341_v48  ;;  %1381 = vmatmul.bf16.gmra.mxu0 %v2125_v49  ;;  %v2165_v48 = vor.u32 %v2682_v40, %v2162_v41  ;;  %v2169_v49 = vor.u32 %v2687_v43, %v2168_v42  ;;  %v2718_v40 = vld [vmem:[%s3003_s11 + $0x1b4] sm:$0xf]  ;;  %v2306_v41 = vld [vmem:[%s3003_s11 + $0x1d4] sm:$0xf0]  ;;  %v2723_v43 = vld [vmem:[%s3003_s11 + $0x1d8] sm:$0xf0] }
  0x3f   : > { %1519 = vmatpush.bf16.msrb.mxu3 %v2763_v50  ;;  %1568 = vmatpush.bf16.msrb.mxu0 %v2771_v51  ;;  %v2173_v50 = vor.u32 %v2683_v44, %v2170_v45  ;;  %v2177_v51 = vor.u32 %v2688_v47, %v2176_v46  ;;  %v2312_v42 = vld [vmem:[%s3003_s11 + $0x1b8] sm:$0xf]  ;;  %v2719_v44 = vld [vmem:[%s3003_s11 + $0x1bc] sm:$0xf]  ;;  %v2314_v45 = vld [vmem:[%s3003_s11 + $0x1dc] sm:$0xf0] }
  0x40   : > { %v2320_v46 = vld [vmem:[%s3003_s11 + $0x1c0] sm:$0xf]  ;;  %v2724_v47 = vld [vmem:[%s3003_s11 + $0x1e0] sm:$0xf0] }
  0x41   : > { %1471 = vmatpush.bf16.msrb.mxu2 %v2754_v52  ;;  %1422 = vmatpush.bf16.msrb.mxu1 %v2746_v53  ;;  %v2787_v52 = vld [vmem:[%s3494_s1 + $0x198] sm:$0xff] }
  0x42   : > { %v2795_v53 = vld [vmem:[%s3494_s1 + $0x1d8] sm:$0xff] }
  0x43   : > { %1520 = vmatpush.bf16.msrb.mxu3 %v2762_v54  ;;  %1569 = vmatpush.bf16.msrb.mxu0 %v2770_v55  ;;  %v2779_v54 = vld [vmem:[%s3494_s1 + $0x158] sm:$0xff] }
  0x44   : > { %v2803_v55 = vld [vmem:[%s3494_s1 + $0x218] sm:$0xff] }
  0x45   : > { %1472 = vmatpush.bf16.msrb.mxu2 %v2753_v56  ;;  %1423 = vmatpush.bf16.msrb.mxu1 %v2745_v57  ;;  %v2691_v56 = vld [vmem:[%s3003_s11 + $0xdc] sm:$0xf]  ;;  %v2198_v57 = vld [vmem:[%s3003_s11 + $0xfc] sm:$0xf0] }
  0x47   : > { %1521 = vmatpush.bf16.msrb.mxu3 %v2761_v58  ;;  %1570 = vmatpush.bf16.msrb.mxu0 %v2769_v59  ;;  %v2204_v58 = vld [vmem:[%s3003_s11 + $0xe0] sm:$0xf]  ;;  %v2696_v59 = vld [vmem:[%s3003_s11 + $0x100] sm:$0xf0] }
  0x48   : > { %v2205_v1 = vor.u32 %v2696_v59, %v2204_v58  ;;  %v2727_v58 = vld [vmem:[%s3003_s11 + $0x1fc] sm:$0xf]  ;;  %v2342_v59 = vld [vmem:[%s3003_s11 + $0x21c] sm:$0xf0] }
  0x49   : > { %1473 = vmatpush.bf16.msrb.mxu2 %v2752_v60  ;;  %1424 = vmatpush.bf16.msrb.mxu1 %v2744_v61  ;;  %v2692_v60 = vld [vmem:[%s3003_s11 + $0xe4] sm:$0xf]  ;;  %v2206_v61 = vld [vmem:[%s3003_s11 + $0x104] sm:$0xf0] }
  0x4b   : > { %1522 = vmatpush.bf16.msrb.mxu3 %v2760_v63  ;;  %1571 = vmatpush.bf16.msrb.mxu0 %v2768_v0  ;;  %v2697_v63 = vld [vmem:[%s3003_s11 + $0x108] sm:$0xf0]  ;;  %v2201_v0 = vor.u32 %v2691_v56, %v2198_v57 }
  0x4c   : > { %1425 = vmatmul.bf16.vlgmr.msrb.gmra.mxu1 %v2093_v12  ;;  %1474 = vmatmul.bf16.vlgmr.msrb.gmra.mxu2 %v2097_v13  ;;  %v2701_v12 = vld [vmem:[%s3003_s11 + $0x12c] sm:$0xf]  ;;  %v2242_v13 = vld [vmem:[%s3003_s11 + $0x14c] sm:$0xf0] }
  0x4d   : > { %1662 = vmatpush.bf16.msra.mxu2 %v2791_v2  ;;  %1613 = vmatpush.bf16.msra.mxu1 %v2783_v3  ;;  %v2209_v2 = vor.u32 %v2692_v60, %v2206_v61  ;;  %v2213_v3 = vor.u32 %v2697_v63, %v2212_v62  ;;  %v2348_v60 = vld [vmem:[%s3003_s11 + $0x200] sm:$0xf]  ;;  %v2732_v61 = vld [vmem:[%s3003_s11 + $0x220] sm:$0xf0]  ;;  %v2350_v63 = vld [vmem:[%s3003_s11 + $0x224] sm:$0xf0] }
  0x4e   : > { %1523 = vmatmul.bf16.vlgmr.msrb.gmra.mxu3 %v2101_v14  ;;  %1572 = vmatmul.bf16.vlgmr.msrb.gmra.mxu0 %v2105_v15  ;;  %v2248_v14 = vld [vmem:[%s3003_s11 + $0x130] sm:$0xf]  ;;  %v2706_v15 = vld [vmem:[%s3003_s11 + $0x150] sm:$0xf0]  ;;  %v2728_v62 = vld [vmem:[%s3003_s11 + $0x204] sm:$0xf] }
  0x4f   : > { %1711 = vmatpush.bf16.msra.mxu3 %v2799_v10  ;;  %1760 = vmatpush.bf16.msra.mxu0 %v2807_v11  ;;  %v2240_v10 = vld [vmem:[%s3003_s11 + $0x128] sm:$0xf]  ;;  %v2705_v11 = vld [vmem:[%s3003_s11 + $0x148] sm:$0xf0] }
  0x51   : > { %1663 = vmatpush.bf16.msra.mxu2 %v2790_v16  ;;  %1614 = vmatpush.bf16.msra.mxu1 %v2782_v17  ;;  %v2237_v16 = vor.u32 %v2700_v8, %v2234_v9  ;;  %v2241_v17 = vor.u32 %v2705_v11, %v2240_v10 }
  0x53   : > { %1712 = vmatpush.bf16.msra.mxu3 %v2798_v18  ;;  %1761 = vmatpush.bf16.msra.mxu0 %v2806_v19  ;;  %v2245_v18 = vor.u32 %v2701_v12, %v2242_v13  ;;  %v2249_v19 = vor.u32 %v2706_v15, %v2248_v14  ;;  %v2666_v14 = vld [vmem:[%s3003_s11 + $0x14] sm:$0xf]  ;;  %v2106_v15 = vld [vmem:[%s3003_s11 + $0x34] sm:$0xf0] }
  0x55   : > { %1664 = vmatpush.bf16.msra.mxu2 %v2789_v20  ;;  %1615 = vmatpush.bf16.msra.mxu1 %v2781_v21  ;;  %v2785_v20 = vld [vmem:[%s3494_s1 + $0x188] sm:$0xff] }
  0x56   : > { %v2793_v21 = vld [vmem:[%s3494_s1 + $0x1c8] sm:$0xff] }
  0x57   : > { %1713 = vmatpush.bf16.msra.mxu3 %v2797_v22  ;;  %1762 = vmatpush.bf16.msra.mxu0 %v2805_v23  ;;  %v2777_v22 = vld [vmem:[%s3494_s1 + $0x148] sm:$0xff] }
  0x58   : > { %v2801_v23 = vld [vmem:[%s3494_s1 + $0x208] sm:$0xff] }
  0x59   : > { %1665 = vmatpush.bf16.msra.mxu2 %v2788_v36  ;;  %1616 = vmatpush.bf16.msra.mxu1 %v2780_v38  ;;  %v2784_v36 = vld [vmem:[%s3494_s1 + $0x180] sm:$0xff] }
  0x5a   : > { %v2776_v38 = vld [vmem:[%s3494_s1 + $0x140] sm:$0xff] }
  0x5b   : > { %1714 = vmatpush.bf16.msra.mxu3 %v2796_v37  ;;  %1763 = vmatpush.bf16.msra.mxu0 %v2804_v39  ;;  %v2792_v37 = vld [vmem:[%s3494_s1 + $0x1c0] sm:$0xff] }
  0x5c   : > { %1430 = vmatmul.bf16.gmra.mxu1 %v2129_v32  ;;  %1479 = vmatmul.bf16.gmra.mxu2 %v2133_v33  ;;  %v2273_v32 = vor.u32 %v2709_v24, %v2270_v25  ;;  %v2277_v33 = vor.u32 %v2714_v27, %v2276_v26  ;;  %v2800_v39 = vld [vmem:[%s3494_s1 + $0x200] sm:$0xff]  ;;  %v2109_v24 = vor.u32 %v2666_v14, %v2106_v15  ;;  %v2178_v14 = vld [vmem:[%s3003_s11 + $0xc4] sm:$0xf0] }
  0x5d   : > { %1666 = vmatpush.bf16.msra.mxu2 %v2787_v52  ;;  %1617 = vmatpush.bf16.msra.mxu1 %v2779_v54  ;;  %v2321_v52 = vor.u32 %v2724_v47, %v2320_v46  ;;  %v2681_v46 = vld [vmem:[%s3003_s11 + $0x88] sm:$0xf0] }
  0x5e   : > { %1528 = vmatmul.bf16.gmra.mxu3 %v2137_v34  ;;  %1577 = vmatmul.bf16.gmra.mxu0 %v2141_v35  ;;  %v2281_v34 = vor.u32 %v2710_v28, %v2278_v29  ;;  %v2285_v35 = vor.u32 %v2715_v31, %v2284_v30 }
  0x5f   : > { %1715 = vmatpush.bf16.msra.mxu3 %v2795_v53  ;;  %1764 = vmatpush.bf16.msra.mxu0 %v2803_v55 }
  0x61   : > { %1667 = vmatpush.bf16.msra.mxu2 %v2786_v4  ;;  %1618 = vmatpush.bf16.msra.mxu1 %v2778_v6  ;;  %v2345_v4 = vor.u32 %v2727_v58, %v2342_v59 }
  0x63   : > { %1716 = vmatpush.bf16.msra.mxu3 %v2794_v5  ;;  %1765 = vmatpush.bf16.msra.mxu0 %v2802_v7  ;;  %v2349_v5 = vor.u32 %v2732_v61, %v2348_v60  ;;  %v2353_v7 = vor.u32 %v2728_v62, %v2350_v63 }
  0x65   : > { %1668 = vmatpush.bf16.msra.mxu2 %v2785_v20  ;;  %1619 = vmatpush.bf16.msra.mxu1 %v2777_v22  ;;  %v2120_v20 = vld [vmem:[%s3003_s11 + $0x20] sm:$0xf] }
  0x67   : > { %1717 = vmatpush.bf16.msra.mxu3 %v2793_v21  ;;  %1766 = vmatpush.bf16.msra.mxu0 %v2801_v23  ;;  %v2672_v21 = vld [vmem:[%s3003_s11 + $0x40] sm:$0xf0] }
  0x68   : > { %v2121_v28 = vor.u32 %v2672_v21, %v2120_v20  ;;  %v2192_v20 = vld [vmem:[%s3003_s11 + $0xb0] sm:$0xf]  ;;  %v2690_v21 = vld [vmem:[%s3003_s11 + $0xd0] sm:$0xf0] }
  0x69   : > { %1669 = vmatpush.bf16.msra.mxu2 %v2784_v36  ;;  %1620 = vmatpush.bf16.msra.mxu1 %v2776_v38  ;;  %v2675_v38 = vld [vmem:[%s3003_s11 + $0x5c] sm:$0xf] }
  0x6b   : > { %1718 = vmatpush.bf16.msra.mxu3 %v2792_v37  ;;  %1767 = vmatpush.bf16.msra.mxu0 %v2800_v39  ;;  %v2142_v39 = vld [vmem:[%s3003_s11 + $0x7c] sm:$0xf0] }
  0x6c   : > { %1435 = vmatmul.bf16.gmra.mxu1 %v2165_v48  ;;  %1484 = vmatmul.bf16.gmra.mxu2 %v2169_v49  ;;  %v2309_v48 = vor.u32 %v2718_v40, %v2306_v41  ;;  %v2313_v49 = vor.u32 %v2723_v43, %v2312_v42  ;;  %v2148_v41 = vld [vmem:[%s3003_s11 + $0x60] sm:$0xf]  ;;  %v2680_v42 = vld [vmem:[%s3003_s11 + $0x80] sm:$0xf0] }
  0x6d   : > { %v2676_v43 = vld [vmem:[%s3003_s11 + $0x64] sm:$0xf] }
  0x6e   : > { %1533 = vmatmul.bf16.gmra.mxu3 %v2173_v50  ;;  %1582 = vmatmul.bf16.gmra.mxu0 %v2177_v51  ;;  %v2317_v51 = vor.u32 %v2719_v44, %v2314_v45  ;;  %v2150_v44 = vld [vmem:[%s3003_s11 + $0x84] sm:$0xf0] }
  0x6f   : > { %v2156_v45 = vld [vmem:[%s3003_s11 + $0x68] sm:$0xf]  ;;  %v2153_v58 = vor.u32 %v2676_v43, %v2150_v44  ;;  %v2214_v43 = vld [vmem:[%s3003_s11 + $0x10c] sm:$0xf0] }
  0x70   : > { %v2157_v59 = vor.u32 %v2681_v46, %v2156_v45  ;;  %v2220_v45 = vld [vmem:[%s3003_s11 + $0xf0] sm:$0xf]  ;;  %v2698_v46 = vld [vmem:[%s3003_s11 + $0x110] sm:$0xf0] }
  0x7c   : > { %1440 = vmatmul.bf16.gmra.mxu1 %v2201_v0  ;;  %1489 = vmatmul.bf16.gmra.mxu2 %v2205_v1  ;;  %v2356_v0 = vld [vmem:[%s3003_s11 + $0x208] sm:$0xf]  ;;  %v2733_v1 = vld [vmem:[%s3003_s11 + $0x228] sm:$0xf0] }
  0x7d   : > { %v2357_v8 = vor.u32 %v2733_v1, %v2356_v0 }
  0x7e   : > { %1538 = vmatmul.bf16.gmra.mxu3 %v2209_v2  ;;  %1587 = vmatmul.bf16.gmra.mxu0 %v2213_v3 }
  0x8c   : > { %1445 = vmatmul.bf16.gmra.mxu1 %v2237_v16  ;;  %1494 = vmatmul.bf16.gmra.mxu2 %v2241_v17  ;;  %v2112_v16 = vld [vmem:[%s3003_s11 + $0x18] sm:$0xf]  ;;  %v2671_v17 = vld [vmem:[%s3003_s11 + $0x38] sm:$0xf0] }
  0x8d   : > { %v2113_v25 = vor.u32 %v2671_v17, %v2112_v16  ;;  %v2184_v16 = vld [vmem:[%s3003_s11 + $0xa8] sm:$0xf]  ;;  %v2689_v17 = vld [vmem:[%s3003_s11 + $0xc8] sm:$0xf0] }
  0x8e   : > { %1543 = vmatmul.bf16.gmra.mxu3 %v2245_v18  ;;  %1592 = vmatmul.bf16.gmra.mxu0 %v2249_v19  ;;  %v2667_v18 = vld [vmem:[%s3003_s11 + $0x1c] sm:$0xf]  ;;  %v2114_v19 = vld [vmem:[%s3003_s11 + $0x3c] sm:$0xf0] }
  0x8f   : > { %v2117_v27 = vor.u32 %v2667_v18, %v2114_v19  ;;  %v2685_v18 = vld [vmem:[%s3003_s11 + $0xac] sm:$0xf]  ;;  %v2186_v19 = vld [vmem:[%s3003_s11 + $0xcc] sm:$0xf0] }
  0x9c   : > { %1450 = vmatmul.bf16.gmra.mxu1 %v2273_v32  ;;  %1499 = vmatmul.bf16.gmra.mxu2 %v2277_v33 }
  0x9e   : > { %1548 = vmatmul.bf16.gmra.mxu3 %v2281_v34  ;;  %1597 = vmatmul.bf16.gmra.mxu0 %v2285_v35 }
  0xa9   : > { %v3272_v50 = vpop.f32.mrf.mxu1 }
  0xab   : > { %v1377_v53 = vpop.f32.mrf.mxu0 }
  0xac   : > { %1455 = vmatmul.bf16.gmra.mxu1 %v2309_v48  ;;  %1504 = vmatmul.bf16.gmra.mxu2 %v2313_v49 }
  0xae   : > { %1553 = vmatmul.bf16.gmra.mxu3 %v2317_v51  ;;  %1602 = vmatmul.bf16.gmra.mxu0 %v2321_v52  ;;  %v2145_v51 = vor.u32 %v2675_v38, %v2142_v39  ;;  %v2149_v52 = vor.u32 %v2680_v42, %v2148_v41  ;;  %v2693_v42 = vld [vmem:[%s3003_s11 + $0xec] sm:$0xf] }
  0xaf   : > { %v3274_v54 = vpop.f32.mrf.mxu2 }
  0xb1   : > { %v3276_v55 = vpop.f32.mrf.mxu3  ;;  %v3278_v56 = vpop.f32.mrf.mxu1 }
  0xb3   : > { %v1379_v57 = vpop.f32.mrf.mxu0 }
  0xb7   : > { %v3288_v2 = vpop.f32.mrf.mxu2 }
  0xb9   : > { %v3290_v3 = vpop.f32.mrf.mxu3  ;;  %v3292_v6 = vpop.f32.mrf.mxu1 }
  0xbb   : > { %v1382_v9 = vpop.f32.mrf.mxu0 }
  0xbc   : > { %1460 = vmatmul.bf16.gmra.mxu1 %v2345_v4  ;;  %1509 = vmatmul.bf16.gmra.mxu2 %v2349_v5 }
  0xbe   : > { %1558 = vmatmul.bf16.gmra.mxu3 %v2353_v7  ;;  %1607 = vmatmul.bf16.gmra.mxu0 %v2357_v8 }
  0xbf   : > { %v3294_v10 = vpop.f32.mrf.mxu2 }
  0xc1   : > { %v3296_v11 = vpop.f32.mrf.mxu3  ;;  %v3298_v12 = vpop.f32.mrf.mxu1 }
  0xc3   : > { %v1384_v13 = vpop.f32.mrf.mxu0 }
  0xc7   : > { %v3308_v22 = vpop.f32.mrf.mxu2 }
  0xc9   : > { %v3310_v23 = vpop.f32.mrf.mxu3  ;;  %v1426_v26 = vpop.f32.mrf.mxu1 }
  0xca   : > { %v1427_v29 = vadd.f32 %v1426_v26, %v1377_v53 }
  0xcb   : > { %v1573_v30 = vpop.f32.mrf.mxu0 }
  0xcc   : > { %1621 = vmatmul.bf16.vlgmr.msra.gmra.mxu1 %v2109_v24  ;;  %1670 = vmatmul.bf16.vlgmr.msra.gmra.mxu2 %v2113_v25 }
  0xce   : > { %1719 = vmatmul.bf16.vlgmr.msra.gmra.mxu3 %v2117_v27  ;;  %1768 = vmatmul.bf16.vlgmr.msra.gmra.mxu0 %v2121_v28  ;;  %v2185_v28 = vor.u32 %v2689_v17, %v2184_v16  ;;  %v2702_v17 = vld [vmem:[%s3003_s11 + $0x134] sm:$0xf] }
  0xcf   : > { %v1475_v31 = vpop.f32.mrf.mxu2 }
  0xd0   : > { %v1476_v32 = vadd.f32 %v1475_v31, %v1427_v29  ;;  %v2193_v31 = vor.u32 %v2690_v21, %v2192_v20  ;;  %v2256_v20 = vld [vmem:[%s3003_s11 + $0x138] sm:$0xf]  ;;  %v2707_v21 = vld [vmem:[%s3003_s11 + $0x158] sm:$0xf0] }
  0xd1   : > { %v1524_v33 = vpop.f32.mrf.mxu3  ;;  %v1428_v34 = vpop.f32.mrf.mxu1 }
  0xd2   : > { %v1525_v35 = vadd.f32 %v1524_v33, %v1476_v32  ;;  %v1429_v36 = vadd.f32 %v1428_v34, %v1379_v57 }
  0xd3   : > { %v1575_v37 = vpop.f32.mrf.mxu0 }
  0xd4   : > { %v3314_v40 = vadd.f32 %v1573_v30, %v1525_v35  ;;  %v2189_v30 = vor.u32 %v2685_v18, %v2186_v19  ;;  %v2250_v18 = vld [vmem:[%s3003_s11 + $0x154] sm:$0xf0] }
  0xd7   : > { %v1477_v47 = vpop.f32.mrf.mxu2 }
  0xd8   : > { %v1478_v48 = vadd.f32 %v1477_v47, %v1429_v36  ;;  %v2694_v47 = vld [vmem:[%s3003_s11 + $0xf4] sm:$0xf] }
  0xd9   : > { %v1526_v49 = vpop.f32.mrf.mxu3  ;;  %v1431_v53 = vpop.f32.mrf.mxu1 }
  0xda   : > { %v1527_v57 = vadd.f32 %v1526_v49, %v1478_v48  ;;  %v1432_v60 = vadd.f32 %v1431_v53, %v1382_v9  ;;  %v2684_v9 = vld [vmem:[%s3003_s11 + $0xa4] sm:$0xf]  ;;  %v2222_v48 = vld [vmem:[%s3003_s11 + $0x114] sm:$0xf0] }
  0xdb   : > { %v1578_v61 = vpop.f32.mrf.mxu0  ;;  %v2181_v27 = vor.u32 %v2684_v9, %v2178_v14  ;;  %v2228_v49 = vld [vmem:[%s3003_s11 + $0xf8] sm:$0xf] }
  0xdc   : > { %1626 = vmatmul.bf16.gmra.mxu1 %v2145_v51  ;;  %1675 = vmatmul.bf16.gmra.mxu2 %v2149_v52  ;;  %v3322_v62 = vadd.f32 %v1575_v37, %v1527_v57  ;;  %v2699_v51 = vld [vmem:[%s3003_s11 + $0x118] sm:$0xf0]  ;;  %v2221_v57 = vor.u32 %v2698_v46, %v2220_v45 }
  0xdd   : > { %v2711_v46 = vld [vmem:[%s3003_s11 + $0x17c] sm:$0xf] }
  0xde   : > { %1724 = vmatmul.bf16.gmra.mxu3 %v2153_v58  ;;  %1773 = vmatmul.bf16.gmra.mxu0 %v2157_v59  ;;  %v2217_v59 = vor.u32 %v2693_v42, %v2214_v43 }
  0xdf   : > { %v1480_v63 = vpop.f32.mrf.mxu2 }
  0xe0   : > { %v1481_v0 = vadd.f32 %v1480_v63, %v1432_v60  ;;  %v2229_v63 = vor.u32 %v2699_v51, %v2228_v49  ;;  %v2292_v49 = vld [vmem:[%s3003_s11 + $0x180] sm:$0xf]  ;;  %v2716_v51 = vld [vmem:[%s3003_s11 + $0x1a0] sm:$0xf0] }
  0xe1   : > { %v1529_v1 = vpop.f32.mrf.mxu3  ;;  %v1433_v4 = vpop.f32.mrf.mxu1 }
  0xe2   : > { %v1530_v5 = vadd.f32 %v1529_v1, %v1481_v0  ;;  %v1434_v7 = vadd.f32 %v1433_v4, %v1384_v13 }
  0xe3   : > { %v1580_v8 = vpop.f32.mrf.mxu0 }
  0xe4   : > { %v3326_v15 = vadd.f32 %v1578_v61, %v1530_v5  ;;  %v2225_v61 = vor.u32 %v2694_v47, %v2222_v48  ;;  %v2286_v47 = vld [vmem:[%s3003_s11 + $0x19c] sm:$0xf0] }
  0xe7   : > { %v1482_v24 = vpop.f32.mrf.mxu2 }
  0xe8   : > { %v1483_v25 = vadd.f32 %v1482_v24, %v1434_v7  ;;  %v2703_v24 = vld [vmem:[%s3003_s11 + $0x13c] sm:$0xf] }
  0xe9   : > { %v1531_v26 = vpop.f32.mrf.mxu3  ;;  %v1436_v29 = vpop.f32.mrf.mxu1 }
  0xea   : > { %v1532_v13 = vadd.f32 %v1531_v26, %v1483_v25  ;;  %v1437_v32 = vadd.f32 %v1436_v29, %v3272_v50  ;;  %v2258_v25 = vld [vmem:[%s3003_s11 + $0x15c] sm:$0xf0] }
  0xeb   : > { %v1583_v33 = vpop.f32.mrf.mxu0  ;;  %v2264_v26 = vld [vmem:[%s3003_s11 + $0x140] sm:$0xf] }
  0xec   : > { %1631 = vmatmul.bf16.gmra.mxu1 %v2181_v27  ;;  %1680 = vmatmul.bf16.gmra.mxu2 %v2185_v28  ;;  %v3335_v34 = vadd.f32 %v1580_v8, %v1532_v13  ;;  %v2708_v27 = vld [vmem:[%s3003_s11 + $0x160] sm:$0xf0]  ;;  %v2257_v13 = vor.u32 %v2707_v21, %v2256_v20 }
  0xed   : > { %v2720_v21 = vld [vmem:[%s3003_s11 + $0x1c4] sm:$0xf] }
  0xee   : > { %1729 = vmatmul.bf16.gmra.mxu3 %v2189_v30  ;;  %1778 = vmatmul.bf16.gmra.mxu0 %v2193_v31  ;;  %v2253_v31 = vor.u32 %v2702_v17, %v2250_v18 }
  0xef   : > { %v1485_v35 = vpop.f32.mrf.mxu2 }
  0xf0   : > { %v1486_v36 = vadd.f32 %v1485_v35, %v1437_v32 }
  0xf1   : > { %v1534_v37 = vpop.f32.mrf.mxu3  ;;  %v1438_v38 = vpop.f32.mrf.mxu1 }
  0xf2   : > { %v1535_v39 = vadd.f32 %v1534_v37, %v1486_v36  ;;  %v1439_v50 = vadd.f32 %v1438_v38, %v3278_v56 }
  0xf3   : > { %v1585_v41 = vpop.f32.mrf.mxu0 }
  0xf4   : > { %v3340_v44 = vadd.f32 %v1583_v33, %v1535_v39  ;;  %v2261_v33 = vor.u32 %v2703_v24, %v2258_v25  ;;  %v2322_v24 = vld [vmem:[%s3003_s11 + $0x1e4] sm:$0xf0] }
  0xf7   : > { %v1487_v52 = vpop.f32.mrf.mxu2 }
  0xf8   : > { %v1488_v53 = vadd.f32 %v1487_v52, %v1439_v50  ;;  %v2712_v52 = vld [vmem:[%s3003_s11 + $0x184] sm:$0xf] }
  0xf9   : > { %v1536_v58 = vpop.f32.mrf.mxu3  ;;  %v1441_v60 = vpop.f32.mrf.mxu1 }
  0xfa   : > { %v1537_v56 = vadd.f32 %v1536_v58, %v1488_v53  ;;  %v1442_v0 = vadd.f32 %v1441_v60, %v3292_v6  ;;  %v2294_v58 = vld [vmem:[%s3003_s11 + $0x1a4] sm:$0xf0] }
  0xfb   : > { %v1588_v1 = vpop.f32.mrf.mxu0 }
  0xfc   : > { %1636 = vmatmul.bf16.gmra.mxu1 %v2217_v59  ;;  %1685 = vmatmul.bf16.gmra.mxu2 %v2221_v57  ;;  %v3349_v4 = vadd.f32 %v1585_v41, %v1537_v56  ;;  %v2300_v59 = vld [vmem:[%s3003_s11 + $0x188] sm:$0xf]  ;;  %v2717_v57 = vld [vmem:[%s3003_s11 + $0x1a8] sm:$0xf0]  ;;  %v2293_v56 = vor.u32 %v2716_v51, %v2292_v49 }
  0xfe   : > { %1734 = vmatmul.bf16.gmra.mxu3 %v2225_v61  ;;  %1783 = vmatmul.bf16.gmra.mxu0 %v2229_v63  ;;  %v2289_v63 = vor.u32 %v2711_v46, %v2286_v47 }
  0xff   : > { %v1490_v5 = vpop.f32.mrf.mxu2 }
 0x100   : > { %v1491_v7 = vadd.f32 %v1490_v5, %v1442_v0  ;;  %v2301_v5 = vor.u32 %v2717_v57, %v2300_v59  ;;  %v2364_v59 = vld [vmem:[%s3003_s11 + $0x210] sm:$0xf]  ;;  %v2734_v57 = vld [vmem:[%s3003_s11 + $0x230] sm:$0xf0] }
 0x101   : > { %v1539_v8 = vpop.f32.mrf.mxu3  ;;  %v1443_v9 = vpop.f32.mrf.mxu1 }
 0x102   : > { %v1540_v14 = vadd.f32 %v1539_v8, %v1491_v7  ;;  %v1444_v6 = vadd.f32 %v1443_v9, %v3298_v12  ;;  %v2265_v12 = vor.u32 %v2708_v27, %v2264_v26  ;;  %v2328_v26 = vld [vmem:[%s3003_s11 + $0x1c8] sm:$0xf]  ;;  %v2725_v27 = vld [vmem:[%s3003_s11 + $0x1e8] sm:$0xf0] }
 0x103   : > { %v1590_v16 = vpop.f32.mrf.mxu0 }
 0x104   : > { %v3354_v19 = vadd.f32 %v1588_v1, %v1540_v14  ;;  %v2297_v1 = vor.u32 %v2712_v52, %v2294_v58  ;;  %v2729_v52 = vld [vmem:[%s3003_s11 + $0x20c] sm:$0xf] }
 0x107   : > { %v1492_v28 = vpop.f32.mrf.mxu2 }
 0x108   : > { %v1493_v29 = vadd.f32 %v1492_v28, %v1444_v6  ;;  %v2721_v28 = vld [vmem:[%s3003_s11 + $0x1cc] sm:$0xf] }
 0x109   : > { %v1541_v30 = vpop.f32.mrf.mxu3  ;;  %v1446_v32 = vpop.f32.mrf.mxu1 }
 0x10a   : > { %v1542_v35 = vadd.f32 %v1541_v30, %v1493_v29  ;;  %v1447_v38 = vadd.f32 %v1446_v32, %v3274_v54  ;;  %v2330_v30 = vld [vmem:[%s3003_s11 + $0x1ec] sm:$0xf0] }
 0x10b   : > { %v1593_v36 = vpop.f32.mrf.mxu0 }
 0x10c   : > { %1641 = vmatmul.bf16.gmra.mxu1 %v2253_v31  ;;  %1690 = vmatmul.bf16.gmra.mxu2 %v2257_v13  ;;  %v3362_v37 = vadd.f32 %v1590_v16, %v1542_v35  ;;  %v2336_v31 = vld [vmem:[%s3003_s11 + $0x1d0] sm:$0xf]  ;;  %v2726_v13 = vld [vmem:[%s3003_s11 + $0x1f0] sm:$0xf0]  ;;  %v2329_v35 = vor.u32 %v2725_v27, %v2328_v26 }
 0x10e   : > { %1739 = vmatmul.bf16.gmra.mxu3 %v2261_v33  ;;  %1788 = vmatmul.bf16.gmra.mxu0 %v2265_v12  ;;  %v2325_v12 = vor.u32 %v2720_v21, %v2322_v24 }
 0x10f   : > { %v1495_v39 = vpop.f32.mrf.mxu2 }
 0x110   : > { %v1496_v50 = vadd.f32 %v1495_v39, %v1447_v38  ;;  %v2333_v38 = vor.u32 %v2721_v28, %v2330_v30  ;;  %v2337_v39 = vor.u32 %v2726_v13, %v2336_v31 }
 0x111   : > { %v1544_v41 = vpop.f32.mrf.mxu3  ;;  %v1448_v42 = vpop.f32.mrf.mxu1 }
 0x112   : > { %v1545_v43 = vadd.f32 %v1544_v41, %v1496_v50  ;;  %v1449_v53 = vadd.f32 %v1448_v42, %v3288_v2 }
 0x113   : > { %v1595_v45 = vpop.f32.mrf.mxu0 }
 0x114   : > { %v3367_v48 = vadd.f32 %v1593_v36, %v1545_v43 }
 0x117   : > { %v1497_v54 = vpop.f32.mrf.mxu2 }
 0x118   : > { %v1498_v60 = vadd.f32 %v1497_v54, %v1449_v53  ;;  %v2358_v53 = vld [vmem:[%s3003_s11 + $0x22c] sm:$0xf0]  ;;  %v2730_v54 = vld [vmem:[%s3003_s11 + $0x214] sm:$0xf] }
 0x119   : > { %v1546_v61 = vpop.f32.mrf.mxu3  ;;  %v1451_v0 = vpop.f32.mrf.mxu1 }
 0x11a   : > { %v1547_v7 = vadd.f32 %v1546_v61, %v1498_v60  ;;  %v1452_v9 = vadd.f32 %v1451_v0, %v3294_v10  ;;  %v2366_v61 = vld [vmem:[%s3003_s11 + $0x234] sm:$0xf0] }
 0x11b   : > { %v1598_v8 = vpop.f32.mrf.mxu0 }
 0x11c   : > { %1646 = vmatmul.bf16.gmra.mxu1 %v2289_v63  ;;  %1695 = vmatmul.bf16.gmra.mxu2 %v2293_v56  ;;  %v3376_v2 = vadd.f32 %v1595_v45, %v1547_v7  ;;  %v2372_v63 = vld [vmem:[%s3003_s11 + $0x218] sm:$0xf]  ;;  %v2735_v56 = vld [vmem:[%s3003_s11 + $0x238] sm:$0xf0]  ;;  %v2365_v7 = vor.u32 %v2734_v57, %v2364_v59 }
 0x11e   : > { %1744 = vmatmul.bf16.gmra.mxu3 %v2297_v1  ;;  %1793 = vmatmul.bf16.gmra.mxu0 %v2301_v5  ;;  %v2361_v5 = vor.u32 %v2729_v52, %v2358_v53 }
 0x11f   : > { %v1500_v14 = vpop.f32.mrf.mxu2 }
 0x120   : > { %v1501_v6 = vadd.f32 %v1500_v14, %v1452_v9  ;;  %v2369_v9 = vor.u32 %v2730_v54, %v2366_v61  ;;  %v2373_v14 = vor.u32 %v2735_v56, %v2372_v63 }
 0x121   : > { %v1549_v16 = vpop.f32.mrf.mxu3  ;;  %v1453_v17 = vpop.f32.mrf.mxu1 }
 0x122   : > { %v1550_v18 = vadd.f32 %v1549_v16, %v1501_v6  ;;  %v1454_v29 = vadd.f32 %v1453_v17, %v3308_v22 }
 0x123   : > { %v1600_v20 = vpop.f32.mrf.mxu0 }
 0x124   : > { %v3381_v25 = vadd.f32 %v1598_v8, %v1550_v18 }
 0x127   : > { %v1502_v10 = vpop.f32.mrf.mxu2 }
 0x128   : > { %v1503_v32 = vadd.f32 %v1502_v10, %v1454_v29 }
 0x129   : > { %v1551_v33 = vpop.f32.mrf.mxu3  ;;  %v1456_v36 = vpop.f32.mrf.mxu1 }
 0x12a   : > { %v1552_v50 = vadd.f32 %v1551_v33, %v1503_v32  ;;  %v1457_v42 = vadd.f32 %v1456_v36, %v3276_v55 }
 0x12b   : > { %v1603_v41 = vpop.f32.mrf.mxu0 }
 0x12c   : > { %1651 = vmatmul.bf16.gmra.mxu1 %v2325_v12  ;;  %1700 = vmatmul.bf16.gmra.mxu2 %v2329_v35  ;;  %v3390_v22 = vadd.f32 %v1600_v20, %v1552_v50 }
 0x12e   : > { %1749 = vmatmul.bf16.gmra.mxu3 %v2333_v38  ;;  %1798 = vmatmul.bf16.gmra.mxu0 %v2337_v39 }
 0x12f   : > { %v1505_v43 = vpop.f32.mrf.mxu2 }
 0x130   : > { %v1506_v45 = vadd.f32 %v1505_v43, %v1457_v42 }
 0x131   : > { %v1554_v46 = vpop.f32.mrf.mxu3  ;;  %v1458_v47 = vpop.f32.mrf.mxu1 }
 0x132   : > { %v1555_v49 = vadd.f32 %v1554_v46, %v1506_v45  ;;  %v1459_v60 = vadd.f32 %v1458_v47, %v3290_v3 }
 0x133   : > { %v1605_v51 = vpop.f32.mrf.mxu0 }
 0x134   : > { %v3395_v58 = vadd.f32 %v1603_v41, %v1555_v49 }
 0x137   : > { %v1507_v55 = vpop.f32.mrf.mxu2 }
 0x138   : > { %v1508_v0 = vadd.f32 %v1507_v55, %v1459_v60 }
 0x139   : > { %v1556_v1 = vpop.f32.mrf.mxu3  ;;  %v1461_v8 = vpop.f32.mrf.mxu1 }
 0x13a   : > { %v1557_v6 = vadd.f32 %v1556_v1, %v1508_v0  ;;  %v1462_v3 = vadd.f32 %v1461_v8, %v3296_v11 }
 0x13b   : > { %v1608_v16 = vpop.f32.mrf.mxu0 }
 0x13c   : > { %1656 = vmatmul.bf16.gmra.mxu1 %v2361_v5  ;;  %1705 = vmatmul.bf16.gmra.mxu2 %v2365_v7  ;;  %v3404_v17 = vadd.f32 %v1605_v51, %v1557_v6  ;;  %v3423_v51 = vld [vmem:[%s3496_s3] ss:$0 sm:$0xff] }
 0x13e   : > { %1754 = vmatmul.bf16.gmra.mxu3 %v2369_v9  ;;  %1803 = vmatmul.bf16.gmra.mxu0 %v2373_v14 }
 0x13f   : > { %v1510_v18 = vpop.f32.mrf.mxu2 }
 0x140   : > { %v1511_v20 = vadd.f32 %v1510_v18, %v1462_v3 }
 0x141   : > { %v1559_v21 = vpop.f32.mrf.mxu3  ;;  %v1463_v24 = vpop.f32.mrf.mxu1 }
 0x142   : > { %v1560_v26 = vadd.f32 %v1559_v21, %v1511_v20  ;;  %v1464_v29 = vadd.f32 %v1463_v24, %v3310_v23  ;;  %v3416_v23 = vld [vmem:[%s3495_s2] ss:$0 sm:$0xff] }
 0x143   : > { %v1610_v27 = vpop.f32.mrf.mxu0 }
 0x144   : > { %v3407_v28 = vadd.f32 %v1608_v16, %v1560_v26 }
 0x147   : > { %v1512_v30 = vpop.f32.mrf.mxu2 }
 0x148   : > { %v1513_v31 = vadd.f32 %v1512_v30, %v1464_v29 }
 0x149   : > { %v1561_v13 = vpop.f32.mrf.mxu3  ;;  %v1622_v10 = vpop.f32.mrf.mxu1 }
 0x14a   : > { %v1562_v32 = vadd.f32 %v1561_v13, %v1513_v31  ;;  %v1623_v11 = vadd.f32 %v1622_v10, %v3314_v40 }
 0x14b   : > { %v1769_v33 = vpop.f32.mrf.mxu0 }
 0x14c   : > { %v3410_v12 = vadd.f32 %v1610_v27, %v1562_v32 }
 0x14f   : > { %v1671_v35 = vpop.f32.mrf.mxu2 }
 0x150   : > { %v1672_v36 = vadd.f32 %v1671_v35, %v1623_v11 }
 0x151   : > { %v1720_v38 = vpop.f32.mrf.mxu3  ;;  %v1624_v39 = vpop.f32.mrf.mxu1 }
 0x152   : > { %v1721_v50 = vadd.f32 %v1720_v38, %v1672_v36  ;;  %v1625_v43 = vadd.f32 %v1624_v39, %v3322_v62 }
 0x153   : > { %v1771_v41 = vpop.f32.mrf.mxu0 }
 0x154   : > { %v1770_v42 = vadd.f32 %v1769_v33, %v1721_v50 }
 0x156   : > { %v1864_v40 = vmul.f32 %v3416_v23, %v1770_v42 }
 0x157   : > { %v1673_v45 = vpop.f32.mrf.mxu2 }
 0x158   : > { %v1674_v46 = vadd.f32 %v1673_v45, %v1625_v43  ;;  %v1884_v57 = vadd.f32 %v3423_v51, %v1864_v40 }
 0x159   : > { %v1722_v47 = vpop.f32.mrf.mxu3  ;;  %v1627_v49 = vpop.f32.mrf.mxu1 }
 0x15a   : > { %v1723_v52 = vadd.f32 %v1722_v47, %v1674_v46  ;;  %v1628_v62 = vadd.f32 %v1627_v49, %v3326_v15  ;;  %v1900_v0 = vmax.f32 %v1884_v57, 0.0 }
 0x15b   : > { %v1774_v53 = vpop.f32.mrf.mxu0 }
 0x15c   : > { %v1772_v59 = vadd.f32 %v1771_v41, %v1723_v52 }
 0x15e   : > { %v1865_v54 = vmul.f32 %v3416_v23, %v1772_v59 }
 0x15f   : > { %v1676_v60 = vpop.f32.mrf.mxu2 }
 0x160   : > { %v1885_v61 = vadd.f32 %v3423_v51, %v1865_v54  ;;  %v1677_v63 = vadd.f32 %v1676_v60, %v1628_v62 }
 0x161   : > { %v1725_v56 = vpop.f32.mrf.mxu3  ;;  %v1629_v55 = vpop.f32.mrf.mxu1 }
 0x162   : > { %v1901_v1 = vmax.f32 %v1885_v61, 0.0  ;;  %v1726_v5 = vadd.f32 %v1725_v56, %v1677_v63  ;;  %v1630_v9 = vadd.f32 %v1629_v55, %v3335_v34 }
 0x163   : > { %v1776_v7 = vpop.f32.mrf.mxu0 }
 0x164   : > { %v2811_v8 = vpack.c.bf16 %v1901_v1, %v1900_v0  ;;  %v1775_v15 = vadd.f32 %v1774_v53, %v1726_v5 }
 0x166   : > { %2812 = vst [vmem:[%s3433_s26] sm:$0xff] %v2811_v8   ;;  %v1866_v18 = vmul.f32 %v3416_v23, %v1775_v15 }
 0x167   : > { %v1678_v14 = vpop.f32.mrf.mxu2 }
 0x168   : > { %v1679_v6 = vadd.f32 %v1678_v14, %v1630_v9  ;;  %v1886_v26 = vadd.f32 %v3423_v51, %v1866_v18 }
 0x169   : > { %v1727_v16 = vpop.f32.mrf.mxu3  ;;  %v1632_v3 = vpop.f32.mrf.mxu1 }
 0x16a   : > { %v1728_v20 = vadd.f32 %v1727_v16, %v1679_v6  ;;  %v1633_v29 = vadd.f32 %v1632_v3, %v3340_v44  ;;  %v1902_v32 = vmax.f32 %v1886_v26, 0.0 }
 0x16b   : > { %v1779_v21 = vpop.f32.mrf.mxu0 }
 0x16c   : > { %v1777_v24 = vadd.f32 %v1776_v7, %v1728_v20 }
 0x16e   : > { %v1867_v27 = vmul.f32 %v3416_v23, %v1777_v24 }
 0x16f   : > { %v1681_v30 = vpop.f32.mrf.mxu2 }
 0x170   : > { %v1887_v31 = vadd.f32 %v3423_v51, %v1867_v27  ;;  %v1682_v34 = vadd.f32 %v1681_v30, %v1633_v29 }
 0x171   : > { %v1730_v13 = vpop.f32.mrf.mxu3  ;;  %v1634_v10 = vpop.f32.mrf.mxu1 }
 0x172   : > { %v1903_v33 = vmax.f32 %v1887_v31, 0.0  ;;  %v1731_v11 = vadd.f32 %v1730_v13, %v1682_v34  ;;  %v1635_v39 = vadd.f32 %v1634_v10, %v3349_v4 }
 0x173   : > { %v1781_v35 = vpop.f32.mrf.mxu0 }
 0x174   : > { %v2816_v36 = vpack.c.bf16 %v1903_v33, %v1902_v32  ;;  %v1780_v38 = vadd.f32 %v1779_v21, %v1731_v11 }
 0x176   : > { %2848 = vst [vmem:[%s3433_s26 + $0x8] sm:$0xff] %v2816_v36   ;;  %v1868_v44 = vmul.f32 %v3416_v23, %v1780_v38 }
 0x177   : > { %v1683_v50 = vpop.f32.mrf.mxu2 }
 0x178   : > { %v1684_v41 = vadd.f32 %v1683_v50, %v1635_v39  ;;  %v1888_v49 = vadd.f32 %v3423_v51, %v1868_v44 }
 0x179   : > { %v1732_v42 = vpop.f32.mrf.mxu3  ;;  %v1637_v43 = vpop.f32.mrf.mxu1 }
 0x17a   : > { %v1733_v45 = vadd.f32 %v1732_v42, %v1684_v41  ;;  %v1638_v52 = vadd.f32 %v1637_v43, %v3354_v19  ;;  %v1904_v62 = vmax.f32 %v1888_v49, 0.0 }
 0x17b   : > { %v1784_v46 = vpop.f32.mrf.mxu0 }
 0x17c   : > { %v1782_v47 = vadd.f32 %v1781_v35, %v1733_v45 }
 0x17e   : > { %v1869_v40 = vmul.f32 %v3416_v23, %v1782_v47 }
 0x17f   : > { %v1686_v53 = vpop.f32.mrf.mxu2 }
 0x180   : > { %v1889_v59 = vadd.f32 %v3423_v51, %v1869_v40  ;;  %v1687_v4 = vadd.f32 %v1686_v53, %v1638_v52 }
 0x181   : > { %v1735_v57 = vpop.f32.mrf.mxu3  ;;  %v1639_v54 = vpop.f32.mrf.mxu1 }
 0x182   : > { %v1905_v60 = vmax.f32 %v1889_v59, 0.0  ;;  %v1736_v61 = vadd.f32 %v1735_v57, %v1687_v4  ;;  %v1640_v0 = vadd.f32 %v1639_v54, %v3362_v37 }
 0x183   : > { %v1786_v63 = vpop.f32.mrf.mxu0 }
 0x184   : > { %v2821_v56 = vpack.c.bf16 %v1905_v60, %v1904_v62  ;;  %v1785_v55 = vadd.f32 %v1784_v46, %v1736_v61 }
 0x186   : > { %2849 = vst [vmem:[%s3433_s26 + $0x10] sm:$0xff] %v2821_v56   ;;  %v1870_v19 = vmul.f32 %v3416_v23, %v1785_v55 }
 0x187   : > { %v1688_v1 = vpop.f32.mrf.mxu2 }
 0x188   : > { %v1689_v5 = vadd.f32 %v1688_v1, %v1640_v0  ;;  %v1890_v6 = vadd.f32 %v3423_v51, %v1870_v19 }
 0x189   : > { %v1737_v7 = vpop.f32.mrf.mxu3  ;;  %v1642_v8 = vpop.f32.mrf.mxu1 }
 0x18a   : > { %v1738_v15 = vadd.f32 %v1737_v7, %v1689_v5  ;;  %v1643_v3 = vadd.f32 %v1642_v8, %v3367_v48  ;;  %v1906_v26 = vmax.f32 %v1890_v6, 0.0 }
 0x18b   : > { %v1789_v9 = vpop.f32.mrf.mxu0 }
 0x18c   : > { %v1787_v14 = vadd.f32 %v1786_v63, %v1738_v15 }
 0x18e   : > { %v1871_v16 = vmul.f32 %v3416_v23, %v1787_v14 }
 0x18f   : > { %v1691_v18 = vpop.f32.mrf.mxu2 }
 0x190   : > { %v1891_v20 = vadd.f32 %v3423_v51, %v1871_v16  ;;  %v1692_v37 = vadd.f32 %v1691_v18, %v1643_v3 }
 0x191   : > { %v1740_v21 = vpop.f32.mrf.mxu3  ;;  %v1644_v24 = vpop.f32.mrf.mxu1 }
 0x192   : > { %v1907_v27 = vmax.f32 %v1891_v20, 0.0  ;;  %v1741_v29 = vadd.f32 %v1740_v21, %v1692_v37  ;;  %v1645_v13 = vadd.f32 %v1644_v24, %v3376_v2 }
 0x193   : > { %v1791_v30 = vpop.f32.mrf.mxu0 }
 0x194   : > { %v2826_v31 = vpack.c.bf16 %v1907_v27, %v1906_v26  ;;  %v1790_v34 = vadd.f32 %v1789_v9, %v1741_v29 }
 0x196   : > { %2850 = vst [vmem:[%s3433_s26 + $0x18] sm:$0xff] %v2826_v31   ;;  %v1872_v48 = vmul.f32 %v3416_v23, %v1790_v34 }
 0x197   : > { %v1693_v10 = vpop.f32.mrf.mxu2 }
 0x198   : > { %v1694_v32 = vadd.f32 %v1693_v10, %v1645_v13  ;;  %v1892_v39 = vadd.f32 %v3423_v51, %v1872_v48 }
 0x199   : > { %v1742_v33 = vpop.f32.mrf.mxu3  ;;  %v1647_v11 = vpop.f32.mrf.mxu1 }
 0x19a   : > { %v1743_v35 = vadd.f32 %v1742_v33, %v1694_v32  ;;  %v1648_v41 = vadd.f32 %v1647_v11, %v3381_v25  ;;  %v1908_v46 = vmax.f32 %v1892_v39, 0.0 }
 0x19b   : > { %v1794_v36 = vpop.f32.mrf.mxu0 }
 0x19c   : > { %v1792_v38 = vadd.f32 %v1791_v30, %v1743_v35 }
 0x19e   : > { %v1873_v50 = vmul.f32 %v3416_v23, %v1792_v38 }
 0x19f   : > { %v1696_v42 = vpop.f32.mrf.mxu2 }
 0x1a0   : > { %v1893_v43 = vadd.f32 %v3423_v51, %v1873_v50  ;;  %v1697_v2 = vadd.f32 %v1696_v42, %v1648_v41 }
 0x1a1   : > { %v1745_v44 = vpop.f32.mrf.mxu3  ;;  %v1649_v45 = vpop.f32.mrf.mxu1 }
 0x1a2   : > { %v1909_v47 = vmax.f32 %v1893_v43, 0.0  ;;  %v1746_v49 = vadd.f32 %v1745_v44, %v1697_v2  ;;  %v1650_v59 = vadd.f32 %v1649_v45, %v3390_v22 }
 0x1a3   : > { %v1796_v40 = vpop.f32.mrf.mxu0 }
 0x1a4   : > { %v2831_v52 = vpack.c.bf16 %v1909_v47, %v1908_v46  ;;  %v1795_v53 = vadd.f32 %v1794_v36, %v1746_v49 }
 0x1a6   : > { %2851 = vst [vmem:[%s3433_s26 + $0x20] sm:$0xff] %v2831_v52   ;;  %v1874_v25 = vmul.f32 %v3416_v23, %v1795_v53 }
 0x1a7   : > { %v1698_v4 = vpop.f32.mrf.mxu2 }
 0x1a8   : > { %v1699_v57 = vadd.f32 %v1698_v4, %v1650_v59  ;;  %v1894_v56 = vadd.f32 %v3423_v51, %v1874_v25 }
 0x1a9   : > { %v1747_v54 = vpop.f32.mrf.mxu3  ;;  %v1652_v62 = vpop.f32.mrf.mxu1 }
 0x1aa   : > { %v1748_v60 = vadd.f32 %v1747_v54, %v1699_v57  ;;  %v1653_v0 = vadd.f32 %v1652_v62, %v3395_v58  ;;  %v1910_v19 = vmax.f32 %v1894_v56, 0.0 }
 0x1ab   : > { %v1799_v63 = vpop.f32.mrf.mxu0 }
 0x1ac   : > { %v1797_v61 = vadd.f32 %v1796_v40, %v1748_v60 }
 0x1ae   : > { %v1875_v55 = vmul.f32 %v3416_v23, %v1797_v61 }
 0x1af   : > { %v1701_v1 = vpop.f32.mrf.mxu2 }
 0x1b0   : > { %v1895_v5 = vadd.f32 %v3423_v51, %v1875_v55  ;;  %v1702_v22 = vadd.f32 %v1701_v1, %v1653_v0 }
 0x1b1   : > { %v1750_v7 = vpop.f32.mrf.mxu3  ;;  %v1654_v8 = vpop.f32.mrf.mxu1 }
 0x1b2   : > { %v1911_v15 = vmax.f32 %v1895_v5, 0.0  ;;  %v1751_v9 = vadd.f32 %v1750_v7, %v1702_v22  ;;  %v1655_v16 = vadd.f32 %v1654_v8, %v3404_v17 }
 0x1b3   : > { %v1801_v3 = vpop.f32.mrf.mxu0 }
 0x1b4   : > { %v2836_v14 = vpack.c.bf16 %v1911_v15, %v1910_v19  ;;  %v1800_v6 = vadd.f32 %v1799_v63, %v1751_v9 }
 0x1b6   : > { %2852 = vst [vmem:[%s3433_s26 + $0x28] sm:$0xff] %v2836_v14   ;;  %v1876_v58 = vmul.f32 %v3416_v23, %v1800_v6 }
 0x1b7   : > { %v1703_v18 = vpop.f32.mrf.mxu2 }
 0x1b8   : > { %v1704_v20 = vadd.f32 %v1703_v18, %v1655_v16  ;;  %v1896_v27 = vadd.f32 %v3423_v51, %v1876_v58 }
 0x1b9   : > { %v1752_v37 = vpop.f32.mrf.mxu3  ;;  %v1657_v21 = vpop.f32.mrf.mxu1 }
 0x1ba   : > { %v1753_v24 = vadd.f32 %v1752_v37, %v1704_v20  ;;  %v1658_v30 = vadd.f32 %v1657_v21, %v3407_v28  ;;  %v1912_v32 = vmax.f32 %v1896_v27, 0.0 }
 0x1bb   : > { %v1804_v10 = vpop.f32.mrf.mxu0 }
 0x1bc   : > { %v1802_v26 = vadd.f32 %v1801_v3, %v1753_v24 }
 0x1be   : > { %v1877_v29 = vmul.f32 %v3416_v23, %v1802_v26 }
 0x1bf   : > { %v1706_v31 = vpop.f32.mrf.mxu2 }
 0x1c0   : > { %v1897_v34 = vadd.f32 %v3423_v51, %v1877_v29  ;;  %v1707_v17 = vadd.f32 %v1706_v31, %v1658_v30 }
 0x1c1   : > { %v1755_v13 = vpop.f32.mrf.mxu3  ;;  %v1659_v48 = vpop.f32.mrf.mxu1 }
 0x1c2   : > { %v1913_v33 = vmax.f32 %v1897_v34, 0.0  ;;  %v1756_v11 = vadd.f32 %v1755_v13, %v1707_v17  ;;  %v1660_v38 = vadd.f32 %v1659_v48, %v3410_v12 }
 0x1c3   : > { %v1806_v43 = vpop.f32.mrf.mxu0 }
 0x1c4   : > { %v2841_v35 = vpack.c.bf16 %v1913_v33, %v1912_v32  ;;  %v1805_v36 = vadd.f32 %v1804_v10, %v1756_v11 }
 0x1c6   : > { %2853 = vst [vmem:[%s3433_s26 + $0x30] sm:$0xff] %v2841_v35   ;;  %v1878_v28 = vmul.f32 %v3416_v23, %v1805_v36 }
 0x1c7   : > { %v1708_v39 = vpop.f32.mrf.mxu2 }
 0x1c8   : > { %v1709_v50 = vadd.f32 %v1708_v39, %v1660_v38  ;;  %v1898_v44 = vadd.f32 %v3423_v51, %v1878_v28 }
 0x1c9   : > { %v1757_v41 = vpop.f32.mrf.mxu3 }
 0x1ca   : > { %v1758_v42 = vadd.f32 %v1757_v41, %v1709_v50  ;;  %v1914_v47 = vmax.f32 %v1898_v44, 0.0 }
 0x1cc   : > { %v1807_v2 = vadd.f32 %v1806_v43, %v1758_v42 }
 0x1ce   : > { %v1879_v45 = vmul.f32 %v3416_v23, %v1807_v2 }
 0x1d0   : > { %v1899_v46 = vadd.f32 %v3423_v51, %v1879_v45 }
 0x1d2   : > { %v1915_v49 = vmax.f32 %v1899_v46, 0.0 }
 0x1d4   : > { %v2846_v40 = vpack.c.bf16 %v1915_v49, %v1914_v47 }
 0x1d6   : > { %2854 = vst [vmem:[%s3433_s26 + $0x38] sm:$0xff] %v2846_v40  }
 0x1d7 PF: > { %s14_s17 = sadd.s32 1, %s2928_s17   ;;  %s3498_s15 = smov %s2924_s16 }
 0x1d8   : > { %p11_p5 = scmp.ge.s32.totalorder %s14_s17, 4   ;;  %s3499_s16 = smov %s3501_s18 }
 0x1da   :  { %13 = sbr.rel (!%p11_p5) target bundleno = 2 (0x2), region = 83 }

// kernel: regular_model_mnist_forward.7
= control target key start
LH: loop header
LB: loop body
LE: loop exit
PB: predicated region body
PF: predicated region fallthrough
CT: control target
= control target key end

     0   :  { %s2601_s1 = inlined_call_operand.vmem [shape: bf16[2048,128], index: 1, kind: input, shape index: {}]   ;;  %s2602_s0 = inlined_call_operand.vmem [shape: bf16[16,2048], index: 0, kind: input, shape index: {}]   ;;  %s2603_s2 = inlined_call_operand.vmem [shape: f32[16,128], index: 2, kind: output, shape index: {}]  }
   0x1   :  { %v1979_v0 = vld [vmem:[%s2601_s1 + $0x38] sm:$0xff]  ;;  %v1978_v4 = vld [vmem:[%s2601_s1 + $0x30] sm:$0xff]  ;;  %v1977_v8 = vld [vmem:[%s2601_s1 + $0x28] sm:$0xff] }
   0x2   :  { %v1987_v1 = vld [vmem:[%s2601_s1 + $0x78] sm:$0xff]  ;;  %1139 = vmatpush.bf16.msra.mxu0 %v1979_v0  ;;  %v1986_v5 = vld [vmem:[%s2601_s1 + $0x70] sm:$0xff]  ;;  %v1985_v9 = vld [vmem:[%s2601_s1 + $0x68] sm:$0xff] }
   0x3   :  { %v1995_v2 = vld [vmem:[%s2601_s1 + $0xb8] sm:$0xff]  ;;  %1153 = vmatpush.bf16.msra.mxu1 %v1987_v1  ;;  %v1994_v6 = vld [vmem:[%s2601_s1 + $0xb0] sm:$0xff]  ;;  %v1993_v10 = vld [vmem:[%s2601_s1 + $0xa8] sm:$0xff] }
   0x4   :  { %v2003_v3 = vld [vmem:[%s2601_s1 + $0xf8] sm:$0xff]  ;;  %1167 = vmatpush.bf16.msra.mxu2 %v1995_v2  ;;  %v2002_v7 = vld [vmem:[%s2601_s1 + $0xf0] sm:$0xff]  ;;  %v2001_v11 = vld [vmem:[%s2601_s1 + $0xe8] sm:$0xff] }
   0x5   :  { %1181 = vmatpush.bf16.msra.mxu3 %v2003_v3  ;;  %v1976_v12 = vld [vmem:[%s2601_s1 + $0x20] sm:$0xff]  ;;  %v1975_v16 = vld [vmem:[%s2601_s1 + $0x18] sm:$0xff]  ;;  %v1974_v20 = vld [vmem:[%s2601_s1 + $0x10] sm:$0xff] }
   0x6   :  { %1140 = vmatpush.bf16.msra.mxu0 %v1978_v4  ;;  %v1984_v13 = vld [vmem:[%s2601_s1 + $0x60] sm:$0xff]  ;;  %v1983_v17 = vld [vmem:[%s2601_s1 + $0x58] sm:$0xff]  ;;  %v1982_v21 = vld [vmem:[%s2601_s1 + $0x50] sm:$0xff] }
   0x7   :  { %1154 = vmatpush.bf16.msra.mxu1 %v1986_v5  ;;  %v1992_v14 = vld [vmem:[%s2601_s1 + $0xa0] sm:$0xff]  ;;  %v1991_v18 = vld [vmem:[%s2601_s1 + $0x98] sm:$0xff]  ;;  %v1990_v22 = vld [vmem:[%s2601_s1 + $0x90] sm:$0xff] }
   0x8   :  { %1168 = vmatpush.bf16.msra.mxu2 %v1994_v6  ;;  %v2000_v15 = vld [vmem:[%s2601_s1 + $0xe0] sm:$0xff]  ;;  %v1999_v19 = vld [vmem:[%s2601_s1 + $0xd8] sm:$0xff]  ;;  %v1998_v23 = vld [vmem:[%s2601_s1 + $0xd0] sm:$0xff] }
   0x9   :  { %1182 = vmatpush.bf16.msra.mxu3 %v2002_v7  ;;  %v1973_v24 = vld [vmem:[%s2601_s1 + $0x8] sm:$0xff]  ;;  %v1972_v28 = vld [vmem:[%s2601_s1] sm:$0xff]  ;;  %v2011_v32 = vld [vmem:[%s2601_s1 + $0x138] sm:$0xff] }
   0xa   :  { %1141 = vmatpush.bf16.msra.mxu0 %v1977_v8  ;;  %v1981_v25 = vld [vmem:[%s2601_s1 + $0x48] sm:$0xff]  ;;  %v1980_v29 = vld [vmem:[%s2601_s1 + $0x40] sm:$0xff]  ;;  %v2019_v33 = vld [vmem:[%s2601_s1 + $0x178] sm:$0xff] }
   0xb   :  { %1155 = vmatpush.bf16.msra.mxu1 %v1985_v9  ;;  %v1989_v26 = vld [vmem:[%s2601_s1 + $0x88] sm:$0xff]  ;;  %v1988_v30 = vld [vmem:[%s2601_s1 + $0x80] sm:$0xff]  ;;  %v2027_v42 = vld [vmem:[%s2601_s1 + $0x1b8] sm:$0xff] }
   0xc   :  { %1169 = vmatpush.bf16.msra.mxu2 %v1993_v10  ;;  %v1997_v27 = vld [vmem:[%s2601_s1 + $0xc8] sm:$0xff]  ;;  %v1996_v31 = vld [vmem:[%s2601_s1 + $0xc0] sm:$0xff]  ;;  %v2035_v43 = vld [vmem:[%s2601_s1 + $0x1f8] sm:$0xff] }
   0xd   :  { %1183 = vmatpush.bf16.msra.mxu3 %v2001_v11  ;;  %v1382_v34 = vld [vmem:[%s2602_s0] sm:$0xf]  ;;  %v1390_v36 = vld [vmem:[%s2602_s0 + $0x8] sm:$0xf]  ;;  %v1956_v38 = vld [vmem:[%s2602_s0 + $0x4] sm:$0xf] }
   0xe   :  { %1142 = vmatpush.bf16.msra.mxu0 %v1976_v12  ;;  %v1964_v35 = vld [vmem:[%s2602_s0 + $0x3c] sm:$0xf0]  ;;  %v1965_v37 = vld [vmem:[%s2602_s0 + $0x44] sm:$0xf0]  ;;  %v1384_v39 = vld [vmem:[%s2602_s0 + $0x40] sm:$0xf0] }
   0xf   :  { %1156 = vmatpush.bf16.msra.mxu1 %v1984_v13  ;;  %v1957_v40 = vld [vmem:[%s2602_s0 + $0xc] sm:$0xf]  ;;  %v1383_v44 = vor.u32 %v1964_v35, %v1382_v34  ;;  %v1391_v45 = vor.u32 %v1965_v37, %v1390_v36  ;;  %v1387_v46 = vor.u32 %v1956_v38, %v1384_v39  ;;  %v2010_v48 = vld [vmem:[%s2601_s1 + $0x130] sm:$0xff]  ;;  %v2008_v56 = vld [vmem:[%s2601_s1 + $0x120] sm:$0xff] }
  0x10   :  { %1170 = vmatpush.bf16.msra.mxu2 %v1992_v14  ;;  %v1392_v41 = vld [vmem:[%s2602_s0 + $0x48] sm:$0xf0]  ;;  %v2018_v49 = vld [vmem:[%s2601_s1 + $0x170] sm:$0xff]  ;;  %v2016_v57 = vld [vmem:[%s2601_s1 + $0x160] sm:$0xff] }
  0x11   :  { %1184 = vmatpush.bf16.msra.mxu3 %v2000_v15  ;;  %v1395_v47 = vor.u32 %v1957_v40, %v1392_v41  ;;  %v2026_v50 = vld [vmem:[%s2601_s1 + $0x1b0] sm:$0xff]  ;;  %v2009_v52 = vld [vmem:[%s2601_s1 + $0x128] sm:$0xff]  ;;  %v2024_v58 = vld [vmem:[%s2601_s1 + $0x1a0] sm:$0xff] }
  0x12   :  { %1143 = vmatpush.bf16.msra.mxu0 %v1975_v16  ;;  %v2034_v51 = vld [vmem:[%s2601_s1 + $0x1f0] sm:$0xff]  ;;  %v2017_v53 = vld [vmem:[%s2601_s1 + $0x168] sm:$0xff]  ;;  %v2032_v59 = vld [vmem:[%s2601_s1 + $0x1e0] sm:$0xff] }
  0x13   :  { %1157 = vmatpush.bf16.msra.mxu1 %v1983_v17  ;;  %v2025_v54 = vld [vmem:[%s2601_s1 + $0x1a8] sm:$0xff]  ;;  %v2007_v60 = vld [vmem:[%s2601_s1 + $0x118] sm:$0xff]  ;;  %v2006_v0 = vld [vmem:[%s2601_s1 + $0x110] sm:$0xff] }
  0x14   :  { %1171 = vmatpush.bf16.msra.mxu2 %v1991_v18  ;;  %v2033_v55 = vld [vmem:[%s2601_s1 + $0x1e8] sm:$0xff]  ;;  %v2015_v61 = vld [vmem:[%s2601_s1 + $0x158] sm:$0xff]  ;;  %v2014_v1 = vld [vmem:[%s2601_s1 + $0x150] sm:$0xff] }
  0x15   :  { %1185 = vmatpush.bf16.msra.mxu3 %v1999_v19  ;;  %v2023_v62 = vld [vmem:[%s2601_s1 + $0x198] sm:$0xff]  ;;  %v2022_v2 = vld [vmem:[%s2601_s1 + $0x190] sm:$0xff]  ;;  %v2005_v4 = vld [vmem:[%s2601_s1 + $0x108] sm:$0xff] }
  0x16   :  { %1144 = vmatpush.bf16.msra.mxu0 %v1974_v20  ;;  %v2031_v63 = vld [vmem:[%s2601_s1 + $0x1d8] sm:$0xff]  ;;  %v2030_v3 = vld [vmem:[%s2601_s1 + $0x1d0] sm:$0xff]  ;;  %v2013_v5 = vld [vmem:[%s2601_s1 + $0x148] sm:$0xff] }
  0x17   :  { %1158 = vmatpush.bf16.msra.mxu1 %v1982_v21  ;;  %v2021_v6 = vld [vmem:[%s2601_s1 + $0x188] sm:$0xff]  ;;  %v2004_v8 = vld [vmem:[%s2601_s1 + $0x100] sm:$0xff]  ;;  %v2043_v12 = vld [vmem:[%s2601_s1 + $0x238] sm:$0xff] }
  0x18   :  { %1172 = vmatpush.bf16.msra.mxu2 %v1990_v22  ;;  %v2029_v7 = vld [vmem:[%s2601_s1 + $0x1c8] sm:$0xff]  ;;  %v2012_v9 = vld [vmem:[%s2601_s1 + $0x140] sm:$0xff]  ;;  %v2051_v13 = vld [vmem:[%s2601_s1 + $0x278] sm:$0xff] }
  0x19   :  { %1186 = vmatpush.bf16.msra.mxu3 %v1998_v23  ;;  %v2020_v10 = vld [vmem:[%s2601_s1 + $0x180] sm:$0xff]  ;;  %v1398_v14 = vld [vmem:[%s2602_s0 + $0x10] sm:$0xf]  ;;  %v1406_v16 = vld [vmem:[%s2602_s0 + $0x18] sm:$0xf] }
  0x1a   :  { %1145 = vmatpush.bf16.msra.mxu0 %v1973_v24  ;;  %v2028_v11 = vld [vmem:[%s2601_s1 + $0x1c0] sm:$0xff]  ;;  %v1966_v15 = vld [vmem:[%s2602_s0 + $0x4c] sm:$0xf0]  ;;  %v1967_v17 = vld [vmem:[%s2602_s0 + $0x54] sm:$0xf0] }
  0x1b   :  { %1159 = vmatpush.bf16.msra.mxu1 %v1981_v25  ;;  %v1958_v18 = vld [vmem:[%s2602_s0 + $0x14] sm:$0xf]  ;;  %v1959_v20 = vld [vmem:[%s2602_s0 + $0x1c] sm:$0xf]  ;;  %v1399_v24 = vor.u32 %v1966_v15, %v1398_v14  ;;  %v1407_v25 = vor.u32 %v1967_v17, %v1406_v16  ;;  %v2057_v34 = vld [vmem:[%s2601_s1 + $0x2a8] sm:$0xff] }
  0x1c   :  { %1173 = vmatpush.bf16.msra.mxu2 %v1989_v26  ;;  %v1400_v19 = vld [vmem:[%s2602_s0 + $0x50] sm:$0xf0]  ;;  %v1408_v21 = vld [vmem:[%s2602_s0 + $0x58] sm:$0xf0]  ;;  %v2065_v35 = vld [vmem:[%s2601_s1 + $0x2e8] sm:$0xff] }
  0x1d   :  { %1187 = vmatpush.bf16.msra.mxu3 %v1997_v27  ;;  %v2059_v22 = vld [vmem:[%s2601_s1 + $0x2b8] sm:$0xff]  ;;  %v1403_v26 = vor.u32 %v1958_v18, %v1400_v19  ;;  %v1411_v27 = vor.u32 %v1959_v20, %v1408_v21  ;;  %v2040_v36 = vld [vmem:[%s2601_s1 + $0x220] sm:$0xff]  ;;  %v2089_v14 = vld [vmem:[%s2601_s1 + $0x3a8] sm:$0xff] }
  0x1e   :  { %1146 = vmatpush.bf16.msra.mxu0 %v1972_v28  ;;  %v2067_v23 = vld [vmem:[%s2601_s1 + $0x2f8] sm:$0xff]  ;;  %v2042_v28 = vld [vmem:[%s2601_s1 + $0x230] sm:$0xff]  ;;  %v2048_v37 = vld [vmem:[%s2601_s1 + $0x260] sm:$0xff] }
  0x1f   :  { %1160 = vmatpush.bf16.msra.mxu1 %v1980_v29  ;;  %v2050_v29 = vld [vmem:[%s2601_s1 + $0x270] sm:$0xff]  ;;  %v2056_v38 = vld [vmem:[%s2601_s1 + $0x2a0] sm:$0xff]  ;;  %v2039_v40 = vld [vmem:[%s2601_s1 + $0x218] sm:$0xff] }
  0x20   :  { %1174 = vmatpush.bf16.msra.mxu2 %v1988_v30  ;;  %v2058_v30 = vld [vmem:[%s2601_s1 + $0x2b0] sm:$0xff]  ;;  %v2064_v39 = vld [vmem:[%s2601_s1 + $0x2e0] sm:$0xff]  ;;  %v2047_v41 = vld [vmem:[%s2601_s1 + $0x258] sm:$0xff] }
  0x21   :  { %1188 = vmatpush.bf16.msra.mxu3 %v1996_v31  ;;  %1147 = vmatmul.bf16.vlgmr.msra.gmra.mxu0 %v1383_v44  ;;  %v2066_v31 = vld [vmem:[%s2601_s1 + $0x2f0] sm:$0xff]  ;;  %v2097_v15 = vld [vmem:[%s2601_s1 + $0x3e8] sm:$0xff]  ;;  %v2072_v16 = vld [vmem:[%s2601_s1 + $0x320] sm:$0xff] }
  0x22   :  { %1195 = vmatpush.bf16.msrb.mxu0 %v2011_v32  ;;  %1161 = vmatmul.bf16.vlgmr.msra.gmra.mxu1 %v1387_v46  ;;  %v2041_v32 = vld [vmem:[%s2601_s1 + $0x228] sm:$0xff]  ;;  %v2038_v44 = vld [vmem:[%s2601_s1 + $0x210] sm:$0xff]  ;;  %v2080_v17 = vld [vmem:[%s2601_s1 + $0x360] sm:$0xff] }
  0x23   :  { %1209 = vmatpush.bf16.msrb.mxu1 %v2019_v33  ;;  %1175 = vmatmul.bf16.vlgmr.msra.gmra.mxu2 %v1391_v45  ;;  %v2049_v33 = vld [vmem:[%s2601_s1 + $0x268] sm:$0xff]  ;;  %v2046_v45 = vld [vmem:[%s2601_s1 + $0x250] sm:$0xff]  ;;  %v2088_v18 = vld [vmem:[%s2601_s1 + $0x3a0] sm:$0xff] }
  0x24   :  { %1223 = vmatpush.bf16.msrb.mxu2 %v2027_v42  ;;  %1189 = vmatmul.bf16.vlgmr.msra.gmra.mxu3 %v1395_v47  ;;  %v2055_v42 = vld [vmem:[%s2601_s1 + $0x298] sm:$0xff]  ;;  %v2054_v46 = vld [vmem:[%s2601_s1 + $0x290] sm:$0xff]  ;;  %v2096_v19 = vld [vmem:[%s2601_s1 + $0x3e0] sm:$0xff] }
  0x25   :  { %1237 = vmatpush.bf16.msrb.mxu3 %v2035_v43  ;;  %v2063_v43 = vld [vmem:[%s2601_s1 + $0x2d8] sm:$0xff]  ;;  %v2062_v47 = vld [vmem:[%s2601_s1 + $0x2d0] sm:$0xff] }
  0x26   :  { %1196 = vmatpush.bf16.msrb.mxu0 %v2010_v48  ;;  %v2037_v48 = vld [vmem:[%s2601_s1 + $0x208] sm:$0xff]  ;;  %v2071_v20 = vld [vmem:[%s2601_s1 + $0x318] sm:$0xff] }
  0x27   :  { %1210 = vmatpush.bf16.msrb.mxu1 %v2018_v49  ;;  %v2045_v49 = vld [vmem:[%s2601_s1 + $0x248] sm:$0xff]  ;;  %v2079_v21 = vld [vmem:[%s2601_s1 + $0x358] sm:$0xff] }
  0x28   :  { %1224 = vmatpush.bf16.msrb.mxu2 %v2026_v50  ;;  %v2053_v50 = vld [vmem:[%s2601_s1 + $0x288] sm:$0xff] }
  0x29   :  { %1238 = vmatpush.bf16.msrb.mxu3 %v2034_v51  ;;  %v2061_v51 = vld [vmem:[%s2601_s1 + $0x2c8] sm:$0xff] }
  0x2a   :  { %1197 = vmatpush.bf16.msrb.mxu0 %v2009_v52  ;;  %v2036_v52 = vld [vmem:[%s2601_s1 + $0x200] sm:$0xff] }
  0x2b   :  { %1211 = vmatpush.bf16.msrb.mxu1 %v2017_v53  ;;  %v2044_v53 = vld [vmem:[%s2601_s1 + $0x240] sm:$0xff] }
  0x2c   :  { %1225 = vmatpush.bf16.msrb.mxu2 %v2025_v54  ;;  %v2052_v54 = vld [vmem:[%s2601_s1 + $0x280] sm:$0xff] }
  0x2d   :  { %1239 = vmatpush.bf16.msrb.mxu3 %v2033_v55  ;;  %v2060_v55 = vld [vmem:[%s2601_s1 + $0x2c0] sm:$0xff] }
  0x2e   :  { %1198 = vmatpush.bf16.msrb.mxu0 %v2008_v56  ;;  %v2075_v56 = vld [vmem:[%s2601_s1 + $0x338] sm:$0xff] }
  0x2f   :  { %1212 = vmatpush.bf16.msrb.mxu1 %v2016_v57  ;;  %v2083_v57 = vld [vmem:[%s2601_s1 + $0x378] sm:$0xff] }
  0x30   :  { %1226 = vmatpush.bf16.msrb.mxu2 %v2024_v58  ;;  %v1414_v58 = vld [vmem:[%s2602_s0 + $0x20] sm:$0xf] }
  0x31   :  { %1240 = vmatpush.bf16.msrb.mxu3 %v2032_v59  ;;  %v1968_v59 = vld [vmem:[%s2602_s0 + $0x5c] sm:$0xf0] }
  0x32   :  { %1199 = vmatpush.bf16.msrb.mxu0 %v2007_v60  ;;  %v1422_v60 = vld [vmem:[%s2602_s0 + $0x28] sm:$0xf] }
  0x33   :  { %1213 = vmatpush.bf16.msrb.mxu1 %v2015_v61  ;;  %v1969_v61 = vld [vmem:[%s2602_s0 + $0x64] sm:$0xf0] }
  0x34   :  { %1227 = vmatpush.bf16.msrb.mxu2 %v2023_v62  ;;  %v1960_v62 = vld [vmem:[%s2602_s0 + $0x24] sm:$0xf] }
  0x35   :  { %1241 = vmatpush.bf16.msrb.mxu3 %v2031_v63  ;;  %v1416_v63 = vld [vmem:[%s2602_s0 + $0x60] sm:$0xf0] }
  0x36   :  { %1200 = vmatpush.bf16.msrb.mxu0 %v2006_v0  ;;  %v1961_v0 = vld [vmem:[%s2602_s0 + $0x2c] sm:$0xf] }
  0x37   :  { %1214 = vmatpush.bf16.msrb.mxu1 %v2014_v1  ;;  %v1424_v1 = vld [vmem:[%s2602_s0 + $0x68] sm:$0xf0] }
  0x38   :  { %1228 = vmatpush.bf16.msrb.mxu2 %v2022_v2  ;;  %v2091_v2 = vld [vmem:[%s2601_s1 + $0x3b8] sm:$0xff] }
  0x39   :  { %1242 = vmatpush.bf16.msrb.mxu3 %v2030_v3  ;;  %v2099_v3 = vld [vmem:[%s2601_s1 + $0x3f8] sm:$0xff] }
  0x3a   :  { %1201 = vmatpush.bf16.msrb.mxu0 %v2005_v4  ;;  %v1415_v4 = vor.u32 %v1968_v59, %v1414_v58 }
  0x3b   :  { %1215 = vmatpush.bf16.msrb.mxu1 %v2013_v5  ;;  %v1423_v5 = vor.u32 %v1969_v61, %v1422_v60 }
  0x3c   :  { %1229 = vmatpush.bf16.msrb.mxu2 %v2021_v6  ;;  %v1419_v6 = vor.u32 %v1960_v62, %v1416_v63 }
  0x3d   :  { %1243 = vmatpush.bf16.msrb.mxu3 %v2029_v7  ;;  %v1427_v7 = vor.u32 %v1961_v0, %v1424_v1 }
  0x3e   :  { %1202 = vmatpush.bf16.msrb.mxu0 %v2004_v8  ;;  %v2074_v8 = vld [vmem:[%s2601_s1 + $0x330] sm:$0xff] }
  0x3f   :  { %1216 = vmatpush.bf16.msrb.mxu1 %v2012_v9  ;;  %v2082_v9 = vld [vmem:[%s2601_s1 + $0x370] sm:$0xff] }
  0x40   :  { %1230 = vmatpush.bf16.msrb.mxu2 %v2020_v10  ;;  %v2090_v10 = vld [vmem:[%s2601_s1 + $0x3b0] sm:$0xff] }
  0x41   :  { %1244 = vmatpush.bf16.msrb.mxu3 %v2028_v11  ;;  %1203 = vmatmul.bf16.vlgmr.msrb.gmra.mxu0 %v1399_v24  ;;  %v2098_v11 = vld [vmem:[%s2601_s1 + $0x3f0] sm:$0xff] }
  0x42   :  { %1251 = vmatpush.bf16.msra.mxu0 %v2043_v12  ;;  %1217 = vmatmul.bf16.vlgmr.msrb.gmra.mxu1 %v1403_v26  ;;  %v2073_v12 = vld [vmem:[%s2601_s1 + $0x328] sm:$0xff]  ;;  %v2070_v24 = vld [vmem:[%s2601_s1 + $0x310] sm:$0xff] }
  0x43   :  { %1265 = vmatpush.bf16.msra.mxu1 %v2051_v13  ;;  %1231 = vmatmul.bf16.vlgmr.msrb.gmra.mxu2 %v1407_v25  ;;  %v2081_v13 = vld [vmem:[%s2601_s1 + $0x368] sm:$0xff]  ;;  %v2078_v25 = vld [vmem:[%s2601_s1 + $0x350] sm:$0xff] }
  0x44   :  { %1279 = vmatpush.bf16.msra.mxu2 %v2059_v22  ;;  %1245 = vmatmul.bf16.vlgmr.msrb.gmra.mxu3 %v1411_v27  ;;  %v2087_v22 = vld [vmem:[%s2601_s1 + $0x398] sm:$0xff]  ;;  %v2086_v26 = vld [vmem:[%s2601_s1 + $0x390] sm:$0xff] }
  0x45   :  { %1293 = vmatpush.bf16.msra.mxu3 %v2067_v23  ;;  %v2095_v23 = vld [vmem:[%s2601_s1 + $0x3d8] sm:$0xff]  ;;  %v2094_v27 = vld [vmem:[%s2601_s1 + $0x3d0] sm:$0xff] }
  0x46   :  { %1252 = vmatpush.bf16.msra.mxu0 %v2042_v28  ;;  %v2069_v28 = vld [vmem:[%s2601_s1 + $0x308] sm:$0xff] }
  0x47   :  { %1266 = vmatpush.bf16.msra.mxu1 %v2050_v29  ;;  %v2077_v29 = vld [vmem:[%s2601_s1 + $0x348] sm:$0xff] }
  0x48   :  { %1280 = vmatpush.bf16.msra.mxu2 %v2058_v30  ;;  %v2085_v30 = vld [vmem:[%s2601_s1 + $0x388] sm:$0xff] }
  0x49   :  { %1294 = vmatpush.bf16.msra.mxu3 %v2066_v31  ;;  %v2093_v31 = vld [vmem:[%s2601_s1 + $0x3c8] sm:$0xff] }
  0x4a   :  { %1253 = vmatpush.bf16.msra.mxu0 %v2041_v32  ;;  %v2068_v32 = vld [vmem:[%s2601_s1 + $0x300] sm:$0xff] }
  0x4b   :  { %1267 = vmatpush.bf16.msra.mxu1 %v2049_v33  ;;  %v2076_v33 = vld [vmem:[%s2601_s1 + $0x340] sm:$0xff] }
  0x4c   :  { %1281 = vmatpush.bf16.msra.mxu2 %v2057_v34  ;;  %v2084_v34 = vld [vmem:[%s2601_s1 + $0x380] sm:$0xff] }
  0x4d   :  { %1295 = vmatpush.bf16.msra.mxu3 %v2065_v35  ;;  %v2092_v35 = vld [vmem:[%s2601_s1 + $0x3c0] sm:$0xff] }
  0x4e   :  { %1254 = vmatpush.bf16.msra.mxu0 %v2040_v36  ;;  %v1430_v36 = vld [vmem:[%s2602_s0 + $0x30] sm:$0xf] }
  0x4f   :  { %1268 = vmatpush.bf16.msra.mxu1 %v2048_v37  ;;  %v1970_v37 = vld [vmem:[%s2602_s0 + $0x6c] sm:$0xf0] }
  0x50   :  { %1282 = vmatpush.bf16.msra.mxu2 %v2056_v38  ;;  %v1962_v38 = vld [vmem:[%s2602_s0 + $0x34] sm:$0xf] }
  0x51   :  { %1296 = vmatpush.bf16.msra.mxu3 %v2064_v39  ;;  %v1432_v39 = vld [vmem:[%s2602_s0 + $0x70] sm:$0xf0] }
  0x52   :  { %1255 = vmatpush.bf16.msra.mxu0 %v2039_v40  ;;  %v1438_v40 = vld [vmem:[%s2602_s0 + $0x38] sm:$0xf] }
  0x53   :  { %1269 = vmatpush.bf16.msra.mxu1 %v2047_v41  ;;  %v1971_v41 = vld [vmem:[%s2602_s0 + $0x74] sm:$0xf0] }
  0x54   :  { %1283 = vmatpush.bf16.msra.mxu2 %v2055_v42  ;;  %v1963_v42 = vld [vmem:[%s2602_s0 + $0x3c] sm:$0xf] }
  0x55   :  { %1297 = vmatpush.bf16.msra.mxu3 %v2063_v43  ;;  %v1440_v43 = vld [vmem:[%s2602_s0 + $0x78] sm:$0xf0] }
  0x56   :  { %1256 = vmatpush.bf16.msra.mxu0 %v2038_v44  ;;  %v1431_v44 = vor.u32 %v1970_v37, %v1430_v36 }
  0x57   :  { %1270 = vmatpush.bf16.msra.mxu1 %v2046_v45  ;;  %v1435_v45 = vor.u32 %v1962_v38, %v1432_v39 }
  0x58   :  { %1284 = vmatpush.bf16.msra.mxu2 %v2054_v46  ;;  %v1439_v46 = vor.u32 %v1971_v41, %v1438_v40 }
  0x59   :  { %1298 = vmatpush.bf16.msra.mxu3 %v2062_v47  ;;  %v1443_v47 = vor.u32 %v1963_v42, %v1440_v43 }
  0x5a   :  { %1257 = vmatpush.bf16.msra.mxu0 %v2037_v48 }
  0x5b   :  { %1271 = vmatpush.bf16.msra.mxu1 %v2045_v49 }
  0x5c   :  { %1285 = vmatpush.bf16.msra.mxu2 %v2053_v50 }
  0x5d   :  { %1299 = vmatpush.bf16.msra.mxu3 %v2061_v51 }
  0x5e   :  { %1258 = vmatpush.bf16.msra.mxu0 %v2036_v52 }
  0x5f   :  { %1272 = vmatpush.bf16.msra.mxu1 %v2044_v53 }
  0x60   :  { %1286 = vmatpush.bf16.msra.mxu2 %v2052_v54 }
  0x61   :  { %1300 = vmatpush.bf16.msra.mxu3 %v2060_v55  ;;  %1259 = vmatmul.bf16.vlgmr.msra.gmra.mxu0 %v1415_v4 }
  0x62   :  { %1307 = vmatpush.bf16.msrb.mxu0 %v2075_v56  ;;  %1273 = vmatmul.bf16.vlgmr.msra.gmra.mxu1 %v1419_v6 }
  0x63   :  { %1321 = vmatpush.bf16.msrb.mxu1 %v2083_v57  ;;  %1287 = vmatmul.bf16.vlgmr.msra.gmra.mxu2 %v1423_v5 }
  0x64   :  { %1335 = vmatpush.bf16.msrb.mxu2 %v2091_v2  ;;  %1301 = vmatmul.bf16.vlgmr.msra.gmra.mxu3 %v1427_v7 }
  0x65   :  { %1349 = vmatpush.bf16.msrb.mxu3 %v2099_v3 }
  0x66   :  { %1308 = vmatpush.bf16.msrb.mxu0 %v2074_v8 }
  0x67   :  { %1322 = vmatpush.bf16.msrb.mxu1 %v2082_v9 }
  0x68   :  { %1336 = vmatpush.bf16.msrb.mxu2 %v2090_v10 }
  0x69   :  { %1350 = vmatpush.bf16.msrb.mxu3 %v2098_v11 }
  0x6a   :  { %1309 = vmatpush.bf16.msrb.mxu0 %v2073_v12 }
  0x6b   :  { %1323 = vmatpush.bf16.msrb.mxu1 %v2081_v13 }
  0x6c   :  { %1337 = vmatpush.bf16.msrb.mxu2 %v2089_v14 }
  0x6d   :  { %1351 = vmatpush.bf16.msrb.mxu3 %v2097_v15 }
  0x6e   :  { %1310 = vmatpush.bf16.msrb.mxu0 %v2072_v16 }
  0x6f   :  { %1324 = vmatpush.bf16.msrb.mxu1 %v2080_v17 }
  0x70   :  { %1338 = vmatpush.bf16.msrb.mxu2 %v2088_v18 }
  0x71   :  { %1352 = vmatpush.bf16.msrb.mxu3 %v2096_v19 }
  0x72   :  { %1311 = vmatpush.bf16.msrb.mxu0 %v2071_v20 }
  0x73   :  { %1325 = vmatpush.bf16.msrb.mxu1 %v2079_v21 }
  0x74   :  { %1339 = vmatpush.bf16.msrb.mxu2 %v2087_v22 }
  0x75   :  { %1353 = vmatpush.bf16.msrb.mxu3 %v2095_v23 }
  0x76   :  { %1312 = vmatpush.bf16.msrb.mxu0 %v2070_v24 }
  0x77   :  { %1326 = vmatpush.bf16.msrb.mxu1 %v2078_v25 }
  0x78   :  { %1340 = vmatpush.bf16.msrb.mxu2 %v2086_v26 }
  0x79   :  { %1354 = vmatpush.bf16.msrb.mxu3 %v2094_v27 }
  0x7a   :  { %1313 = vmatpush.bf16.msrb.mxu0 %v2069_v28 }
  0x7b   :  { %1327 = vmatpush.bf16.msrb.mxu1 %v2077_v29 }
  0x7c   :  { %1341 = vmatpush.bf16.msrb.mxu2 %v2085_v30 }
  0x7d   :  { %1355 = vmatpush.bf16.msrb.mxu3 %v2093_v31 }
  0x7e   :  { %1314 = vmatpush.bf16.msrb.mxu0 %v2068_v32 }
  0x7f   :  { %1328 = vmatpush.bf16.msrb.mxu1 %v2076_v33 }
  0x80   :  { %1342 = vmatpush.bf16.msrb.mxu2 %v2084_v34 }
  0x81   :  { %1356 = vmatpush.bf16.msrb.mxu3 %v2092_v35  ;;  %1315 = vmatmul.bf16.vlgmr.msrb.gmra.mxu0 %v1431_v44 }
  0x82   :  { %1329 = vmatmul.bf16.vlgmr.msrb.gmra.mxu1 %v1435_v45 }
  0x83   :  { %1343 = vmatmul.bf16.vlgmr.msrb.gmra.mxu2 %v1439_v46 }
  0x84   :  { %1357 = vmatmul.bf16.vlgmr.msrb.gmra.mxu3 %v1443_v47 }
  0x9e   :  { %v1148_v48 = vpop.f32.mrf.mxu0 }
  0x9f   :  { %v1162_v49 = vpop.f32.mrf.mxu1 }
  0xa0   :  { %v1163_v56 = vadd.f32 %v1162_v49, %v1148_v48 }
  0xa6   :  { %v1176_v50 = vpop.f32.mrf.mxu2  ;;  %v1150_v52 = vpop.f32.mrf.mxu0 }
  0xa7   :  { %v1190_v51 = vpop.f32.mrf.mxu3  ;;  %v1164_v53 = vpop.f32.mrf.mxu1  ;;  %v1177_v59 = vadd.f32 %v1176_v50, %v1163_v56 }
  0xa8   :  { %v1165_v0 = vadd.f32 %v1164_v53, %v1150_v52 }
  0xa9   :  { %v1191_v62 = vadd.f32 %v1190_v51, %v1177_v59 }
  0xae   :  { %v1178_v54 = vpop.f32.mrf.mxu2 }
  0xaf   :  { %v1192_v55 = vpop.f32.mrf.mxu3  ;;  %v1179_v3 = vadd.f32 %v1178_v54, %v1165_v0 }
  0xb1   :  { %v1193_v8 = vadd.f32 %v1192_v55, %v1179_v3 }
  0xbe   :  { %v1204_v57 = vpop.f32.mrf.mxu0 }
  0xbf   :  { %v1218_v58 = vpop.f32.mrf.mxu1  ;;  %v1205_v1 = vadd.f32 %v1204_v57, %v1191_v62 }
  0xc1   :  { %v1219_v4 = vadd.f32 %v1218_v58, %v1205_v1 }
  0xc6   :  { %v1232_v60 = vpop.f32.mrf.mxu2  ;;  %v1206_v63 = vpop.f32.mrf.mxu0 }
  0xc7   :  { %v1246_v61 = vpop.f32.mrf.mxu3  ;;  %v1220_v2 = vpop.f32.mrf.mxu1  ;;  %v1233_v9 = vadd.f32 %v1232_v60, %v1219_v4  ;;  %v1207_v11 = vadd.f32 %v1206_v63, %v1193_v8 }
  0xc9   :  { %v1247_v12 = vadd.f32 %v1246_v61, %v1233_v9  ;;  %v1221_v15 = vadd.f32 %v1220_v2, %v1207_v11 }
  0xce   :  { %v1234_v5 = vpop.f32.mrf.mxu2 }
  0xcf   :  { %v1248_v6 = vpop.f32.mrf.mxu3  ;;  %v1235_v17 = vadd.f32 %v1234_v5, %v1221_v15 }
  0xd1   :  { %v1249_v21 = vadd.f32 %v1248_v6, %v1235_v17 }
  0xde   :  { %v1260_v7 = vpop.f32.mrf.mxu0 }
  0xdf   :  { %v1274_v10 = vpop.f32.mrf.mxu1  ;;  %v1261_v16 = vadd.f32 %v1260_v7, %v1247_v12 }
  0xe1   :  { %v1275_v19 = vadd.f32 %v1274_v10, %v1261_v16 }
  0xe6   :  { %v1288_v13 = vpop.f32.mrf.mxu2  ;;  %v1262_v18 = vpop.f32.mrf.mxu0 }
  0xe7   :  { %v1302_v14 = vpop.f32.mrf.mxu3  ;;  %v1276_v20 = vpop.f32.mrf.mxu1  ;;  %v1289_v22 = vadd.f32 %v1288_v13, %v1275_v19  ;;  %v1263_v23 = vadd.f32 %v1262_v18, %v1249_v21 }
  0xe9   :  { %v1303_v26 = vadd.f32 %v1302_v14, %v1289_v22  ;;  %v1277_v28 = vadd.f32 %v1276_v20, %v1263_v23 }
  0xee   :  { %v1290_v24 = vpop.f32.mrf.mxu2 }
  0xef   :  { %v1304_v25 = vpop.f32.mrf.mxu3  ;;  %v1291_v31 = vadd.f32 %v1290_v24, %v1277_v28 }
  0xf1   :  { %v1305_v35 = vadd.f32 %v1304_v25, %v1291_v31 }
  0xfe   :  { %v1316_v27 = vpop.f32.mrf.mxu0 }
  0xff   :  { %v1317_v29 = vadd.f32 %v1316_v27, %v1303_v26  ;;  %v1330_v30 = vpop.f32.mrf.mxu1 }
 0x101   :  { %v1331_v32 = vadd.f32 %v1330_v30, %v1317_v29 }
 0x106   :  { %v1344_v33 = vpop.f32.mrf.mxu2  ;;  %v1318_v37 = vpop.f32.mrf.mxu0 }
 0x107   :  { %v1358_v34 = vpop.f32.mrf.mxu3  ;;  %v1345_v36 = vadd.f32 %v1344_v33, %v1331_v32  ;;  %v1319_v39 = vadd.f32 %v1318_v37, %v1305_v35  ;;  %v1332_v41 = vpop.f32.mrf.mxu1 }
 0x109   :  { %v1359_v38 = vadd.f32 %v1358_v34, %v1345_v36  ;;  %v1333_v42 = vadd.f32 %v1332_v41, %v1319_v39 }
 0x10b   :  { %v1372_v40 = vmax.f32 %v1359_v38, 0.0 }
 0x10d   :  { %1374 = vst [vmem:[%s2603_s2] sm:$0xff] %v1372_v40 }
 0x10e   :  { %v1346_v43 = vpop.f32.mrf.mxu2 }
 0x10f   :  { %v1347_v44 = vadd.f32 %v1346_v43, %v1333_v42  ;;  %v1360_v45 = vpop.f32.mrf.mxu3 }
 0x111   :  { %v1361_v46 = vadd.f32 %v1360_v45, %v1347_v44 }
 0x113   :  { %v1373_v47 = vmax.f32 %v1361_v46, 0.0 }
 0x115   :  { %1375 = vst [vmem:[%s2603_s2 + $0x8] sm:$0xff] %v1373_v47 }

// kernel: regular_model_mnist_forward.6
= control target key start
LH: loop header
LB: loop body
LE: loop exit
PB: predicated region body
PF: predicated region fallthrough
CT: control target
= control target key end

     0   :  { %s13531_s9 = smov 0   ;;  %s13533_s10 = smov 0   ;;  %s16616_s0 = inlined_call_operand.vmem [shape: bf16[16,3200], index: 0, kind: input, shape index: {}]   ;;  %s16617_s1 = inlined_call_operand.vmem [shape: bf16[3200,2048], index: 1, kind: input, shape index: {}]   ;;  %s16618_s2 = inlined_call_operand.vmem [shape: bf16[16,2048], index: 2, kind: output, shape index: {}]  }
   0x1   :  { %s13535_s11 = smov 0   ;;  %s13537_s12 = smov 0  }
   0x2   :  { %s13539_s13 = smov 0  }
   0x3 LB: > { %s27_s14 = sadd.s32 1, %s13494_s12  ;;  %s9227_s15 = sadd.s32 4294967295, %s13498_s13   ;;  %s13498_s13 = sphi %s13539_s13, %s12_s13   ;;  %s13494_s12 = sphi %s13537_s12, %s16712_s12   ;;  %s13490_s11 = sphi %s13535_s11, %s16711_s11   ;;  %s13486_s10 = sphi %s13533_s10, %s16710_s10   ;;  %s13482_s9 = sphi %s13531_s9, %s16709_s9  }
   0x4   : > { %p29_p0 = scmp.ge.s32.totalorder %s27_s14, 4  ;;  %p75_p1 = scmp.ne.s32.totalorder %s13486_s10, %s13482_s9 }
   0x5   : > { %p76_p2 = scmp.eq.s32.totalorder %s13498_s13, 0  ;;  %p107_p4 = scmp.eq.s32.totalorder %s9227_s15, 3 }
   0x6   : > { %s16714_s14 = smov (%p29_p0, %s27_s14), 0  ;;  %s68_s17 = sadd.s32 1, %s13486_s10 }
   0x7   : > { %p77_p3 = por %p76_p2, %p75_p1  ;;  %s64_s16 = ssub.s32 %s13494_s12, %s16714_s14 }
   0x8   : > { %p66_p5 = scmp.eq.s32.totalorder %s64_s16, 0  ;;  %p13566_p6 = por %p107_p4, %p75_p1 }
   0x9   : > { %p9231_p7 = scmp.ge.s32.totalorder %s13498_s13, 4 }
   0xa   : > { %s13571_s19 = scalar_select %p66_p5, %s13486_s10, %s68_s17  }
   0xb   : > { %144 = sbr.rel (%p9231_p7) target bundleno = 422 (0x1a6), region = 20 }
  0x10   : > { %147 = sbr.rel (!%p77_p3) target bundleno = 422 (0x1a6), region = 24  ;;  %s149_s20 = sand.u32 (%p77_p3), 1, %s13486_s10  }
  0x11   : > { %s12543_s21 = sshll.u32 (%p77_p3), %s13494_s12, 4  ;;  %s13576_s22 = smul.u32 (%p77_p3), 6400, %s149_s20 }
  0x12   : > { %s13581_s25 = scalar_lea.vmem (%p77_p3), %s16617_s1, %s12543_s21   ;;  %s13591_s29 = smov (%p77_p3), 0  }
  0x13   : > { %s151_s26 = scalar_lea.vmem (%p77_p3), [#allocation3], %s13576_s22   ;;  %s16647_s28 = smov (%p77_p3), %s13581_s25 }
  0x14   : > { %s16646_s27 = smov (%p77_p3), %s151_s26  ;;  %s13593_s30 = smov (%p77_p3), 0  }
  0x15 LB: >> { %v171_v0 = vld [vmem:[%s13506_s28] sm:$0xff]  ;;  %s971_s3 = sadd.s32 1, %s13510_s29  ;;  %s167_s30 = sadd.s32 1, %s13514_s30   ;;  %s13514_s30 = sphi %s13593_s30, %s167_s30   ;;  %s13510_s29 = sphi %s13591_s29, %s16650_s29   ;;  %s13506_s28 = sphi %s16647_s28, %s16649_s28   ;;  %s13502_s27 = sphi %s16646_s27, %s16648_s27  }
  0x16   : >> { %v173_v1 = vld [vmem:[%s13506_s28 + $0x40] sm:$0xff]  ;;  %172 = vst [vmem:[%s13502_s27] sm:$0xff] %v171_v0  ;;  %p972_p8 = scmp.ge.s32.totalorder %s971_s3, 2  ;;  %p164_p9 = scmp.ge.s32.totalorder %s167_s30, 2  }
  0x17   : >> { %v175_v2 = vld [vmem:[%s13506_s28 + $0x80] sm:$0xff]  ;;  %174 = vst [vmem:[%s13502_s27 + $0x10] sm:$0xff] %v173_v1 }
  0x18   : >> { %v177_v3 = vld [vmem:[%s13506_s28 + $0xc0] sm:$0xff]  ;;  %176 = vst [vmem:[%s13502_s27 + $0x20] sm:$0xff] %v175_v2  ;;  %s16716_s3 = smov (%p972_p8, %s971_s3), 0 }
  0x19   : >> { %v179_v4 = vld [vmem:[%s13506_s28 + $0x100] sm:$0xff]  ;;  %178 = vst [vmem:[%s13502_s27 + $0x30] sm:$0xff] %v177_v3  ;;  %s9234_s4 = sshll.u32 %s16716_s3, 3  ;;  %s16650_s29 = smov %s16716_s3 }
  0x1a   : >> { %v181_v5 = vld [vmem:[%s13506_s28 + $0x140] sm:$0xff]  ;;  %180 = vst [vmem:[%s13502_s27 + $0x40] sm:$0xff] %v179_v4  ;;  %s14159_s5 = scalar_lea.vmem %s13581_s25, %s9234_s4   ;;  %s14163_s6 = scalar_lea.vmem %s151_s26, %s9234_s4 [#allocation3]  }
  0x1b   : >> { %v183_v6 = vld [vmem:[%s13506_s28 + $0x180] sm:$0xff]  ;;  %182 = vst [vmem:[%s13502_s27 + $0x50] sm:$0xff] %v181_v5 }
  0x1c   : >> { %v185_v7 = vld [vmem:[%s13506_s28 + $0x1c0] sm:$0xff]  ;;  %184 = vst [vmem:[%s13502_s27 + $0x60] sm:$0xff] %v183_v6 }
  0x1d   : >> { %v187_v8 = vld [vmem:[%s13506_s28 + $0x200] sm:$0xff]  ;;  %186 = vst [vmem:[%s13502_s27 + $0x70] sm:$0xff] %v185_v7 }
  0x1e   : >> { %v189_v9 = vld [vmem:[%s13506_s28 + $0x240] sm:$0xff]  ;;  %188 = vst [vmem:[%s13502_s27 + $0x80] sm:$0xff] %v187_v8 }
  0x1f   : >> { %v191_v10 = vld [vmem:[%s13506_s28 + $0x280] sm:$0xff]  ;;  %190 = vst [vmem:[%s13502_s27 + $0x90] sm:$0xff] %v189_v9 }
  0x20   : >> { %v193_v11 = vld [vmem:[%s13506_s28 + $0x2c0] sm:$0xff]  ;;  %192 = vst [vmem:[%s13502_s27 + $0xa0] sm:$0xff] %v191_v10 }
  0x21   : >> { %v195_v12 = vld [vmem:[%s13506_s28 + $0x300] sm:$0xff]  ;;  %194 = vst [vmem:[%s13502_s27 + $0xb0] sm:$0xff] %v193_v11 }
  0x22   : >> { %v197_v13 = vld [vmem:[%s13506_s28 + $0x340] sm:$0xff]  ;;  %196 = vst [vmem:[%s13502_s27 + $0xc0] sm:$0xff] %v195_v12 }
  0x23   : >> { %v199_v14 = vld [vmem:[%s13506_s28 + $0x380] sm:$0xff]  ;;  %198 = vst [vmem:[%s13502_s27 + $0xd0] sm:$0xff] %v197_v13 }
  0x24   : >> { %v201_v15 = vld [vmem:[%s13506_s28 + $0x3c0] sm:$0xff]  ;;  %200 = vst [vmem:[%s13502_s27 + $0xe0] sm:$0xff] %v199_v14 }
  0x25   : >> { %v203_v16 = vld [vmem:[%s13506_s28 + $0x400] sm:$0xff]  ;;  %202 = vst [vmem:[%s13502_s27 + $0xf0] sm:$0xff] %v201_v15 }
  0x26   : >> { %v205_v17 = vld [vmem:[%s13506_s28 + $0x440] sm:$0xff]  ;;  %204 = vst [vmem:[%s13502_s27 + $0x100] sm:$0xff] %v203_v16 }
  0x27   : >> { %v207_v18 = vld [vmem:[%s13506_s28 + $0x480] sm:$0xff]  ;;  %206 = vst [vmem:[%s13502_s27 + $0x110] sm:$0xff] %v205_v17 }
  0x28   : >> { %v209_v19 = vld [vmem:[%s13506_s28 + $0x4c0] sm:$0xff]  ;;  %208 = vst [vmem:[%s13502_s27 + $0x120] sm:$0xff] %v207_v18 }
  0x29   : >> { %v211_v20 = vld [vmem:[%s13506_s28 + $0x500] sm:$0xff]  ;;  %210 = vst [vmem:[%s13502_s27 + $0x130] sm:$0xff] %v209_v19 }
  0x2a   : >> { %v213_v21 = vld [vmem:[%s13506_s28 + $0x540] sm:$0xff]  ;;  %212 = vst [vmem:[%s13502_s27 + $0x140] sm:$0xff] %v211_v20 }
  0x2b   : >> { %v215_v22 = vld [vmem:[%s13506_s28 + $0x580] sm:$0xff]  ;;  %214 = vst [vmem:[%s13502_s27 + $0x150] sm:$0xff] %v213_v21 }
  0x2c   : >> { %v217_v23 = vld [vmem:[%s13506_s28 + $0x5c0] sm:$0xff]  ;;  %216 = vst [vmem:[%s13502_s27 + $0x160] sm:$0xff] %v215_v22 }
  0x2d   : >> { %v219_v24 = vld [vmem:[%s13506_s28 + $0x600] sm:$0xff]  ;;  %218 = vst [vmem:[%s13502_s27 + $0x170] sm:$0xff] %v217_v23 }
  0x2e   : >> { %v221_v25 = vld [vmem:[%s13506_s28 + $0x640] sm:$0xff]  ;;  %220 = vst [vmem:[%s13502_s27 + $0x180] sm:$0xff] %v219_v24 }
  0x2f   : >> { %v223_v26 = vld [vmem:[%s13506_s28 + $0x680] sm:$0xff]  ;;  %222 = vst [vmem:[%s13502_s27 + $0x190] sm:$0xff] %v221_v25 }
  0x30   : >> { %v225_v27 = vld [vmem:[%s13506_s28 + $0x6c0] sm:$0xff]  ;;  %224 = vst [vmem:[%s13502_s27 + $0x1a0] sm:$0xff] %v223_v26 }
  0x31   : >> { %v227_v28 = vld [vmem:[%s13506_s28 + $0x700] sm:$0xff]  ;;  %226 = vst [vmem:[%s13502_s27 + $0x1b0] sm:$0xff] %v225_v27 }
  0x32   : >> { %v229_v29 = vld [vmem:[%s13506_s28 + $0x740] sm:$0xff]  ;;  %228 = vst [vmem:[%s13502_s27 + $0x1c0] sm:$0xff] %v227_v28 }
  0x33   : >> { %v231_v30 = vld [vmem:[%s13506_s28 + $0x780] sm:$0xff]  ;;  %230 = vst [vmem:[%s13502_s27 + $0x1d0] sm:$0xff] %v229_v29 }
  0x34   : >> { %v233_v31 = vld [vmem:[%s13506_s28 + $0x7c0] sm:$0xff]  ;;  %232 = vst [vmem:[%s13502_s27 + $0x1e0] sm:$0xff] %v231_v30 }
  0x35   : >> { %v235_v32 = vld [vmem:[%s13506_s28 + $0x800] sm:$0xff]  ;;  %234 = vst [vmem:[%s13502_s27 + $0x1f0] sm:$0xff] %v233_v31 }
  0x36   : >> { %v237_v33 = vld [vmem:[%s13506_s28 + $0x840] sm:$0xff]  ;;  %236 = vst [vmem:[%s13502_s27 + $0x200] sm:$0xff] %v235_v32 }
  0x37   : >> { %v239_v34 = vld [vmem:[%s13506_s28 + $0x880] sm:$0xff]  ;;  %238 = vst [vmem:[%s13502_s27 + $0x210] sm:$0xff] %v237_v33 }
  0x38   : >> { %v241_v35 = vld [vmem:[%s13506_s28 + $0x8c0] sm:$0xff]  ;;  %240 = vst [vmem:[%s13502_s27 + $0x220] sm:$0xff] %v239_v34 }
  0x39   : >> { %v243_v36 = vld [vmem:[%s13506_s28 + $0x900] sm:$0xff]  ;;  %242 = vst [vmem:[%s13502_s27 + $0x230] sm:$0xff] %v241_v35 }
  0x3a   : >> { %v245_v37 = vld [vmem:[%s13506_s28 + $0x940] sm:$0xff]  ;;  %244 = vst [vmem:[%s13502_s27 + $0x240] sm:$0xff] %v243_v36 }
  0x3b   : >> { %v247_v38 = vld [vmem:[%s13506_s28 + $0x980] sm:$0xff]  ;;  %246 = vst [vmem:[%s13502_s27 + $0x250] sm:$0xff] %v245_v37 }
  0x3c   : >> { %v249_v39 = vld [vmem:[%s13506_s28 + $0x9c0] sm:$0xff]  ;;  %248 = vst [vmem:[%s13502_s27 + $0x260] sm:$0xff] %v247_v38 }
  0x3d   : >> { %v251_v40 = vld [vmem:[%s13506_s28 + $0xa00] sm:$0xff]  ;;  %250 = vst [vmem:[%s13502_s27 + $0x270] sm:$0xff] %v249_v39 }
  0x3e   : >> { %v253_v41 = vld [vmem:[%s13506_s28 + $0xa40] sm:$0xff]  ;;  %252 = vst [vmem:[%s13502_s27 + $0x280] sm:$0xff] %v251_v40 }
  0x3f   : >> { %v255_v42 = vld [vmem:[%s13506_s28 + $0xa80] sm:$0xff]  ;;  %254 = vst [vmem:[%s13502_s27 + $0x290] sm:$0xff] %v253_v41 }
  0x40   : >> { %v257_v43 = vld [vmem:[%s13506_s28 + $0xac0] sm:$0xff]  ;;  %256 = vst [vmem:[%s13502_s27 + $0x2a0] sm:$0xff] %v255_v42 }
  0x41   : >> { %v259_v44 = vld [vmem:[%s13506_s28 + $0xb00] sm:$0xff]  ;;  %258 = vst [vmem:[%s13502_s27 + $0x2b0] sm:$0xff] %v257_v43 }
  0x42   : >> { %v261_v45 = vld [vmem:[%s13506_s28 + $0xb40] sm:$0xff]  ;;  %260 = vst [vmem:[%s13502_s27 + $0x2c0] sm:$0xff] %v259_v44 }
  0x43   : >> { %v263_v46 = vld [vmem:[%s13506_s28 + $0xb80] sm:$0xff]  ;;  %262 = vst [vmem:[%s13502_s27 + $0x2d0] sm:$0xff] %v261_v45 }
  0x44   : >> { %v265_v47 = vld [vmem:[%s13506_s28 + $0xbc0] sm:$0xff]  ;;  %264 = vst [vmem:[%s13502_s27 + $0x2e0] sm:$0xff] %v263_v46 }
  0x45   : >> { %v267_v48 = vld [vmem:[%s13506_s28 + $0xc00] sm:$0xff]  ;;  %266 = vst [vmem:[%s13502_s27 + $0x2f0] sm:$0xff] %v265_v47 }
  0x46   : >> { %v269_v49 = vld [vmem:[%s13506_s28 + $0xc40] sm:$0xff]  ;;  %268 = vst [vmem:[%s13502_s27 + $0x300] sm:$0xff] %v267_v48 }
  0x47   : >> { %v271_v50 = vld [vmem:[%s13506_s28 + $0xc80] sm:$0xff]  ;;  %270 = vst [vmem:[%s13502_s27 + $0x310] sm:$0xff] %v269_v49 }
  0x48   : >> { %v273_v51 = vld [vmem:[%s13506_s28 + $0xcc0] sm:$0xff]  ;;  %272 = vst [vmem:[%s13502_s27 + $0x320] sm:$0xff] %v271_v50 }
  0x49   : >> { %v275_v52 = vld [vmem:[%s13506_s28 + $0xd00] sm:$0xff]  ;;  %274 = vst [vmem:[%s13502_s27 + $0x330] sm:$0xff] %v273_v51 }
  0x4a   : >> { %v277_v53 = vld [vmem:[%s13506_s28 + $0xd40] sm:$0xff]  ;;  %276 = vst [vmem:[%s13502_s27 + $0x340] sm:$0xff] %v275_v52 }
  0x4b   : >> { %v279_v54 = vld [vmem:[%s13506_s28 + $0xd80] sm:$0xff]  ;;  %278 = vst [vmem:[%s13502_s27 + $0x350] sm:$0xff] %v277_v53 }
  0x4c   : >> { %v281_v55 = vld [vmem:[%s13506_s28 + $0xdc0] sm:$0xff]  ;;  %280 = vst [vmem:[%s13502_s27 + $0x360] sm:$0xff] %v279_v54 }
  0x4d   : >> { %v283_v56 = vld [vmem:[%s13506_s28 + $0xe00] sm:$0xff]  ;;  %282 = vst [vmem:[%s13502_s27 + $0x370] sm:$0xff] %v281_v55 }
  0x4e   : >> { %v285_v57 = vld [vmem:[%s13506_s28 + $0xe40] sm:$0xff]  ;;  %284 = vst [vmem:[%s13502_s27 + $0x380] sm:$0xff] %v283_v56 }
  0x4f   : >> { %v287_v58 = vld [vmem:[%s13506_s28 + $0xe80] sm:$0xff]  ;;  %286 = vst [vmem:[%s13502_s27 + $0x390] sm:$0xff] %v285_v57 }
  0x50   : >> { %v289_v59 = vld [vmem:[%s13506_s28 + $0xec0] sm:$0xff]  ;;  %288 = vst [vmem:[%s13502_s27 + $0x3a0] sm:$0xff] %v287_v58 }
  0x51   : >> { %v291_v60 = vld [vmem:[%s13506_s28 + $0xf00] sm:$0xff]  ;;  %290 = vst [vmem:[%s13502_s27 + $0x3b0] sm:$0xff] %v289_v59 }
  0x52   : >> { %v293_v61 = vld [vmem:[%s13506_s28 + $0xf40] sm:$0xff]  ;;  %292 = vst [vmem:[%s13502_s27 + $0x3c0] sm:$0xff] %v291_v60 }
  0x53   : >> { %v295_v62 = vld [vmem:[%s13506_s28 + $0xf80] sm:$0xff]  ;;  %294 = vst [vmem:[%s13502_s27 + $0x3d0] sm:$0xff] %v293_v61 }
  0x54   : >> { %v297_v63 = vld [vmem:[%s13506_s28 + $0xfc0] sm:$0xff]  ;;  %296 = vst [vmem:[%s13502_s27 + $0x3e0] sm:$0xff] %v295_v62 }
  0x55   : >> { %v299_v0 = vld [vmem:[%s13506_s28 + $0x1000] sm:$0xff]  ;;  %298 = vst [vmem:[%s13502_s27 + $0x3f0] sm:$0xff] %v297_v63 }
  0x56   : >> { %v301_v1 = vld [vmem:[%s13506_s28 + $0x1040] sm:$0xff]  ;;  %300 = vst [vmem:[%s13502_s27 + $0x400] sm:$0xff] %v299_v0 }
  0x57   : >> { %v303_v2 = vld [vmem:[%s13506_s28 + $0x1080] sm:$0xff]  ;;  %302 = vst [vmem:[%s13502_s27 + $0x410] sm:$0xff] %v301_v1 }
  0x58   : >> { %v305_v3 = vld [vmem:[%s13506_s28 + $0x10c0] sm:$0xff]  ;;  %304 = vst [vmem:[%s13502_s27 + $0x420] sm:$0xff] %v303_v2 }
  0x59   : >> { %v307_v4 = vld [vmem:[%s13506_s28 + $0x1100] sm:$0xff]  ;;  %306 = vst [vmem:[%s13502_s27 + $0x430] sm:$0xff] %v305_v3 }
  0x5a   : >> { %v309_v5 = vld [vmem:[%s13506_s28 + $0x1140] sm:$0xff]  ;;  %308 = vst [vmem:[%s13502_s27 + $0x440] sm:$0xff] %v307_v4 }
  0x5b   : >> { %v311_v6 = vld [vmem:[%s13506_s28 + $0x1180] sm:$0xff]  ;;  %310 = vst [vmem:[%s13502_s27 + $0x450] sm:$0xff] %v309_v5 }
  0x5c   : >> { %v313_v7 = vld [vmem:[%s13506_s28 + $0x11c0] sm:$0xff]  ;;  %312 = vst [vmem:[%s13502_s27 + $0x460] sm:$0xff] %v311_v6 }
  0x5d   : >> { %v315_v8 = vld [vmem:[%s13506_s28 + $0x1200] sm:$0xff]  ;;  %314 = vst [vmem:[%s13502_s27 + $0x470] sm:$0xff] %v313_v7 }
  0x5e   : >> { %v317_v9 = vld [vmem:[%s13506_s28 + $0x1240] sm:$0xff]  ;;  %316 = vst [vmem:[%s13502_s27 + $0x480] sm:$0xff] %v315_v8 }
  0x5f   : >> { %v319_v10 = vld [vmem:[%s13506_s28 + $0x1280] sm:$0xff]  ;;  %318 = vst [vmem:[%s13502_s27 + $0x490] sm:$0xff] %v317_v9 }
  0x60   : >> { %v321_v11 = vld [vmem:[%s13506_s28 + $0x12c0] sm:$0xff]  ;;  %320 = vst [vmem:[%s13502_s27 + $0x4a0] sm:$0xff] %v319_v10 }
  0x61   : >> { %v323_v12 = vld [vmem:[%s13506_s28 + $0x1300] sm:$0xff]  ;;  %322 = vst [vmem:[%s13502_s27 + $0x4b0] sm:$0xff] %v321_v11 }
  0x62   : >> { %v325_v13 = vld [vmem:[%s13506_s28 + $0x1340] sm:$0xff]  ;;  %324 = vst [vmem:[%s13502_s27 + $0x4c0] sm:$0xff] %v323_v12 }
  0x63   : >> { %v327_v14 = vld [vmem:[%s13506_s28 + $0x1380] sm:$0xff]  ;;  %326 = vst [vmem:[%s13502_s27 + $0x4d0] sm:$0xff] %v325_v13 }
  0x64   : >> { %v329_v15 = vld [vmem:[%s13506_s28 + $0x13c0] sm:$0xff]  ;;  %328 = vst [vmem:[%s13502_s27 + $0x4e0] sm:$0xff] %v327_v14 }
  0x65   : >> { %v331_v16 = vld [vmem:[%s13506_s28 + $0x1400] sm:$0xff]  ;;  %330 = vst [vmem:[%s13502_s27 + $0x4f0] sm:$0xff] %v329_v15 }
  0x66   : >> { %v333_v17 = vld [vmem:[%s13506_s28 + $0x1440] sm:$0xff]  ;;  %332 = vst [vmem:[%s13502_s27 + $0x500] sm:$0xff] %v331_v16 }
  0x67   : >> { %v335_v18 = vld [vmem:[%s13506_s28 + $0x1480] sm:$0xff]  ;;  %334 = vst [vmem:[%s13502_s27 + $0x510] sm:$0xff] %v333_v17 }
  0x68   : >> { %v337_v19 = vld [vmem:[%s13506_s28 + $0x14c0] sm:$0xff]  ;;  %336 = vst [vmem:[%s13502_s27 + $0x520] sm:$0xff] %v335_v18 }
  0x69   : >> { %v339_v20 = vld [vmem:[%s13506_s28 + $0x1500] sm:$0xff]  ;;  %338 = vst [vmem:[%s13502_s27 + $0x530] sm:$0xff] %v337_v19 }
  0x6a   : >> { %v341_v21 = vld [vmem:[%s13506_s28 + $0x1540] sm:$0xff]  ;;  %340 = vst [vmem:[%s13502_s27 + $0x540] sm:$0xff] %v339_v20 }
  0x6b   : >> { %v343_v22 = vld [vmem:[%s13506_s28 + $0x1580] sm:$0xff]  ;;  %342 = vst [vmem:[%s13502_s27 + $0x550] sm:$0xff] %v341_v21 }
  0x6c   : >> { %v345_v23 = vld [vmem:[%s13506_s28 + $0x15c0] sm:$0xff]  ;;  %344 = vst [vmem:[%s13502_s27 + $0x560] sm:$0xff] %v343_v22 }
  0x6d   : >> { %v347_v24 = vld [vmem:[%s13506_s28 + $0x1600] sm:$0xff]  ;;  %346 = vst [vmem:[%s13502_s27 + $0x570] sm:$0xff] %v345_v23 }
  0x6e   : >> { %v349_v25 = vld [vmem:[%s13506_s28 + $0x1640] sm:$0xff]  ;;  %348 = vst [vmem:[%s13502_s27 + $0x580] sm:$0xff] %v347_v24 }
  0x6f   : >> { %v351_v26 = vld [vmem:[%s13506_s28 + $0x1680] sm:$0xff]  ;;  %350 = vst [vmem:[%s13502_s27 + $0x590] sm:$0xff] %v349_v25 }
  0x70   : >> { %v353_v27 = vld [vmem:[%s13506_s28 + $0x16c0] sm:$0xff]  ;;  %352 = vst [vmem:[%s13502_s27 + $0x5a0] sm:$0xff] %v351_v26 }
  0x71   : >> { %v355_v28 = vld [vmem:[%s13506_s28 + $0x1700] sm:$0xff]  ;;  %354 = vst [vmem:[%s13502_s27 + $0x5b0] sm:$0xff] %v353_v27 }
  0x72   : >> { %v357_v29 = vld [vmem:[%s13506_s28 + $0x1740] sm:$0xff]  ;;  %356 = vst [vmem:[%s13502_s27 + $0x5c0] sm:$0xff] %v355_v28 }
  0x73   : >> { %v359_v30 = vld [vmem:[%s13506_s28 + $0x1780] sm:$0xff]  ;;  %358 = vst [vmem:[%s13502_s27 + $0x5d0] sm:$0xff] %v357_v29 }
  0x74   : >> { %v361_v31 = vld [vmem:[%s13506_s28 + $0x17c0] sm:$0xff]  ;;  %360 = vst [vmem:[%s13502_s27 + $0x5e0] sm:$0xff] %v359_v30 }
  0x75   : >> { %v363_v32 = vld [vmem:[%s13506_s28 + $0x1800] sm:$0xff]  ;;  %362 = vst [vmem:[%s13502_s27 + $0x5f0] sm:$0xff] %v361_v31 }
  0x76   : >> { %v365_v33 = vld [vmem:[%s13506_s28 + $0x1840] sm:$0xff]  ;;  %364 = vst [vmem:[%s13502_s27 + $0x600] sm:$0xff] %v363_v32 }
  0x77   : >> { %v367_v34 = vld [vmem:[%s13506_s28 + $0x1880] sm:$0xff]  ;;  %366 = vst [vmem:[%s13502_s27 + $0x610] sm:$0xff] %v365_v33 }
  0x78   : >> { %v369_v35 = vld [vmem:[%s13506_s28 + $0x18c0] sm:$0xff]  ;;  %368 = vst [vmem:[%s13502_s27 + $0x620] sm:$0xff] %v367_v34 }
  0x79   : >> { %v371_v36 = vld [vmem:[%s13506_s28 + $0x1900] sm:$0xff]  ;;  %370 = vst [vmem:[%s13502_s27 + $0x630] sm:$0xff] %v369_v35 }
  0x7a   : >> { %v373_v37 = vld [vmem:[%s13506_s28 + $0x1940] sm:$0xff]  ;;  %372 = vst [vmem:[%s13502_s27 + $0x640] sm:$0xff] %v371_v36 }
  0x7b   : >> { %v375_v38 = vld [vmem:[%s13506_s28 + $0x1980] sm:$0xff]  ;;  %374 = vst [vmem:[%s13502_s27 + $0x650] sm:$0xff] %v373_v37 }
  0x7c   : >> { %v377_v39 = vld [vmem:[%s13506_s28 + $0x19c0] sm:$0xff]  ;;  %376 = vst [vmem:[%s13502_s27 + $0x660] sm:$0xff] %v375_v38 }
  0x7d   : >> { %v379_v40 = vld [vmem:[%s13506_s28 + $0x1a00] sm:$0xff]  ;;  %378 = vst [vmem:[%s13502_s27 + $0x670] sm:$0xff] %v377_v39 }
  0x7e   : >> { %v381_v41 = vld [vmem:[%s13506_s28 + $0x1a40] sm:$0xff]  ;;  %380 = vst [vmem:[%s13502_s27 + $0x680] sm:$0xff] %v379_v40 }
  0x7f   : >> { %v383_v42 = vld [vmem:[%s13506_s28 + $0x1a80] sm:$0xff]  ;;  %382 = vst [vmem:[%s13502_s27 + $0x690] sm:$0xff] %v381_v41 }
  0x80   : >> { %v385_v43 = vld [vmem:[%s13506_s28 + $0x1ac0] sm:$0xff]  ;;  %384 = vst [vmem:[%s13502_s27 + $0x6a0] sm:$0xff] %v383_v42 }
  0x81   : >> { %v387_v44 = vld [vmem:[%s13506_s28 + $0x1b00] sm:$0xff]  ;;  %386 = vst [vmem:[%s13502_s27 + $0x6b0] sm:$0xff] %v385_v43 }
  0x82   : >> { %v389_v45 = vld [vmem:[%s13506_s28 + $0x1b40] sm:$0xff]  ;;  %388 = vst [vmem:[%s13502_s27 + $0x6c0] sm:$0xff] %v387_v44 }
  0x83   : >> { %v391_v46 = vld [vmem:[%s13506_s28 + $0x1b80] sm:$0xff]  ;;  %390 = vst [vmem:[%s13502_s27 + $0x6d0] sm:$0xff] %v389_v45 }
  0x84   : >> { %v393_v47 = vld [vmem:[%s13506_s28 + $0x1bc0] sm:$0xff]  ;;  %392 = vst [vmem:[%s13502_s27 + $0x6e0] sm:$0xff] %v391_v46 }
  0x85   : >> { %v395_v48 = vld [vmem:[%s13506_s28 + $0x1c00] sm:$0xff]  ;;  %394 = vst [vmem:[%s13502_s27 + $0x6f0] sm:$0xff] %v393_v47 }
  0x86   : >> { %v397_v49 = vld [vmem:[%s13506_s28 + $0x1c40] sm:$0xff]  ;;  %396 = vst [vmem:[%s13502_s27 + $0x700] sm:$0xff] %v395_v48 }
  0x87   : >> { %v399_v50 = vld [vmem:[%s13506_s28 + $0x1c80] sm:$0xff]  ;;  %398 = vst [vmem:[%s13502_s27 + $0x710] sm:$0xff] %v397_v49 }
  0x88   : >> { %v401_v51 = vld [vmem:[%s13506_s28 + $0x1cc0] sm:$0xff]  ;;  %400 = vst [vmem:[%s13502_s27 + $0x720] sm:$0xff] %v399_v50 }
  0x89   : >> { %v403_v52 = vld [vmem:[%s13506_s28 + $0x1d00] sm:$0xff]  ;;  %402 = vst [vmem:[%s13502_s27 + $0x730] sm:$0xff] %v401_v51 }
  0x8a   : >> { %v405_v53 = vld [vmem:[%s13506_s28 + $0x1d40] sm:$0xff]  ;;  %404 = vst [vmem:[%s13502_s27 + $0x740] sm:$0xff] %v403_v52 }
  0x8b   : >> { %v407_v54 = vld [vmem:[%s13506_s28 + $0x1d80] sm:$0xff]  ;;  %406 = vst [vmem:[%s13502_s27 + $0x750] sm:$0xff] %v405_v53 }
  0x8c   : >> { %v409_v55 = vld [vmem:[%s13506_s28 + $0x1dc0] sm:$0xff]  ;;  %408 = vst [vmem:[%s13502_s27 + $0x760] sm:$0xff] %v407_v54 }
  0x8d   : >> { %v411_v56 = vld [vmem:[%s13506_s28 + $0x1e00] sm:$0xff]  ;;  %410 = vst [vmem:[%s13502_s27 + $0x770] sm:$0xff] %v409_v55 }
  0x8e   : >> { %v413_v57 = vld [vmem:[%s13506_s28 + $0x1e40] sm:$0xff]  ;;  %412 = vst [vmem:[%s13502_s27 + $0x780] sm:$0xff] %v411_v56 }
  0x8f   : >> { %v415_v58 = vld [vmem:[%s13506_s28 + $0x1e80] sm:$0xff]  ;;  %414 = vst [vmem:[%s13502_s27 + $0x790] sm:$0xff] %v413_v57 }
  0x90   : >> { %v417_v59 = vld [vmem:[%s13506_s28 + $0x1ec0] sm:$0xff]  ;;  %416 = vst [vmem:[%s13502_s27 + $0x7a0] sm:$0xff] %v415_v58 }
  0x91   : >> { %v419_v60 = vld [vmem:[%s13506_s28 + $0x1f00] sm:$0xff]  ;;  %418 = vst [vmem:[%s13502_s27 + $0x7b0] sm:$0xff] %v417_v59 }
  0x92   : >> { %v421_v61 = vld [vmem:[%s13506_s28 + $0x1f40] sm:$0xff]  ;;  %420 = vst [vmem:[%s13502_s27 + $0x7c0] sm:$0xff] %v419_v60 }
  0x93   : >> { %v423_v62 = vld [vmem:[%s13506_s28 + $0x1f80] sm:$0xff]  ;;  %422 = vst [vmem:[%s13502_s27 + $0x7d0] sm:$0xff] %v421_v61 }
  0x94   : >> { %v425_v63 = vld [vmem:[%s13506_s28 + $0x1fc0] sm:$0xff]  ;;  %424 = vst [vmem:[%s13502_s27 + $0x7e0] sm:$0xff] %v423_v62 }
  0x95   : >> { %v427_v0 = vld [vmem:[%s13506_s28 + $0x2000] sm:$0xff]  ;;  %426 = vst [vmem:[%s13502_s27 + $0x7f0] sm:$0xff] %v425_v63 }
  0x96   : >> { %v429_v1 = vld [vmem:[%s13506_s28 + $0x2040] sm:$0xff]  ;;  %428 = vst [vmem:[%s13502_s27 + $0x800] sm:$0xff] %v427_v0 }
  0x97   : >> { %v431_v2 = vld [vmem:[%s13506_s28 + $0x2080] sm:$0xff]  ;;  %430 = vst [vmem:[%s13502_s27 + $0x810] sm:$0xff] %v429_v1 }
  0x98   : >> { %v433_v3 = vld [vmem:[%s13506_s28 + $0x20c0] sm:$0xff]  ;;  %432 = vst [vmem:[%s13502_s27 + $0x820] sm:$0xff] %v431_v2 }
  0x99   : >> { %v435_v4 = vld [vmem:[%s13506_s28 + $0x2100] sm:$0xff]  ;;  %434 = vst [vmem:[%s13502_s27 + $0x830] sm:$0xff] %v433_v3 }
  0x9a   : >> { %v437_v5 = vld [vmem:[%s13506_s28 + $0x2140] sm:$0xff]  ;;  %436 = vst [vmem:[%s13502_s27 + $0x840] sm:$0xff] %v435_v4 }
  0x9b   : >> { %v439_v6 = vld [vmem:[%s13506_s28 + $0x2180] sm:$0xff]  ;;  %438 = vst [vmem:[%s13502_s27 + $0x850] sm:$0xff] %v437_v5 }
  0x9c   : >> { %v441_v7 = vld [vmem:[%s13506_s28 + $0x21c0] sm:$0xff]  ;;  %440 = vst [vmem:[%s13502_s27 + $0x860] sm:$0xff] %v439_v6 }
  0x9d   : >> { %v443_v8 = vld [vmem:[%s13506_s28 + $0x2200] sm:$0xff]  ;;  %442 = vst [vmem:[%s13502_s27 + $0x870] sm:$0xff] %v441_v7 }
  0x9e   : >> { %v445_v9 = vld [vmem:[%s13506_s28 + $0x2240] sm:$0xff]  ;;  %444 = vst [vmem:[%s13502_s27 + $0x880] sm:$0xff] %v443_v8 }
  0x9f   : >> { %v447_v10 = vld [vmem:[%s13506_s28 + $0x2280] sm:$0xff]  ;;  %446 = vst [vmem:[%s13502_s27 + $0x890] sm:$0xff] %v445_v9 }
  0xa0   : >> { %v449_v11 = vld [vmem:[%s13506_s28 + $0x22c0] sm:$0xff]  ;;  %448 = vst [vmem:[%s13502_s27 + $0x8a0] sm:$0xff] %v447_v10 }
  0xa1   : >> { %v451_v12 = vld [vmem:[%s13506_s28 + $0x2300] sm:$0xff]  ;;  %450 = vst [vmem:[%s13502_s27 + $0x8b0] sm:$0xff] %v449_v11 }
  0xa2   : >> { %v453_v13 = vld [vmem:[%s13506_s28 + $0x2340] sm:$0xff]  ;;  %452 = vst [vmem:[%s13502_s27 + $0x8c0] sm:$0xff] %v451_v12 }
  0xa3   : >> { %v455_v14 = vld [vmem:[%s13506_s28 + $0x2380] sm:$0xff]  ;;  %454 = vst [vmem:[%s13502_s27 + $0x8d0] sm:$0xff] %v453_v13 }
  0xa4   : >> { %v457_v15 = vld [vmem:[%s13506_s28 + $0x23c0] sm:$0xff]  ;;  %456 = vst [vmem:[%s13502_s27 + $0x8e0] sm:$0xff] %v455_v14 }
  0xa5   : >> { %v459_v16 = vld [vmem:[%s13506_s28 + $0x2400] sm:$0xff]  ;;  %458 = vst [vmem:[%s13502_s27 + $0x8f0] sm:$0xff] %v457_v15 }
  0xa6   : >> { %v461_v17 = vld [vmem:[%s13506_s28 + $0x2440] sm:$0xff]  ;;  %460 = vst [vmem:[%s13502_s27 + $0x900] sm:$0xff] %v459_v16 }
  0xa7   : >> { %v463_v18 = vld [vmem:[%s13506_s28 + $0x2480] sm:$0xff]  ;;  %462 = vst [vmem:[%s13502_s27 + $0x910] sm:$0xff] %v461_v17 }
  0xa8   : >> { %v465_v19 = vld [vmem:[%s13506_s28 + $0x24c0] sm:$0xff]  ;;  %464 = vst [vmem:[%s13502_s27 + $0x920] sm:$0xff] %v463_v18 }
  0xa9   : >> { %v467_v20 = vld [vmem:[%s13506_s28 + $0x2500] sm:$0xff]  ;;  %466 = vst [vmem:[%s13502_s27 + $0x930] sm:$0xff] %v465_v19 }
  0xaa   : >> { %v469_v21 = vld [vmem:[%s13506_s28 + $0x2540] sm:$0xff]  ;;  %468 = vst [vmem:[%s13502_s27 + $0x940] sm:$0xff] %v467_v20 }
  0xab   : >> { %v471_v22 = vld [vmem:[%s13506_s28 + $0x2580] sm:$0xff]  ;;  %470 = vst [vmem:[%s13502_s27 + $0x950] sm:$0xff] %v469_v21 }
  0xac   : >> { %v473_v23 = vld [vmem:[%s13506_s28 + $0x25c0] sm:$0xff]  ;;  %472 = vst [vmem:[%s13502_s27 + $0x960] sm:$0xff] %v471_v22 }
  0xad   : >> { %v475_v24 = vld [vmem:[%s13506_s28 + $0x2600] sm:$0xff]  ;;  %474 = vst [vmem:[%s13502_s27 + $0x970] sm:$0xff] %v473_v23 }
  0xae   : >> { %v477_v25 = vld [vmem:[%s13506_s28 + $0x2640] sm:$0xff]  ;;  %476 = vst [vmem:[%s13502_s27 + $0x980] sm:$0xff] %v475_v24 }
  0xaf   : >> { %v479_v26 = vld [vmem:[%s13506_s28 + $0x2680] sm:$0xff]  ;;  %478 = vst [vmem:[%s13502_s27 + $0x990] sm:$0xff] %v477_v25 }
  0xb0   : >> { %v481_v27 = vld [vmem:[%s13506_s28 + $0x26c0] sm:$0xff]  ;;  %480 = vst [vmem:[%s13502_s27 + $0x9a0] sm:$0xff] %v479_v26 }
  0xb1   : >> { %v483_v28 = vld [vmem:[%s13506_s28 + $0x2700] sm:$0xff]  ;;  %482 = vst [vmem:[%s13502_s27 + $0x9b0] sm:$0xff] %v481_v27 }
  0xb2   : >> { %v485_v29 = vld [vmem:[%s13506_s28 + $0x2740] sm:$0xff]  ;;  %484 = vst [vmem:[%s13502_s27 + $0x9c0] sm:$0xff] %v483_v28 }
  0xb3   : >> { %v487_v30 = vld [vmem:[%s13506_s28 + $0x2780] sm:$0xff]  ;;  %486 = vst [vmem:[%s13502_s27 + $0x9d0] sm:$0xff] %v485_v29 }
  0xb4   : >> { %v489_v31 = vld [vmem:[%s13506_s28 + $0x27c0] sm:$0xff]  ;;  %488 = vst [vmem:[%s13502_s27 + $0x9e0] sm:$0xff] %v487_v30 }
  0xb5   : >> { %v491_v32 = vld [vmem:[%s13506_s28 + $0x2800] sm:$0xff]  ;;  %490 = vst [vmem:[%s13502_s27 + $0x9f0] sm:$0xff] %v489_v31 }
  0xb6   : >> { %v493_v33 = vld [vmem:[%s13506_s28 + $0x2840] sm:$0xff]  ;;  %492 = vst [vmem:[%s13502_s27 + $0xa00] sm:$0xff] %v491_v32 }
  0xb7   : >> { %v495_v34 = vld [vmem:[%s13506_s28 + $0x2880] sm:$0xff]  ;;  %494 = vst [vmem:[%s13502_s27 + $0xa10] sm:$0xff] %v493_v33 }
  0xb8   : >> { %v497_v35 = vld [vmem:[%s13506_s28 + $0x28c0] sm:$0xff]  ;;  %496 = vst [vmem:[%s13502_s27 + $0xa20] sm:$0xff] %v495_v34 }
  0xb9   : >> { %v499_v36 = vld [vmem:[%s13506_s28 + $0x2900] sm:$0xff]  ;;  %498 = vst [vmem:[%s13502_s27 + $0xa30] sm:$0xff] %v497_v35 }
  0xba   : >> { %v501_v37 = vld [vmem:[%s13506_s28 + $0x2940] sm:$0xff]  ;;  %500 = vst [vmem:[%s13502_s27 + $0xa40] sm:$0xff] %v499_v36 }
  0xbb   : >> { %v503_v38 = vld [vmem:[%s13506_s28 + $0x2980] sm:$0xff]  ;;  %502 = vst [vmem:[%s13502_s27 + $0xa50] sm:$0xff] %v501_v37 }
  0xbc   : >> { %v505_v39 = vld [vmem:[%s13506_s28 + $0x29c0] sm:$0xff]  ;;  %504 = vst [vmem:[%s13502_s27 + $0xa60] sm:$0xff] %v503_v38 }
  0xbd   : >> { %v507_v40 = vld [vmem:[%s13506_s28 + $0x2a00] sm:$0xff]  ;;  %506 = vst [vmem:[%s13502_s27 + $0xa70] sm:$0xff] %v505_v39 }
  0xbe   : >> { %v509_v41 = vld [vmem:[%s13506_s28 + $0x2a40] sm:$0xff]  ;;  %508 = vst [vmem:[%s13502_s27 + $0xa80] sm:$0xff] %v507_v40 }
  0xbf   : >> { %v511_v42 = vld [vmem:[%s13506_s28 + $0x2a80] sm:$0xff]  ;;  %510 = vst [vmem:[%s13502_s27 + $0xa90] sm:$0xff] %v509_v41 }
  0xc0   : >> { %v513_v43 = vld [vmem:[%s13506_s28 + $0x2ac0] sm:$0xff]  ;;  %512 = vst [vmem:[%s13502_s27 + $0xaa0] sm:$0xff] %v511_v42 }
  0xc1   : >> { %v515_v44 = vld [vmem:[%s13506_s28 + $0x2b00] sm:$0xff]  ;;  %514 = vst [vmem:[%s13502_s27 + $0xab0] sm:$0xff] %v513_v43 }
  0xc2   : >> { %v517_v45 = vld [vmem:[%s13506_s28 + $0x2b40] sm:$0xff]  ;;  %516 = vst [vmem:[%s13502_s27 + $0xac0] sm:$0xff] %v515_v44 }
  0xc3   : >> { %v519_v46 = vld [vmem:[%s13506_s28 + $0x2b80] sm:$0xff]  ;;  %518 = vst [vmem:[%s13502_s27 + $0xad0] sm:$0xff] %v517_v45 }
  0xc4   : >> { %v521_v47 = vld [vmem:[%s13506_s28 + $0x2bc0] sm:$0xff]  ;;  %520 = vst [vmem:[%s13502_s27 + $0xae0] sm:$0xff] %v519_v46 }
  0xc5   : >> { %v523_v48 = vld [vmem:[%s13506_s28 + $0x2c00] sm:$0xff]  ;;  %522 = vst [vmem:[%s13502_s27 + $0xaf0] sm:$0xff] %v521_v47 }
  0xc6   : >> { %v525_v49 = vld [vmem:[%s13506_s28 + $0x2c40] sm:$0xff]  ;;  %524 = vst [vmem:[%s13502_s27 + $0xb00] sm:$0xff] %v523_v48 }
  0xc7   : >> { %v527_v50 = vld [vmem:[%s13506_s28 + $0x2c80] sm:$0xff]  ;;  %526 = vst [vmem:[%s13502_s27 + $0xb10] sm:$0xff] %v525_v49 }
  0xc8   : >> { %v529_v51 = vld [vmem:[%s13506_s28 + $0x2cc0] sm:$0xff]  ;;  %528 = vst [vmem:[%s13502_s27 + $0xb20] sm:$0xff] %v527_v50 }
  0xc9   : >> { %v531_v52 = vld [vmem:[%s13506_s28 + $0x2d00] sm:$0xff]  ;;  %530 = vst [vmem:[%s13502_s27 + $0xb30] sm:$0xff] %v529_v51 }
  0xca   : >> { %v533_v53 = vld [vmem:[%s13506_s28 + $0x2d40] sm:$0xff]  ;;  %532 = vst [vmem:[%s13502_s27 + $0xb40] sm:$0xff] %v531_v52 }
  0xcb   : >> { %v535_v54 = vld [vmem:[%s13506_s28 + $0x2d80] sm:$0xff]  ;;  %534 = vst [vmem:[%s13502_s27 + $0xb50] sm:$0xff] %v533_v53 }
  0xcc   : >> { %v537_v55 = vld [vmem:[%s13506_s28 + $0x2dc0] sm:$0xff]  ;;  %536 = vst [vmem:[%s13502_s27 + $0xb60] sm:$0xff] %v535_v54 }
  0xcd   : >> { %v539_v56 = vld [vmem:[%s13506_s28 + $0x2e00] sm:$0xff]  ;;  %538 = vst [vmem:[%s13502_s27 + $0xb70] sm:$0xff] %v537_v55 }
  0xce   : >> { %v541_v57 = vld [vmem:[%s13506_s28 + $0x2e40] sm:$0xff]  ;;  %540 = vst [vmem:[%s13502_s27 + $0xb80] sm:$0xff] %v539_v56 }
  0xcf   : >> { %v543_v58 = vld [vmem:[%s13506_s28 + $0x2e80] sm:$0xff]  ;;  %542 = vst [vmem:[%s13502_s27 + $0xb90] sm:$0xff] %v541_v57 }
  0xd0   : >> { %v545_v59 = vld [vmem:[%s13506_s28 + $0x2ec0] sm:$0xff]  ;;  %544 = vst [vmem:[%s13502_s27 + $0xba0] sm:$0xff] %v543_v58 }
  0xd1   : >> { %v547_v60 = vld [vmem:[%s13506_s28 + $0x2f00] sm:$0xff]  ;;  %546 = vst [vmem:[%s13502_s27 + $0xbb0] sm:$0xff] %v545_v59 }
  0xd2   : >> { %v549_v61 = vld [vmem:[%s13506_s28 + $0x2f40] sm:$0xff]  ;;  %548 = vst [vmem:[%s13502_s27 + $0xbc0] sm:$0xff] %v547_v60 }
  0xd3   : >> { %v551_v62 = vld [vmem:[%s13506_s28 + $0x2f80] sm:$0xff]  ;;  %550 = vst [vmem:[%s13502_s27 + $0xbd0] sm:$0xff] %v549_v61 }
  0xd4   : >> { %v553_v63 = vld [vmem:[%s13506_s28 + $0x2fc0] sm:$0xff]  ;;  %552 = vst [vmem:[%s13502_s27 + $0xbe0] sm:$0xff] %v551_v62 }
  0xd5   : >> { %v555_v0 = vld [vmem:[%s13506_s28 + $0x3000] sm:$0xff]  ;;  %554 = vst [vmem:[%s13502_s27 + $0xbf0] sm:$0xff] %v553_v63 }
  0xd6   : >> { %v557_v1 = vld [vmem:[%s13506_s28 + $0x3040] sm:$0xff]  ;;  %556 = vst [vmem:[%s13502_s27 + $0xc00] sm:$0xff] %v555_v0 }
  0xd7   : >> { %v559_v2 = vld [vmem:[%s13506_s28 + $0x3080] sm:$0xff]  ;;  %558 = vst [vmem:[%s13502_s27 + $0xc10] sm:$0xff] %v557_v1 }
  0xd8   : >> { %v561_v3 = vld [vmem:[%s13506_s28 + $0x30c0] sm:$0xff]  ;;  %560 = vst [vmem:[%s13502_s27 + $0xc20] sm:$0xff] %v559_v2 }
  0xd9   : >> { %v563_v4 = vld [vmem:[%s13506_s28 + $0x3100] sm:$0xff]  ;;  %562 = vst [vmem:[%s13502_s27 + $0xc30] sm:$0xff] %v561_v3 }
  0xda   : >> { %v565_v5 = vld [vmem:[%s13506_s28 + $0x3140] sm:$0xff]  ;;  %564 = vst [vmem:[%s13502_s27 + $0xc40] sm:$0xff] %v563_v4 }
  0xdb   : >> { %v567_v6 = vld [vmem:[%s13506_s28 + $0x3180] sm:$0xff]  ;;  %566 = vst [vmem:[%s13502_s27 + $0xc50] sm:$0xff] %v565_v5 }
  0xdc   : >> { %v569_v7 = vld [vmem:[%s13506_s28 + $0x31c0] sm:$0xff]  ;;  %568 = vst [vmem:[%s13502_s27 + $0xc60] sm:$0xff] %v567_v6 }
  0xdd   : >> { %v571_v8 = vld [vmem:[%s13506_s28 + $0x3200] sm:$0xff]  ;;  %570 = vst [vmem:[%s13502_s27 + $0xc70] sm:$0xff] %v569_v7 }
  0xde   : >> { %v573_v9 = vld [vmem:[%s13506_s28 + $0x3240] sm:$0xff]  ;;  %572 = vst [vmem:[%s13502_s27 + $0xc80] sm:$0xff] %v571_v8 }
  0xdf   : >> { %v575_v10 = vld [vmem:[%s13506_s28 + $0x3280] sm:$0xff]  ;;  %574 = vst [vmem:[%s13502_s27 + $0xc90] sm:$0xff] %v573_v9 }
  0xe0   : >> { %v577_v11 = vld [vmem:[%s13506_s28 + $0x32c0] sm:$0xff]  ;;  %576 = vst [vmem:[%s13502_s27 + $0xca0] sm:$0xff] %v575_v10 }
  0xe1   : >> { %v579_v12 = vld [vmem:[%s13506_s28 + $0x3300] sm:$0xff]  ;;  %578 = vst [vmem:[%s13502_s27 + $0xcb0] sm:$0xff] %v577_v11 }
  0xe2   : >> { %v581_v13 = vld [vmem:[%s13506_s28 + $0x3340] sm:$0xff]  ;;  %580 = vst [vmem:[%s13502_s27 + $0xcc0] sm:$0xff] %v579_v12 }
  0xe3   : >> { %v583_v14 = vld [vmem:[%s13506_s28 + $0x3380] sm:$0xff]  ;;  %582 = vst [vmem:[%s13502_s27 + $0xcd0] sm:$0xff] %v581_v13 }
  0xe4   : >> { %v585_v15 = vld [vmem:[%s13506_s28 + $0x33c0] sm:$0xff]  ;;  %584 = vst [vmem:[%s13502_s27 + $0xce0] sm:$0xff] %v583_v14 }
  0xe5   : >> { %v587_v16 = vld [vmem:[%s13506_s28 + $0x3400] sm:$0xff]  ;;  %586 = vst [vmem:[%s13502_s27 + $0xcf0] sm:$0xff] %v585_v15 }
  0xe6   : >> { %v589_v17 = vld [vmem:[%s13506_s28 + $0x3440] sm:$0xff]  ;;  %588 = vst [vmem:[%s13502_s27 + $0xd00] sm:$0xff] %v587_v16 }
  0xe7   : >> { %v591_v18 = vld [vmem:[%s13506_s28 + $0x3480] sm:$0xff]  ;;  %590 = vst [vmem:[%s13502_s27 + $0xd10] sm:$0xff] %v589_v17 }
  0xe8   : >> { %v593_v19 = vld [vmem:[%s13506_s28 + $0x34c0] sm:$0xff]  ;;  %592 = vst [vmem:[%s13502_s27 + $0xd20] sm:$0xff] %v591_v18 }
  0xe9   : >> { %v595_v20 = vld [vmem:[%s13506_s28 + $0x3500] sm:$0xff]  ;;  %594 = vst [vmem:[%s13502_s27 + $0xd30] sm:$0xff] %v593_v19 }
  0xea   : >> { %v597_v21 = vld [vmem:[%s13506_s28 + $0x3540] sm:$0xff]  ;;  %596 = vst [vmem:[%s13502_s27 + $0xd40] sm:$0xff] %v595_v20 }
  0xeb   : >> { %v599_v22 = vld [vmem:[%s13506_s28 + $0x3580] sm:$0xff]  ;;  %598 = vst [vmem:[%s13502_s27 + $0xd50] sm:$0xff] %v597_v21 }
  0xec   : >> { %v601_v23 = vld [vmem:[%s13506_s28 + $0x35c0] sm:$0xff]  ;;  %600 = vst [vmem:[%s13502_s27 + $0xd60] sm:$0xff] %v599_v22 }
  0xed   : >> { %v603_v24 = vld [vmem:[%s13506_s28 + $0x3600] sm:$0xff]  ;;  %602 = vst [vmem:[%s13502_s27 + $0xd70] sm:$0xff] %v601_v23 }
  0xee   : >> { %v605_v25 = vld [vmem:[%s13506_s28 + $0x3640] sm:$0xff]  ;;  %604 = vst [vmem:[%s13502_s27 + $0xd80] sm:$0xff] %v603_v24 }
  0xef   : >> { %v607_v26 = vld [vmem:[%s13506_s28 + $0x3680] sm:$0xff]  ;;  %606 = vst [vmem:[%s13502_s27 + $0xd90] sm:$0xff] %v605_v25 }
  0xf0   : >> { %v609_v27 = vld [vmem:[%s13506_s28 + $0x36c0] sm:$0xff]  ;;  %608 = vst [vmem:[%s13502_s27 + $0xda0] sm:$0xff] %v607_v26 }
  0xf1   : >> { %v611_v28 = vld [vmem:[%s13506_s28 + $0x3700] sm:$0xff]  ;;  %610 = vst [vmem:[%s13502_s27 + $0xdb0] sm:$0xff] %v609_v27 }
  0xf2   : >> { %v613_v29 = vld [vmem:[%s13506_s28 + $0x3740] sm:$0xff]  ;;  %612 = vst [vmem:[%s13502_s27 + $0xdc0] sm:$0xff] %v611_v28 }
  0xf3   : >> { %v615_v30 = vld [vmem:[%s13506_s28 + $0x3780] sm:$0xff]  ;;  %614 = vst [vmem:[%s13502_s27 + $0xdd0] sm:$0xff] %v613_v29 }
  0xf4   : >> { %v617_v31 = vld [vmem:[%s13506_s28 + $0x37c0] sm:$0xff]  ;;  %616 = vst [vmem:[%s13502_s27 + $0xde0] sm:$0xff] %v615_v30 }
  0xf5   : >> { %v619_v32 = vld [vmem:[%s13506_s28 + $0x3800] sm:$0xff]  ;;  %618 = vst [vmem:[%s13502_s27 + $0xdf0] sm:$0xff] %v617_v31 }
  0xf6   : >> { %v621_v33 = vld [vmem:[%s13506_s28 + $0x3840] sm:$0xff]  ;;  %620 = vst [vmem:[%s13502_s27 + $0xe00] sm:$0xff] %v619_v32 }
  0xf7   : >> { %v623_v34 = vld [vmem:[%s13506_s28 + $0x3880] sm:$0xff]  ;;  %622 = vst [vmem:[%s13502_s27 + $0xe10] sm:$0xff] %v621_v33 }
  0xf8   : >> { %v625_v35 = vld [vmem:[%s13506_s28 + $0x38c0] sm:$0xff]  ;;  %624 = vst [vmem:[%s13502_s27 + $0xe20] sm:$0xff] %v623_v34 }
  0xf9   : >> { %v627_v36 = vld [vmem:[%s13506_s28 + $0x3900] sm:$0xff]  ;;  %626 = vst [vmem:[%s13502_s27 + $0xe30] sm:$0xff] %v625_v35 }
  0xfa   : >> { %v629_v37 = vld [vmem:[%s13506_s28 + $0x3940] sm:$0xff]  ;;  %628 = vst [vmem:[%s13502_s27 + $0xe40] sm:$0xff] %v627_v36 }
  0xfb   : >> { %v631_v38 = vld [vmem:[%s13506_s28 + $0x3980] sm:$0xff]  ;;  %630 = vst [vmem:[%s13502_s27 + $0xe50] sm:$0xff] %v629_v37 }
  0xfc   : >> { %v633_v39 = vld [vmem:[%s13506_s28 + $0x39c0] sm:$0xff]  ;;  %632 = vst [vmem:[%s13502_s27 + $0xe60] sm:$0xff] %v631_v38 }
  0xfd   : >> { %v635_v40 = vld [vmem:[%s13506_s28 + $0x3a00] sm:$0xff]  ;;  %634 = vst [vmem:[%s13502_s27 + $0xe70] sm:$0xff] %v633_v39 }
  0xfe   : >> { %v637_v41 = vld [vmem:[%s13506_s28 + $0x3a40] sm:$0xff]  ;;  %636 = vst [vmem:[%s13502_s27 + $0xe80] sm:$0xff] %v635_v40 }
  0xff   : >> { %v639_v42 = vld [vmem:[%s13506_s28 + $0x3a80] sm:$0xff]  ;;  %638 = vst [vmem:[%s13502_s27 + $0xe90] sm:$0xff] %v637_v41 }
 0x100   : >> { %v641_v43 = vld [vmem:[%s13506_s28 + $0x3ac0] sm:$0xff]  ;;  %640 = vst [vmem:[%s13502_s27 + $0xea0] sm:$0xff] %v639_v42 }
 0x101   : >> { %v643_v44 = vld [vmem:[%s13506_s28 + $0x3b00] sm:$0xff]  ;;  %642 = vst [vmem:[%s13502_s27 + $0xeb0] sm:$0xff] %v641_v43 }
 0x102   : >> { %v645_v45 = vld [vmem:[%s13506_s28 + $0x3b40] sm:$0xff]  ;;  %644 = vst [vmem:[%s13502_s27 + $0xec0] sm:$0xff] %v643_v44 }
 0x103   : >> { %v647_v46 = vld [vmem:[%s13506_s28 + $0x3b80] sm:$0xff]  ;;  %646 = vst [vmem:[%s13502_s27 + $0xed0] sm:$0xff] %v645_v45 }
 0x104   : >> { %v649_v47 = vld [vmem:[%s13506_s28 + $0x3bc0] sm:$0xff]  ;;  %648 = vst [vmem:[%s13502_s27 + $0xee0] sm:$0xff] %v647_v46 }
 0x105   : >> { %v651_v48 = vld [vmem:[%s13506_s28 + $0x3c00] sm:$0xff]  ;;  %650 = vst [vmem:[%s13502_s27 + $0xef0] sm:$0xff] %v649_v47 }
 0x106   : >> { %v653_v49 = vld [vmem:[%s13506_s28 + $0x3c40] sm:$0xff]  ;;  %652 = vst [vmem:[%s13502_s27 + $0xf00] sm:$0xff] %v651_v48 }
 0x107   : >> { %v655_v50 = vld [vmem:[%s13506_s28 + $0x3c80] sm:$0xff]  ;;  %654 = vst [vmem:[%s13502_s27 + $0xf10] sm:$0xff] %v653_v49 }
 0x108   : >> { %v657_v51 = vld [vmem:[%s13506_s28 + $0x3cc0] sm:$0xff]  ;;  %656 = vst [vmem:[%s13502_s27 + $0xf20] sm:$0xff] %v655_v50 }
 0x109   : >> { %v659_v52 = vld [vmem:[%s13506_s28 + $0x3d00] sm:$0xff]  ;;  %658 = vst [vmem:[%s13502_s27 + $0xf30] sm:$0xff] %v657_v51 }
 0x10a   : >> { %v661_v53 = vld [vmem:[%s13506_s28 + $0x3d40] sm:$0xff]  ;;  %660 = vst [vmem:[%s13502_s27 + $0xf40] sm:$0xff] %v659_v52 }
 0x10b   : >> { %v663_v54 = vld [vmem:[%s13506_s28 + $0x3d80] sm:$0xff]  ;;  %662 = vst [vmem:[%s13502_s27 + $0xf50] sm:$0xff] %v661_v53 }
 0x10c   : >> { %v665_v55 = vld [vmem:[%s13506_s28 + $0x3dc0] sm:$0xff]  ;;  %664 = vst [vmem:[%s13502_s27 + $0xf60] sm:$0xff] %v663_v54 }
 0x10d   : >> { %v667_v56 = vld [vmem:[%s13506_s28 + $0x3e00] sm:$0xff]  ;;  %666 = vst [vmem:[%s13502_s27 + $0xf70] sm:$0xff] %v665_v55 }
 0x10e   : >> { %v669_v57 = vld [vmem:[%s13506_s28 + $0x3e40] sm:$0xff]  ;;  %668 = vst [vmem:[%s13502_s27 + $0xf80] sm:$0xff] %v667_v56 }
 0x10f   : >> { %v671_v58 = vld [vmem:[%s13506_s28 + $0x3e80] sm:$0xff]  ;;  %670 = vst [vmem:[%s13502_s27 + $0xf90] sm:$0xff] %v669_v57 }
 0x110   : >> { %v673_v59 = vld [vmem:[%s13506_s28 + $0x3ec0] sm:$0xff]  ;;  %672 = vst [vmem:[%s13502_s27 + $0xfa0] sm:$0xff] %v671_v58 }
 0x111   : >> { %v675_v60 = vld [vmem:[%s13506_s28 + $0x3f00] sm:$0xff]  ;;  %674 = vst [vmem:[%s13502_s27 + $0xfb0] sm:$0xff] %v673_v59 }
 0x112   : >> { %v677_v61 = vld [vmem:[%s13506_s28 + $0x3f40] sm:$0xff]  ;;  %676 = vst [vmem:[%s13502_s27 + $0xfc0] sm:$0xff] %v675_v60 }
 0x113   : >> { %v679_v62 = vld [vmem:[%s13506_s28 + $0x3f80] sm:$0xff]  ;;  %678 = vst [vmem:[%s13502_s27 + $0xfd0] sm:$0xff] %v677_v61 }
 0x114   : >> { %v681_v63 = vld [vmem:[%s13506_s28 + $0x3fc0] sm:$0xff]  ;;  %680 = vst [vmem:[%s13502_s27 + $0xfe0] sm:$0xff] %v679_v62 }
 0x115   : >> { %v683_v0 = vld [vmem:[%s13506_s28 + $0x4000] sm:$0xff]  ;;  %682 = vst [vmem:[%s13502_s27 + $0xff0] sm:$0xff] %v681_v63 }
 0x116   : >> { %v685_v1 = vld [vmem:[%s13506_s28 + $0x4040] sm:$0xff]  ;;  %684 = vst [vmem:[%s13502_s27 + $0x1000] sm:$0xff] %v683_v0 }
 0x117   : >> { %v687_v2 = vld [vmem:[%s13506_s28 + $0x4080] sm:$0xff]  ;;  %686 = vst [vmem:[%s13502_s27 + $0x1010] sm:$0xff] %v685_v1 }
 0x118   : >> { %v689_v3 = vld [vmem:[%s13506_s28 + $0x40c0] sm:$0xff]  ;;  %688 = vst [vmem:[%s13502_s27 + $0x1020] sm:$0xff] %v687_v2 }
 0x119   : >> { %v691_v4 = vld [vmem:[%s13506_s28 + $0x4100] sm:$0xff]  ;;  %690 = vst [vmem:[%s13502_s27 + $0x1030] sm:$0xff] %v689_v3 }
 0x11a   : >> { %v693_v5 = vld [vmem:[%s13506_s28 + $0x4140] sm:$0xff]  ;;  %692 = vst [vmem:[%s13502_s27 + $0x1040] sm:$0xff] %v691_v4 }
 0x11b   : >> { %v695_v6 = vld [vmem:[%s13506_s28 + $0x4180] sm:$0xff]  ;;  %694 = vst [vmem:[%s13502_s27 + $0x1050] sm:$0xff] %v693_v5 }
 0x11c   : >> { %v697_v7 = vld [vmem:[%s13506_s28 + $0x41c0] sm:$0xff]  ;;  %696 = vst [vmem:[%s13502_s27 + $0x1060] sm:$0xff] %v695_v6 }
 0x11d   : >> { %v699_v8 = vld [vmem:[%s13506_s28 + $0x4200] sm:$0xff]  ;;  %698 = vst [vmem:[%s13502_s27 + $0x1070] sm:$0xff] %v697_v7 }
 0x11e   : >> { %v701_v9 = vld [vmem:[%s13506_s28 + $0x4240] sm:$0xff]  ;;  %700 = vst [vmem:[%s13502_s27 + $0x1080] sm:$0xff] %v699_v8 }
 0x11f   : >> { %v703_v10 = vld [vmem:[%s13506_s28 + $0x4280] sm:$0xff]  ;;  %702 = vst [vmem:[%s13502_s27 + $0x1090] sm:$0xff] %v701_v9 }
 0x120   : >> { %v705_v11 = vld [vmem:[%s13506_s28 + $0x42c0] sm:$0xff]  ;;  %704 = vst [vmem:[%s13502_s27 + $0x10a0] sm:$0xff] %v703_v10 }
 0x121   : >> { %v707_v12 = vld [vmem:[%s13506_s28 + $0x4300] sm:$0xff]  ;;  %706 = vst [vmem:[%s13502_s27 + $0x10b0] sm:$0xff] %v705_v11 }
 0x122   : >> { %v709_v13 = vld [vmem:[%s13506_s28 + $0x4340] sm:$0xff]  ;;  %708 = vst [vmem:[%s13502_s27 + $0x10c0] sm:$0xff] %v707_v12 }
 0x123   : >> { %v711_v14 = vld [vmem:[%s13506_s28 + $0x4380] sm:$0xff]  ;;  %710 = vst [vmem:[%s13502_s27 + $0x10d0] sm:$0xff] %v709_v13 }
 0x124   : >> { %v713_v15 = vld [vmem:[%s13506_s28 + $0x43c0] sm:$0xff]  ;;  %712 = vst [vmem:[%s13502_s27 + $0x10e0] sm:$0xff] %v711_v14 }
 0x125   : >> { %v715_v16 = vld [vmem:[%s13506_s28 + $0x4400] sm:$0xff]  ;;  %714 = vst [vmem:[%s13502_s27 + $0x10f0] sm:$0xff] %v713_v15 }
 0x126   : >> { %v717_v17 = vld [vmem:[%s13506_s28 + $0x4440] sm:$0xff]  ;;  %716 = vst [vmem:[%s13502_s27 + $0x1100] sm:$0xff] %v715_v16 }
 0x127   : >> { %v719_v18 = vld [vmem:[%s13506_s28 + $0x4480] sm:$0xff]  ;;  %718 = vst [vmem:[%s13502_s27 + $0x1110] sm:$0xff] %v717_v17 }
 0x128   : >> { %v721_v19 = vld [vmem:[%s13506_s28 + $0x44c0] sm:$0xff]  ;;  %720 = vst [vmem:[%s13502_s27 + $0x1120] sm:$0xff] %v719_v18 }
 0x129   : >> { %v723_v20 = vld [vmem:[%s13506_s28 + $0x4500] sm:$0xff]  ;;  %722 = vst [vmem:[%s13502_s27 + $0x1130] sm:$0xff] %v721_v19 }
 0x12a   : >> { %v725_v21 = vld [vmem:[%s13506_s28 + $0x4540] sm:$0xff]  ;;  %724 = vst [vmem:[%s13502_s27 + $0x1140] sm:$0xff] %v723_v20 }
 0x12b   : >> { %v727_v22 = vld [vmem:[%s13506_s28 + $0x4580] sm:$0xff]  ;;  %726 = vst [vmem:[%s13502_s27 + $0x1150] sm:$0xff] %v725_v21 }
 0x12c   : >> { %v729_v23 = vld [vmem:[%s13506_s28 + $0x45c0] sm:$0xff]  ;;  %728 = vst [vmem:[%s13502_s27 + $0x1160] sm:$0xff] %v727_v22 }
 0x12d   : >> { %v731_v24 = vld [vmem:[%s13506_s28 + $0x4600] sm:$0xff]  ;;  %730 = vst [vmem:[%s13502_s27 + $0x1170] sm:$0xff] %v729_v23 }
 0x12e   : >> { %v733_v25 = vld [vmem:[%s13506_s28 + $0x4640] sm:$0xff]  ;;  %732 = vst [vmem:[%s13502_s27 + $0x1180] sm:$0xff] %v731_v24 }
 0x12f   : >> { %v735_v26 = vld [vmem:[%s13506_s28 + $0x4680] sm:$0xff]  ;;  %734 = vst [vmem:[%s13502_s27 + $0x1190] sm:$0xff] %v733_v25 }
 0x130   : >> { %v737_v27 = vld [vmem:[%s13506_s28 + $0x46c0] sm:$0xff]  ;;  %736 = vst [vmem:[%s13502_s27 + $0x11a0] sm:$0xff] %v735_v26 }
 0x131   : >> { %v739_v28 = vld [vmem:[%s13506_s28 + $0x4700] sm:$0xff]  ;;  %738 = vst [vmem:[%s13502_s27 + $0x11b0] sm:$0xff] %v737_v27 }
 0x132   : >> { %v741_v29 = vld [vmem:[%s13506_s28 + $0x4740] sm:$0xff]  ;;  %740 = vst [vmem:[%s13502_s27 + $0x11c0] sm:$0xff] %v739_v28 }
 0x133   : >> { %v743_v30 = vld [vmem:[%s13506_s28 + $0x4780] sm:$0xff]  ;;  %742 = vst [vmem:[%s13502_s27 + $0x11d0] sm:$0xff] %v741_v29 }
 0x134   : >> { %v745_v31 = vld [vmem:[%s13506_s28 + $0x47c0] sm:$0xff]  ;;  %744 = vst [vmem:[%s13502_s27 + $0x11e0] sm:$0xff] %v743_v30 }
 0x135   : >> { %v747_v32 = vld [vmem:[%s13506_s28 + $0x4800] sm:$0xff]  ;;  %746 = vst [vmem:[%s13502_s27 + $0x11f0] sm:$0xff] %v745_v31 }
 0x136   : >> { %v749_v33 = vld [vmem:[%s13506_s28 + $0x4840] sm:$0xff]  ;;  %748 = vst [vmem:[%s13502_s27 + $0x1200] sm:$0xff] %v747_v32 }
 0x137   : >> { %v751_v34 = vld [vmem:[%s13506_s28 + $0x4880] sm:$0xff]  ;;  %750 = vst [vmem:[%s13502_s27 + $0x1210] sm:$0xff] %v749_v33 }
 0x138   : >> { %v753_v35 = vld [vmem:[%s13506_s28 + $0x48c0] sm:$0xff]  ;;  %752 = vst [vmem:[%s13502_s27 + $0x1220] sm:$0xff] %v751_v34 }
 0x139   : >> { %v755_v36 = vld [vmem:[%s13506_s28 + $0x4900] sm:$0xff]  ;;  %754 = vst [vmem:[%s13502_s27 + $0x1230] sm:$0xff] %v753_v35 }
 0x13a   : >> { %v757_v37 = vld [vmem:[%s13506_s28 + $0x4940] sm:$0xff]  ;;  %756 = vst [vmem:[%s13502_s27 + $0x1240] sm:$0xff] %v755_v36 }
 0x13b   : >> { %v759_v38 = vld [vmem:[%s13506_s28 + $0x4980] sm:$0xff]  ;;  %758 = vst [vmem:[%s13502_s27 + $0x1250] sm:$0xff] %v757_v37 }
 0x13c   : >> { %v761_v39 = vld [vmem:[%s13506_s28 + $0x49c0] sm:$0xff]  ;;  %760 = vst [vmem:[%s13502_s27 + $0x1260] sm:$0xff] %v759_v38 }
 0x13d   : >> { %v763_v40 = vld [vmem:[%s13506_s28 + $0x4a00] sm:$0xff]  ;;  %762 = vst [vmem:[%s13502_s27 + $0x1270] sm:$0xff] %v761_v39 }
 0x13e   : >> { %v765_v41 = vld [vmem:[%s13506_s28 + $0x4a40] sm:$0xff]  ;;  %764 = vst [vmem:[%s13502_s27 + $0x1280] sm:$0xff] %v763_v40 }
 0x13f   : >> { %v767_v42 = vld [vmem:[%s13506_s28 + $0x4a80] sm:$0xff]  ;;  %766 = vst [vmem:[%s13502_s27 + $0x1290] sm:$0xff] %v765_v41 }
 0x140   : >> { %v769_v43 = vld [vmem:[%s13506_s28 + $0x4ac0] sm:$0xff]  ;;  %768 = vst [vmem:[%s13502_s27 + $0x12a0] sm:$0xff] %v767_v42 }
 0x141   : >> { %v771_v44 = vld [vmem:[%s13506_s28 + $0x4b00] sm:$0xff]  ;;  %770 = vst [vmem:[%s13502_s27 + $0x12b0] sm:$0xff] %v769_v43 }
 0x142   : >> { %v773_v45 = vld [vmem:[%s13506_s28 + $0x4b40] sm:$0xff]  ;;  %772 = vst [vmem:[%s13502_s27 + $0x12c0] sm:$0xff] %v771_v44 }
 0x143   : >> { %v775_v46 = vld [vmem:[%s13506_s28 + $0x4b80] sm:$0xff]  ;;  %774 = vst [vmem:[%s13502_s27 + $0x12d0] sm:$0xff] %v773_v45 }
 0x144   : >> { %v777_v47 = vld [vmem:[%s13506_s28 + $0x4bc0] sm:$0xff]  ;;  %776 = vst [vmem:[%s13502_s27 + $0x12e0] sm:$0xff] %v775_v46 }
 0x145   : >> { %v779_v48 = vld [vmem:[%s13506_s28 + $0x4c00] sm:$0xff]  ;;  %778 = vst [vmem:[%s13502_s27 + $0x12f0] sm:$0xff] %v777_v47 }
 0x146   : >> { %v781_v49 = vld [vmem:[%s13506_s28 + $0x4c40] sm:$0xff]  ;;  %780 = vst [vmem:[%s13502_s27 + $0x1300] sm:$0xff] %v779_v48 }
 0x147   : >> { %v783_v50 = vld [vmem:[%s13506_s28 + $0x4c80] sm:$0xff]  ;;  %782 = vst [vmem:[%s13502_s27 + $0x1310] sm:$0xff] %v781_v49 }
 0x148   : >> { %v785_v51 = vld [vmem:[%s13506_s28 + $0x4cc0] sm:$0xff]  ;;  %784 = vst [vmem:[%s13502_s27 + $0x1320] sm:$0xff] %v783_v50 }
 0x149   : >> { %v787_v52 = vld [vmem:[%s13506_s28 + $0x4d00] sm:$0xff]  ;;  %786 = vst [vmem:[%s13502_s27 + $0x1330] sm:$0xff] %v785_v51 }
 0x14a   : >> { %v789_v53 = vld [vmem:[%s13506_s28 + $0x4d40] sm:$0xff]  ;;  %788 = vst [vmem:[%s13502_s27 + $0x1340] sm:$0xff] %v787_v52 }
 0x14b   : >> { %v791_v54 = vld [vmem:[%s13506_s28 + $0x4d80] sm:$0xff]  ;;  %790 = vst [vmem:[%s13502_s27 + $0x1350] sm:$0xff] %v789_v53 }
 0x14c   : >> { %v793_v55 = vld [vmem:[%s13506_s28 + $0x4dc0] sm:$0xff]  ;;  %792 = vst [vmem:[%s13502_s27 + $0x1360] sm:$0xff] %v791_v54 }
 0x14d   : >> { %v795_v56 = vld [vmem:[%s13506_s28 + $0x4e00] sm:$0xff]  ;;  %794 = vst [vmem:[%s13502_s27 + $0x1370] sm:$0xff] %v793_v55 }
 0x14e   : >> { %v797_v57 = vld [vmem:[%s13506_s28 + $0x4e40] sm:$0xff]  ;;  %796 = vst [vmem:[%s13502_s27 + $0x1380] sm:$0xff] %v795_v56 }
 0x14f   : >> { %v799_v58 = vld [vmem:[%s13506_s28 + $0x4e80] sm:$0xff]  ;;  %798 = vst [vmem:[%s13502_s27 + $0x1390] sm:$0xff] %v797_v57 }
 0x150   : >> { %v801_v59 = vld [vmem:[%s13506_s28 + $0x4ec0] sm:$0xff]  ;;  %800 = vst [vmem:[%s13502_s27 + $0x13a0] sm:$0xff] %v799_v58 }
 0x151   : >> { %v803_v60 = vld [vmem:[%s13506_s28 + $0x4f00] sm:$0xff]  ;;  %802 = vst [vmem:[%s13502_s27 + $0x13b0] sm:$0xff] %v801_v59 }
 0x152   : >> { %v805_v61 = vld [vmem:[%s13506_s28 + $0x4f40] sm:$0xff]  ;;  %804 = vst [vmem:[%s13502_s27 + $0x13c0] sm:$0xff] %v803_v60 }
 0x153   : >> { %v807_v62 = vld [vmem:[%s13506_s28 + $0x4f80] sm:$0xff]  ;;  %806 = vst [vmem:[%s13502_s27 + $0x13d0] sm:$0xff] %v805_v61 }
 0x154   : >> { %v809_v63 = vld [vmem:[%s13506_s28 + $0x4fc0] sm:$0xff]  ;;  %808 = vst [vmem:[%s13502_s27 + $0x13e0] sm:$0xff] %v807_v62 }
 0x155   : >> { %v811_v0 = vld [vmem:[%s13506_s28 + $0x5000] sm:$0xff]  ;;  %810 = vst [vmem:[%s13502_s27 + $0x13f0] sm:$0xff] %v809_v63 }
 0x156   : >> { %v813_v1 = vld [vmem:[%s13506_s28 + $0x5040] sm:$0xff]  ;;  %812 = vst [vmem:[%s13502_s27 + $0x1400] sm:$0xff] %v811_v0 }
 0x157   : >> { %v815_v2 = vld [vmem:[%s13506_s28 + $0x5080] sm:$0xff]  ;;  %814 = vst [vmem:[%s13502_s27 + $0x1410] sm:$0xff] %v813_v1 }
 0x158   : >> { %v817_v3 = vld [vmem:[%s13506_s28 + $0x50c0] sm:$0xff]  ;;  %816 = vst [vmem:[%s13502_s27 + $0x1420] sm:$0xff] %v815_v2 }
 0x159   : >> { %v819_v4 = vld [vmem:[%s13506_s28 + $0x5100] sm:$0xff]  ;;  %818 = vst [vmem:[%s13502_s27 + $0x1430] sm:$0xff] %v817_v3 }
 0x15a   : >> { %v821_v5 = vld [vmem:[%s13506_s28 + $0x5140] sm:$0xff]  ;;  %820 = vst [vmem:[%s13502_s27 + $0x1440] sm:$0xff] %v819_v4 }
 0x15b   : >> { %v823_v6 = vld [vmem:[%s13506_s28 + $0x5180] sm:$0xff]  ;;  %822 = vst [vmem:[%s13502_s27 + $0x1450] sm:$0xff] %v821_v5 }
 0x15c   : >> { %v825_v7 = vld [vmem:[%s13506_s28 + $0x51c0] sm:$0xff]  ;;  %824 = vst [vmem:[%s13502_s27 + $0x1460] sm:$0xff] %v823_v6 }
 0x15d   : >> { %v827_v8 = vld [vmem:[%s13506_s28 + $0x5200] sm:$0xff]  ;;  %826 = vst [vmem:[%s13502_s27 + $0x1470] sm:$0xff] %v825_v7 }
 0x15e   : >> { %v829_v9 = vld [vmem:[%s13506_s28 + $0x5240] sm:$0xff]  ;;  %828 = vst [vmem:[%s13502_s27 + $0x1480] sm:$0xff] %v827_v8 }
 0x15f   : >> { %v831_v10 = vld [vmem:[%s13506_s28 + $0x5280] sm:$0xff]  ;;  %830 = vst [vmem:[%s13502_s27 + $0x1490] sm:$0xff] %v829_v9 }
 0x160   : >> { %v833_v11 = vld [vmem:[%s13506_s28 + $0x52c0] sm:$0xff]  ;;  %832 = vst [vmem:[%s13502_s27 + $0x14a0] sm:$0xff] %v831_v10 }
 0x161   : >> { %v835_v12 = vld [vmem:[%s13506_s28 + $0x5300] sm:$0xff]  ;;  %834 = vst [vmem:[%s13502_s27 + $0x14b0] sm:$0xff] %v833_v11 }
 0x162   : >> { %v837_v13 = vld [vmem:[%s13506_s28 + $0x5340] sm:$0xff]  ;;  %836 = vst [vmem:[%s13502_s27 + $0x14c0] sm:$0xff] %v835_v12 }
 0x163   : >> { %v839_v14 = vld [vmem:[%s13506_s28 + $0x5380] sm:$0xff]  ;;  %838 = vst [vmem:[%s13502_s27 + $0x14d0] sm:$0xff] %v837_v13 }
 0x164   : >> { %v841_v15 = vld [vmem:[%s13506_s28 + $0x53c0] sm:$0xff]  ;;  %840 = vst [vmem:[%s13502_s27 + $0x14e0] sm:$0xff] %v839_v14 }
 0x165   : >> { %v843_v16 = vld [vmem:[%s13506_s28 + $0x5400] sm:$0xff]  ;;  %842 = vst [vmem:[%s13502_s27 + $0x14f0] sm:$0xff] %v841_v15 }
 0x166   : >> { %v845_v17 = vld [vmem:[%s13506_s28 + $0x5440] sm:$0xff]  ;;  %844 = vst [vmem:[%s13502_s27 + $0x1500] sm:$0xff] %v843_v16 }
 0x167   : >> { %v847_v18 = vld [vmem:[%s13506_s28 + $0x5480] sm:$0xff]  ;;  %846 = vst [vmem:[%s13502_s27 + $0x1510] sm:$0xff] %v845_v17 }
 0x168   : >> { %v849_v19 = vld [vmem:[%s13506_s28 + $0x54c0] sm:$0xff]  ;;  %848 = vst [vmem:[%s13502_s27 + $0x1520] sm:$0xff] %v847_v18 }
 0x169   : >> { %v851_v20 = vld [vmem:[%s13506_s28 + $0x5500] sm:$0xff]  ;;  %850 = vst [vmem:[%s13502_s27 + $0x1530] sm:$0xff] %v849_v19 }
 0x16a   : >> { %v853_v21 = vld [vmem:[%s13506_s28 + $0x5540] sm:$0xff]  ;;  %852 = vst [vmem:[%s13502_s27 + $0x1540] sm:$0xff] %v851_v20 }
 0x16b   : >> { %v855_v22 = vld [vmem:[%s13506_s28 + $0x5580] sm:$0xff]  ;;  %854 = vst [vmem:[%s13502_s27 + $0x1550] sm:$0xff] %v853_v21 }
 0x16c   : >> { %v857_v23 = vld [vmem:[%s13506_s28 + $0x55c0] sm:$0xff]  ;;  %856 = vst [vmem:[%s13502_s27 + $0x1560] sm:$0xff] %v855_v22 }
 0x16d   : >> { %v859_v24 = vld [vmem:[%s13506_s28 + $0x5600] sm:$0xff]  ;;  %858 = vst [vmem:[%s13502_s27 + $0x1570] sm:$0xff] %v857_v23 }
 0x16e   : >> { %v861_v25 = vld [vmem:[%s13506_s28 + $0x5640] sm:$0xff]  ;;  %860 = vst [vmem:[%s13502_s27 + $0x1580] sm:$0xff] %v859_v24 }
 0x16f   : >> { %v863_v26 = vld [vmem:[%s13506_s28 + $0x5680] sm:$0xff]  ;;  %862 = vst [vmem:[%s13502_s27 + $0x1590] sm:$0xff] %v861_v25 }
 0x170   : >> { %v865_v27 = vld [vmem:[%s13506_s28 + $0x56c0] sm:$0xff]  ;;  %864 = vst [vmem:[%s13502_s27 + $0x15a0] sm:$0xff] %v863_v26 }
 0x171   : >> { %v867_v28 = vld [vmem:[%s13506_s28 + $0x5700] sm:$0xff]  ;;  %866 = vst [vmem:[%s13502_s27 + $0x15b0] sm:$0xff] %v865_v27 }
 0x172   : >> { %v869_v29 = vld [vmem:[%s13506_s28 + $0x5740] sm:$0xff]  ;;  %868 = vst [vmem:[%s13502_s27 + $0x15c0] sm:$0xff] %v867_v28 }
 0x173   : >> { %v871_v30 = vld [vmem:[%s13506_s28 + $0x5780] sm:$0xff]  ;;  %870 = vst [vmem:[%s13502_s27 + $0x15d0] sm:$0xff] %v869_v29 }
 0x174   : >> { %v873_v31 = vld [vmem:[%s13506_s28 + $0x57c0] sm:$0xff]  ;;  %872 = vst [vmem:[%s13502_s27 + $0x15e0] sm:$0xff] %v871_v30 }
 0x175   : >> { %v875_v32 = vld [vmem:[%s13506_s28 + $0x5800] sm:$0xff]  ;;  %874 = vst [vmem:[%s13502_s27 + $0x15f0] sm:$0xff] %v873_v31 }
 0x176   : >> { %v877_v33 = vld [vmem:[%s13506_s28 + $0x5840] sm:$0xff]  ;;  %876 = vst [vmem:[%s13502_s27 + $0x1600] sm:$0xff] %v875_v32 }
 0x177   : >> { %v879_v34 = vld [vmem:[%s13506_s28 + $0x5880] sm:$0xff]  ;;  %878 = vst [vmem:[%s13502_s27 + $0x1610] sm:$0xff] %v877_v33 }
 0x178   : >> { %v881_v35 = vld [vmem:[%s13506_s28 + $0x58c0] sm:$0xff]  ;;  %880 = vst [vmem:[%s13502_s27 + $0x1620] sm:$0xff] %v879_v34 }
 0x179   : >> { %v883_v36 = vld [vmem:[%s13506_s28 + $0x5900] sm:$0xff]  ;;  %882 = vst [vmem:[%s13502_s27 + $0x1630] sm:$0xff] %v881_v35 }
 0x17a   : >> { %v885_v37 = vld [vmem:[%s13506_s28 + $0x5940] sm:$0xff]  ;;  %884 = vst [vmem:[%s13502_s27 + $0x1640] sm:$0xff] %v883_v36 }
 0x17b   : >> { %v887_v38 = vld [vmem:[%s13506_s28 + $0x5980] sm:$0xff]  ;;  %886 = vst [vmem:[%s13502_s27 + $0x1650] sm:$0xff] %v885_v37 }
 0x17c   : >> { %v889_v39 = vld [vmem:[%s13506_s28 + $0x59c0] sm:$0xff]  ;;  %888 = vst [vmem:[%s13502_s27 + $0x1660] sm:$0xff] %v887_v38 }
 0x17d   : >> { %v891_v40 = vld [vmem:[%s13506_s28 + $0x5a00] sm:$0xff]  ;;  %890 = vst [vmem:[%s13502_s27 + $0x1670] sm:$0xff] %v889_v39 }
 0x17e   : >> { %v893_v41 = vld [vmem:[%s13506_s28 + $0x5a40] sm:$0xff]  ;;  %892 = vst [vmem:[%s13502_s27 + $0x1680] sm:$0xff] %v891_v40 }
 0x17f   : >> { %v895_v42 = vld [vmem:[%s13506_s28 + $0x5a80] sm:$0xff]  ;;  %894 = vst [vmem:[%s13502_s27 + $0x1690] sm:$0xff] %v893_v41 }
 0x180   : >> { %v897_v43 = vld [vmem:[%s13506_s28 + $0x5ac0] sm:$0xff]  ;;  %896 = vst [vmem:[%s13502_s27 + $0x16a0] sm:$0xff] %v895_v42 }
 0x181   : >> { %v899_v44 = vld [vmem:[%s13506_s28 + $0x5b00] sm:$0xff]  ;;  %898 = vst [vmem:[%s13502_s27 + $0x16b0] sm:$0xff] %v897_v43 }
 0x182   : >> { %v901_v45 = vld [vmem:[%s13506_s28 + $0x5b40] sm:$0xff]  ;;  %900 = vst [vmem:[%s13502_s27 + $0x16c0] sm:$0xff] %v899_v44 }
 0x183   : >> { %v903_v46 = vld [vmem:[%s13506_s28 + $0x5b80] sm:$0xff]  ;;  %902 = vst [vmem:[%s13502_s27 + $0x16d0] sm:$0xff] %v901_v45 }
 0x184   : >> { %v905_v47 = vld [vmem:[%s13506_s28 + $0x5bc0] sm:$0xff]  ;;  %904 = vst [vmem:[%s13502_s27 + $0x16e0] sm:$0xff] %v903_v46 }
 0x185   : >> { %v907_v48 = vld [vmem:[%s13506_s28 + $0x5c00] sm:$0xff]  ;;  %906 = vst [vmem:[%s13502_s27 + $0x16f0] sm:$0xff] %v905_v47 }
 0x186   : >> { %v909_v49 = vld [vmem:[%s13506_s28 + $0x5c40] sm:$0xff]  ;;  %908 = vst [vmem:[%s13502_s27 + $0x1700] sm:$0xff] %v907_v48 }
 0x187   : >> { %v911_v50 = vld [vmem:[%s13506_s28 + $0x5c80] sm:$0xff]  ;;  %910 = vst [vmem:[%s13502_s27 + $0x1710] sm:$0xff] %v909_v49 }
 0x188   : >> { %v913_v51 = vld [vmem:[%s13506_s28 + $0x5cc0] sm:$0xff]  ;;  %912 = vst [vmem:[%s13502_s27 + $0x1720] sm:$0xff] %v911_v50 }
 0x189   : >> { %v915_v52 = vld [vmem:[%s13506_s28 + $0x5d00] sm:$0xff]  ;;  %914 = vst [vmem:[%s13502_s27 + $0x1730] sm:$0xff] %v913_v51 }
 0x18a   : >> { %v917_v53 = vld [vmem:[%s13506_s28 + $0x5d40] sm:$0xff]  ;;  %916 = vst [vmem:[%s13502_s27 + $0x1740] sm:$0xff] %v915_v52 }
 0x18b   : >> { %v919_v54 = vld [vmem:[%s13506_s28 + $0x5d80] sm:$0xff]  ;;  %918 = vst [vmem:[%s13502_s27 + $0x1750] sm:$0xff] %v917_v53 }
 0x18c   : >> { %v921_v55 = vld [vmem:[%s13506_s28 + $0x5dc0] sm:$0xff]  ;;  %920 = vst [vmem:[%s13502_s27 + $0x1760] sm:$0xff] %v919_v54 }
 0x18d   : >> { %v923_v56 = vld [vmem:[%s13506_s28 + $0x5e00] sm:$0xff]  ;;  %922 = vst [vmem:[%s13502_s27 + $0x1770] sm:$0xff] %v921_v55 }
 0x18e   : >> { %v925_v57 = vld [vmem:[%s13506_s28 + $0x5e40] sm:$0xff]  ;;  %924 = vst [vmem:[%s13502_s27 + $0x1780] sm:$0xff] %v923_v56 }
 0x18f   : >> { %v927_v58 = vld [vmem:[%s13506_s28 + $0x5e80] sm:$0xff]  ;;  %926 = vst [vmem:[%s13502_s27 + $0x1790] sm:$0xff] %v925_v57 }
 0x190   : >> { %v929_v59 = vld [vmem:[%s13506_s28 + $0x5ec0] sm:$0xff]  ;;  %928 = vst [vmem:[%s13502_s27 + $0x17a0] sm:$0xff] %v927_v58 }
 0x191   : >> { %v931_v60 = vld [vmem:[%s13506_s28 + $0x5f00] sm:$0xff]  ;;  %930 = vst [vmem:[%s13502_s27 + $0x17b0] sm:$0xff] %v929_v59 }
 0x192   : >> { %v933_v61 = vld [vmem:[%s13506_s28 + $0x5f40] sm:$0xff]  ;;  %932 = vst [vmem:[%s13502_s27 + $0x17c0] sm:$0xff] %v931_v60 }
 0x193   : >> { %v935_v62 = vld [vmem:[%s13506_s28 + $0x5f80] sm:$0xff]  ;;  %934 = vst [vmem:[%s13502_s27 + $0x17d0] sm:$0xff] %v933_v61 }
 0x194   : >> { %v937_v63 = vld [vmem:[%s13506_s28 + $0x5fc0] sm:$0xff]  ;;  %936 = vst [vmem:[%s13502_s27 + $0x17e0] sm:$0xff] %v935_v62 }
 0x195   : >> { %v939_v0 = vld [vmem:[%s13506_s28 + $0x6000] sm:$0xff]  ;;  %938 = vst [vmem:[%s13502_s27 + $0x17f0] sm:$0xff] %v937_v63 }
 0x196   : >> { %v941_v1 = vld [vmem:[%s13506_s28 + $0x6040] sm:$0xff]  ;;  %940 = vst [vmem:[%s13502_s27 + $0x1800] sm:$0xff] %v939_v0 }
 0x197   : >> { %v943_v2 = vld [vmem:[%s13506_s28 + $0x6080] sm:$0xff]  ;;  %942 = vst [vmem:[%s13502_s27 + $0x1810] sm:$0xff] %v941_v1 }
 0x198   : >> { %v945_v3 = vld [vmem:[%s13506_s28 + $0x60c0] sm:$0xff]  ;;  %944 = vst [vmem:[%s13502_s27 + $0x1820] sm:$0xff] %v943_v2 }
 0x199   : >> { %v947_v4 = vld [vmem:[%s13506_s28 + $0x6100] sm:$0xff]  ;;  %946 = vst [vmem:[%s13502_s27 + $0x1830] sm:$0xff] %v945_v3 }
 0x19a   : >> { %v949_v5 = vld [vmem:[%s13506_s28 + $0x6140] sm:$0xff]  ;;  %948 = vst [vmem:[%s13502_s27 + $0x1840] sm:$0xff] %v947_v4 }
 0x19b   : >> { %v951_v6 = vld [vmem:[%s13506_s28 + $0x6180] sm:$0xff]  ;;  %950 = vst [vmem:[%s13502_s27 + $0x1850] sm:$0xff] %v949_v5 }
 0x19c   : >> { %v953_v7 = vld [vmem:[%s13506_s28 + $0x61c0] sm:$0xff]  ;;  %952 = vst [vmem:[%s13502_s27 + $0x1860] sm:$0xff] %v951_v6 }
 0x19d   : >> { %v955_v8 = vld [vmem:[%s13506_s28 + $0x6200] sm:$0xff]  ;;  %954 = vst [vmem:[%s13502_s27 + $0x1870] sm:$0xff] %v953_v7 }
 0x19e   : >> { %v957_v9 = vld [vmem:[%s13506_s28 + $0x6240] sm:$0xff]  ;;  %956 = vst [vmem:[%s13502_s27 + $0x1880] sm:$0xff] %v955_v8 }
 0x19f   : >> { %v959_v10 = vld [vmem:[%s13506_s28 + $0x6280] sm:$0xff]  ;;  %958 = vst [vmem:[%s13502_s27 + $0x1890] sm:$0xff] %v957_v9 }
 0x1a0   : >> { %v961_v11 = vld [vmem:[%s13506_s28 + $0x62c0] sm:$0xff]  ;;  %960 = vst [vmem:[%s13502_s27 + $0x18a0] sm:$0xff] %v959_v10 }
 0x1a1   : >> { %v963_v12 = vld [vmem:[%s13506_s28 + $0x6300] sm:$0xff]  ;;  %962 = vst [vmem:[%s13502_s27 + $0x18b0] sm:$0xff] %v961_v11  ;;  %166 = sbr.rel (!%p164_p9) target bundleno = 21 (0x15), region = 136 }
 0x1a2   : >> { %v965_v13 = vld [vmem:[%s13506_s28 + $0x6340] sm:$0xff]  ;;  %964 = vst [vmem:[%s13502_s27 + $0x18c0] sm:$0xff] %v963_v12 }
 0x1a3   : >> { %v967_v14 = vld [vmem:[%s13506_s28 + $0x6380] sm:$0xff]  ;;  %966 = vst [vmem:[%s13502_s27 + $0x18d0] sm:$0xff] %v965_v13 }
 0x1a4   : >> { %v969_v15 = vld [vmem:[%s13506_s28 + $0x63c0] sm:$0xff]  ;;  %968 = vst [vmem:[%s13502_s27 + $0x18e0] sm:$0xff] %v967_v14  ;;  %s16649_s28 = smov %s14159_s5 }
 0x1a5   : >> { %970 = vst [vmem:[%s13502_s27 + $0x18f0] sm:$0xff] %v969_v15  ;;  %s16648_s27 = smov %s14163_s6 }
 0x1a6 PF: > { %p9236_p10 = scmp.ge.s32.totalorder %s13498_s13, 1  ;;  %p2610_p11 = scmp.lt.s32.totalorder %s13498_s13, 5 }
 0x1a8   : > { %p2611_p12 = pnand %p9236_p10, %p2610_p11 }
 0x1aa   : > { %2614 = sbr.rel (%p2611_p12) target bundleno = 1401 (0x579), region = 61 }
 0x1af   : > { %s2617_s7 = sand.u32 1, %s13482_s9  }
 0x1b0   : > { %s13371_s8 = smul.u32 6400, %s2617_s7  ;;  %s16027_s28 = sshll.u32 %s2617_s7, 5 }
 0x1b1   : > { %s16050_s9 = scalar_lea.vmem [#allocation4], %s16027_s28  ;;  %s13369_s7 = sshll.u32 (%p13566_p6), %s13490_s11, 4 }
 0x1b2   : > { %s14435_s15 = scalar_lea.vmem [#allocation3], %s13371_s8  ;;  %s9090_s30 = scalar_lea.vmem (%p13566_p6), %s16618_s2, %s13369_s7 }
 0x1b3   : > { %v9452_v16 = vld [vmem:[%s14435_s15 + $0xe0] sm:$0xf]  ;;  %v12599_v17 = vld [vmem:[%s14435_s15 + $0xec] sm:$0xf0] }
 0x1b4   : > { %v9580_v18 = vld [vmem:[%s14435_s15 + $0x1e0] sm:$0xf]  ;;  %v9453_v19 = vor.u32 %v12599_v17, %v9452_v16  ;;  %v12631_v20 = vld [vmem:[%s14435_s15 + $0x1ec] sm:$0xf0] }
 0x1b5   : > { %v9708_v21 = vld [vmem:[%s14435_s15 + $0x2e0] sm:$0xf]  ;;  %v12663_v22 = vld [vmem:[%s14435_s15 + $0x2ec] sm:$0xf0]  ;;  %v9581_v23 = vor.u32 %v12631_v20, %v9580_v18 }
 0x1b6   : > { %v9709_v24 = vor.u32 %v12663_v22, %v9708_v21  ;;  %v9836_v25 = vld [vmem:[%s14435_s15 + $0x3e0] sm:$0xf]  ;;  %v12695_v26 = vld [vmem:[%s14435_s15 + $0x3ec] sm:$0xf0]  ;;  %7635 = vmatpush.bf16.msra.mxu0 %v9453_v19 }
 0x1b7   : > { %v9436_v27 = vld [vmem:[%s14435_s15 + $0xc0] sm:$0xf]  ;;  %v9837_v28 = vor.u32 %v12695_v26, %v9836_v25  ;;  %v12595_v29 = vld [vmem:[%s14435_s15 + $0xcc] sm:$0xf0]  ;;  %7649 = vmatpush.bf16.msra.mxu1 %v9581_v23 }
 0x1b8   : > { %v9564_v30 = vld [vmem:[%s14435_s15 + $0x1c0] sm:$0xf]  ;;  %v12627_v31 = vld [vmem:[%s14435_s15 + $0x1cc] sm:$0xf0]  ;;  %7663 = vmatpush.bf16.msra.mxu2 %v9709_v24  ;;  %v9437_v32 = vor.u32 %v12595_v29, %v9436_v27 }
 0x1b9   : > { %v9565_v33 = vor.u32 %v12627_v31, %v9564_v30  ;;  %v9692_v34 = vld [vmem:[%s14435_s15 + $0x2c0] sm:$0xf]  ;;  %v12659_v35 = vld [vmem:[%s14435_s15 + $0x2cc] sm:$0xf0]  ;;  %7677 = vmatpush.bf16.msra.mxu3 %v9837_v28 }
 0x1ba   : > { %v9820_v36 = vld [vmem:[%s14435_s15 + $0x3c0] sm:$0xf]  ;;  %v9693_v37 = vor.u32 %v12659_v35, %v9692_v34  ;;  %v12691_v38 = vld [vmem:[%s14435_s15 + $0x3cc] sm:$0xf0]  ;;  %7636 = vmatpush.bf16.msra.mxu0 %v9437_v32 }
 0x1bb   : > { %v9420_v39 = vld [vmem:[%s14435_s15 + $0xa0] sm:$0xf]  ;;  %v12591_v40 = vld [vmem:[%s14435_s15 + $0xac] sm:$0xf0]  ;;  %v9821_v41 = vor.u32 %v12691_v38, %v9820_v36  ;;  %7650 = vmatpush.bf16.msra.mxu1 %v9565_v33 }
 0x1bc   : > { %v9548_v42 = vld [vmem:[%s14435_s15 + $0x1a0] sm:$0xf]  ;;  %v12623_v43 = vld [vmem:[%s14435_s15 + $0x1ac] sm:$0xf0]  ;;  %v9421_v45 = vor.u32 %v12591_v40, %v9420_v39  ;;  %7664 = vmatpush.bf16.msra.mxu2 %v9693_v37 }
 0x1bd   : > { %v9676_v44 = vld [vmem:[%s14435_s15 + $0x2a0] sm:$0xf]  ;;  %v12655_v46 = vld [vmem:[%s14435_s15 + $0x2ac] sm:$0xf0]  ;;  %v9549_v49 = vor.u32 %v12623_v43, %v9548_v42  ;;  %7678 = vmatpush.bf16.msra.mxu3 %v9821_v41 }
 0x1be   : > { %v9804_v47 = vld [vmem:[%s14435_s15 + $0x3a0] sm:$0xf]  ;;  %v12687_v48 = vld [vmem:[%s14435_s15 + $0x3ac] sm:$0xf0]  ;;  %v9677_v50 = vor.u32 %v12655_v46, %v9676_v44  ;;  %7637 = vmatpush.bf16.msra.mxu0 %v9421_v45 }
 0x1bf   : > { %v9404_v51 = vld [vmem:[%s14435_s15 + $0x80] sm:$0xf]  ;;  %v12587_v52 = vld [vmem:[%s14435_s15 + $0x8c] sm:$0xf0]  ;;  %v9805_v54 = vor.u32 %v12687_v48, %v9804_v47  ;;  %7651 = vmatpush.bf16.msra.mxu1 %v9549_v49 }
 0x1c0   : > { %v9532_v53 = vld [vmem:[%s14435_s15 + $0x180] sm:$0xf]  ;;  %v12619_v55 = vld [vmem:[%s14435_s15 + $0x18c] sm:$0xf0]  ;;  %v9405_v60 = vor.u32 %v12587_v52, %v9404_v51  ;;  %7665 = vmatpush.bf16.msra.mxu2 %v9677_v50 }
 0x1c1   : > { %v9660_v56 = vld [vmem:[%s14435_s15 + $0x280] sm:$0xf]  ;;  %v12651_v57 = vld [vmem:[%s14435_s15 + $0x28c] sm:$0xf0]  ;;  %v9533_v61 = vor.u32 %v12619_v55, %v9532_v53  ;;  %7679 = vmatpush.bf16.msra.mxu3 %v9805_v54 }
 0x1c2   : > { %v9788_v58 = vld [vmem:[%s14435_s15 + $0x380] sm:$0xf]  ;;  %v12683_v59 = vld [vmem:[%s14435_s15 + $0x38c] sm:$0xf0]  ;;  %v9661_v62 = vor.u32 %v12651_v57, %v9660_v56  ;;  %7638 = vmatpush.bf16.msra.mxu0 %v9405_v60 }
 0x1c3   : > { %v9388_v63 = vld [vmem:[%s14435_s15 + $0x60] sm:$0xf]  ;;  %v12583_v0 = vld [vmem:[%s14435_s15 + $0x6c] sm:$0xf0]  ;;  %v9789_v2 = vor.u32 %v12683_v59, %v9788_v58  ;;  %7652 = vmatpush.bf16.msra.mxu1 %v9533_v61 }
 0x1c4   : > { %v9516_v1 = vld [vmem:[%s14435_s15 + $0x160] sm:$0xf]  ;;  %v12615_v3 = vld [vmem:[%s14435_s15 + $0x16c] sm:$0xf0]  ;;  %v9389_v8 = vor.u32 %v12583_v0, %v9388_v63  ;;  %7666 = vmatpush.bf16.msra.mxu2 %v9661_v62 }
 0x1c5   : > { %v9644_v4 = vld [vmem:[%s14435_s15 + $0x260] sm:$0xf]  ;;  %v12647_v5 = vld [vmem:[%s14435_s15 + $0x26c] sm:$0xf0]  ;;  %v9517_v9 = vor.u32 %v12615_v3, %v9516_v1  ;;  %7680 = vmatpush.bf16.msra.mxu3 %v9789_v2 }
 0x1c6   : > { %v9772_v6 = vld [vmem:[%s14435_s15 + $0x360] sm:$0xf]  ;;  %v12679_v7 = vld [vmem:[%s14435_s15 + $0x36c] sm:$0xf0]  ;;  %v9645_v10 = vor.u32 %v12647_v5, %v9644_v4  ;;  %7639 = vmatpush.bf16.msra.mxu0 %v9389_v8  ;;  %v12556_v5 = vld [vmem:[%s16616_s0 + $0x60] sm:$0xf0] }
 0x1c7   : > { %v9372_v11 = vld [vmem:[%s14435_s15 + $0x40] sm:$0xf]  ;;  %v12579_v12 = vld [vmem:[%s14435_s15 + $0x4c] sm:$0xf0]  ;;  %v9773_v14 = vor.u32 %v12679_v7, %v9772_v6  ;;  %7653 = vmatpush.bf16.msra.mxu1 %v9517_v9  ;;  %v9248_v6 = vld [vmem:[%s16616_s0 + $0x8] sm:$0xf] }
 0x1c8   : > { %v9500_v13 = vld [vmem:[%s14435_s15 + $0x140] sm:$0xf]  ;;  %v12611_v15 = vld [vmem:[%s14435_s15 + $0x14c] sm:$0xf0]  ;;  %v9373_v20 = vor.u32 %v12579_v12, %v9372_v11  ;;  %7667 = vmatpush.bf16.msra.mxu2 %v9645_v10  ;;  %v12557_v11 = vld [vmem:[%s16616_s0 + $0x68] sm:$0xf0] }
 0x1c9   : > { %v9628_v16 = vld [vmem:[%s14435_s15 + $0x240] sm:$0xf]  ;;  %v12643_v17 = vld [vmem:[%s14435_s15 + $0x24c] sm:$0xf0]  ;;  %v9501_v21 = vor.u32 %v12611_v15, %v9500_v13  ;;  %7681 = vmatpush.bf16.msra.mxu3 %v9773_v14 }
 0x1ca   : > { %v9756_v18 = vld [vmem:[%s14435_s15 + $0x340] sm:$0xf]  ;;  %v12675_v19 = vld [vmem:[%s14435_s15 + $0x34c] sm:$0xf0]  ;;  %v9629_v22 = vor.u32 %v12643_v17, %v9628_v16  ;;  %7640 = vmatpush.bf16.msra.mxu0 %v9373_v20  ;;  %v14536_v17 = vor.u32 %v12557_v11, %v9248_v6 }
 0x1cb   : > { %v9356_v23 = vld [vmem:[%s14435_s15 + $0x20] sm:$0xf]  ;;  %v12575_v24 = vld [vmem:[%s14435_s15 + $0x2c] sm:$0xf0]  ;;  %v9757_v26 = vor.u32 %v12675_v19, %v9756_v18  ;;  %7654 = vmatpush.bf16.msra.mxu1 %v9501_v21 }
 0x1cc   : > { %v9484_v25 = vld [vmem:[%s14435_s15 + $0x120] sm:$0xf]  ;;  %v12607_v27 = vld [vmem:[%s14435_s15 + $0x12c] sm:$0xf0]  ;;  %v9357_v32 = vor.u32 %v12575_v24, %v9356_v23  ;;  %7668 = vmatpush.bf16.msra.mxu2 %v9629_v22  ;;  %16652 = vst [vmem:[#allocation6_spill] sm:$0xff] %v14536_v17 }
 0x1cd   : > { %v9612_v28 = vld [vmem:[%s14435_s15 + $0x220] sm:$0xf]  ;;  %v12639_v29 = vld [vmem:[%s14435_s15 + $0x22c] sm:$0xf0]  ;;  %v9485_v35 = vor.u32 %v12607_v27, %v9484_v25  ;;  %7682 = vmatpush.bf16.msra.mxu3 %v9757_v26  ;;  %v12544_v22 = vld [vmem:[%s16616_s0 + $0x4] sm:$0xf] }
 0x1ce   : > { %v9740_v30 = vld [vmem:[%s14435_s15 + $0x320] sm:$0xf]  ;;  %v12671_v31 = vld [vmem:[%s14435_s15 + $0x32c] sm:$0xf0]  ;;  %v9613_v36 = vor.u32 %v12639_v29, %v9612_v28  ;;  %7641 = vmatpush.bf16.msra.mxu0 %v9357_v32  ;;  %v9242_v23 = vld [vmem:[%s16616_s0 + $0x64] sm:$0xf0] }
 0x1cf   : > { %v9340_v33 = vld [vmem:[%s14435_s15] sm:$0xf]  ;;  %v12571_v34 = vld [vmem:[%s14435_s15 + $0xc] sm:$0xf0]  ;;  %v9741_v40 = vor.u32 %v12671_v31, %v9740_v30  ;;  %7655 = vmatpush.bf16.msra.mxu1 %v9485_v35  ;;  %v12545_v24 = vld [vmem:[%s16616_s0 + $0xc] sm:$0xf]  ;;  %v14552_v26 = vor.u32 %v12544_v22, %v9242_v23 }
 0x1d0   : > { %v9468_v37 = vld [vmem:[%s14435_s15 + $0x100] sm:$0xf]  ;;  %v12603_v38 = vld [vmem:[%s14435_s15 + $0x10c] sm:$0xf0]  ;;  %v9341_v47 = vor.u32 %v12571_v34, %v9340_v33  ;;  %7669 = vmatpush.bf16.msra.mxu2 %v9613_v36 }
 0x1d1   : > { %v9596_v39 = vld [vmem:[%s14435_s15 + $0x200] sm:$0xf]  ;;  %v12635_v41 = vld [vmem:[%s14435_s15 + $0x20c] sm:$0xf0]  ;;  %v9469_v51 = vor.u32 %v12603_v38, %v9468_v37  ;;  %7683 = vmatpush.bf16.msra.mxu3 %v9741_v40  ;;  %16653 = vst [vmem:[#allocation7_spill] sm:$0xff] %v14552_v26 }
 0x1d2   : > { %v9724_v42 = vld [vmem:[%s14435_s15 + $0x300] sm:$0xf]  ;;  %v12667_v43 = vld [vmem:[%s14435_s15 + $0x30c] sm:$0xf0]  ;;  %v9597_v52 = vor.u32 %v12635_v41, %v9596_v39  ;;  %7642 = vmatpush.bf16.msra.mxu0 %v9341_v47 }
 0x1d3   : > { %v9964_v44 = vld [vmem:[%s14435_s15 + $0x4e0] sm:$0xf]  ;;  %v12727_v45 = vld [vmem:[%s14435_s15 + $0x4ec] sm:$0xf0]  ;;  %v9725_v55 = vor.u32 %v12667_v43, %v9724_v42  ;;  %7656 = vmatpush.bf16.msra.mxu1 %v9469_v51 }
 0x1d4   : > { %v10092_v46 = vld [vmem:[%s14435_s15 + $0x5e0] sm:$0xf]  ;;  %v12759_v48 = vld [vmem:[%s14435_s15 + $0x5ec] sm:$0xf0]  ;;  %v9965_v56 = vor.u32 %v12727_v45, %v9964_v44  ;;  %7670 = vmatpush.bf16.msra.mxu2 %v9597_v52 }
 0x1d5   : > { %v10220_v49 = vld [vmem:[%s14435_s15 + $0x6e0] sm:$0xf]  ;;  %v12791_v50 = vld [vmem:[%s14435_s15 + $0x6ec] sm:$0xf0]  ;;  %v10093_v59 = vor.u32 %v12759_v48, %v10092_v46  ;;  %7684 = vmatpush.bf16.msra.mxu3 %v9725_v55 }
 0x1d6   : > { %v10348_v53 = vld [vmem:[%s14435_s15 + $0x7e0] sm:$0xf]  ;;  %v12823_v54 = vld [vmem:[%s14435_s15 + $0x7ec] sm:$0xf0]  ;;  %v10221_v60 = vor.u32 %v12791_v50, %v10220_v49  ;;  %7691 = vmatpush.bf16.msrb.mxu0 %v9965_v56  ;;  %7657 = vmatmul.bf16.vlgmr.msra.gmra.mxu1 %v14552_v26 }
 0x1d7   : > { %v9948_v57 = vld [vmem:[%s14435_s15 + $0x4c0] sm:$0xf]  ;;  %v12723_v58 = vld [vmem:[%s14435_s15 + $0x4cc] sm:$0xf0]  ;;  %v10349_v0 = vor.u32 %v12823_v54, %v10348_v53  ;;  %7705 = vmatpush.bf16.msrb.mxu1 %v10093_v59  ;;  %7671 = vmatmul.bf16.vlgmr.msra.gmra.mxu2 %v14536_v17 }
 0x1d8   : > { %v10076_v61 = vld [vmem:[%s14435_s15 + $0x5c0] sm:$0xf]  ;;  %v12755_v62 = vld [vmem:[%s14435_s15 + $0x5cc] sm:$0xf0]  ;;  %v9949_v7 = vor.u32 %v12723_v58, %v9948_v57  ;;  %7719 = vmatpush.bf16.msrb.mxu2 %v10221_v60 }
 0x1d9   : > { %v10204_v63 = vld [vmem:[%s14435_s15 + $0x6c0] sm:$0xf]  ;;  %v12787_v1 = vld [vmem:[%s14435_s15 + $0x6cc] sm:$0xf0]  ;;  %v10077_v12 = vor.u32 %v12755_v62, %v10076_v61  ;;  %7733 = vmatpush.bf16.msrb.mxu3 %v10349_v0 }
 0x1da   : > { %v10332_v2 = vld [vmem:[%s14435_s15 + $0x7c0] sm:$0xf]  ;;  %v12819_v3 = vld [vmem:[%s14435_s15 + $0x7cc] sm:$0xf0]  ;;  %v10205_v13 = vor.u32 %v12787_v1, %v10204_v63  ;;  %7692 = vmatpush.bf16.msrb.mxu0 %v9949_v7 }
 0x1db   : > { %v9240_v4 = vld [vmem:[%s16616_s0] sm:$0xf]  ;;  %v12719_v9 = vld [vmem:[%s14435_s15 + $0x4ac] sm:$0xf0]  ;;  %v10333_v18 = vor.u32 %v12819_v3, %v10332_v2  ;;  %7706 = vmatpush.bf16.msrb.mxu1 %v10077_v12 }
 0x1dc   : > { %v9932_v8 = vld [vmem:[%s14435_s15 + $0x4a0] sm:$0xf]  ;;  %v14528_v10 = vor.u32 %v12556_v5, %v9240_v4  ;;  %v12751_v15 = vld [vmem:[%s14435_s15 + $0x5ac] sm:$0xf0]  ;;  %7720 = vmatpush.bf16.msrb.mxu2 %v10205_v13 }
 0x1dd   : > { %v10060_v14 = vld [vmem:[%s14435_s15 + $0x5a0] sm:$0xf]  ;;  %v12783_v19 = vld [vmem:[%s14435_s15 + $0x6ac] sm:$0xf0]  ;;  %v9933_v25 = vor.u32 %v12719_v9, %v9932_v8  ;;  %7734 = vmatpush.bf16.msrb.mxu3 %v10333_v18 }
 0x1de   : > { %16651 = vst [vmem:[#allocation5_spill] sm:$0xff] %v14528_v10  ;;  %v10188_v16 = vld [vmem:[%s14435_s15 + $0x6a0] sm:$0xf]  ;;  %v12815_v21 = vld [vmem:[%s14435_s15 + $0x7ac] sm:$0xf0]  ;;  %7643 = vmatmul.bf16.vlgmr.msra.gmra.mxu0 %v14528_v10  ;;  %v10061_v28 = vor.u32 %v12751_v15, %v10060_v14 }
 0x1df   : > { %v10316_v20 = vld [vmem:[%s14435_s15 + $0x7a0] sm:$0xf]  ;;  %v9250_v27 = vld [vmem:[%s16616_s0 + $0x6c] sm:$0xf0]  ;;  %v10189_v29 = vor.u32 %v12783_v19, %v10188_v16  ;;  %7693 = vmatpush.bf16.msrb.mxu0 %v9933_v25 }
 0x1e0   : > { %v9916_v30 = vld [vmem:[%s14435_s15 + $0x480] sm:$0xf]  ;;  %v12715_v31 = vld [vmem:[%s14435_s15 + $0x48c] sm:$0xf0]  ;;  %v14560_v33 = vor.u32 %v12545_v24, %v9250_v27  ;;  %v10317_v34 = vor.u32 %v12815_v21, %v10316_v20  ;;  %7707 = vmatpush.bf16.msrb.mxu1 %v10061_v28 }
 0x1e1   : > { %v10044_v32 = vld [vmem:[%s14435_s15 + $0x580] sm:$0xf]  ;;  %v12747_v35 = vld [vmem:[%s14435_s15 + $0x58c] sm:$0xf0]  ;;  %v9917_v40 = vor.u32 %v12715_v31, %v9916_v30  ;;  %7721 = vmatpush.bf16.msrb.mxu2 %v10189_v29 }
 0x1e2   : > { %16654 = vst [vmem:[#allocation8_spill] sm:$0xff] %v14560_v33  ;;  %v10172_v36 = vld [vmem:[%s14435_s15 + $0x680] sm:$0xf]  ;;  %v12779_v37 = vld [vmem:[%s14435_s15 + $0x68c] sm:$0xf0]  ;;  %7685 = vmatmul.bf16.vlgmr.msra.gmra.mxu3 %v14560_v33  ;;  %v10045_v41 = vor.u32 %v12747_v35, %v10044_v32 }
 0x1e3   : > { %v10300_v38 = vld [vmem:[%s14435_s15 + $0x780] sm:$0xf]  ;;  %v12811_v39 = vld [vmem:[%s14435_s15 + $0x78c] sm:$0xf0]  ;;  %v10173_v42 = vor.u32 %v12779_v37, %v10172_v36  ;;  %7735 = vmatpush.bf16.msrb.mxu3 %v10317_v34  ;;  %7694 = vmatpush.bf16.msrb.mxu0 %v9917_v40 }
 0x1e4   : > { %v9900_v43 = vld [vmem:[%s14435_s15 + $0x460] sm:$0xf]  ;;  %v12711_v44 = vld [vmem:[%s14435_s15 + $0x46c] sm:$0xf0]  ;;  %v10301_v46 = vor.u32 %v12811_v39, %v10300_v38  ;;  %7708 = vmatpush.bf16.msrb.mxu1 %v10045_v41  ;;  %v12558_v38 = vld [vmem:[%s16616_s0 + $0x70] sm:$0xf0] }
 0x1e5   : > { %v10028_v45 = vld [vmem:[%s14435_s15 + $0x560] sm:$0xf]  ;;  %v12743_v47 = vld [vmem:[%s14435_s15 + $0x56c] sm:$0xf0]  ;;  %v9901_v52 = vor.u32 %v12711_v44, %v9900_v43  ;;  %7722 = vmatpush.bf16.msrb.mxu2 %v10173_v42  ;;  %v9264_v41 = vld [vmem:[%s16616_s0 + $0x18] sm:$0xf] }
 0x1e6   : > { %v10156_v48 = vld [vmem:[%s14435_s15 + $0x660] sm:$0xf]  ;;  %v12775_v49 = vld [vmem:[%s14435_s15 + $0x66c] sm:$0xf0]  ;;  %v10029_v53 = vor.u32 %v12743_v47, %v10028_v45  ;;  %v12559_v42 = vld [vmem:[%s16616_s0 + $0x78] sm:$0xf0] }
 0x1e7   : > { %v10284_v50 = vld [vmem:[%s14435_s15 + $0x760] sm:$0xf]  ;;  %v12807_v51 = vld [vmem:[%s14435_s15 + $0x76c] sm:$0xf0]  ;;  %v10157_v54 = vor.u32 %v12775_v49, %v10156_v48  ;;  %7736 = vmatpush.bf16.msrb.mxu3 %v10301_v46  ;;  %7695 = vmatpush.bf16.msrb.mxu0 %v9901_v52  ;;  %v12546_v43 = vld [vmem:[%s16616_s0 + $0x14] sm:$0xf] }
 0x1e8   : > { %v9884_v55 = vld [vmem:[%s14435_s15 + $0x440] sm:$0xf]  ;;  %v12707_v56 = vld [vmem:[%s14435_s15 + $0x44c] sm:$0xf0]  ;;  %v10285_v58 = vor.u32 %v12807_v51, %v10284_v50  ;;  %7709 = vmatpush.bf16.msrb.mxu1 %v10029_v53  ;;  %v9258_v46 = vld [vmem:[%s16616_s0 + $0x74] sm:$0xf0] }
 0x1e9   : > { %v10012_v57 = vld [vmem:[%s14435_s15 + $0x540] sm:$0xf]  ;;  %v12739_v59 = vld [vmem:[%s14435_s15 + $0x54c] sm:$0xf0]  ;;  %v9885_v0 = vor.u32 %v12707_v56, %v9884_v55  ;;  %7723 = vmatpush.bf16.msrb.mxu2 %v10157_v54  ;;  %v12547_v47 = vld [vmem:[%s16616_s0 + $0x1c] sm:$0xf] }
 0x1ea   : > { %v10140_v60 = vld [vmem:[%s14435_s15 + $0x640] sm:$0xf]  ;;  %v12771_v61 = vld [vmem:[%s14435_s15 + $0x64c] sm:$0xf0]  ;;  %v10013_v2 = vor.u32 %v12739_v59, %v10012_v57  ;;  %v14641_v59 = vor.u32 %v12559_v42, %v9264_v41 }
 0x1eb   : > { %v10268_v62 = vld [vmem:[%s14435_s15 + $0x740] sm:$0xf]  ;;  %v12803_v63 = vld [vmem:[%s14435_s15 + $0x74c] sm:$0xf0]  ;;  %v10141_v3 = vor.u32 %v12771_v61, %v10140_v60  ;;  %7737 = vmatpush.bf16.msrb.mxu3 %v10285_v58  ;;  %7696 = vmatpush.bf16.msrb.mxu0 %v9885_v0  ;;  %v14643_v60 = vor.u32 %v12546_v43, %v9258_v46 }
 0x1ec   : > { %v9868_v1 = vld [vmem:[%s14435_s15 + $0x420] sm:$0xf]  ;;  %v12703_v4 = vld [vmem:[%s14435_s15 + $0x42c] sm:$0xf0]  ;;  %v10269_v7 = vor.u32 %v12803_v63, %v10268_v62  ;;  %7710 = vmatpush.bf16.msrb.mxu1 %v10013_v2 }
 0x1ed   : > { %v9996_v5 = vld [vmem:[%s14435_s15 + $0x520] sm:$0xf]  ;;  %v12735_v6 = vld [vmem:[%s14435_s15 + $0x52c] sm:$0xf0]  ;;  %v9869_v15 = vor.u32 %v12703_v4, %v9868_v1  ;;  %7724 = vmatpush.bf16.msrb.mxu2 %v10141_v3  ;;  %16656 = vst [vmem:[#allocation10_spill] sm:$0xff] %v14643_v60 }
 0x1ee   : > { %v10124_v8 = vld [vmem:[%s14435_s15 + $0x620] sm:$0xf]  ;;  %v12767_v9 = vld [vmem:[%s14435_s15 + $0x62c] sm:$0xf0]  ;;  %v9997_v21 = vor.u32 %v12735_v6, %v9996_v5 }
 0x1ef   : > { %v10252_v11 = vld [vmem:[%s14435_s15 + $0x720] sm:$0xf]  ;;  %v12799_v12 = vld [vmem:[%s14435_s15 + $0x72c] sm:$0xf0]  ;;  %v10125_v22 = vor.u32 %v12767_v9, %v10124_v8  ;;  %7738 = vmatpush.bf16.msrb.mxu3 %v10269_v7  ;;  %7697 = vmatpush.bf16.msrb.mxu0 %v9869_v15 }
 0x1f0   : > { %v9852_v13 = vld [vmem:[%s14435_s15 + $0x400] sm:$0xf]  ;;  %v12699_v14 = vld [vmem:[%s14435_s15 + $0x40c] sm:$0xf0]  ;;  %v10253_v27 = vor.u32 %v12799_v12, %v10252_v11  ;;  %7711 = vmatpush.bf16.msrb.mxu1 %v9997_v21 }
 0x1f1   : > { %v9980_v16 = vld [vmem:[%s14435_s15 + $0x500] sm:$0xf]  ;;  %v12731_v18 = vld [vmem:[%s14435_s15 + $0x50c] sm:$0xf0]  ;;  %v9853_v35 = vor.u32 %v12699_v14, %v9852_v13  ;;  %7725 = vmatpush.bf16.msrb.mxu2 %v10125_v22 }
 0x1f2   : > { %v10108_v19 = vld [vmem:[%s14435_s15 + $0x600] sm:$0xf]  ;;  %v12763_v20 = vld [vmem:[%s14435_s15 + $0x60c] sm:$0xf0]  ;;  %v9981_v39 = vor.u32 %v12731_v18, %v9980_v16 }
 0x1f3   : > { %v10236_v23 = vld [vmem:[%s14435_s15 + $0x700] sm:$0xf]  ;;  %v12795_v24 = vld [vmem:[%s14435_s15 + $0x70c] sm:$0xf0]  ;;  %v10109_v40 = vor.u32 %v12763_v20, %v10108_v19  ;;  %7739 = vmatpush.bf16.msrb.mxu3 %v10253_v27  ;;  %7698 = vmatpush.bf16.msrb.mxu0 %v9853_v35 }
 0x1f4   : > { %v10476_v25 = vld [vmem:[%s14435_s15 + $0x8e0] sm:$0xf]  ;;  %v12855_v28 = vld [vmem:[%s14435_s15 + $0x8ec] sm:$0xf0]  ;;  %v10237_v44 = vor.u32 %v12795_v24, %v10236_v23  ;;  %7712 = vmatpush.bf16.msrb.mxu1 %v9981_v39 }
 0x1f5   : > { %v10604_v29 = vld [vmem:[%s14435_s15 + $0x9e0] sm:$0xf]  ;;  %v12887_v30 = vld [vmem:[%s14435_s15 + $0x9ec] sm:$0xf0]  ;;  %v10477_v45 = vor.u32 %v12855_v28, %v10476_v25  ;;  %7726 = vmatpush.bf16.msrb.mxu2 %v10109_v40 }
 0x1f6   : > { %v10732_v31 = vld [vmem:[%s14435_s15 + $0xae0] sm:$0xf]  ;;  %v12919_v32 = vld [vmem:[%s14435_s15 + $0xaec] sm:$0xf0]  ;;  %v10605_v49 = vor.u32 %v12887_v30, %v10604_v29 }
 0x1f7   : > { %v10860_v34 = vld [vmem:[%s14435_s15 + $0xbe0] sm:$0xf]  ;;  %v12951_v36 = vld [vmem:[%s14435_s15 + $0xbec] sm:$0xf0]  ;;  %v10733_v50 = vor.u32 %v12919_v32, %v10732_v31  ;;  %7740 = vmatpush.bf16.msrb.mxu3 %v10237_v44  ;;  %7747 = vmatpush.bf16.msra.mxu0 %v10477_v45 }
 0x1f8   : > { %v9256_v37 = vld [vmem:[%s16616_s0 + $0x10] sm:$0xf]  ;;  %v9266_v48 = vld [vmem:[%s16616_s0 + $0x7c] sm:$0xf0]  ;;  %v10861_v54 = vor.u32 %v12951_v36, %v10860_v34  ;;  %7761 = vmatpush.bf16.msra.mxu1 %v10605_v49  ;;  %7727 = vmatmul.bf16.vlgmr.msrb.gmra.mxu2 %v14641_v59 }
 0x1f9   : > { %v10460_v51 = vld [vmem:[%s14435_s15 + $0x8c0] sm:$0xf]  ;;  %v12851_v52 = vld [vmem:[%s14435_s15 + $0x8cc] sm:$0xf0]  ;;  %v14636_v55 = vor.u32 %v12558_v38, %v9256_v37  ;;  %v14647_v63 = vor.u32 %v12547_v47, %v9266_v48  ;;  %7775 = vmatpush.bf16.msra.mxu2 %v10733_v50  ;;  %7713 = vmatmul.bf16.vlgmr.msrb.gmra.mxu1 %v14643_v60 }
 0x1fa   : > { %v10588_v53 = vld [vmem:[%s14435_s15 + $0x9c0] sm:$0xf]  ;;  %v12883_v56 = vld [vmem:[%s14435_s15 + $0x9cc] sm:$0xf0]  ;;  %v10461_v0 = vor.u32 %v12851_v52, %v10460_v51 }
 0x1fb   : > { %16655 = vst [vmem:[#allocation9_spill] sm:$0xff] %v14636_v55  ;;  %v10716_v57 = vld [vmem:[%s14435_s15 + $0xac0] sm:$0xf]  ;;  %v12915_v58 = vld [vmem:[%s14435_s15 + $0xacc] sm:$0xf0]  ;;  %v10589_v1 = vor.u32 %v12883_v56, %v10588_v53  ;;  %7789 = vmatpush.bf16.msra.mxu3 %v10861_v54  ;;  %7699 = vmatmul.bf16.vlgmr.msrb.gmra.mxu0 %v14636_v55 }
 0x1fc   : > { %v10844_v61 = vld [vmem:[%s14435_s15 + $0xbc0] sm:$0xf]  ;;  %v12947_v62 = vld [vmem:[%s14435_s15 + $0xbcc] sm:$0xf0]  ;;  %v10717_v2 = vor.u32 %v12915_v58, %v10716_v57  ;;  %7741 = vmatmul.bf16.vlgmr.msrb.gmra.mxu3 %v14647_v63  ;;  %7748 = vmatpush.bf16.msra.mxu0 %v10461_v0 }
 0x1fd   : > { %v10444_v3 = vld [vmem:[%s14435_s15 + $0x8a0] sm:$0xf]  ;;  %v12847_v4 = vld [vmem:[%s14435_s15 + $0x8ac] sm:$0xf0]  ;;  %v10845_v6 = vor.u32 %v12947_v62, %v10844_v61  ;;  %7762 = vmatpush.bf16.msra.mxu1 %v10589_v1 }
 0x1fe   : > { %v10572_v5 = vld [vmem:[%s14435_s15 + $0x9a0] sm:$0xf]  ;;  %v12879_v7 = vld [vmem:[%s14435_s15 + $0x9ac] sm:$0xf0]  ;;  %v10445_v13 = vor.u32 %v12847_v4, %v10444_v3  ;;  %7776 = vmatpush.bf16.msra.mxu2 %v10717_v2 }
 0x1ff   : > { %v10700_v8 = vld [vmem:[%s14435_s15 + $0xaa0] sm:$0xf]  ;;  %v12911_v9 = vld [vmem:[%s14435_s15 + $0xaac] sm:$0xf0]  ;;  %v10573_v14 = vor.u32 %v12879_v7, %v10572_v5  ;;  %7790 = vmatpush.bf16.msra.mxu3 %v10845_v6 }
 0x200   : > { %v10828_v11 = vld [vmem:[%s14435_s15 + $0xba0] sm:$0xf]  ;;  %v12943_v12 = vld [vmem:[%s14435_s15 + $0xbac] sm:$0xf0]  ;;  %v10701_v15 = vor.u32 %v12911_v9, %v10700_v8  ;;  %7749 = vmatpush.bf16.msra.mxu0 %v10445_v13 }
 0x201   : > { %v10428_v16 = vld [vmem:[%s14435_s15 + $0x880] sm:$0xf]  ;;  %v12843_v18 = vld [vmem:[%s14435_s15 + $0x88c] sm:$0xf0]  ;;  %v10829_v20 = vor.u32 %v12943_v12, %v10828_v11  ;;  %7763 = vmatpush.bf16.msra.mxu1 %v10573_v14 }
 0x202   : > { %v10556_v19 = vld [vmem:[%s14435_s15 + $0x980] sm:$0xf]  ;;  %v12875_v21 = vld [vmem:[%s14435_s15 + $0x98c] sm:$0xf0]  ;;  %v10429_v27 = vor.u32 %v12843_v18, %v10428_v16  ;;  %7777 = vmatpush.bf16.msra.mxu2 %v10701_v15 }
 0x203   : > { %v10684_v22 = vld [vmem:[%s14435_s15 + $0xa80] sm:$0xf]  ;;  %v12907_v23 = vld [vmem:[%s14435_s15 + $0xa8c] sm:$0xf0]  ;;  %v10557_v28 = vor.u32 %v12875_v21, %v10556_v19  ;;  %7791 = vmatpush.bf16.msra.mxu3 %v10829_v20 }
 0x204   : > { %v10812_v24 = vld [vmem:[%s14435_s15 + $0xb80] sm:$0xf]  ;;  %v12939_v25 = vld [vmem:[%s14435_s15 + $0xb8c] sm:$0xf0]  ;;  %v10685_v29 = vor.u32 %v12907_v23, %v10684_v22  ;;  %7750 = vmatpush.bf16.msra.mxu0 %v10429_v27 }
 0x205   : > { %v10412_v30 = vld [vmem:[%s14435_s15 + $0x860] sm:$0xf]  ;;  %v12839_v31 = vld [vmem:[%s14435_s15 + $0x86c] sm:$0xf0]  ;;  %v10813_v34 = vor.u32 %v12939_v25, %v10812_v24  ;;  %7764 = vmatpush.bf16.msra.mxu1 %v10557_v28 }
 0x206   : > { %v10540_v32 = vld [vmem:[%s14435_s15 + $0x960] sm:$0xf]  ;;  %v12871_v35 = vld [vmem:[%s14435_s15 + $0x96c] sm:$0xf0]  ;;  %v10413_v40 = vor.u32 %v12839_v31, %v10412_v30  ;;  %7778 = vmatpush.bf16.msra.mxu2 %v10685_v29  ;;  %v12560_v29 = vld [vmem:[%s16616_s0 + $0x80] sm:$0xf0] }
 0x207   : > { %v10668_v36 = vld [vmem:[%s14435_s15 + $0xa60] sm:$0xf]  ;;  %v12903_v37 = vld [vmem:[%s14435_s15 + $0xa6c] sm:$0xf0]  ;;  %v10541_v41 = vor.u32 %v12871_v35, %v10540_v32  ;;  %7792 = vmatpush.bf16.msra.mxu3 %v10813_v34  ;;  %v9280_v32 = vld [vmem:[%s16616_s0 + $0x28] sm:$0xf] }
 0x208   : > { %v10796_v38 = vld [vmem:[%s14435_s15 + $0xb60] sm:$0xf]  ;;  %v12935_v39 = vld [vmem:[%s14435_s15 + $0xb6c] sm:$0xf0]  ;;  %v10669_v42 = vor.u32 %v12903_v37, %v10668_v36  ;;  %7751 = vmatpush.bf16.msra.mxu0 %v10413_v40  ;;  %v12561_v34 = vld [vmem:[%s16616_s0 + $0x88] sm:$0xf0] }
 0x209   : > { %v10396_v43 = vld [vmem:[%s14435_s15 + $0x840] sm:$0xf]  ;;  %v12835_v44 = vld [vmem:[%s14435_s15 + $0x84c] sm:$0xf0]  ;;  %v10797_v46 = vor.u32 %v12935_v39, %v10796_v38  ;;  %7765 = vmatpush.bf16.msra.mxu1 %v10541_v41  ;;  %v12548_v35 = vld [vmem:[%s16616_s0 + $0x24] sm:$0xf] }
 0x20a   : > { %v10524_v45 = vld [vmem:[%s14435_s15 + $0x940] sm:$0xf]  ;;  %v12867_v47 = vld [vmem:[%s14435_s15 + $0x94c] sm:$0xf0]  ;;  %v10397_v52 = vor.u32 %v12835_v44, %v10396_v43  ;;  %7779 = vmatpush.bf16.msra.mxu2 %v10669_v42  ;;  %v9274_v38 = vld [vmem:[%s16616_s0 + $0x84] sm:$0xf0] }
 0x20b   : > { %v10652_v48 = vld [vmem:[%s14435_s15 + $0xa40] sm:$0xf]  ;;  %v12899_v49 = vld [vmem:[%s14435_s15 + $0xa4c] sm:$0xf0]  ;;  %v10525_v54 = vor.u32 %v12867_v47, %v10524_v45  ;;  %7793 = vmatpush.bf16.msra.mxu3 %v10797_v46  ;;  %v12549_v39 = vld [vmem:[%s16616_s0 + $0x2c] sm:$0xf] }
 0x20c   : > { %v10780_v50 = vld [vmem:[%s14435_s15 + $0xb40] sm:$0xf]  ;;  %v12931_v51 = vld [vmem:[%s14435_s15 + $0xb4c] sm:$0xf0]  ;;  %v10653_v56 = vor.u32 %v12899_v49, %v10652_v48  ;;  %7752 = vmatpush.bf16.msra.mxu0 %v10397_v52  ;;  %v14743_v52 = vor.u32 %v12548_v35, %v9274_v38 }
 0x20d   : > { %v10380_v53 = vld [vmem:[%s14435_s15 + $0x820] sm:$0xf]  ;;  %v12831_v57 = vld [vmem:[%s14435_s15 + $0x82c] sm:$0xf0]  ;;  %v10781_v62 = vor.u32 %v12931_v51, %v10780_v50  ;;  %7766 = vmatpush.bf16.msra.mxu1 %v10525_v54  ;;  %v14741_v51 = vor.u32 %v12561_v34, %v9280_v32 }
 0x20e   : > { %v10508_v58 = vld [vmem:[%s14435_s15 + $0x920] sm:$0xf]  ;;  %v12863_v61 = vld [vmem:[%s14435_s15 + $0x92c] sm:$0xf0]  ;;  %v10381_v6 = vor.u32 %v12831_v57, %v10380_v53  ;;  %7780 = vmatpush.bf16.msra.mxu2 %v10653_v56 }
 0x20f   : > { %v10636_v0 = vld [vmem:[%s14435_s15 + $0xa20] sm:$0xf]  ;;  %v12895_v1 = vld [vmem:[%s14435_s15 + $0xa2c] sm:$0xf0]  ;;  %v10509_v12 = vor.u32 %v12863_v61, %v10508_v58  ;;  %7794 = vmatpush.bf16.msra.mxu3 %v10781_v62 }
 0x210   : > { %v10764_v2 = vld [vmem:[%s14435_s15 + $0xb20] sm:$0xf]  ;;  %v12927_v3 = vld [vmem:[%s14435_s15 + $0xb2c] sm:$0xf0]  ;;  %v10637_v13 = vor.u32 %v12895_v1, %v10636_v0  ;;  %7753 = vmatpush.bf16.msra.mxu0 %v10381_v6 }
 0x211   : > { %v10364_v4 = vld [vmem:[%s14435_s15 + $0x800] sm:$0xf]  ;;  %v12827_v5 = vld [vmem:[%s14435_s15 + $0x80c] sm:$0xf0]  ;;  %v10765_v18 = vor.u32 %v12927_v3, %v10764_v2  ;;  %7767 = vmatpush.bf16.msra.mxu1 %v10509_v12 }
 0x212   : > { %v10492_v7 = vld [vmem:[%s14435_s15 + $0x900] sm:$0xf]  ;;  %v12859_v8 = vld [vmem:[%s14435_s15 + $0x90c] sm:$0xf0]  ;;  %v10365_v25 = vor.u32 %v12827_v5, %v10364_v4  ;;  %7781 = vmatpush.bf16.msra.mxu2 %v10637_v13 }
 0x213   : > { %v10620_v9 = vld [vmem:[%s14435_s15 + $0xa00] sm:$0xf]  ;;  %v12891_v11 = vld [vmem:[%s14435_s15 + $0xa0c] sm:$0xf0]  ;;  %v10493_v30 = vor.u32 %v12859_v8, %v10492_v7  ;;  %7795 = vmatpush.bf16.msra.mxu3 %v10765_v18 }
 0x214   : > { %v10748_v14 = vld [vmem:[%s14435_s15 + $0xb00] sm:$0xf]  ;;  %v12923_v15 = vld [vmem:[%s14435_s15 + $0xb0c] sm:$0xf0]  ;;  %v10621_v31 = vor.u32 %v12891_v11, %v10620_v9  ;;  %7754 = vmatpush.bf16.msra.mxu0 %v10365_v25 }
 0x215   : > { %v10988_v16 = vld [vmem:[%s14435_s15 + $0xce0] sm:$0xf]  ;;  %v12983_v19 = vld [vmem:[%s14435_s15 + $0xcec] sm:$0xf0]  ;;  %v10749_v36 = vor.u32 %v12923_v15, %v10748_v14  ;;  %7768 = vmatpush.bf16.msra.mxu1 %v10493_v30 }
 0x216   : > { %v11116_v20 = vld [vmem:[%s14435_s15 + $0xde0] sm:$0xf]  ;;  %v13015_v21 = vld [vmem:[%s14435_s15 + $0xdec] sm:$0xf0]  ;;  %v10989_v37 = vor.u32 %v12983_v19, %v10988_v16  ;;  %7782 = vmatpush.bf16.msra.mxu2 %v10621_v31 }
 0x217   : > { %v11244_v22 = vld [vmem:[%s14435_s15 + $0xee0] sm:$0xf]  ;;  %v13047_v23 = vld [vmem:[%s14435_s15 + $0xeec] sm:$0xf0]  ;;  %v11117_v41 = vor.u32 %v13015_v21, %v11116_v20  ;;  %7796 = vmatpush.bf16.msra.mxu3 %v10749_v36 }
 0x218   : > { %v11372_v24 = vld [vmem:[%s14435_s15 + $0xfe0] sm:$0xf]  ;;  %v13079_v27 = vld [vmem:[%s14435_s15 + $0xfec] sm:$0xf0]  ;;  %v11245_v42 = vor.u32 %v13047_v23, %v11244_v22  ;;  %7803 = vmatpush.bf16.msrb.mxu0 %v10989_v37  ;;  %7769 = vmatmul.bf16.vlgmr.msra.gmra.mxu1 %v14743_v52 }
 0x219   : > { %v9272_v28 = vld [vmem:[%s16616_s0 + $0x20] sm:$0xf]  ;;  %v9282_v40 = vld [vmem:[%s16616_s0 + $0x8c] sm:$0xf0]  ;;  %v11373_v46 = vor.u32 %v13079_v27, %v11372_v24  ;;  %7817 = vmatpush.bf16.msrb.mxu1 %v11117_v41  ;;  %7783 = vmatmul.bf16.vlgmr.msra.gmra.mxu2 %v14741_v51 }
 0x21a   : > { %v10972_v43 = vld [vmem:[%s14435_s15 + $0xcc0] sm:$0xf]  ;;  %v12979_v44 = vld [vmem:[%s14435_s15 + $0xccc] sm:$0xf0]  ;;  %v14736_v47 = vor.u32 %v12560_v29, %v9272_v28  ;;  %v14747_v56 = vor.u32 %v12549_v39, %v9282_v40  ;;  %7831 = vmatpush.bf16.msrb.mxu2 %v11245_v42 }
 0x21b   : > { %v11100_v45 = vld [vmem:[%s14435_s15 + $0xdc0] sm:$0xf]  ;;  %v13011_v48 = vld [vmem:[%s14435_s15 + $0xdcc] sm:$0xf0]  ;;  %v10973_v57 = vor.u32 %v12979_v44, %v10972_v43  ;;  %7845 = vmatpush.bf16.msrb.mxu3 %v11373_v46 }
 0x21c   : > { %v11228_v49 = vld [vmem:[%s14435_s15 + $0xec0] sm:$0xf]  ;;  %v13043_v50 = vld [vmem:[%s14435_s15 + $0xecc] sm:$0xf0]  ;;  %v11101_v58 = vor.u32 %v13011_v48, %v11100_v45  ;;  %7755 = vmatmul.bf16.vlgmr.msra.gmra.mxu0 %v14736_v47  ;;  %7797 = vmatmul.bf16.vlgmr.msra.gmra.mxu3 %v14747_v56 }
 0x21d   : > { %v11356_v53 = vld [vmem:[%s14435_s15 + $0xfc0] sm:$0xf]  ;;  %v13075_v54 = vld [vmem:[%s14435_s15 + $0xfcc] sm:$0xf0]  ;;  %v11229_v61 = vor.u32 %v13043_v50, %v11228_v49  ;;  %7804 = vmatpush.bf16.msrb.mxu0 %v10973_v57 }
 0x21e   : > { %v10956_v62 = vld [vmem:[%s14435_s15 + $0xca0] sm:$0xf]  ;;  %v12975_v0 = vld [vmem:[%s14435_s15 + $0xcac] sm:$0xf0]  ;;  %v11357_v2 = vor.u32 %v13075_v54, %v11356_v53  ;;  %7818 = vmatpush.bf16.msrb.mxu1 %v11101_v58 }
 0x21f   : > { %v11084_v1 = vld [vmem:[%s14435_s15 + $0xda0] sm:$0xf]  ;;  %v13007_v3 = vld [vmem:[%s14435_s15 + $0xdac] sm:$0xf0]  ;;  %v10957_v8 = vor.u32 %v12975_v0, %v10956_v62  ;;  %7832 = vmatpush.bf16.msrb.mxu2 %v11229_v61 }
 0x220   : > { %v11212_v4 = vld [vmem:[%s14435_s15 + $0xea0] sm:$0xf]  ;;  %v13039_v5 = vld [vmem:[%s14435_s15 + $0xeac] sm:$0xf0]  ;;  %v11085_v9 = vor.u32 %v13007_v3, %v11084_v1  ;;  %7846 = vmatpush.bf16.msrb.mxu3 %v11357_v2 }
 0x221   : > { %v11340_v6 = vld [vmem:[%s14435_s15 + $0xfa0] sm:$0xf]  ;;  %v13071_v7 = vld [vmem:[%s14435_s15 + $0xfac] sm:$0xf0]  ;;  %v11213_v11 = vor.u32 %v13039_v5, %v11212_v4  ;;  %7805 = vmatpush.bf16.msrb.mxu0 %v10957_v8 }
 0x222   : > { %v10940_v12 = vld [vmem:[%s14435_s15 + $0xc80] sm:$0xf]  ;;  %v12971_v13 = vld [vmem:[%s14435_s15 + $0xc8c] sm:$0xf0]  ;;  %v11341_v15 = vor.u32 %v13071_v7, %v11340_v6  ;;  %7819 = vmatpush.bf16.msrb.mxu1 %v11085_v9 }
 0x223   : > { %v11068_v14 = vld [vmem:[%s14435_s15 + $0xd80] sm:$0xf]  ;;  %v13003_v16 = vld [vmem:[%s14435_s15 + $0xd8c] sm:$0xf0]  ;;  %v10941_v22 = vor.u32 %v12971_v13, %v10940_v12  ;;  %7833 = vmatpush.bf16.msrb.mxu2 %v11213_v11 }
 0x224   : > { %v11196_v18 = vld [vmem:[%s14435_s15 + $0xe80] sm:$0xf]  ;;  %v13035_v19 = vld [vmem:[%s14435_s15 + $0xe8c] sm:$0xf0]  ;;  %v11069_v23 = vor.u32 %v13003_v16, %v11068_v14  ;;  %7847 = vmatpush.bf16.msrb.mxu3 %v11341_v15 }
 0x225   : > { %v11324_v20 = vld [vmem:[%s14435_s15 + $0xf80] sm:$0xf]  ;;  %v13067_v21 = vld [vmem:[%s14435_s15 + $0xf8c] sm:$0xf0]  ;;  %v11197_v24 = vor.u32 %v13035_v19, %v11196_v18  ;;  %7806 = vmatpush.bf16.msrb.mxu0 %v10941_v22 }
 0x226   : > { %v10924_v25 = vld [vmem:[%s14435_s15 + $0xc60] sm:$0xf]  ;;  %v12967_v27 = vld [vmem:[%s14435_s15 + $0xc6c] sm:$0xf0]  ;;  %v11325_v29 = vor.u32 %v13067_v21, %v11324_v20  ;;  %7820 = vmatpush.bf16.msrb.mxu1 %v11069_v23 }
 0x227   : > { %v11052_v28 = vld [vmem:[%s14435_s15 + $0xd60] sm:$0xf]  ;;  %v12999_v30 = vld [vmem:[%s14435_s15 + $0xd6c] sm:$0xf0]  ;;  %v10925_v36 = vor.u32 %v12967_v27, %v10924_v25  ;;  %7834 = vmatpush.bf16.msrb.mxu2 %v11197_v24 }
 0x228   : > { %v11180_v31 = vld [vmem:[%s14435_s15 + $0xe60] sm:$0xf]  ;;  %v13031_v32 = vld [vmem:[%s14435_s15 + $0xe6c] sm:$0xf0]  ;;  %v11053_v37 = vor.u32 %v12999_v30, %v11052_v28  ;;  %7848 = vmatpush.bf16.msrb.mxu3 %v11325_v29  ;;  %v12562_v29 = vld [vmem:[%s16616_s0 + $0x90] sm:$0xf0] }
 0x229   : > { %v11308_v34 = vld [vmem:[%s14435_s15 + $0xf60] sm:$0xf]  ;;  %v13063_v35 = vld [vmem:[%s14435_s15 + $0xf6c] sm:$0xf0]  ;;  %v11181_v38 = vor.u32 %v13031_v32, %v11180_v31  ;;  %7807 = vmatpush.bf16.msrb.mxu0 %v10925_v36  ;;  %v9296_v32 = vld [vmem:[%s16616_s0 + $0x38] sm:$0xf] }
 0x22a   : > { %v10908_v39 = vld [vmem:[%s14435_s15 + $0xc40] sm:$0xf]  ;;  %v12963_v40 = vld [vmem:[%s14435_s15 + $0xc4c] sm:$0xf0]  ;;  %v11309_v42 = vor.u32 %v13063_v35, %v11308_v34  ;;  %7821 = vmatpush.bf16.msrb.mxu1 %v11053_v37  ;;  %v12563_v34 = vld [vmem:[%s16616_s0 + $0x98] sm:$0xf0] }
 0x22b   : > { %v11036_v41 = vld [vmem:[%s14435_s15 + $0xd40] sm:$0xf]  ;;  %v12995_v43 = vld [vmem:[%s14435_s15 + $0xd4c] sm:$0xf0]  ;;  %v10909_v49 = vor.u32 %v12963_v40, %v10908_v39  ;;  %7835 = vmatpush.bf16.msrb.mxu2 %v11181_v38  ;;  %v12550_v35 = vld [vmem:[%s16616_s0 + $0x34] sm:$0xf] }
 0x22c   : > { %v11164_v44 = vld [vmem:[%s14435_s15 + $0xe40] sm:$0xf]  ;;  %v13027_v45 = vld [vmem:[%s14435_s15 + $0xe4c] sm:$0xf0]  ;;  %v11037_v53 = vor.u32 %v12995_v43, %v11036_v41  ;;  %7849 = vmatpush.bf16.msrb.mxu3 %v11309_v42  ;;  %v9290_v38 = vld [vmem:[%s16616_s0 + $0x94] sm:$0xf0] }
 0x22d   : > { %v11292_v46 = vld [vmem:[%s14435_s15 + $0xf40] sm:$0xf]  ;;  %v13059_v48 = vld [vmem:[%s14435_s15 + $0xf4c] sm:$0xf0]  ;;  %v11165_v54 = vor.u32 %v13027_v45, %v11164_v44  ;;  %7808 = vmatpush.bf16.msrb.mxu0 %v10909_v49  ;;  %v12551_v39 = vld [vmem:[%s16616_s0 + $0x3c] sm:$0xf] }
 0x22e   : > { %v10892_v50 = vld [vmem:[%s14435_s15 + $0xc20] sm:$0xf]  ;;  %v12959_v57 = vld [vmem:[%s14435_s15 + $0xc2c] sm:$0xf0]  ;;  %v11293_v62 = vor.u32 %v13059_v48, %v11292_v46  ;;  %7822 = vmatpush.bf16.msrb.mxu1 %v11037_v53 }
 0x22f   : > { %v11020_v58 = vld [vmem:[%s14435_s15 + $0xd20] sm:$0xf]  ;;  %v12991_v61 = vld [vmem:[%s14435_s15 + $0xd2c] sm:$0xf0]  ;;  %v10893_v6 = vor.u32 %v12959_v57, %v10892_v50  ;;  %7836 = vmatpush.bf16.msrb.mxu2 %v11165_v54  ;;  %v14841_v54 = vor.u32 %v12563_v34, %v9296_v32  ;;  %v14843_v57 = vor.u32 %v12550_v35, %v9290_v38 }
 0x230   : > { %v11148_v0 = vld [vmem:[%s14435_s15 + $0xe20] sm:$0xf]  ;;  %v13023_v1 = vld [vmem:[%s14435_s15 + $0xe2c] sm:$0xf0]  ;;  %v11021_v12 = vor.u32 %v12991_v61, %v11020_v58  ;;  %7850 = vmatpush.bf16.msrb.mxu3 %v11293_v62 }
 0x231   : > { %v11276_v2 = vld [vmem:[%s14435_s15 + $0xf20] sm:$0xf]  ;;  %v13055_v3 = vld [vmem:[%s14435_s15 + $0xf2c] sm:$0xf0]  ;;  %v11149_v13 = vor.u32 %v13023_v1, %v11148_v0  ;;  %7809 = vmatpush.bf16.msrb.mxu0 %v10893_v6  ;;  %16657 = vst [vmem:[#allocation11_spill] sm:$0xff] %v14841_v54 }
 0x232   : > { %v10876_v4 = vld [vmem:[%s14435_s15 + $0xc00] sm:$0xf]  ;;  %v12955_v5 = vld [vmem:[%s14435_s15 + $0xc0c] sm:$0xf0]  ;;  %v11277_v18 = vor.u32 %v13055_v3, %v11276_v2  ;;  %7823 = vmatpush.bf16.msrb.mxu1 %v11021_v12 }
 0x233   : > { %v11004_v7 = vld [vmem:[%s14435_s15 + $0xd00] sm:$0xf]  ;;  %v12987_v8 = vld [vmem:[%s14435_s15 + $0xd0c] sm:$0xf0]  ;;  %v10877_v25 = vor.u32 %v12955_v5, %v10876_v4  ;;  %7837 = vmatpush.bf16.msrb.mxu2 %v11149_v13 }
 0x234   : > { %v11132_v9 = vld [vmem:[%s14435_s15 + $0xe00] sm:$0xf]  ;;  %v13019_v11 = vld [vmem:[%s14435_s15 + $0xe0c] sm:$0xf0]  ;;  %v11005_v30 = vor.u32 %v12987_v8, %v11004_v7  ;;  %7851 = vmatpush.bf16.msrb.mxu3 %v11277_v18 }
 0x235   : > { %v11260_v14 = vld [vmem:[%s14435_s15 + $0xf00] sm:$0xf]  ;;  %v13051_v15 = vld [vmem:[%s14435_s15 + $0xf0c] sm:$0xf0]  ;;  %v11133_v31 = vor.u32 %v13019_v11, %v11132_v9  ;;  %7810 = vmatpush.bf16.msrb.mxu0 %v10877_v25 }
 0x236   : > { %v11500_v16 = vld [vmem:[%s14435_s15 + $0x10e0] sm:$0xf]  ;;  %v13111_v19 = vld [vmem:[%s14435_s15 + $0x10ec] sm:$0xf0]  ;;  %v11261_v36 = vor.u32 %v13051_v15, %v11260_v14  ;;  %7824 = vmatpush.bf16.msrb.mxu1 %v11005_v30 }
 0x237   : > { %v11628_v20 = vld [vmem:[%s14435_s15 + $0x11e0] sm:$0xf]  ;;  %v13143_v21 = vld [vmem:[%s14435_s15 + $0x11ec] sm:$0xf0]  ;;  %v11501_v37 = vor.u32 %v13111_v19, %v11500_v16  ;;  %7838 = vmatpush.bf16.msrb.mxu2 %v11133_v31 }
 0x238   : > { %v11756_v22 = vld [vmem:[%s14435_s15 + $0x12e0] sm:$0xf]  ;;  %v13175_v23 = vld [vmem:[%s14435_s15 + $0x12ec] sm:$0xf0]  ;;  %v11629_v41 = vor.u32 %v13143_v21, %v11628_v20  ;;  %7852 = vmatpush.bf16.msrb.mxu3 %v11261_v36 }
 0x239   : > { %v11884_v24 = vld [vmem:[%s14435_s15 + $0x13e0] sm:$0xf]  ;;  %v13207_v27 = vld [vmem:[%s14435_s15 + $0x13ec] sm:$0xf0]  ;;  %v11757_v42 = vor.u32 %v13175_v23, %v11756_v22  ;;  %7859 = vmatpush.bf16.msra.mxu0 %v11501_v37  ;;  %7825 = vmatmul.bf16.vlgmr.msrb.gmra.mxu1 %v14843_v57 }
 0x23a   : > { %v9288_v28 = vld [vmem:[%s16616_s0 + $0x30] sm:$0xf]  ;;  %v9298_v40 = vld [vmem:[%s16616_s0 + $0x9c] sm:$0xf0]  ;;  %v11885_v46 = vor.u32 %v13207_v27, %v11884_v24  ;;  %7873 = vmatpush.bf16.msra.mxu1 %v11629_v41  ;;  %7839 = vmatmul.bf16.vlgmr.msrb.gmra.mxu2 %v14841_v54 }
 0x23b   : > { %v11484_v43 = vld [vmem:[%s14435_s15 + $0x10c0] sm:$0xf]  ;;  %v13107_v44 = vld [vmem:[%s14435_s15 + $0x10cc] sm:$0xf0]  ;;  %v14836_v48 = vor.u32 %v12562_v29, %v9288_v28  ;;  %v14847_v62 = vor.u32 %v12551_v39, %v9298_v40  ;;  %7887 = vmatpush.bf16.msra.mxu2 %v11757_v42 }
 0x23c   : > { %v11612_v45 = vld [vmem:[%s14435_s15 + $0x11c0] sm:$0xf]  ;;  %v13139_v49 = vld [vmem:[%s14435_s15 + $0x11cc] sm:$0xf0]  ;;  %v11485_v0 = vor.u32 %v13107_v44, %v11484_v43  ;;  %7901 = vmatpush.bf16.msra.mxu3 %v11885_v46 }
 0x23d   : > { %v11740_v50 = vld [vmem:[%s14435_s15 + $0x12c0] sm:$0xf]  ;;  %v13171_v53 = vld [vmem:[%s14435_s15 + $0x12cc] sm:$0xf0]  ;;  %16658 = vst [vmem:[#allocation12_spill] sm:$0xff] %v14847_v62  ;;  %v11613_v1 = vor.u32 %v13139_v49, %v11612_v45  ;;  %7811 = vmatmul.bf16.vlgmr.msrb.gmra.mxu0 %v14836_v48  ;;  %7853 = vmatmul.bf16.vlgmr.msrb.gmra.mxu3 %v14847_v62 }
 0x23e   : > { %v11868_v58 = vld [vmem:[%s14435_s15 + $0x13c0] sm:$0xf]  ;;  %v13203_v61 = vld [vmem:[%s14435_s15 + $0x13cc] sm:$0xf0]  ;;  %v11741_v2 = vor.u32 %v13171_v53, %v11740_v50  ;;  %7860 = vmatpush.bf16.msra.mxu0 %v11485_v0 }
 0x23f   : > { %v11468_v3 = vld [vmem:[%s14435_s15 + $0x10a0] sm:$0xf]  ;;  %v13103_v4 = vld [vmem:[%s14435_s15 + $0x10ac] sm:$0xf0]  ;;  %v11869_v6 = vor.u32 %v13203_v61, %v11868_v58  ;;  %7874 = vmatpush.bf16.msra.mxu1 %v11613_v1 }
 0x240   : > { %v11596_v5 = vld [vmem:[%s14435_s15 + $0x11a0] sm:$0xf]  ;;  %v13135_v7 = vld [vmem:[%s14435_s15 + $0x11ac] sm:$0xf0]  ;;  %v11469_v13 = vor.u32 %v13103_v4, %v11468_v3  ;;  %7888 = vmatpush.bf16.msra.mxu2 %v11741_v2 }
 0x241   : > { %v11724_v8 = vld [vmem:[%s14435_s15 + $0x12a0] sm:$0xf]  ;;  %v13167_v9 = vld [vmem:[%s14435_s15 + $0x12ac] sm:$0xf0]  ;;  %v11597_v14 = vor.u32 %v13135_v7, %v11596_v5  ;;  %7902 = vmatpush.bf16.msra.mxu3 %v11869_v6 }
 0x242   : > { %v11852_v11 = vld [vmem:[%s14435_s15 + $0x13a0] sm:$0xf]  ;;  %v13199_v12 = vld [vmem:[%s14435_s15 + $0x13ac] sm:$0xf0]  ;;  %v11725_v15 = vor.u32 %v13167_v9, %v11724_v8  ;;  %7861 = vmatpush.bf16.msra.mxu0 %v11469_v13 }
 0x243   : > { %v11452_v16 = vld [vmem:[%s14435_s15 + $0x1080] sm:$0xf]  ;;  %v13099_v18 = vld [vmem:[%s14435_s15 + $0x108c] sm:$0xf0]  ;;  %v11853_v20 = vor.u32 %v13199_v12, %v11852_v11  ;;  %7875 = vmatpush.bf16.msra.mxu1 %v11597_v14 }
 0x244   : > { %v11580_v19 = vld [vmem:[%s14435_s15 + $0x1180] sm:$0xf]  ;;  %v13131_v21 = vld [vmem:[%s14435_s15 + $0x118c] sm:$0xf0]  ;;  %v11453_v27 = vor.u32 %v13099_v18, %v11452_v16  ;;  %7889 = vmatpush.bf16.msra.mxu2 %v11725_v15 }
 0x245   : > { %v11708_v22 = vld [vmem:[%s14435_s15 + $0x1280] sm:$0xf]  ;;  %v13163_v23 = vld [vmem:[%s14435_s15 + $0x128c] sm:$0xf0]  ;;  %v11581_v28 = vor.u32 %v13131_v21, %v11580_v19  ;;  %7903 = vmatpush.bf16.msra.mxu3 %v11853_v20 }
 0x246   : > { %v11836_v24 = vld [vmem:[%s14435_s15 + $0x1380] sm:$0xf]  ;;  %v13195_v25 = vld [vmem:[%s14435_s15 + $0x138c] sm:$0xf0]  ;;  %v11709_v29 = vor.u32 %v13163_v23, %v11708_v22  ;;  %7862 = vmatpush.bf16.msra.mxu0 %v11453_v27 }
 0x247   : > { %v11436_v30 = vld [vmem:[%s14435_s15 + $0x1060] sm:$0xf]  ;;  %v13095_v31 = vld [vmem:[%s14435_s15 + $0x106c] sm:$0xf0]  ;;  %v11837_v34 = vor.u32 %v13195_v25, %v11836_v24  ;;  %7876 = vmatpush.bf16.msra.mxu1 %v11581_v28 }
 0x248   : > { %v11564_v32 = vld [vmem:[%s14435_s15 + $0x1160] sm:$0xf]  ;;  %v13127_v35 = vld [vmem:[%s14435_s15 + $0x116c] sm:$0xf0]  ;;  %v11437_v40 = vor.u32 %v13095_v31, %v11436_v30  ;;  %7890 = vmatpush.bf16.msra.mxu2 %v11709_v29 }
 0x249   : > { %v11692_v36 = vld [vmem:[%s14435_s15 + $0x1260] sm:$0xf]  ;;  %v13159_v37 = vld [vmem:[%s14435_s15 + $0x126c] sm:$0xf0]  ;;  %v11565_v41 = vor.u32 %v13127_v35, %v11564_v32  ;;  %7904 = vmatpush.bf16.msra.mxu3 %v11837_v34 }
 0x24a   : > { %v11820_v38 = vld [vmem:[%s14435_s15 + $0x1360] sm:$0xf]  ;;  %v13191_v39 = vld [vmem:[%s14435_s15 + $0x136c] sm:$0xf0]  ;;  %v11693_v42 = vor.u32 %v13159_v37, %v11692_v36  ;;  %7863 = vmatpush.bf16.msra.mxu0 %v11437_v40 }
 0x24b   : > { %v11420_v43 = vld [vmem:[%s14435_s15 + $0x1040] sm:$0xf]  ;;  %v13091_v44 = vld [vmem:[%s14435_s15 + $0x104c] sm:$0xf0]  ;;  %v11821_v46 = vor.u32 %v13191_v39, %v11820_v38  ;;  %7877 = vmatpush.bf16.msra.mxu1 %v11565_v41  ;;  %v12564_v38 = vld [vmem:[%s16616_s0 + $0xa0] sm:$0xf0] }
 0x24c   : > { %v11548_v45 = vld [vmem:[%s14435_s15 + $0x1140] sm:$0xf]  ;;  %v13123_v49 = vld [vmem:[%s14435_s15 + $0x114c] sm:$0xf0]  ;;  %v11421_v0 = vor.u32 %v13091_v44, %v11420_v43  ;;  %7891 = vmatpush.bf16.msra.mxu2 %v11693_v42  ;;  %v9312_v41 = vld [vmem:[%s16616_s0 + $0x48] sm:$0xf] }
 0x24d   : > { %v11676_v50 = vld [vmem:[%s14435_s15 + $0x1240] sm:$0xf]  ;;  %v13155_v53 = vld [vmem:[%s14435_s15 + $0x124c] sm:$0xf0]  ;;  %v11549_v2 = vor.u32 %v13123_v49, %v11548_v45  ;;  %7905 = vmatpush.bf16.msra.mxu3 %v11821_v46  ;;  %v12565_v42 = vld [vmem:[%s16616_s0 + $0xa8] sm:$0xf0] }
 0x24e   : > { %v11804_v58 = vld [vmem:[%s14435_s15 + $0x1340] sm:$0xf]  ;;  %v13187_v61 = vld [vmem:[%s14435_s15 + $0x134c] sm:$0xf0]  ;;  %v11677_v3 = vor.u32 %v13155_v53, %v11676_v50  ;;  %7864 = vmatpush.bf16.msra.mxu0 %v11421_v0  ;;  %v12552_v43 = vld [vmem:[%s16616_s0 + $0x44] sm:$0xf] }
 0x24f   : > { %v11404_v1 = vld [vmem:[%s14435_s15 + $0x1020] sm:$0xf]  ;;  %v13087_v4 = vld [vmem:[%s14435_s15 + $0x102c] sm:$0xf0]  ;;  %v11805_v7 = vor.u32 %v13187_v61, %v11804_v58  ;;  %7878 = vmatpush.bf16.msra.mxu1 %v11549_v2  ;;  %v9306_v46 = vld [vmem:[%s16616_s0 + $0xa4] sm:$0xf0] }
 0x250   : > { %v11532_v5 = vld [vmem:[%s14435_s15 + $0x1120] sm:$0xf]  ;;  %v13119_v6 = vld [vmem:[%s14435_s15 + $0x112c] sm:$0xf0]  ;;  %v11405_v15 = vor.u32 %v13087_v4, %v11404_v1  ;;  %7892 = vmatpush.bf16.msra.mxu2 %v11677_v3  ;;  %v12553_v49 = vld [vmem:[%s16616_s0 + $0x4c] sm:$0xf] }
 0x251   : > { %v11660_v8 = vld [vmem:[%s14435_s15 + $0x1220] sm:$0xf]  ;;  %v13151_v9 = vld [vmem:[%s14435_s15 + $0x122c] sm:$0xf0]  ;;  %v11533_v21 = vor.u32 %v13119_v6, %v11532_v5  ;;  %7906 = vmatpush.bf16.msra.mxu3 %v11805_v7  ;;  %v14941_v7 = vor.u32 %v12565_v42, %v9312_v41 }
 0x252   : > { %v11788_v11 = vld [vmem:[%s14435_s15 + $0x1320] sm:$0xf]  ;;  %v13183_v12 = vld [vmem:[%s14435_s15 + $0x132c] sm:$0xf0]  ;;  %v11661_v22 = vor.u32 %v13151_v9, %v11660_v8  ;;  %7865 = vmatpush.bf16.msra.mxu0 %v11405_v15  ;;  %v14943_v8 = vor.u32 %v12552_v43, %v9306_v46 }
 0x253   : > { %v11388_v13 = vld [vmem:[%s14435_s15 + $0x1000] sm:$0xf]  ;;  %v13083_v14 = vld [vmem:[%s14435_s15 + $0x100c] sm:$0xf0]  ;;  %v11789_v27 = vor.u32 %v13183_v12, %v11788_v11  ;;  %7879 = vmatpush.bf16.msra.mxu1 %v11533_v21  ;;  %16659 = vst [vmem:[#allocation13_spill] sm:$0xff] %v14941_v7 }
 0x254   : > { %v11516_v16 = vld [vmem:[%s14435_s15 + $0x1100] sm:$0xf]  ;;  %v13115_v18 = vld [vmem:[%s14435_s15 + $0x110c] sm:$0xf0]  ;;  %v11389_v35 = vor.u32 %v13083_v14, %v11388_v13  ;;  %7893 = vmatpush.bf16.msra.mxu2 %v11661_v22  ;;  %16660 = vst [vmem:[#allocation14_spill] sm:$0xff] %v14943_v8 }
 0x255   : > { %v11644_v19 = vld [vmem:[%s14435_s15 + $0x1200] sm:$0xf]  ;;  %v13147_v20 = vld [vmem:[%s14435_s15 + $0x120c] sm:$0xf0]  ;;  %v11517_v39 = vor.u32 %v13115_v18, %v11516_v16  ;;  %7907 = vmatpush.bf16.msra.mxu3 %v11789_v27 }
 0x256   : > { %v11772_v23 = vld [vmem:[%s14435_s15 + $0x1300] sm:$0xf]  ;;  %v13179_v24 = vld [vmem:[%s14435_s15 + $0x130c] sm:$0xf0]  ;;  %v11645_v40 = vor.u32 %v13147_v20, %v11644_v19  ;;  %7866 = vmatpush.bf16.msra.mxu0 %v11389_v35 }
 0x257   : > { %v12012_v25 = vld [vmem:[%s14435_s15 + $0x14e0] sm:$0xf]  ;;  %v13239_v28 = vld [vmem:[%s14435_s15 + $0x14ec] sm:$0xf0]  ;;  %v11773_v44 = vor.u32 %v13179_v24, %v11772_v23  ;;  %7880 = vmatpush.bf16.msra.mxu1 %v11517_v39 }
 0x258   : > { %v12140_v29 = vld [vmem:[%s14435_s15 + $0x15e0] sm:$0xf]  ;;  %v13271_v30 = vld [vmem:[%s14435_s15 + $0x15ec] sm:$0xf0]  ;;  %v12013_v45 = vor.u32 %v13239_v28, %v12012_v25  ;;  %7894 = vmatpush.bf16.msra.mxu2 %v11645_v40 }
 0x259   : > { %v12268_v31 = vld [vmem:[%s14435_s15 + $0x16e0] sm:$0xf]  ;;  %v13303_v32 = vld [vmem:[%s14435_s15 + $0x16ec] sm:$0xf0]  ;;  %v12141_v53 = vor.u32 %v13271_v30, %v12140_v29  ;;  %7908 = vmatpush.bf16.msra.mxu3 %v11773_v44 }
 0x25a   : > { %v12396_v34 = vld [vmem:[%s14435_s15 + $0x17e0] sm:$0xf]  ;;  %v13335_v36 = vld [vmem:[%s14435_s15 + $0x17ec] sm:$0xf0]  ;;  %v12269_v58 = vor.u32 %v13303_v32, %v12268_v31  ;;  %7915 = vmatpush.bf16.msrb.mxu0 %v12013_v45  ;;  %7881 = vmatmul.bf16.vlgmr.msra.gmra.mxu1 %v14943_v8 }
 0x25b   : > { %v9304_v37 = vld [vmem:[%s16616_s0 + $0x40] sm:$0xf]  ;;  %v9314_v50 = vld [vmem:[%s16616_s0 + $0xac] sm:$0xf0]  ;;  %v12397_v2 = vor.u32 %v13335_v36, %v12396_v34  ;;  %7929 = vmatpush.bf16.msrb.mxu1 %v12141_v53  ;;  %7895 = vmatmul.bf16.vlgmr.msra.gmra.mxu2 %v14941_v7 }
 0x25c   : > { %v11996_v61 = vld [vmem:[%s14435_s15 + $0x14c0] sm:$0xf]  ;;  %v13235_v0 = vld [vmem:[%s14435_s15 + $0x14cc] sm:$0xf0]  ;;  %v14936_v3 = vor.u32 %v12564_v38, %v9304_v37  ;;  %v14947_v12 = vor.u32 %v12553_v49, %v9314_v50  ;;  %7943 = vmatpush.bf16.msrb.mxu2 %v12269_v58 }
 0x25d   : > { %v12124_v1 = vld [vmem:[%s14435_s15 + $0x15c0] sm:$0xf]  ;;  %v13267_v4 = vld [vmem:[%s14435_s15 + $0x15cc] sm:$0xf0]  ;;  %v11997_v13 = vor.u32 %v13235_v0, %v11996_v61  ;;  %7957 = vmatpush.bf16.msrb.mxu3 %v12397_v2  ;;  %v7644_v0 = vpop.f32.mrf.mxu0 }
 0x25e   : > { %v12252_v5 = vld [vmem:[%s14435_s15 + $0x16c0] sm:$0xf]  ;;  %v13299_v6 = vld [vmem:[%s14435_s15 + $0x16cc] sm:$0xf0]  ;;  %16661 = vst [vmem:[#allocation15_spill] sm:$0xff] %v14947_v12  ;;  %v12125_v14 = vor.u32 %v13267_v4, %v12124_v1  ;;  %7867 = vmatmul.bf16.vlgmr.msra.gmra.mxu0 %v14936_v3  ;;  %7909 = vmatmul.bf16.vlgmr.msra.gmra.mxu3 %v14947_v12  ;;  %v7658_v1 = vpop.f32.mrf.mxu1 }
 0x25f   : > { %v12380_v9 = vld [vmem:[%s14435_s15 + $0x17c0] sm:$0xf]  ;;  %v13331_v11 = vld [vmem:[%s14435_s15 + $0x17cc] sm:$0xf0]  ;;  %v12253_v15 = vor.u32 %v13299_v6, %v12252_v5  ;;  %7916 = vmatpush.bf16.msrb.mxu0 %v11997_v13  ;;  %v7659_v4 = vadd.f32 %v7658_v1, %v7644_v0  ;;  %v12597_v1 = vld [vmem:[%s14435_s15 + $0xe4] sm:$0xf] }
 0x260   : > { %v11980_v16 = vld [vmem:[%s14435_s15 + $0x14a0] sm:$0xf]  ;;  %v13231_v18 = vld [vmem:[%s14435_s15 + $0x14ac] sm:$0xf0]  ;;  %v12381_v20 = vor.u32 %v13331_v11, %v12380_v9  ;;  %7930 = vmatpush.bf16.msrb.mxu1 %v12125_v14 }
 0x261   : > { %v12108_v19 = vld [vmem:[%s14435_s15 + $0x15a0] sm:$0xf]  ;;  %v13263_v21 = vld [vmem:[%s14435_s15 + $0x15ac] sm:$0xf0]  ;;  %v11981_v27 = vor.u32 %v13231_v18, %v11980_v16  ;;  %7944 = vmatpush.bf16.msrb.mxu2 %v12253_v15 }
 0x262   : > { %v12236_v22 = vld [vmem:[%s14435_s15 + $0x16a0] sm:$0xf]  ;;  %v13295_v23 = vld [vmem:[%s14435_s15 + $0x16ac] sm:$0xf0]  ;;  %v12109_v28 = vor.u32 %v13263_v21, %v12108_v19  ;;  %7958 = vmatpush.bf16.msrb.mxu3 %v12381_v20  ;;  %v7672_v19 = vpop.f32.mrf.mxu2 }
 0x263   : > { %v12364_v24 = vld [vmem:[%s14435_s15 + $0x17a0] sm:$0xf]  ;;  %v13327_v25 = vld [vmem:[%s14435_s15 + $0x17ac] sm:$0xf0]  ;;  %v12237_v29 = vor.u32 %v13295_v23, %v12236_v22  ;;  %7917 = vmatpush.bf16.msrb.mxu0 %v11981_v27  ;;  %v7673_v22 = vadd.f32 %v7672_v19, %v7659_v4  ;;  %v12629_v4 = vld [vmem:[%s14435_s15 + $0x1e4] sm:$0xf] }
 0x264   : > { %v11964_v30 = vld [vmem:[%s14435_s15 + $0x1480] sm:$0xf]  ;;  %v13227_v31 = vld [vmem:[%s14435_s15 + $0x148c] sm:$0xf0]  ;;  %v12365_v34 = vor.u32 %v13327_v25, %v12364_v24  ;;  %7931 = vmatpush.bf16.msrb.mxu1 %v12109_v28  ;;  %v12567_v19 = vld [vmem:[%s16616_s0 + $0xb8] sm:$0xf0] }
 0x265   : > { %v12092_v32 = vld [vmem:[%s14435_s15 + $0x1580] sm:$0xf]  ;;  %v13259_v35 = vld [vmem:[%s14435_s15 + $0x158c] sm:$0xf0]  ;;  %v11965_v40 = vor.u32 %v13227_v31, %v11964_v30  ;;  %7945 = vmatpush.bf16.msrb.mxu2 %v12237_v29 }
 0x266   : > { %v12220_v36 = vld [vmem:[%s14435_s15 + $0x1680] sm:$0xf]  ;;  %v13291_v37 = vld [vmem:[%s14435_s15 + $0x168c] sm:$0xf0]  ;;  %v12093_v41 = vor.u32 %v13259_v35, %v12092_v32  ;;  %7959 = vmatpush.bf16.msrb.mxu3 %v12365_v34 }
 0x267   : > { %v12348_v38 = vld [vmem:[%s14435_s15 + $0x1780] sm:$0xf]  ;;  %v13323_v39 = vld [vmem:[%s14435_s15 + $0x178c] sm:$0xf0]  ;;  %v12221_v42 = vor.u32 %v13291_v37, %v12220_v36  ;;  %7918 = vmatpush.bf16.msrb.mxu0 %v11965_v40  ;;  %v7686_v36 = vpop.f32.mrf.mxu3 }
 0x268   : > { %v11948_v43 = vld [vmem:[%s14435_s15 + $0x1460] sm:$0xf]  ;;  %v13223_v44 = vld [vmem:[%s14435_s15 + $0x146c] sm:$0xf0]  ;;  %v12349_v46 = vor.u32 %v13323_v39, %v12348_v38  ;;  %7932 = vmatpush.bf16.msrb.mxu1 %v12093_v41  ;;  %v14995_v40 = vadd.f32 %v7686_v36, %v7673_v22  ;;  %v9438_v36 = vld [vmem:[%s14435_s15 + $0xd0] sm:$0xf0] }
 0x269   : > { %v12076_v45 = vld [vmem:[%s14435_s15 + $0x1560] sm:$0xf]  ;;  %v13255_v49 = vld [vmem:[%s14435_s15 + $0x156c] sm:$0xf0]  ;;  %v11949_v2 = vor.u32 %v13223_v44, %v11948_v43  ;;  %7946 = vmatpush.bf16.msrb.mxu2 %v12221_v42 }
 0x26a   : > { %v12204_v50 = vld [vmem:[%s14435_s15 + $0x1660] sm:$0xf]  ;;  %v13287_v53 = vld [vmem:[%s14435_s15 + $0x166c] sm:$0xf0]  ;;  %v12077_v5 = vor.u32 %v13255_v49, %v12076_v45  ;;  %7960 = vmatpush.bf16.msrb.mxu3 %v12349_v46 }
 0x26b   : > { %v12332_v58 = vld [vmem:[%s14435_s15 + $0x1760] sm:$0xf]  ;;  %v13319_v61 = vld [vmem:[%s14435_s15 + $0x176c] sm:$0xf0]  ;;  %v12205_v6 = vor.u32 %v13287_v53, %v12204_v50  ;;  %7919 = vmatpush.bf16.msrb.mxu0 %v11949_v2  ;;  %v9454_v2 = vld [vmem:[%s14435_s15 + $0xf0] sm:$0xf0] }
 0x26c   : > { %v11932_v9 = vld [vmem:[%s14435_s15 + $0x1440] sm:$0xf]  ;;  %v13219_v11 = vld [vmem:[%s14435_s15 + $0x144c] sm:$0xf0]  ;;  %v12333_v14 = vor.u32 %v13319_v61, %v12332_v58  ;;  %7933 = vmatpush.bf16.msrb.mxu1 %v12077_v5  ;;  %v9582_v5 = vld [vmem:[%s14435_s15 + $0x1f0] sm:$0xf0] }
 0x26d   : > { %v12060_v13 = vld [vmem:[%s14435_s15 + $0x1540] sm:$0xf]  ;;  %v13251_v15 = vld [vmem:[%s14435_s15 + $0x154c] sm:$0xf0]  ;;  %v11933_v23 = vor.u32 %v13219_v11, %v11932_v9  ;;  %7947 = vmatpush.bf16.msrb.mxu2 %v12205_v6  ;;  %v12661_v6 = vld [vmem:[%s14435_s15 + $0x2e4] sm:$0xf] }
 0x26e   : > { %v12188_v16 = vld [vmem:[%s14435_s15 + $0x1640] sm:$0xf]  ;;  %v13283_v18 = vld [vmem:[%s14435_s15 + $0x164c] sm:$0xf0]  ;;  %v12061_v25 = vor.u32 %v13251_v15, %v12060_v13  ;;  %7961 = vmatpush.bf16.msrb.mxu3 %v12333_v14  ;;  %v9710_v11 = vld [vmem:[%s14435_s15 + $0x2f0] sm:$0xf0] }
 0x26f   : > { %v12316_v20 = vld [vmem:[%s14435_s15 + $0x1740] sm:$0xf]  ;;  %v13315_v21 = vld [vmem:[%s14435_s15 + $0x174c] sm:$0xf0]  ;;  %v12189_v27 = vor.u32 %v13283_v18, %v12188_v16  ;;  %7920 = vmatpush.bf16.msrb.mxu0 %v11933_v23  ;;  %v12566_v14 = vld [vmem:[%s16616_s0 + $0xb0] sm:$0xf0] }
 0x270   : > { %v11916_v24 = vld [vmem:[%s14435_s15 + $0x1420] sm:$0xf]  ;;  %v13215_v28 = vld [vmem:[%s14435_s15 + $0x142c] sm:$0xf0]  ;;  %v12317_v31 = vor.u32 %v13315_v21, %v12316_v20  ;;  %7934 = vmatpush.bf16.msrb.mxu1 %v12061_v25  ;;  %v9328_v18 = vld [vmem:[%s16616_s0 + $0x58] sm:$0xf] }
 0x271   : > { %v12044_v29 = vld [vmem:[%s14435_s15 + $0x1520] sm:$0xf]  ;;  %v13247_v30 = vld [vmem:[%s14435_s15 + $0x152c] sm:$0xf0]  ;;  %v11917_v41 = vor.u32 %v13215_v28, %v11916_v24  ;;  %7948 = vmatpush.bf16.msrb.mxu2 %v12189_v27  ;;  %v12554_v20 = vld [vmem:[%s16616_s0 + $0x54] sm:$0xf]  ;;  %v9457_v27 = vor.u32 %v12597_v1, %v9454_v2  ;;  %v9585_v28 = vor.u32 %v12629_v4, %v9582_v5 }
 0x272   : > { %v12172_v32 = vld [vmem:[%s14435_s15 + $0x1620] sm:$0xf]  ;;  %v13279_v34 = vld [vmem:[%s14435_s15 + $0x162c] sm:$0xf0]  ;;  %v12045_v46 = vor.u32 %v13247_v30, %v12044_v29  ;;  %7962 = vmatpush.bf16.msrb.mxu3 %v12317_v31  ;;  %v9322_v23 = vld [vmem:[%s16616_s0 + $0xb4] sm:$0xf0]  ;;  %v15035_v29 = vpop.f32.mrf.mxu0 }
 0x273   : > { %v12300_v35 = vld [vmem:[%s14435_s15 + $0x1720] sm:$0xf]  ;;  %v13311_v37 = vld [vmem:[%s14435_s15 + $0x172c] sm:$0xf0]  ;;  %v12173_v49 = vor.u32 %v13279_v34, %v12172_v32  ;;  %7921 = vmatpush.bf16.msrb.mxu0 %v11917_v41  ;;  %v12555_v24 = vld [vmem:[%s16616_s0 + $0x5c] sm:$0xf]  ;;  %v9713_v34 = vor.u32 %v12661_v6, %v9710_v11  ;;  %v15047_v41 = vor.u32 %v12554_v20, %v9322_v23  ;;  %v15067_v11 = vpop.f32.mrf.mxu2  ;;  %v15072_v20 = vpop.f32.mrf.mxu3 }
 0x274   : > { %v11900_v38 = vld [vmem:[%s14435_s15 + $0x1400] sm:$0xf]  ;;  %v13211_v39 = vld [vmem:[%s14435_s15 + $0x140c] sm:$0xf0]  ;;  %v12301_v61 = vor.u32 %v13311_v37, %v12300_v35  ;;  %7935 = vmatpush.bf16.msrb.mxu1 %v12045_v46  ;;  %v12593_v32 = vld [vmem:[%s14435_s15 + $0xc4] sm:$0xf] }
 0x275   : > { %v12028_v42 = vld [vmem:[%s14435_s15 + $0x1500] sm:$0xf]  ;;  %v13243_v43 = vld [vmem:[%s14435_s15 + $0x150c] sm:$0xf0]  ;;  %v11901_v9 = vor.u32 %v13211_v39, %v11900_v38  ;;  %7949 = vmatpush.bf16.msrb.mxu2 %v12173_v49  ;;  %v12625_v37 = vld [vmem:[%s14435_s15 + $0x1c4] sm:$0xf]  ;;  %v15045_v39 = vor.u32 %v12567_v19, %v9328_v18  ;;  %v9441_v49 = vor.u32 %v12593_v32, %v9438_v36 }
 0x276   : > { %v12156_v44 = vld [vmem:[%s14435_s15 + $0x1600] sm:$0xf]  ;;  %v13275_v45 = vld [vmem:[%s14435_s15 + $0x160c] sm:$0xf0]  ;;  %v12029_v15 = vor.u32 %v13243_v43, %v12028_v42  ;;  %7963 = vmatpush.bf16.msrb.mxu3 %v12301_v61  ;;  %v9566_v38 = vld [vmem:[%s14435_s15 + $0x1d0] sm:$0xf0] }
 0x277   : > { %v12284_v50 = vld [vmem:[%s14435_s15 + $0x1700] sm:$0xf]  ;;  %v13307_v53 = vld [vmem:[%s14435_s15 + $0x170c] sm:$0xf0]  ;;  %v12157_v16 = vor.u32 %v13275_v45, %v12156_v44  ;;  %7922 = vmatpush.bf16.msrb.mxu0 %v11901_v9  ;;  %16663 = vst [vmem:[#allocation17_spill] sm:$0xff] %v15045_v39  ;;  %v15051_v44 = vpop.f32.mrf.mxu1 }
 0x278   : > { %v12524_v58 = vld [vmem:[%s14435_s15 + $0x18e0] sm:$0xf]  ;;  %v13367_v0 = vld [vmem:[%s14435_s15 + $0x18ec] sm:$0xf0]  ;;  %v12285_v21 = vor.u32 %v13307_v53, %v12284_v50  ;;  %7936 = vmatpush.bf16.msrb.mxu1 %v12029_v15  ;;  %16664 = vst [vmem:[#allocation18_spill] sm:$0xff] %v15047_v41  ;;  %v9569_v50 = vor.u32 %v12625_v37, %v9566_v38 }
 0x279   : > { %v9320_v13 = vld [vmem:[%s16616_s0 + $0x50] sm:$0xf]  ;;  %v12525_v22 = vor.u32 %v13367_v0, %v12524_v58  ;;  %v9330_v25 = vld [vmem:[%s16616_s0 + $0xbc] sm:$0xf0]  ;;  %7950 = vmatpush.bf16.msrb.mxu2 %v12157_v16  ;;  %v12657_v42 = vld [vmem:[%s14435_s15 + $0x2c4] sm:$0xf] }
 0x27a   : > { %v12508_v30 = vld [vmem:[%s14435_s15 + $0x18c0] sm:$0xf]  ;;  %v13363_v31 = vld [vmem:[%s14435_s15 + $0x18cc] sm:$0xf0]  ;;  %v15040_v35 = vor.u32 %v12566_v14, %v9320_v13  ;;  %v9694_v43 = vld [vmem:[%s14435_s15 + $0x2d0] sm:$0xf0]  ;;  %7964 = vmatpush.bf16.msrb.mxu3 %v12285_v21  ;;  %v15053_v45 = vor.u32 %v12555_v24, %v9330_v25  ;;  %v7700_v24 = vpop.f32.mrf.mxu0 }
 0x27b   : > { %7971 = vmatpush.bf16.msra.mxu0 %v12525_v22  ;;  %v12509_v46 = vor.u32 %v13363_v31, %v12508_v30  ;;  %v12492_v53 = vld [vmem:[%s14435_s15 + $0x18a0] sm:$0xf]  ;;  %v13359_v58 = vld [vmem:[%s14435_s15 + $0x18ac] sm:$0xf0]  ;;  %v12589_v61 = vld [vmem:[%s14435_s15 + $0xa4] sm:$0xf]  ;;  %v9697_v0 = vor.u32 %v12657_v42, %v9694_v43  ;;  %7937 = vmatmul.bf16.vlgmr.msrb.gmra.mxu1 %v15047_v41 }
 0x27c   : > { %16662 = vst [vmem:[#allocation16_spill] sm:$0xff] %v15040_v35  ;;  %7985 = vmatpush.bf16.msra.mxu1 %v9457_v27  ;;  %7923 = vmatmul.bf16.vlgmr.msrb.gmra.mxu0 %v15040_v35  ;;  %v9422_v1 = vld [vmem:[%s14435_s15 + $0xb0] sm:$0xf0]  ;;  %v12621_v2 = vld [vmem:[%s14435_s15 + $0x1a4] sm:$0xf]  ;;  %v12493_v9 = vor.u32 %v13359_v58, %v12492_v53 }
 0x27d   : > { %16665 = vst [vmem:[#allocation19_spill] sm:$0xff] %v15053_v45  ;;  %7999 = vmatpush.bf16.msra.mxu2 %v9585_v28  ;;  %v9550_v4 = vld [vmem:[%s14435_s15 + $0x1b0] sm:$0xf0]  ;;  %v12653_v5 = vld [vmem:[%s14435_s15 + $0x2a4] sm:$0xf]  ;;  %7965 = vmatmul.bf16.vlgmr.msrb.gmra.mxu3 %v15053_v45  ;;  %v9425_v13 = vor.u32 %v12589_v61, %v9422_v1  ;;  %v7701_v28 = vadd.f32 %v7700_v24, %v14995_v40 }
 0x27e   : > { %8013 = vmatpush.bf16.msra.mxu3 %v9713_v34  ;;  %7951 = vmatmul.bf16.vlgmr.msrb.gmra.mxu2 %v15045_v39  ;;  %v9678_v6 = vld [vmem:[%s14435_s15 + $0x2b0] sm:$0xf0]  ;;  %v9553_v14 = vor.u32 %v12621_v2, %v9550_v4  ;;  %v12476_v15 = vld [vmem:[%s14435_s15 + $0x1880] sm:$0xf]  ;;  %v13355_v16 = vld [vmem:[%s14435_s15 + $0x188c] sm:$0xf0] }
 0x27f   : > { %7972 = vmatpush.bf16.msra.mxu0 %v12509_v46  ;;  %v12585_v18 = vld [vmem:[%s14435_s15 + $0x84] sm:$0xf]  ;;  %v9681_v19 = vor.u32 %v12653_v5, %v9678_v6  ;;  %v9406_v21 = vld [vmem:[%s14435_s15 + $0x90] sm:$0xf0]  ;;  %v12477_v30 = vor.u32 %v13355_v16, %v12476_v15  ;;  %v7714_v34 = vpop.f32.mrf.mxu1  ;;  %v12460_v36 = vld [vmem:[%s14435_s15 + $0x1860] sm:$0xf]  ;;  %v7728_v6 = vpop.f32.mrf.mxu2 }
 0x280   : > { %7986 = vmatpush.bf16.msra.mxu1 %v9441_v49  ;;  %v12617_v22 = vld [vmem:[%s14435_s15 + $0x184] sm:$0xf]  ;;  %v9534_v23 = vld [vmem:[%s14435_s15 + $0x190] sm:$0xf0]  ;;  %v9409_v31 = vor.u32 %v12585_v18, %v9406_v21  ;;  %v13351_v37 = vld [vmem:[%s14435_s15 + $0x186c] sm:$0xf0]  ;;  %v7715_v43 = vadd.f32 %v7714_v34, %v7701_v28 }
 0x281   : > { %8000 = vmatpush.bf16.msra.mxu2 %v9569_v50  ;;  %v12649_v25 = vld [vmem:[%s14435_s15 + $0x284] sm:$0xf]  ;;  %v9662_v27 = vld [vmem:[%s14435_s15 + $0x290] sm:$0xf0]  ;;  %v9537_v32 = vor.u32 %v12617_v22, %v9534_v23  ;;  %v12461_v58 = vor.u32 %v13351_v37, %v12460_v36  ;;  %v12444_v1 = vld [vmem:[%s14435_s15 + $0x1840] sm:$0xf] }
 0x282   : > { %8014 = vmatpush.bf16.msra.mxu3 %v9697_v0  ;;  %v12581_v38 = vld [vmem:[%s14435_s15 + $0x64] sm:$0xf]  ;;  %v9665_v42 = vor.u32 %v12649_v25, %v9662_v27  ;;  %v9390_v46 = vld [vmem:[%s14435_s15 + $0x70] sm:$0xf0]  ;;  %v13347_v2 = vld [vmem:[%s14435_s15 + $0x184c] sm:$0xf0]  ;;  %v7729_v15 = vadd.f32 %v7728_v6, %v7715_v43 }
 0x283   : > { %7973 = vmatpush.bf16.msra.mxu0 %v12493_v9  ;;  %v12613_v49 = vld [vmem:[%s14435_s15 + $0x164] sm:$0xf]  ;;  %v9518_v40 = vld [vmem:[%s14435_s15 + $0x170] sm:$0xf0]  ;;  %v9393_v61 = vor.u32 %v12581_v38, %v9390_v46  ;;  %v12445_v21 = vor.u32 %v13347_v2, %v12444_v1  ;;  %v12428_v25 = vld [vmem:[%s14435_s15 + $0x1820] sm:$0xf] }
 0x284   : > { %7987 = vmatpush.bf16.msra.mxu1 %v9425_v13  ;;  %v12645_v50 = vld [vmem:[%s14435_s15 + $0x264] sm:$0xf]  ;;  %v9646_v53 = vld [vmem:[%s14435_s15 + $0x270] sm:$0xf0]  ;;  %v9521_v0 = vor.u32 %v12613_v49, %v9518_v40  ;;  %v13343_v27 = vld [vmem:[%s14435_s15 + $0x182c] sm:$0xf0] }
 0x285   : > { %8001 = vmatpush.bf16.msra.mxu2 %v9553_v14  ;;  %v12577_v4 = vld [vmem:[%s14435_s15 + $0x44] sm:$0xf]  ;;  %v9649_v5 = vor.u32 %v12645_v50, %v9646_v53  ;;  %v9374_v9 = vld [vmem:[%s14435_s15 + $0x50] sm:$0xf0]  ;;  %v12429_v38 = vor.u32 %v13343_v27, %v12428_v25  ;;  %v13339_v43 = vld [vmem:[%s14435_s15 + $0x180c] sm:$0xf0] }
 0x286   : > { %8015 = vmatpush.bf16.msra.mxu3 %v9681_v19  ;;  %v12609_v13 = vld [vmem:[%s14435_s15 + $0x144] sm:$0xf]  ;;  %v9502_v14 = vld [vmem:[%s14435_s15 + $0x150] sm:$0xf0]  ;;  %v7742_v19 = vpop.f32.mrf.mxu3  ;;  %v9377_v23 = vor.u32 %v12577_v4, %v9374_v9 }
 0x287   : > { %7974 = vmatpush.bf16.msra.mxu0 %v12477_v30  ;;  %v12641_v16 = vld [vmem:[%s14435_s15 + $0x244] sm:$0xf]  ;;  %v9630_v18 = vld [vmem:[%s14435_s15 + $0x250] sm:$0xf0]  ;;  %v15096_v22 = vadd.f32 %v7742_v19, %v7729_v15  ;;  %v9505_v24 = vor.u32 %v12609_v13, %v9502_v14 }
 0x288   : > { %7988 = vmatpush.bf16.msra.mxu1 %v9409_v31  ;;  %v12573_v28 = vld [vmem:[%s14435_s15 + $0x24] sm:$0xf]  ;;  %v9633_v30 = vor.u32 %v12641_v16, %v9630_v18  ;;  %v9358_v31 = vld [vmem:[%s14435_s15 + $0x30] sm:$0xf0] }
 0x289   : > { %8002 = vmatpush.bf16.msra.mxu2 %v9537_v32  ;;  %v12605_v32 = vld [vmem:[%s14435_s15 + $0x124] sm:$0xf]  ;;  %v9486_v34 = vld [vmem:[%s14435_s15 + $0x130] sm:$0xf0]  ;;  %v9361_v49 = vor.u32 %v12573_v28, %v9358_v31 }
 0x28a   : > { %8016 = vmatpush.bf16.msra.mxu3 %v9665_v42  ;;  %v12637_v36 = vld [vmem:[%s14435_s15 + $0x224] sm:$0xf]  ;;  %v9614_v37 = vld [vmem:[%s14435_s15 + $0x230] sm:$0xf0]  ;;  %v12412_v42 = vld [vmem:[%s14435_s15 + $0x1800] sm:$0xf]  ;;  %v9489_v40 = vor.u32 %v12605_v32, %v9486_v34 }
 0x28b   : > { %7975 = vmatpush.bf16.msra.mxu0 %v12461_v58  ;;  %v12569_v46 = vld [vmem:[%s14435_s15 + $0x4] sm:$0xf]  ;;  %v9342_v50 = vld [vmem:[%s14435_s15 + $0x10] sm:$0xf0]  ;;  %v12413_v9 = vor.u32 %v13339_v43, %v12412_v42  ;;  %v15136_v43 = vpop.f32.mrf.mxu0 }
 0x28c   : > { %7989 = vmatpush.bf16.msra.mxu1 %v9393_v61  ;;  %v12601_v53 = vld [vmem:[%s14435_s15 + $0x104] sm:$0xf]  ;;  %v9470_v58 = vld [vmem:[%s14435_s15 + $0x110] sm:$0xf0]  ;;  %v9617_v61 = vor.u32 %v12637_v36, %v9614_v37  ;;  %v9345_v16 = vor.u32 %v12569_v46, %v9342_v50 }
 0x28d   : > { %8003 = vmatpush.bf16.msra.mxu2 %v9521_v0  ;;  %v12633_v0 = vld [vmem:[%s14435_s15 + $0x204] sm:$0xf]  ;;  %v9598_v1 = vld [vmem:[%s14435_s15 + $0x210] sm:$0xf0]  ;;  %v9473_v18 = vor.u32 %v12601_v53, %v9470_v58 }
 0x28e   : > { %8017 = vmatpush.bf16.msra.mxu3 %v9649_v5  ;;  %v12693_v2 = vld [vmem:[%s14435_s15 + $0x3e4] sm:$0xf]  ;;  %v9838_v4 = vld [vmem:[%s14435_s15 + $0x3f0] sm:$0xf0] }
 0x28f   : > { %7976 = vmatpush.bf16.msra.mxu0 %v12445_v21  ;;  %v12725_v5 = vld [vmem:[%s14435_s15 + $0x4e4] sm:$0xf]  ;;  %v9966_v6 = vld [vmem:[%s14435_s15 + $0x4f0] sm:$0xf0]  ;;  %v9336_v21 = vld [vmem:[%s16616_s0 + $0x60] sm:$0xf]  ;;  %v9841_v25 = vor.u32 %v12693_v2, %v9838_v4 }
 0x290   : > { %7990 = vmatpush.bf16.msra.mxu1 %v9377_v23  ;;  %v12757_v13 = vld [vmem:[%s14435_s15 + $0x5e4] sm:$0xf]  ;;  %v10094_v14 = vld [vmem:[%s14435_s15 + $0x5f0] sm:$0xf0]  ;;  %v9969_v27 = vor.u32 %v12725_v5, %v9966_v6 }
 0x291   : > { %8004 = vmatpush.bf16.msra.mxu2 %v9505_v24  ;;  %v12789_v15 = vld [vmem:[%s14435_s15 + $0x6e4] sm:$0xf]  ;;  %v10222_v19 = vld [vmem:[%s14435_s15 + $0x6f0] sm:$0xf0]  ;;  %v9601_v24 = vor.u32 %v12633_v0, %v9598_v1  ;;  %v10097_v28 = vor.u32 %v12757_v13, %v10094_v14 }
 0x292   : > { %8018 = vmatpush.bf16.msra.mxu3 %v9633_v30  ;;  %v12568_v23 = vld [vmem:[%s16616_s0 + $0xc0] sm:$0xf0]  ;;  %v9822_v31 = vld [vmem:[%s14435_s15 + $0x3d0] sm:$0xf0]  ;;  %v10225_v34 = vor.u32 %v12789_v15, %v10222_v19 }
 0x293   : > { %7977 = vmatpush.bf16.msra.mxu0 %v12429_v38  ;;  %v12689_v30 = vld [vmem:[%s14435_s15 + $0x3c4] sm:$0xf]  ;;  %v15131_v36 = vor.u32 %v12568_v23, %v9336_v21  ;;  %v9950_v37 = vld [vmem:[%s14435_s15 + $0x4d0] sm:$0xf0]  ;;  %v15157_v23 = vpop.f32.mrf.mxu2 }
 0x294   : > { %7991 = vmatpush.bf16.msra.mxu1 %v9361_v49  ;;  %v12721_v32 = vld [vmem:[%s14435_s15 + $0x4c4] sm:$0xf]  ;;  %v10078_v42 = vld [vmem:[%s14435_s15 + $0x5d0] sm:$0xf0]  ;;  %v9825_v50 = vor.u32 %v12689_v30, %v9822_v31  ;;  %v15162_v30 = vpop.f32.mrf.mxu3 }
 0x295   : > { %8005 = vmatpush.bf16.msra.mxu2 %v9489_v40  ;;  %16666 = vst [vmem:[#allocation20_spill] sm:$0xff] %v15131_v36  ;;  %v12753_v38 = vld [vmem:[%s14435_s15 + $0x5c4] sm:$0xf]  ;;  %v10206_v49 = vld [vmem:[%s14435_s15 + $0x6d0] sm:$0xf0]  ;;  %v15140_v40 = vpop.f32.mrf.mxu1  ;;  %v9953_v53 = vor.u32 %v12721_v32, %v9950_v37 }
 0x296   : > { %8019 = vmatpush.bf16.msra.mxu3 %v9617_v61  ;;  %v12785_v46 = vld [vmem:[%s14435_s15 + $0x6c4] sm:$0xf]  ;;  %v10081_v58 = vor.u32 %v12753_v38, %v10078_v42  ;;  %v9806_v0 = vld [vmem:[%s14435_s15 + $0x3b0] sm:$0xf0] }
 0x297   : > { %7978 = vmatpush.bf16.msra.mxu0 %v12413_v9  ;;  %v12685_v61 = vld [vmem:[%s14435_s15 + $0x3a4] sm:$0xf]  ;;  %v10209_v2 = vor.u32 %v12785_v46, %v10206_v49  ;;  %v9934_v4 = vld [vmem:[%s14435_s15 + $0x4b0] sm:$0xf0] }
 0x298   : > { %7992 = vmatpush.bf16.msra.mxu1 %v9345_v16  ;;  %v12717_v1 = vld [vmem:[%s14435_s15 + $0x4a4] sm:$0xf]  ;;  %v10062_v6 = vld [vmem:[%s14435_s15 + $0x5b0] sm:$0xf0]  ;;  %v9809_v14 = vor.u32 %v12685_v61, %v9806_v0 }
 0x299   : > { %8006 = vmatpush.bf16.msra.mxu2 %v9473_v18  ;;  %v12749_v5 = vld [vmem:[%s14435_s15 + $0x5a4] sm:$0xf]  ;;  %v10190_v13 = vld [vmem:[%s14435_s15 + $0x6b0] sm:$0xf0]  ;;  %v9937_v15 = vor.u32 %v12717_v1, %v9934_v4  ;;  %v7756_v31 = vpop.f32.mrf.mxu0 }
 0x29a   : > { %8020 = vmatpush.bf16.msra.mxu3 %v9601_v24  ;;  %7979 = vmatmul.bf16.vlgmr.msra.gmra.mxu0 %v15131_v36  ;;  %v12781_v9 = vld [vmem:[%s14435_s15 + $0x6a4] sm:$0xf]  ;;  %v10065_v16 = vor.u32 %v12749_v5, %v10062_v6  ;;  %v9790_v19 = vld [vmem:[%s14435_s15 + $0x390] sm:$0xf0]  ;;  %v7757_v37 = vadd.f32 %v7756_v31, %v15096_v22 }
 0x29b   : > { %8027 = vmatpush.bf16.msrb.mxu0 %v9841_v25  ;;  %7993 = vmatmul.bf16.vlgmr.msra.gmra.mxu1 %v14528_v10  ;;  %v12681_v18 = vld [vmem:[%s14435_s15 + $0x384] sm:$0xf]  ;;  %v10193_v24 = vor.u32 %v12781_v9, %v10190_v13  ;;  %v9918_v25 = vld [vmem:[%s14435_s15 + $0x490] sm:$0xf0] }
 0x29c   : > { %8041 = vmatpush.bf16.msrb.mxu1 %v9969_v27  ;;  %8007 = vmatmul.bf16.vlgmr.msra.gmra.mxu2 %v14552_v26  ;;  %v12713_v21 = vld [vmem:[%s14435_s15 + $0x484] sm:$0xf]  ;;  %v9793_v38 = vor.u32 %v12681_v18, %v9790_v19  ;;  %v9902_v1 = vld [vmem:[%s14435_s15 + $0x470] sm:$0xf0]  ;;  %v7784_v19 = vpop.f32.mrf.mxu2 }
 0x29d   : > { %8055 = vmatpush.bf16.msrb.mxu2 %v10097_v28  ;;  %8021 = vmatmul.bf16.vlgmr.msra.gmra.mxu3 %v14536_v17  ;;  %v12745_v27 = vld [vmem:[%s14435_s15 + $0x584] sm:$0xf]  ;;  %v10046_v28 = vld [vmem:[%s14435_s15 + $0x590] sm:$0xf0]  ;;  %v7770_v42 = vpop.f32.mrf.mxu1  ;;  %v9921_v46 = vor.u32 %v12713_v21, %v9918_v25 }
 0x29e   : > { %8069 = vmatpush.bf16.msrb.mxu3 %v10225_v34  ;;  %v12777_v32 = vld [vmem:[%s14435_s15 + $0x684] sm:$0xf]  ;;  %v10174_v34 = vld [vmem:[%s14435_s15 + $0x690] sm:$0xf0]  ;;  %v10049_v49 = vor.u32 %v12745_v27, %v10046_v28  ;;  %v7771_v0 = vadd.f32 %v7770_v42, %v7757_v37 }
 0x29f   : > { %8028 = vmatpush.bf16.msrb.mxu0 %v9825_v50  ;;  %v12677_v50 = vld [vmem:[%s14435_s15 + $0x364] sm:$0xf]  ;;  %v10177_v61 = vor.u32 %v12777_v32, %v10174_v34  ;;  %v10030_v22 = vld [vmem:[%s14435_s15 + $0x570] sm:$0xf0]  ;;  %v7798_v28 = vpop.f32.mrf.mxu3 }
 0x2a0   : > { %8042 = vmatpush.bf16.msrb.mxu1 %v9953_v53  ;;  %v9774_v53 = vld [vmem:[%s14435_s15 + $0x370] sm:$0xf0]  ;;  %v12773_v4 = vld [vmem:[%s14435_s15 + $0x664] sm:$0xf]  ;;  %v7785_v27 = vadd.f32 %v7784_v19, %v7771_v0 }
 0x2a1   : > { %8056 = vmatpush.bf16.msrb.mxu2 %v10081_v58  ;;  %v12709_v58 = vld [vmem:[%s14435_s15 + $0x464] sm:$0xf]  ;;  %v10158_v5 = vld [vmem:[%s14435_s15 + $0x670] sm:$0xf0]  ;;  %v9777_v6 = vor.u32 %v12677_v50, %v9774_v53 }
 0x2a2   : > { %8070 = vmatpush.bf16.msrb.mxu3 %v10209_v2  ;;  %v12741_v2 = vld [vmem:[%s14435_s15 + $0x564] sm:$0xf]  ;;  %v9905_v9 = vor.u32 %v12709_v58, %v9902_v1  ;;  %v10161_v18 = vor.u32 %v12773_v4, %v10158_v5  ;;  %v9886_v21 = vld [vmem:[%s14435_s15 + $0x450] sm:$0xf0]  ;;  %v15183_v37 = vadd.f32 %v7798_v28, %v7785_v27 }
 0x2a3   : > { %8029 = vmatpush.bf16.msrb.mxu0 %v9809_v14  ;;  %v10033_v13 = vor.u32 %v12741_v2, %v10030_v22  ;;  %v12673_v14 = vld [vmem:[%s14435_s15 + $0x344] sm:$0xf]  ;;  %v10014_v25 = vld [vmem:[%s14435_s15 + $0x550] sm:$0xf0] }
 0x2a4   : > { %8043 = vmatpush.bf16.msrb.mxu1 %v9937_v15  ;;  %v9758_v15 = vld [vmem:[%s14435_s15 + $0x350] sm:$0xf0]  ;;  %v12769_v31 = vld [vmem:[%s14435_s15 + $0x644] sm:$0xf] }
 0x2a5   : > { %8057 = vmatpush.bf16.msrb.mxu2 %v10065_v16  ;;  %v12705_v16 = vld [vmem:[%s14435_s15 + $0x444] sm:$0xf]  ;;  %v10142_v32 = vld [vmem:[%s14435_s15 + $0x650] sm:$0xf0]  ;;  %v9761_v34 = vor.u32 %v12673_v14, %v9758_v15 }
 0x2a6   : > { %8071 = vmatpush.bf16.msrb.mxu3 %v10193_v24  ;;  %v12737_v24 = vld [vmem:[%s14435_s15 + $0x544] sm:$0xf]  ;;  %v10145_v53 = vor.u32 %v12769_v31, %v10142_v32  ;;  %v9870_v58 = vld [vmem:[%s14435_s15 + $0x430] sm:$0xf0] }
 0x2a7   : > { %8030 = vmatpush.bf16.msrb.mxu0 %v9793_v38  ;;  %v9889_v38 = vor.u32 %v12705_v16, %v9886_v21  ;;  %v10017_v42 = vor.u32 %v12737_v24, %v10014_v25  ;;  %v12701_v50 = vld [vmem:[%s14435_s15 + $0x424] sm:$0xf]  ;;  %v9998_v0 = vld [vmem:[%s14435_s15 + $0x530] sm:$0xf0] }
 0x2a8   : > { %8044 = vmatpush.bf16.msrb.mxu1 %v9921_v46  ;;  %v12669_v46 = vld [vmem:[%s14435_s15 + $0x324] sm:$0xf]  ;;  %v10126_v2 = vld [vmem:[%s14435_s15 + $0x630] sm:$0xf0] }
 0x2a9   : > { %8058 = vmatpush.bf16.msrb.mxu2 %v10049_v49  ;;  %v9742_v49 = vld [vmem:[%s14435_s15 + $0x330] sm:$0xf0]  ;;  %v12765_v1 = vld [vmem:[%s14435_s15 + $0x624] sm:$0xf] }
 0x2aa   : > { %8072 = vmatpush.bf16.msrb.mxu3 %v10177_v61  ;;  %v12733_v61 = vld [vmem:[%s14435_s15 + $0x524] sm:$0xf]  ;;  %v9745_v22 = vor.u32 %v12669_v46, %v9742_v49  ;;  %v9726_v5 = vld [vmem:[%s14435_s15 + $0x310] sm:$0xf0]  ;;  %v10129_v16 = vor.u32 %v12765_v1, %v10126_v2 }
 0x2ab   : > { %8031 = vmatpush.bf16.msrb.mxu0 %v9777_v6  ;;  %v12665_v4 = vld [vmem:[%s14435_s15 + $0x304] sm:$0xf]  ;;  %v9873_v6 = vor.u32 %v12701_v50, %v9870_v58  ;;  %v9854_v14 = vld [vmem:[%s14435_s15 + $0x410] sm:$0xf0] }
 0x2ac   : > { %8045 = vmatpush.bf16.msrb.mxu1 %v9905_v9  ;;  %v10001_v9 = vor.u32 %v12733_v61, %v9998_v0  ;;  %v12729_v15 = vld [vmem:[%s14435_s15 + $0x504] sm:$0xf]  ;;  %v10110_v21 = vld [vmem:[%s14435_s15 + $0x610] sm:$0xf0]  ;;  %v9729_v28 = vor.u32 %v12665_v4, %v9726_v5 }
 0x2ad   : > { %8059 = vmatpush.bf16.msrb.mxu2 %v10033_v13  ;;  %v12697_v13 = vld [vmem:[%s14435_s15 + $0x404] sm:$0xf]  ;;  %v10350_v25 = vld [vmem:[%s14435_s15 + $0x7f0] sm:$0xf0] }
 0x2ae   : > { %8073 = vmatpush.bf16.msrb.mxu3 %v10161_v18  ;;  %v9982_v18 = vld [vmem:[%s14435_s15 + $0x510] sm:$0xf0]  ;;  %v12761_v19 = vld [vmem:[%s14435_s15 + $0x604] sm:$0xf] }
 0x2af   : > { %8032 = vmatpush.bf16.msrb.mxu0 %v9761_v34  ;;  %v12821_v24 = vld [vmem:[%s14435_s15 + $0x7e4] sm:$0xf]  ;;  %v10478_v31 = vld [vmem:[%s14435_s15 + $0x8f0] sm:$0xf0]  ;;  %v10113_v50 = vor.u32 %v12761_v19, %v10110_v21 }
 0x2b0   : > { %8046 = vmatpush.bf16.msrb.mxu1 %v9889_v38  ;;  %v12853_v27 = vld [vmem:[%s14435_s15 + $0x8e4] sm:$0xf]  ;;  %v10606_v34 = vld [vmem:[%s14435_s15 + $0x9f0] sm:$0xf0]  ;;  %v9857_v38 = vor.u32 %v12697_v13, %v9854_v14 }
 0x2b1   : > { %8060 = vmatpush.bf16.msrb.mxu2 %v10017_v42  ;;  %v12885_v32 = vld [vmem:[%s14435_s15 + $0x9e4] sm:$0xf]  ;;  %v9985_v42 = vor.u32 %v12729_v15, %v9982_v18  ;;  %v10734_v49 = vld [vmem:[%s14435_s15 + $0xaf0] sm:$0xf0]  ;;  %v10481_v58 = vor.u32 %v12853_v27, %v10478_v31  ;;  %v15219_v15 = vpop.f32.mrf.mxu1 }
 0x2b2   : > { %8074 = vmatpush.bf16.msrb.mxu3 %v10145_v53  ;;  %v12917_v46 = vld [vmem:[%s14435_s15 + $0xae4] sm:$0xf]  ;;  %v10353_v53 = vor.u32 %v12821_v24, %v10350_v25  ;;  %v10609_v61 = vor.u32 %v12885_v32, %v10606_v34  ;;  %v10334_v1 = vld [vmem:[%s14435_s15 + $0x7d0] sm:$0xf0] }
 0x2b3   : > { %8033 = vmatpush.bf16.msrb.mxu0 %v9745_v22  ;;  %v12817_v0 = vld [vmem:[%s14435_s15 + $0x7c4] sm:$0xf]  ;;  %v10737_v22 = vor.u32 %v12917_v46, %v10734_v49  ;;  %v10462_v4 = vld [vmem:[%s14435_s15 + $0x8d0] sm:$0xf0] }
 0x2b4   : > { %8047 = vmatpush.bf16.msrb.mxu1 %v9873_v6  ;;  %v12849_v2 = vld [vmem:[%s14435_s15 + $0x8c4] sm:$0xf]  ;;  %v10590_v6 = vld [vmem:[%s14435_s15 + $0x9d0] sm:$0xf0] }
 0x2b5   : > { %8061 = vmatpush.bf16.msrb.mxu2 %v10001_v9  ;;  %v12881_v5 = vld [vmem:[%s14435_s15 + $0x9c4] sm:$0xf]  ;;  %v15215_v9 = vpop.f32.mrf.mxu0  ;;  %v10718_v14 = vld [vmem:[%s14435_s15 + $0xad0] sm:$0xf0]  ;;  %v10465_v18 = vor.u32 %v12849_v2, %v10462_v4  ;;  %v15241_v4 = vpop.f32.mrf.mxu3 }
 0x2b6   : > { %8075 = vmatpush.bf16.msrb.mxu3 %v10129_v16  ;;  %v12913_v13 = vld [vmem:[%s14435_s15 + $0xac4] sm:$0xf]  ;;  %v10337_v16 = vor.u32 %v12817_v0, %v10334_v1  ;;  %v10593_v19 = vor.u32 %v12881_v5, %v10590_v6  ;;  %v10318_v24 = vld [vmem:[%s14435_s15 + $0x7b0] sm:$0xf0]  ;;  %16668 = vst [vmem:[#allocation22_spill] sm:$0xff] %v15241_v4 }
 0x2b7   : > { %8034 = vmatpush.bf16.msrb.mxu0 %v9729_v28  ;;  %v12813_v21 = vld [vmem:[%s14435_s15 + $0x7a4] sm:$0xf]  ;;  %v10721_v27 = vor.u32 %v12913_v13, %v10718_v14  ;;  %v10446_v28 = vld [vmem:[%s14435_s15 + $0x8b0] sm:$0xf0] }
 0x2b8   : > { %8048 = vmatpush.bf16.msrb.mxu1 %v9857_v38  ;;  %v12845_v25 = vld [vmem:[%s14435_s15 + $0x8a4] sm:$0xf]  ;;  %v10574_v32 = vld [vmem:[%s14435_s15 + $0x9b0] sm:$0xf0] }
 0x2b9   : > { %8062 = vmatpush.bf16.msrb.mxu2 %v9985_v42  ;;  %v12877_v31 = vld [vmem:[%s14435_s15 + $0x9a4] sm:$0xf]  ;;  %v10702_v38 = vld [vmem:[%s14435_s15 + $0xab0] sm:$0xf0]  ;;  %v10321_v42 = vor.u32 %v12813_v21, %v10318_v24  ;;  %v10449_v46 = vor.u32 %v12845_v25, %v10446_v28 }
 0x2ba   : > { %8076 = vmatpush.bf16.msrb.mxu3 %v10113_v50  ;;  %8035 = vmatmul.bf16.vlgmr.msrb.gmra.mxu0 %v14560_v33  ;;  %v12909_v34 = vld [vmem:[%s14435_s15 + $0xaa4] sm:$0xf]  ;;  %v10577_v49 = vor.u32 %v12877_v31, %v10574_v32  ;;  %v10430_v1 = vld [vmem:[%s14435_s15 + $0x890] sm:$0xf0] }
 0x2bb   : > { %8083 = vmatpush.bf16.msra.mxu0 %v10353_v53  ;;  %8049 = vmatmul.bf16.vlgmr.msrb.gmra.mxu1 %v14636_v55  ;;  %v12809_v50 = vld [vmem:[%s14435_s15 + $0x784] sm:$0xf]  ;;  %v10302_v53 = vld [vmem:[%s14435_s15 + $0x790] sm:$0xf0]  ;;  %v10705_v0 = vor.u32 %v12909_v34, %v10702_v38 }
 0x2bc   : > { %8097 = vmatpush.bf16.msra.mxu1 %v10481_v58  ;;  %8063 = vmatmul.bf16.vlgmr.msrb.gmra.mxu2 %v14643_v60  ;;  %v12841_v58 = vld [vmem:[%s14435_s15 + $0x884] sm:$0xf]  ;;  %v10686_v13 = vld [vmem:[%s14435_s15 + $0xa90] sm:$0xf0] }
 0x2bd   : > { %8111 = vmatpush.bf16.msra.mxu2 %v10609_v61  ;;  %8077 = vmatmul.bf16.vlgmr.msrb.gmra.mxu3 %v14641_v59  ;;  %v15236_v61 = vpop.f32.mrf.mxu2  ;;  %v12873_v2 = vld [vmem:[%s14435_s15 + $0x984] sm:$0xf]  ;;  %v7812_v5 = vpop.f32.mrf.mxu0  ;;  %v10286_v25 = vld [vmem:[%s14435_s15 + $0x770] sm:$0xf0] }
 0x2be   : > { %8125 = vmatpush.bf16.msra.mxu3 %v10737_v22  ;;  %16667 = vst [vmem:[#allocation21_spill] sm:$0xff] %v15236_v61  ;;  %v10558_v22 = vld [vmem:[%s14435_s15 + $0x990] sm:$0xf0]  ;;  %v12905_v6 = vld [vmem:[%s14435_s15 + $0xa84] sm:$0xf]  ;;  %v7813_v14 = vadd.f32 %v7812_v5, %v15183_v37 }
 0x2bf   : > { %8084 = vmatpush.bf16.msra.mxu0 %v10337_v16  ;;  %v10305_v16 = vor.u32 %v12809_v50, %v10302_v53  ;;  %v10561_v21 = vor.u32 %v12873_v2, %v10558_v22  ;;  %v12805_v24 = vld [vmem:[%s14435_s15 + $0x764] sm:$0xf]  ;;  %v10689_v28 = vor.u32 %v12905_v6, %v10686_v13  ;;  %v10414_v32 = vld [vmem:[%s14435_s15 + $0x870] sm:$0xf0] }
 0x2c0   : > { %8098 = vmatpush.bf16.msra.mxu1 %v10465_v18  ;;  %v7826_v18 = vpop.f32.mrf.mxu1  ;;  %v12869_v34 = vld [vmem:[%s14435_s15 + $0x964] sm:$0xf]  ;;  %v10542_v37 = vld [vmem:[%s14435_s15 + $0x970] sm:$0xf0] }
 0x2c1   : > { %8112 = vmatpush.bf16.msra.mxu2 %v10593_v19  ;;  %v10433_v19 = vor.u32 %v12841_v58, %v10430_v1  ;;  %v7827_v31 = vadd.f32 %v7826_v18, %v7813_v14  ;;  %v12901_v38 = vld [vmem:[%s14435_s15 + $0xa64] sm:$0xf]  ;;  %v10545_v50 = vor.u32 %v12869_v34, %v10542_v37  ;;  %v10270_v58 = vld [vmem:[%s14435_s15 + $0x750] sm:$0xf0]  ;;  %v7854_v14 = vpop.f32.mrf.mxu3 }
 0x2c2   : > { %8126 = vmatpush.bf16.msra.mxu3 %v10721_v27  ;;  %v12837_v27 = vld [vmem:[%s14435_s15 + $0x864] sm:$0xf]  ;;  %v10398_v22 = vld [vmem:[%s14435_s15 + $0x850] sm:$0xf0] }
 0x2c3   : > { %8085 = vmatpush.bf16.msra.mxu0 %v10321_v42  ;;  %v10670_v42 = vld [vmem:[%s14435_s15 + $0xa70] sm:$0xf0]  ;;  %v12801_v53 = vld [vmem:[%s14435_s15 + $0x744] sm:$0xf] }
 0x2c4   : > { %8099 = vmatpush.bf16.msra.mxu1 %v10449_v46  ;;  %v10289_v46 = vor.u32 %v12805_v24, %v10286_v25  ;;  %v10673_v1 = vor.u32 %v12901_v38, %v10670_v42  ;;  %v12865_v5 = vld [vmem:[%s14435_s15 + $0x944] sm:$0xf]  ;;  %v10526_v6 = vld [vmem:[%s14435_s15 + $0x950] sm:$0xf0] }
 0x2c5   : > { %8113 = vmatpush.bf16.msra.mxu2 %v10577_v49  ;;  %v10417_v49 = vor.u32 %v12837_v27, %v10414_v32  ;;  %v7840_v2 = vpop.f32.mrf.mxu2  ;;  %v10654_v18 = vld [vmem:[%s14435_s15 + $0xa50] sm:$0xf0]  ;;  %v10529_v25 = vor.u32 %v12865_v5, %v10526_v6  ;;  %v12797_v27 = vld [vmem:[%s14435_s15 + $0x724] sm:$0xf] }
 0x2c6   : > { %8127 = vmatpush.bf16.msra.mxu3 %v10705_v0  ;;  %v12833_v0 = vld [vmem:[%s14435_s15 + $0x844] sm:$0xf]  ;;  %v7841_v13 = vadd.f32 %v7840_v2, %v7827_v31  ;;  %v10382_v34 = vld [vmem:[%s14435_s15 + $0x830] sm:$0xf0] }
 0x2c7   : > { %8086 = vmatpush.bf16.msra.mxu0 %v10305_v16  ;;  %v12897_v16 = vld [vmem:[%s14435_s15 + $0xa44] sm:$0xf]  ;;  %v10401_v24 = vor.u32 %v12833_v0, %v10398_v22  ;;  %v10510_v38 = vld [vmem:[%s14435_s15 + $0x930] sm:$0xf0] }
 0x2c8   : > { %8100 = vmatpush.bf16.msra.mxu1 %v10433_v19  ;;  %v10273_v19 = vor.u32 %v12801_v53, %v10270_v58  ;;  %v12829_v31 = vld [vmem:[%s14435_s15 + $0x824] sm:$0xf]  ;;  %v10657_v32 = vor.u32 %v12897_v16, %v10654_v18  ;;  %v10238_v53 = vld [vmem:[%s14435_s15 + $0x710] sm:$0xf0] }
 0x2c9   : > { %8114 = vmatpush.bf16.msra.mxu2 %v10561_v21  ;;  %v15262_v21 = vadd.f32 %v7854_v14, %v7841_v13  ;;  %v12861_v37 = vld [vmem:[%s14435_s15 + $0x924] sm:$0xf]  ;;  %v10385_v58 = vor.u32 %v12829_v31, %v10382_v34  ;;  %v10366_v2 = vld [vmem:[%s14435_s15 + $0x810] sm:$0xf0] }
 0x2ca   : > { %8128 = vmatpush.bf16.msra.mxu3 %v10689_v28  ;;  %v10254_v28 = vld [vmem:[%s14435_s15 + $0x730] sm:$0xf0]  ;;  %v12893_v42 = vld [vmem:[%s14435_s15 + $0xa24] sm:$0xf]  ;;  %v10513_v0 = vor.u32 %v12861_v37, %v10510_v38 }
 0x2cb   : > { %8087 = vmatpush.bf16.msra.mxu0 %v10289_v46  ;;  %v10638_v46 = vld [vmem:[%s14435_s15 + $0xa30] sm:$0xf0]  ;;  %v12857_v22 = vld [vmem:[%s14435_s15 + $0x904] sm:$0xf] }
 0x2cc   : > { %8101 = vmatpush.bf16.msra.mxu1 %v10417_v49  ;;  %v10257_v49 = vor.u32 %v12797_v27, %v10254_v28  ;;  %v10641_v5 = vor.u32 %v12893_v42, %v10638_v46  ;;  %v10494_v6 = vld [vmem:[%s14435_s15 + $0x910] sm:$0xf0]  ;;  %v12889_v13 = vld [vmem:[%s14435_s15 + $0xa04] sm:$0xf] }
 0x2cd   : > { %8115 = vmatpush.bf16.msra.mxu2 %v10545_v50  ;;  %v12793_v50 = vld [vmem:[%s14435_s15 + $0x704] sm:$0xf]  ;;  %v10622_v14 = vld [vmem:[%s14435_s15 + $0xa10] sm:$0xf0] }
 0x2ce   : > { %8129 = vmatpush.bf16.msra.mxu3 %v10673_v1  ;;  %v12825_v1 = vld [vmem:[%s14435_s15 + $0x804] sm:$0xf]  ;;  %v10862_v18 = vld [vmem:[%s14435_s15 + $0xbf0] sm:$0xf0]  ;;  %v10625_v38 = vor.u32 %v12889_v13, %v10622_v14 }
 0x2cf   : > { %8088 = vmatpush.bf16.msra.mxu0 %v10273_v19  ;;  %v12949_v16 = vld [vmem:[%s14435_s15 + $0xbe4] sm:$0xf]  ;;  %v11118_v28 = vld [vmem:[%s14435_s15 + $0xdf0] sm:$0xf0]  ;;  %v10369_v31 = vor.u32 %v12825_v1, %v10366_v2  ;;  %v15294_v2 = vpop.f32.mrf.mxu0 }
 0x2d0   : > { %8102 = vmatpush.bf16.msra.mxu1 %v10401_v24  ;;  %v12981_v19 = vld [vmem:[%s14435_s15 + $0xce4] sm:$0xf]  ;;  %v10241_v24 = vor.u32 %v12793_v50, %v10238_v53  ;;  %v11246_v37 = vld [vmem:[%s14435_s15 + $0xef0] sm:$0xf0]  ;;  %v10865_v42 = vor.u32 %v12949_v16, %v10862_v18  ;;  %16669 = vst [vmem:[#allocation23_spill] sm:$0xff] %v15294_v2 }
 0x2d1   : > { %8116 = vmatpush.bf16.msra.mxu2 %v10529_v25  ;;  %v10990_v25 = vld [vmem:[%s14435_s15 + $0xcf0] sm:$0xf0]  ;;  %v13013_v27 = vld [vmem:[%s14435_s15 + $0xde4] sm:$0xf] }
 0x2d2   : > { %8130 = vmatpush.bf16.msra.mxu3 %v10657_v32  ;;  %v10497_v32 = vor.u32 %v12857_v22, %v10494_v6  ;;  %v13045_v34 = vld [vmem:[%s14435_s15 + $0xee4] sm:$0xf]  ;;  %v10993_v46 = vor.u32 %v12981_v19, %v10990_v25  ;;  %v10846_v53 = vld [vmem:[%s14435_s15 + $0xbd0] sm:$0xf0]  ;;  %v15298_v6 = vpop.f32.mrf.mxu1 }
 0x2d3   : > { %8089 = vmatpush.bf16.msra.mxu0 %v10257_v49  ;;  %v11121_v49 = vor.u32 %v13013_v27, %v11118_v28  ;;  %v12945_v50 = vld [vmem:[%s14435_s15 + $0xbc4] sm:$0xf]  ;;  %v10974_v61 = vld [vmem:[%s14435_s15 + $0xcd0] sm:$0xf0]  ;;  %16670 = vst [vmem:[#allocation24_spill] sm:$0xff] %v15298_v6 }
 0x2d4   : > { %8103 = vmatpush.bf16.msra.mxu1 %v10385_v58  ;;  %v12977_v4 = vld [vmem:[%s14435_s15 + $0xcc4] sm:$0xf]  ;;  %v11249_v58 = vor.u32 %v13045_v34, %v11246_v37  ;;  %v11102_v1 = vld [vmem:[%s14435_s15 + $0xdd0] sm:$0xf0]  ;;  %v10849_v13 = vor.u32 %v12945_v50, %v10846_v53 }
 0x2d5   : > { %8117 = vmatpush.bf16.msra.mxu2 %v10513_v0  ;;  %v13009_v0 = vld [vmem:[%s14435_s15 + $0xdc4] sm:$0xf]  ;;  %v10977_v14 = vor.u32 %v12977_v4, %v10974_v61  ;;  %v10830_v19 = vld [vmem:[%s14435_s15 + $0xbb0] sm:$0xf0] }
 0x2d6   : > { %8131 = vmatpush.bf16.msra.mxu3 %v10641_v5  ;;  %v13041_v22 = vld [vmem:[%s14435_s15 + $0xec4] sm:$0xf]  ;;  %v11230_v5 = vld [vmem:[%s14435_s15 + $0xed0] sm:$0xf0]  ;;  %v11105_v16 = vor.u32 %v13009_v0, %v11102_v1  ;;  %v15320_v1 = vpop.f32.mrf.mxu3 }
 0x2d7   : > { %8090 = vmatpush.bf16.msra.mxu0 %v10241_v24  ;;  %v12941_v18 = vld [vmem:[%s14435_s15 + $0xba4] sm:$0xf]  ;;  %v11233_v25 = vor.u32 %v13041_v22, %v11230_v5  ;;  %v10958_v27 = vld [vmem:[%s14435_s15 + $0xcb0] sm:$0xf0]  ;;  %16672 = vst [vmem:[#allocation26_spill] sm:$0xff] %v15320_v1 }
 0x2d8   : > { %8104 = vmatpush.bf16.msra.mxu1 %v10369_v31  ;;  %v12973_v24 = vld [vmem:[%s14435_s15 + $0xca4] sm:$0xf]  ;;  %v11086_v31 = vld [vmem:[%s14435_s15 + $0xdb0] sm:$0xf0] }
 0x2d9   : > { %8118 = vmatpush.bf16.msra.mxu2 %v10497_v32  ;;  %v13005_v28 = vld [vmem:[%s14435_s15 + $0xda4] sm:$0xf]  ;;  %v11214_v4 = vld [vmem:[%s14435_s15 + $0xeb0] sm:$0xf0]  ;;  %v10833_v32 = vor.u32 %v12941_v18, %v10830_v19  ;;  %v10961_v34 = vor.u32 %v12973_v24, %v10958_v27 }
 0x2da   : > { %8132 = vmatpush.bf16.msra.mxu3 %v10625_v38  ;;  %8091 = vmatmul.bf16.vlgmr.msra.gmra.mxu0 %v14647_v63  ;;  %v13037_v61 = vld [vmem:[%s14435_s15 + $0xea4] sm:$0xf]  ;;  %v11089_v37 = vor.u32 %v13005_v28, %v11086_v31  ;;  %v10942_v53 = vld [vmem:[%s14435_s15 + $0xc90] sm:$0xf0]  ;;  %v7882_v18 = vpop.f32.mrf.mxu1 }
 0x2db   : > { %8139 = vmatpush.bf16.msrb.mxu0 %v10865_v42  ;;  %8105 = vmatmul.bf16.vlgmr.msra.gmra.mxu1 %v14736_v47  ;;  %v12937_v38 = vld [vmem:[%s14435_s15 + $0xb84] sm:$0xf]  ;;  %v10814_v42 = vld [vmem:[%s14435_s15 + $0xb90] sm:$0xf0]  ;;  %v11217_v50 = vor.u32 %v13037_v61, %v11214_v4  ;;  %v7868_v22 = vpop.f32.mrf.mxu0 }
 0x2dc   : > { %8153 = vmatpush.bf16.msrb.mxu1 %v10993_v46  ;;  %8119 = vmatmul.bf16.vlgmr.msra.gmra.mxu2 %v14743_v52  ;;  %v12969_v46 = vld [vmem:[%s14435_s15 + $0xc84] sm:$0xf]  ;;  %v11070_v0 = vld [vmem:[%s14435_s15 + $0xd90] sm:$0xf0] }
 0x2dd   : > { %8167 = vmatpush.bf16.msrb.mxu2 %v11121_v49  ;;  %8133 = vmatmul.bf16.vlgmr.msra.gmra.mxu3 %v14741_v51  ;;  %v15315_v49 = vpop.f32.mrf.mxu2  ;;  %v13033_v5 = vld [vmem:[%s14435_s15 + $0xe84] sm:$0xf]  ;;  %v10945_v19 = vor.u32 %v12969_v46, %v10942_v53  ;;  %v10798_v27 = vld [vmem:[%s14435_s15 + $0xb70] sm:$0xf0] }
 0x2de   : > { %8181 = vmatpush.bf16.msrb.mxu3 %v11249_v58  ;;  %16671 = vst [vmem:[#allocation25_spill] sm:$0xff] %v15315_v49  ;;  %v13001_v58 = vld [vmem:[%s14435_s15 + $0xd84] sm:$0xf]  ;;  %v10926_v4 = vld [vmem:[%s14435_s15 + $0xc70] sm:$0xf0] }
 0x2df   : > { %8140 = vmatpush.bf16.msrb.mxu0 %v10849_v13  ;;  %v11198_v13 = vld [vmem:[%s14435_s15 + $0xe90] sm:$0xf0]  ;;  %v11073_v24 = vor.u32 %v13001_v58, %v11070_v0  ;;  %v12965_v28 = vld [vmem:[%s14435_s15 + $0xc64] sm:$0xf] }
 0x2e0   : > { %8154 = vmatpush.bf16.msrb.mxu1 %v10977_v14  ;;  %v7869_v14 = vadd.f32 %v7868_v22, %v15262_v21  ;;  %v11201_v31 = vor.u32 %v13033_v5, %v11198_v13  ;;  %v11054_v21 = vld [vmem:[%s14435_s15 + $0xd70] sm:$0xf0]  ;;  %v12961_v58 = vld [vmem:[%s14435_s15 + $0xc44] sm:$0xf] }
 0x2e1   : > { %8168 = vmatpush.bf16.msrb.mxu2 %v11105_v16  ;;  %v10817_v16 = vor.u32 %v12937_v38, %v10814_v42  ;;  %v13029_v38 = vld [vmem:[%s14435_s15 + $0xe64] sm:$0xf]  ;;  %v10929_v42 = vor.u32 %v12965_v28, %v10926_v4  ;;  %v10782_v53 = vld [vmem:[%s14435_s15 + $0xb50] sm:$0xf0] }
 0x2e2   : > { %8182 = vmatpush.bf16.msrb.mxu3 %v11233_v25  ;;  %v12933_v25 = vld [vmem:[%s14435_s15 + $0xb64] sm:$0xf]  ;;  %v7883_v61 = vadd.f32 %v7882_v18, %v7869_v14  ;;  %v10910_v5 = vld [vmem:[%s14435_s15 + $0xc50] sm:$0xf0]  ;;  %v7910_v18 = vpop.f32.mrf.mxu3 }
 0x2e3   : > { %8141 = vmatpush.bf16.msrb.mxu0 %v10833_v32  ;;  %v12997_v32 = vld [vmem:[%s14435_s15 + $0xd64] sm:$0xf]  ;;  %v11038_v14 = vld [vmem:[%s14435_s15 + $0xd50] sm:$0xf0]  ;;  %v10913_v28 = vor.u32 %v12961_v58, %v10910_v5 }
 0x2e4   : > { %8155 = vmatpush.bf16.msrb.mxu1 %v10961_v34  ;;  %v11182_v34 = vld [vmem:[%s14435_s15 + $0xe70] sm:$0xf0]  ;;  %v11057_v46 = vor.u32 %v12997_v32, %v11054_v21  ;;  %v12993_v13 = vld [vmem:[%s14435_s15 + $0xd44] sm:$0xf] }
 0x2e5   : > { %8169 = vmatpush.bf16.msrb.mxu2 %v11089_v37  ;;  %v10801_v37 = vor.u32 %v12933_v25, %v10798_v27  ;;  %v11185_v0 = vor.u32 %v13029_v38, %v11182_v34  ;;  %v7896_v22 = vpop.f32.mrf.mxu2  ;;  %v12925_v4 = vld [vmem:[%s14435_s15 + $0xb24] sm:$0xf]  ;;  %v10894_v38 = vld [vmem:[%s14435_s15 + $0xc30] sm:$0xf0] }
 0x2e6   : > { %8183 = vmatpush.bf16.msrb.mxu3 %v11217_v50  ;;  %v12929_v50 = vld [vmem:[%s14435_s15 + $0xb44] sm:$0xf]  ;;  %v10750_v58 = vld [vmem:[%s14435_s15 + $0xb10] sm:$0xf0] }
 0x2e7   : > { %8142 = vmatpush.bf16.msrb.mxu0 %v10817_v16  ;;  %v7897_v16 = vadd.f32 %v7896_v22, %v7883_v61  ;;  %v10785_v25 = vor.u32 %v12929_v50, %v10782_v53  ;;  %v10766_v61 = vld [vmem:[%s14435_s15 + $0xb30] sm:$0xf0]  ;;  %v12957_v32 = vld [vmem:[%s14435_s15 + $0xc24] sm:$0xf] }
 0x2e8   : > { %8156 = vmatpush.bf16.msrb.mxu1 %v10945_v19  ;;  %v13025_v19 = vld [vmem:[%s14435_s15 + $0xe44] sm:$0xf]  ;;  %v10769_v50 = vor.u32 %v12925_v4, %v10766_v61  ;;  %v11374_v4 = vld [vmem:[%s14435_s15 + $0xff0] sm:$0xf0] }
 0x2e9   : > { %8170 = vmatpush.bf16.msrb.mxu2 %v11073_v24  ;;  %v11166_v24 = vld [vmem:[%s14435_s15 + $0xe50] sm:$0xf0]  ;;  %v15341_v27 = vadd.f32 %v7910_v18, %v7897_v16  ;;  %v12989_v34 = vld [vmem:[%s14435_s15 + $0xd24] sm:$0xf] }
 0x2ea   : > { %8184 = vmatpush.bf16.msrb.mxu3 %v11201_v31  ;;  %v11041_v31 = vor.u32 %v12993_v13, %v11038_v14  ;;  %v11169_v21 = vor.u32 %v13025_v19, %v11166_v24  ;;  %v12921_v53 = vld [vmem:[%s14435_s15 + $0xb04] sm:$0xf]  ;;  %v10878_v13 = vld [vmem:[%s14435_s15 + $0xc10] sm:$0xf0] }
 0x2eb   : > { %8143 = vmatpush.bf16.msrb.mxu0 %v10801_v37  ;;  %v11022_v37 = vld [vmem:[%s14435_s15 + $0xd30] sm:$0xf0]  ;;  %v12953_v5 = vld [vmem:[%s14435_s15 + $0xc04] sm:$0xf] }
 0x2ec   : > { %8157 = vmatpush.bf16.msrb.mxu1 %v10929_v42  ;;  %v13021_v42 = vld [vmem:[%s14435_s15 + $0xe24] sm:$0xf]  ;;  %v11025_v22 = vor.u32 %v12989_v34, %v11022_v37  ;;  %v11006_v18 = vld [vmem:[%s14435_s15 + $0xd10] sm:$0xf0] }
 0x2ed   : > { %8171 = vmatpush.bf16.msrb.mxu2 %v11057_v46  ;;  %v11150_v46 = vld [vmem:[%s14435_s15 + $0xe30] sm:$0xf0]  ;;  %v12985_v14 = vld [vmem:[%s14435_s15 + $0xd04] sm:$0xf] }
 0x2ee   : > { %8185 = vmatpush.bf16.msrb.mxu3 %v11185_v0  ;;  %v10897_v0 = vor.u32 %v12957_v32, %v10894_v38  ;;  %v11153_v16 = vor.u32 %v13021_v42, %v11150_v46  ;;  %v13017_v19 = vld [vmem:[%s14435_s15 + $0xe04] sm:$0xf]  ;;  %v11134_v24 = vld [vmem:[%s14435_s15 + $0xe10] sm:$0xf0]  ;;  %v11009_v34 = vor.u32 %v12985_v14, %v11006_v18  ;;  %v15377_v18 = vpop.f32.mrf.mxu1 }
 0x2ef   : > { %8144 = vmatpush.bf16.msrb.mxu0 %v10785_v25  ;;  %v13077_v25 = vld [vmem:[%s14435_s15 + $0xfe4] sm:$0xf]  ;;  %v11630_v38 = vld [vmem:[%s14435_s15 + $0x11f0] sm:$0xf0]  ;;  %v11137_v46 = vor.u32 %v13017_v19, %v11134_v24 }
 0x2f0   : > { %8158 = vmatpush.bf16.msrb.mxu1 %v10913_v28  ;;  %v13109_v61 = vld [vmem:[%s14435_s15 + $0x10e4] sm:$0xf]  ;;  %v10753_v28 = vor.u32 %v12921_v53, %v10750_v58  ;;  %v11758_v42 = vld [vmem:[%s14435_s15 + $0x12f0] sm:$0xf0] }
 0x2f1   : > { %8172 = vmatpush.bf16.msrb.mxu2 %v11041_v31  ;;  %v11502_v31 = vld [vmem:[%s14435_s15 + $0x10f0] sm:$0xf0]  ;;  %v13141_v32 = vld [vmem:[%s14435_s15 + $0x11e4] sm:$0xf] }
 0x2f2   : > { %8186 = vmatpush.bf16.msrb.mxu3 %v11169_v21  ;;  %v10881_v21 = vor.u32 %v12953_v5, %v10878_v13  ;;  %v13173_v37 = vld [vmem:[%s14435_s15 + $0x12e4] sm:$0xf]  ;;  %v11505_v53 = vor.u32 %v13109_v61, %v11502_v31  ;;  %v11633_v58 = vor.u32 %v13141_v32, %v11630_v38  ;;  %v11358_v49 = vld [vmem:[%s14435_s15 + $0xfd0] sm:$0xf0]  ;;  %v15373_v13 = vpop.f32.mrf.mxu0 }
 0x2f3   : > { %8145 = vmatpush.bf16.msrb.mxu0 %v10769_v50  ;;  %v11377_v50 = vor.u32 %v13077_v25, %v11374_v4  ;;  %v13073_v1 = vld [vmem:[%s14435_s15 + $0xfc4] sm:$0xf]  ;;  %v11486_v2 = vld [vmem:[%s14435_s15 + $0x10d0] sm:$0xf0] }
 0x2f4   : > { %8159 = vmatpush.bf16.msrb.mxu1 %v10897_v0  ;;  %v13105_v6 = vld [vmem:[%s14435_s15 + $0x10c4] sm:$0xf]  ;;  %v11761_v0 = vor.u32 %v13173_v37, %v11758_v42  ;;  %v11614_v5 = vld [vmem:[%s14435_s15 + $0x11d0] sm:$0xf0]  ;;  %v11361_v19 = vor.u32 %v13073_v1, %v11358_v49 }
 0x2f5   : > { %8173 = vmatpush.bf16.msrb.mxu2 %v11025_v22  ;;  %v13137_v22 = vld [vmem:[%s14435_s15 + $0x11c4] sm:$0xf]  ;;  %v11489_v24 = vor.u32 %v13105_v6, %v11486_v2  ;;  %v11342_v61 = vld [vmem:[%s14435_s15 + $0xfb0] sm:$0xf0] }
 0x2f6   : > { %8187 = vmatpush.bf16.msrb.mxu3 %v11153_v16  ;;  %v13169_v14 = vld [vmem:[%s14435_s15 + $0x12c4] sm:$0xf]  ;;  %v11742_v16 = vld [vmem:[%s14435_s15 + $0x12d0] sm:$0xf0]  ;;  %v11617_v25 = vor.u32 %v13137_v22, %v11614_v5  ;;  %v15399_v5 = vpop.f32.mrf.mxu3 }
 0x2f7   : > { %8146 = vmatpush.bf16.msrb.mxu0 %v10753_v28  ;;  %v13069_v4 = vld [vmem:[%s14435_s15 + $0xfa4] sm:$0xf]  ;;  %v11745_v31 = vor.u32 %v13169_v14, %v11742_v16  ;;  %v11470_v32 = vld [vmem:[%s14435_s15 + $0x10b0] sm:$0xf0]  ;;  %16674 = vst [vmem:[#allocation28_spill] sm:$0xff] %v15399_v5 }
 0x2f8   : > { %8160 = vmatpush.bf16.msrb.mxu1 %v10881_v21  ;;  %v13101_v28 = vld [vmem:[%s14435_s15 + $0x10a4] sm:$0xf]  ;;  %v11598_v21 = vld [vmem:[%s14435_s15 + $0x11b0] sm:$0xf0]  ;;  %v11345_v49 = vor.u32 %v13069_v4, %v11342_v61  ;;  %v7938_v4 = vpop.f32.mrf.mxu1 }
 0x2f9   : > { %8174 = vmatpush.bf16.msrb.mxu2 %v11009_v34  ;;  %v13133_v38 = vld [vmem:[%s14435_s15 + $0x11a4] sm:$0xf]  ;;  %v11726_v6 = vld [vmem:[%s14435_s15 + $0x12b0] sm:$0xf0]  ;;  %v11473_v1 = vor.u32 %v13101_v28, %v11470_v32 }
 0x2fa   : > { %8188 = vmatpush.bf16.msrb.mxu3 %v11137_v46  ;;  %8147 = vmatmul.bf16.vlgmr.msrb.gmra.mxu0 %v14747_v56  ;;  %v13165_v2 = vld [vmem:[%s14435_s15 + $0x12a4] sm:$0xf]  ;;  %v11601_v34 = vor.u32 %v13133_v38, %v11598_v21  ;;  %v11326_v42 = vld [vmem:[%s14435_s15 + $0xf90] sm:$0xf0]  ;;  %v7924_v14 = vpop.f32.mrf.mxu0 }
 0x2fb   : > { %8195 = vmatpush.bf16.msra.mxu0 %v11377_v50  ;;  %8161 = vmatmul.bf16.vlgmr.msrb.gmra.mxu1 %v14836_v48  ;;  %v13065_v37 = vld [vmem:[%s14435_s15 + $0xf84] sm:$0xf]  ;;  %v15394_v50 = vpop.f32.mrf.mxu2  ;;  %v11582_v22 = vld [vmem:[%s14435_s15 + $0x1190] sm:$0xf0] }
 0x2fc   : > { %8209 = vmatpush.bf16.msra.mxu1 %v11505_v53  ;;  %8175 = vmatmul.bf16.vlgmr.msrb.gmra.mxu2 %v14843_v57  ;;  %v13097_v46 = vld [vmem:[%s14435_s15 + $0x1084] sm:$0xf]  ;;  %16673 = vst [vmem:[#allocation27_spill] sm:$0xff] %v15394_v50  ;;  %v11729_v53 = vor.u32 %v13165_v2, %v11726_v6  ;;  %v11310_v32 = vld [vmem:[%s14435_s15 + $0xf70] sm:$0xf0] }
 0x2fd   : > { %8223 = vmatpush.bf16.msra.mxu2 %v11633_v58  ;;  %8189 = vmatmul.bf16.vlgmr.msrb.gmra.mxu3 %v14841_v54  ;;  %v11454_v58 = vld [vmem:[%s14435_s15 + $0x1090] sm:$0xf0]  ;;  %v13161_v16 = vld [vmem:[%s14435_s15 + $0x1284] sm:$0xf] }
 0x2fe   : > { %8237 = vmatpush.bf16.msra.mxu3 %v11761_v0  ;;  %v13129_v0 = vld [vmem:[%s14435_s15 + $0x1184] sm:$0xf]  ;;  %v11457_v61 = vor.u32 %v13097_v46, %v11454_v58  ;;  %v11438_v6 = vld [vmem:[%s14435_s15 + $0x1070] sm:$0xf0] }
 0x2ff   : > { %8196 = vmatpush.bf16.msra.mxu0 %v11361_v19  ;;  %v11710_v19 = vld [vmem:[%s14435_s15 + $0x1290] sm:$0xf0]  ;;  %v11585_v28 = vor.u32 %v13129_v0, %v11582_v22  ;;  %v13093_v38 = vld [vmem:[%s14435_s15 + $0x1064] sm:$0xf] }
 0x300   : > { %8210 = vmatpush.bf16.msra.mxu1 %v11489_v24  ;;  %v7925_v24 = vadd.f32 %v7924_v14, %v15341_v27  ;;  %v11713_v21 = vor.u32 %v13161_v16, %v11710_v19  ;;  %v11566_v27 = vld [vmem:[%s14435_s15 + $0x1170] sm:$0xf0]  ;;  %v13089_v0 = vld [vmem:[%s14435_s15 + $0x1044] sm:$0xf] }
 0x301   : > { %8224 = vmatpush.bf16.msra.mxu2 %v11617_v25  ;;  %v11329_v25 = vor.u32 %v13065_v37, %v11326_v42  ;;  %v13157_v37 = vld [vmem:[%s14435_s15 + $0x1264] sm:$0xf]  ;;  %v11441_v42 = vor.u32 %v13093_v38, %v11438_v6  ;;  %v11294_v58 = vld [vmem:[%s14435_s15 + $0xf50] sm:$0xf0] }
 0x302   : > { %8238 = vmatpush.bf16.msra.mxu3 %v11745_v31  ;;  %v13061_v31 = vld [vmem:[%s14435_s15 + $0xf64] sm:$0xf]  ;;  %v7939_v2 = vadd.f32 %v7938_v4, %v7925_v24  ;;  %v11422_v16 = vld [vmem:[%s14435_s15 + $0x1050] sm:$0xf0]  ;;  %v7966_v4 = vpop.f32.mrf.mxu3 }
 0x303   : > { %8197 = vmatpush.bf16.msra.mxu0 %v11345_v49  ;;  %v13125_v49 = vld [vmem:[%s14435_s15 + $0x1164] sm:$0xf]  ;;  %v7952_v14 = vpop.f32.mrf.mxu2  ;;  %v11550_v24 = vld [vmem:[%s14435_s15 + $0x1150] sm:$0xf0]  ;;  %v11425_v38 = vor.u32 %v13089_v0, %v11422_v16 }
 0x304   : > { %8211 = vmatpush.bf16.msra.mxu1 %v11473_v1  ;;  %v11694_v1 = vld [vmem:[%s14435_s15 + $0x1270] sm:$0xf0]  ;;  %v11569_v46 = vor.u32 %v13125_v49, %v11566_v27  ;;  %v13121_v19 = vld [vmem:[%s14435_s15 + $0x1144] sm:$0xf] }
 0x305   : > { %8225 = vmatpush.bf16.msra.mxu2 %v11601_v34  ;;  %v11313_v34 = vor.u32 %v13061_v31, %v11310_v32  ;;  %v11697_v22 = vor.u32 %v13157_v37, %v11694_v1  ;;  %v13053_v6 = vld [vmem:[%s14435_s15 + $0xf24] sm:$0xf]  ;;  %v11406_v37 = vld [vmem:[%s14435_s15 + $0x1030] sm:$0xf0] }
 0x306   : > { %8239 = vmatpush.bf16.msra.mxu3 %v11729_v53  ;;  %v13057_v53 = vld [vmem:[%s14435_s15 + $0xf44] sm:$0xf]  ;;  %v11262_v0 = vld [vmem:[%s14435_s15 + $0xf10] sm:$0xf0] }
 0x307   : > { %8198 = vmatpush.bf16.msra.mxu0 %v11329_v25  ;;  %v7953_v25 = vadd.f32 %v7952_v14, %v7939_v2  ;;  %v11297_v31 = vor.u32 %v13057_v53, %v11294_v58  ;;  %v11278_v2 = vld [vmem:[%s14435_s15 + $0xf30] sm:$0xf0]  ;;  %v13085_v49 = vld [vmem:[%s14435_s15 + $0x1024] sm:$0xf] }
 0x308   : > { %8212 = vmatpush.bf16.msra.mxu1 %v11457_v61  ;;  %v13153_v61 = vld [vmem:[%s14435_s15 + $0x1244] sm:$0xf]  ;;  %v11281_v53 = vor.u32 %v13053_v6, %v11278_v2  ;;  %v11886_v6 = vld [vmem:[%s14435_s15 + $0x13f0] sm:$0xf0] }
 0x309   : > { %8226 = vmatpush.bf16.msra.mxu2 %v11585_v28  ;;  %v11678_v28 = vld [vmem:[%s14435_s15 + $0x1250] sm:$0xf0]  ;;  %v15420_v32 = vadd.f32 %v7966_v4, %v7953_v25  ;;  %v13117_v1 = vld [vmem:[%s14435_s15 + $0x1124] sm:$0xf] }
 0x30a   : > { %8240 = vmatpush.bf16.msra.mxu3 %v11713_v21  ;;  %v11553_v21 = vor.u32 %v13121_v19, %v11550_v24  ;;  %v11681_v27 = vor.u32 %v13153_v61, %v11678_v28  ;;  %v13049_v58 = vld [vmem:[%s14435_s15 + $0xf04] sm:$0xf]  ;;  %v11390_v19 = vld [vmem:[%s14435_s15 + $0x1010] sm:$0xf0] }
 0x30b   : > { %8199 = vmatpush.bf16.msra.mxu0 %v11313_v34  ;;  %v11534_v34 = vld [vmem:[%s14435_s15 + $0x1130] sm:$0xf0]  ;;  %v13081_v16 = vld [vmem:[%s14435_s15 + $0x1004] sm:$0xf] }
 0x30c   : > { %8213 = vmatpush.bf16.msra.mxu1 %v11441_v42  ;;  %v13149_v42 = vld [vmem:[%s14435_s15 + $0x1224] sm:$0xf]  ;;  %v11537_v14 = vor.u32 %v13117_v1, %v11534_v34  ;;  %v11518_v4 = vld [vmem:[%s14435_s15 + $0x1110] sm:$0xf0] }
 0x30d   : > { %8227 = vmatpush.bf16.msra.mxu2 %v11569_v46  ;;  %v11662_v46 = vld [vmem:[%s14435_s15 + $0x1230] sm:$0xf0]  ;;  %v13113_v24 = vld [vmem:[%s14435_s15 + $0x1104] sm:$0xf] }
 0x30e   : > { %8241 = vmatpush.bf16.msra.mxu3 %v11697_v22  ;;  %v11409_v22 = vor.u32 %v13085_v49, %v11406_v37  ;;  %v11665_v25 = vor.u32 %v13149_v42, %v11662_v46  ;;  %v13145_v61 = vld [vmem:[%s14435_s15 + $0x1204] sm:$0xf]  ;;  %v11646_v28 = vld [vmem:[%s14435_s15 + $0x1210] sm:$0xf0]  ;;  %v11521_v1 = vor.u32 %v13113_v24, %v11518_v4  ;;  %v15452_v24 = vpop.f32.mrf.mxu0 }
 0x30f   : > { %8200 = vmatpush.bf16.msra.mxu0 %v11297_v31  ;;  %v13205_v31 = vld [vmem:[%s14435_s15 + $0x13e4] sm:$0xf]  ;;  %v12142_v37 = vld [vmem:[%s14435_s15 + $0x15f0] sm:$0xf0]  ;;  %v11649_v46 = vor.u32 %v13145_v61, %v11646_v28 }
 0x310   : > { %8214 = vmatpush.bf16.msra.mxu1 %v11425_v38  ;;  %v13237_v2 = vld [vmem:[%s14435_s15 + $0x14e4] sm:$0xf]  ;;  %v11265_v38 = vor.u32 %v13049_v58, %v11262_v0  ;;  %v12270_v42 = vld [vmem:[%s14435_s15 + $0x16f0] sm:$0xf0] }
 0x311   : > { %8228 = vmatpush.bf16.msra.mxu2 %v11553_v21  ;;  %v12014_v21 = vld [vmem:[%s14435_s15 + $0x14f0] sm:$0xf0]  ;;  %v13269_v49 = vld [vmem:[%s14435_s15 + $0x15e4] sm:$0xf] }
 0x312   : > { %8242 = vmatpush.bf16.msra.mxu3 %v11681_v27  ;;  %v11393_v27 = vor.u32 %v13081_v16, %v11390_v19  ;;  %v13301_v34 = vld [vmem:[%s14435_s15 + $0x16e4] sm:$0xf]  ;;  %v12017_v58 = vor.u32 %v13237_v2, %v12014_v21  ;;  %v12145_v0 = vor.u32 %v13269_v49, %v12142_v37  ;;  %v11870_v5 = vld [vmem:[%s14435_s15 + $0x13d0] sm:$0xf0] }
 0x313   : > { %8201 = vmatpush.bf16.msra.mxu0 %v11281_v53  ;;  %v11889_v53 = vor.u32 %v13205_v31, %v11886_v6  ;;  %v13201_v54 = vld [vmem:[%s14435_s15 + $0x13c4] sm:$0xf]  ;;  %v12126_v19 = vld [vmem:[%s14435_s15 + $0x15d0] sm:$0xf0] }
 0x314   : > { %8215 = vmatpush.bf16.msra.mxu1 %v11409_v22  ;;  %v13233_v50 = vld [vmem:[%s14435_s15 + $0x14c4] sm:$0xf]  ;;  %v12273_v22 = vor.u32 %v13301_v34, %v12270_v42  ;;  %v12254_v4 = vld [vmem:[%s14435_s15 + $0x16d0] sm:$0xf0]  ;;  %v11873_v61 = vor.u32 %v13201_v54, %v11870_v5 }
 0x315   : > { %8229 = vmatpush.bf16.msra.mxu2 %v11537_v14  ;;  %v11998_v14 = vld [vmem:[%s14435_s15 + $0x14d0] sm:$0xf0]  ;;  %v13265_v16 = vld [vmem:[%s14435_s15 + $0x15c4] sm:$0xf] }
 0x316   : > { %8243 = vmatpush.bf16.msra.mxu3 %v11665_v25  ;;  %v13297_v25 = vld [vmem:[%s14435_s15 + $0x16c4] sm:$0xf]  ;;  %v12001_v28 = vor.u32 %v13233_v50, %v11998_v14  ;;  %v12129_v31 = vor.u32 %v13265_v16, %v12126_v19  ;;  %v11854_v2 = vld [vmem:[%s14435_s15 + $0x13b0] sm:$0xf0] }
 0x317   : > { %8202 = vmatpush.bf16.msra.mxu0 %v11265_v38  ;;  %v13197_v6 = vld [vmem:[%s14435_s15 + $0x13a4] sm:$0xf]  ;;  %v12257_v21 = vor.u32 %v13297_v25, %v12254_v4  ;;  %v11982_v49 = vld [vmem:[%s14435_s15 + $0x14b0] sm:$0xf0]  ;;  %v7980_v16 = vpop.f32.mrf.mxu0 }
 0x318   : > { %8216 = vmatpush.bf16.msra.mxu1 %v11393_v27  ;;  %v13229_v38 = vld [vmem:[%s14435_s15 + $0x14a4] sm:$0xf]  ;;  %v12110_v27 = vld [vmem:[%s14435_s15 + $0x15b0] sm:$0xf0]  ;;  %v11857_v5 = vor.u32 %v13197_v6, %v11854_v2  ;;  %v15477_v4 = vadd.f32 %v7980_v16, %v15420_v32 }
 0x319   : > { %8230 = vmatpush.bf16.msra.mxu2 %v11521_v1  ;;  %v13261_v37 = vld [vmem:[%s14435_s15 + $0x15a4] sm:$0xf]  ;;  %v12238_v50 = vld [vmem:[%s14435_s15 + $0x16b0] sm:$0xf0]  ;;  %v11985_v1 = vor.u32 %v13229_v38, %v11982_v49 }
 0x31a   : > { %8244 = vmatpush.bf16.msra.mxu3 %v11649_v46  ;;  %8203 = vmatmul.bf16.vlgmr.msra.gmra.mxu0 %v14847_v62  ;;  %v13293_v54 = vld [vmem:[%s14435_s15 + $0x16a4] sm:$0xf]  ;;  %v12113_v34 = vor.u32 %v13261_v37, %v12110_v27  ;;  %v11838_v46 = vld [vmem:[%s14435_s15 + $0x1390] sm:$0xf0]  ;;  %16675 = vst [vmem:[#allocation29_spill] sm:$0xff] %v15477_v4 }
 0x31b   : > { %8251 = vmatpush.bf16.msrb.mxu0 %v11889_v53  ;;  %8217 = vmatmul.bf16.vlgmr.msra.gmra.mxu1 %v14936_v3  ;;  %v13193_v42 = vld [vmem:[%s14435_s15 + $0x1384] sm:$0xf]  ;;  %v12094_v14 = vld [vmem:[%s14435_s15 + $0x1590] sm:$0xf0]  ;;  %v12916_v62 = vld [vmem:[%s14435_s15 + $0xad4] sm:$0xf0] }
 0x31c   : > { %8265 = vmatpush.bf16.msrb.mxu1 %v12017_v58  ;;  %8231 = vmatmul.bf16.vlgmr.msra.gmra.mxu2 %v14943_v8  ;;  %v13225_v53 = vld [vmem:[%s14435_s15 + $0x1484] sm:$0xf]  ;;  %v12241_v58 = vor.u32 %v13293_v54, %v12238_v50  ;;  %v12222_v25 = vld [vmem:[%s14435_s15 + $0x1690] sm:$0xf0]  ;;  %v10724_v8 = vld [vmem:[%s14435_s15 + $0xac8] sm:$0xf] }
 0x31d   : > { %8279 = vmatpush.bf16.msrb.mxu2 %v12145_v0  ;;  %8245 = vmatmul.bf16.vlgmr.msra.gmra.mxu3 %v14941_v7  ;;  %v11966_v0 = vld [vmem:[%s14435_s15 + $0x1490] sm:$0xf0]  ;;  %v13289_v19 = vld [vmem:[%s14435_s15 + $0x1684] sm:$0xf] }
 0x31e   : > { %8293 = vmatpush.bf16.msrb.mxu3 %v12273_v22  ;;  %v13257_v22 = vld [vmem:[%s14435_s15 + $0x1584] sm:$0xf]  ;;  %v11822_v2 = vld [vmem:[%s14435_s15 + $0x1370] sm:$0xf0] }
 0x31f   : > { %8252 = vmatpush.bf16.msrb.mxu0 %v11873_v61  ;;  %v11841_v61 = vor.u32 %v13193_v42, %v11838_v46  ;;  %v13189_v6 = vld [vmem:[%s14435_s15 + $0x1364] sm:$0xf]  ;;  %v11950_v49 = vld [vmem:[%s14435_s15 + $0x1470] sm:$0xf0] }
 0x320   : > { %8266 = vmatpush.bf16.msrb.mxu1 %v12001_v28  ;;  %v11969_v28 = vor.u32 %v13225_v53, %v11966_v0  ;;  %v13221_v38 = vld [vmem:[%s14435_s15 + $0x1464] sm:$0xf]  ;;  %v12078_v27 = vld [vmem:[%s14435_s15 + $0x1570] sm:$0xf0]  ;;  %v11825_v50 = vor.u32 %v13189_v6, %v11822_v2 }
 0x321   : > { %8280 = vmatpush.bf16.msrb.mxu2 %v12129_v31  ;;  %v12097_v31 = vor.u32 %v13257_v22, %v12094_v14  ;;  %v13253_v37 = vld [vmem:[%s14435_s15 + $0x1564] sm:$0xf]  ;;  %v12206_v54 = vld [vmem:[%s14435_s15 + $0x1670] sm:$0xf0] }
 0x322   : > { %8294 = vmatpush.bf16.msrb.mxu3 %v12257_v21  ;;  %v12225_v21 = vor.u32 %v13289_v19, %v12222_v25  ;;  %v13285_v32 = vld [vmem:[%s14435_s15 + $0x1664] sm:$0xf]  ;;  %v11806_v42 = vld [vmem:[%s14435_s15 + $0x1350] sm:$0xf0] }
 0x323   : > { %8253 = vmatpush.bf16.msrb.mxu0 %v11857_v5  ;;  %v11953_v5 = vor.u32 %v13221_v38, %v11950_v49  ;;  %v13217_v46 = vld [vmem:[%s14435_s15 + $0x1444] sm:$0xf]  ;;  %v12209_v53 = vor.u32 %v13285_v32, %v12206_v54  ;;  %v12062_v22 = vld [vmem:[%s14435_s15 + $0x1550] sm:$0xf0] }
 0x324   : > { %8267 = vmatpush.bf16.msrb.mxu1 %v11985_v1  ;;  %v12081_v1 = vor.u32 %v13253_v37, %v12078_v27  ;;  %v13249_v0 = vld [vmem:[%s14435_s15 + $0x1544] sm:$0xf]  ;;  %v12190_v16 = vld [vmem:[%s14435_s15 + $0x1650] sm:$0xf0] }
 0x325   : > { %8281 = vmatpush.bf16.msrb.mxu2 %v12113_v34  ;;  %v13185_v34 = vld [vmem:[%s14435_s15 + $0x1344] sm:$0xf]  ;;  %v11918_v38 = vld [vmem:[%s14435_s15 + $0x1430] sm:$0xf0] }
 0x326   : > { %8295 = vmatpush.bf16.msrb.mxu3 %v12241_v58  ;;  %v11934_v58 = vld [vmem:[%s14435_s15 + $0x1450] sm:$0xf0]  ;;  %v13281_v14 = vld [vmem:[%s14435_s15 + $0x1644] sm:$0xf]  ;;  %v11809_v19 = vor.u32 %v13185_v34, %v11806_v42 }
 0x327   : > { %8254 = vmatpush.bf16.msrb.mxu0 %v11841_v61  ;;  %v11937_v25 = vor.u32 %v13217_v46, %v11934_v58  ;;  %v12065_v61 = vor.u32 %v13249_v0, %v12062_v22  ;;  %v13213_v6 = vld [vmem:[%s14435_s15 + $0x1424] sm:$0xf]  ;;  %v12193_v2 = vor.u32 %v13281_v14, %v12190_v16  ;;  %v12046_v49 = vld [vmem:[%s14435_s15 + $0x1530] sm:$0xf0] }
 0x328   : > { %8268 = vmatpush.bf16.msrb.mxu1 %v11969_v28  ;;  %v13181_v28 = vld [vmem:[%s14435_s15 + $0x1324] sm:$0xf]  ;;  %v12174_v27 = vld [vmem:[%s14435_s15 + $0x1630] sm:$0xf0] }
 0x329   : > { %8282 = vmatpush.bf16.msrb.mxu2 %v12097_v31  ;;  %v11790_v31 = vld [vmem:[%s14435_s15 + $0x1330] sm:$0xf0]  ;;  %v13277_v37 = vld [vmem:[%s14435_s15 + $0x1624] sm:$0xf] }
 0x32a   : > { %8296 = vmatpush.bf16.msrb.mxu3 %v12225_v21  ;;  %v13245_v21 = vld [vmem:[%s14435_s15 + $0x1524] sm:$0xf]  ;;  %v11793_v32 = vor.u32 %v13181_v28, %v11790_v31  ;;  %v11902_v42 = vld [vmem:[%s14435_s15 + $0x1410] sm:$0xf0]  ;;  %v9460_v28 = vld [vmem:[%s14435_s15 + $0xe8] sm:$0xf] }
 0x32b   : > { %8255 = vmatpush.bf16.msrb.mxu0 %v11825_v50  ;;  %v13177_v54 = vld [vmem:[%s14435_s15 + $0x1304] sm:$0xf]  ;;  %v11774_v50 = vld [vmem:[%s14435_s15 + $0x1310] sm:$0xf0]  ;;  %v12600_v31 = vld [vmem:[%s14435_s15 + $0xf4] sm:$0xf0] }
 0x32c   : > { %8269 = vmatpush.bf16.msrb.mxu1 %v11953_v5  ;;  %v11921_v5 = vor.u32 %v13213_v6, %v11918_v38  ;;  %v13209_v34 = vld [vmem:[%s14435_s15 + $0x1404] sm:$0xf]  ;;  %v12030_v58 = vld [vmem:[%s14435_s15 + $0x1510] sm:$0xf0]  ;;  %v9588_v38 = vld [vmem:[%s14435_s15 + $0x1e8] sm:$0xf] }
 0x32d   : > { %8283 = vmatpush.bf16.msrb.mxu2 %v12081_v1  ;;  %v12049_v1 = vor.u32 %v13245_v21, %v12046_v49  ;;  %v13241_v46 = vld [vmem:[%s14435_s15 + $0x1504] sm:$0xf]  ;;  %v12158_v22 = vld [vmem:[%s14435_s15 + $0x1610] sm:$0xf0]  ;;  %v11905_v6 = vor.u32 %v13209_v34, %v11902_v42  ;;  %v12632_v21 = vld [vmem:[%s14435_s15 + $0x1f4] sm:$0xf0] }
 0x32e   : > { %8297 = vmatpush.bf16.msrb.mxu3 %v12209_v53  ;;  %v12177_v53 = vor.u32 %v13277_v37, %v12174_v27  ;;  %v13273_v0 = vld [vmem:[%s14435_s15 + $0x1604] sm:$0xf]  ;;  %v12398_v16 = vld [vmem:[%s14435_s15 + $0x17f0] sm:$0xf0]  ;;  %v9444_v34 = vld [vmem:[%s14435_s15 + $0xc8] sm:$0xf] }
 0x32f   : > { %8256 = vmatpush.bf16.msrb.mxu0 %v11809_v19  ;;  %v13333_v14 = vld [vmem:[%s14435_s15 + $0x17e4] sm:$0xf]  ;;  %v12161_v49 = vor.u32 %v13273_v0, %v12158_v22  ;;  %v12596_v42 = vld [vmem:[%s14435_s15 + $0xd4] sm:$0xf0] }
 0x330   : > { %8270 = vmatpush.bf16.msrb.mxu1 %v11937_v25  ;;  %v13365_v19 = vld [vmem:[%s14435_s15 + $0x18e4] sm:$0xf]  ;;  %v11777_v25 = vor.u32 %v13177_v54, %v11774_v50  ;;  %v12401_v37 = vor.u32 %v13333_v14, %v12398_v16  ;;  %v12382_v50 = vld [vmem:[%s14435_s15 + $0x17d0] sm:$0xf0]  ;;  %v9445_v22 = vor.u32 %v12596_v42, %v9444_v34  ;;  %v12620_v34 = vld [vmem:[%s14435_s15 + $0x194] sm:$0xf0] }
 0x331   : > { %8284 = vmatpush.bf16.msrb.mxu2 %v12065_v61  ;;  %v12526_v61 = vld [vmem:[%s14435_s15 + $0x18f0] sm:$0xf0]  ;;  %v13329_v54 = vld [vmem:[%s14435_s15 + $0x17c4] sm:$0xf] }
 0x332   : > { %8298 = vmatpush.bf16.msrb.mxu3 %v12193_v2  ;;  %v12033_v2 = vor.u32 %v13241_v46, %v12030_v58  ;;  %v12529_v27 = vor.u32 %v13365_v19, %v12526_v61  ;;  %v13361_v7 = vld [vmem:[%s14435_s15 + $0x18c4] sm:$0xf]  ;;  %v9572_v46 = vld [vmem:[%s14435_s15 + $0x1c8] sm:$0xf]  ;;  %v12385_v58 = vor.u32 %v13329_v54, %v12382_v50  ;;  %v12366_v16 = vld [vmem:[%s14435_s15 + $0x17b0] sm:$0xf0] }
 0x333   : > { %8257 = vmatpush.bf16.msrb.mxu0 %v11793_v32  ;;  %v9461_v32 = vor.u32 %v12600_v31, %v9460_v28  ;;  %v13325_v14 = vld [vmem:[%s14435_s15 + $0x17a4] sm:$0xf]  ;;  %v12494_v61 = vld [vmem:[%s14435_s15 + $0x18b0] sm:$0xf0]  ;;  %v9428_v28 = vld [vmem:[%s14435_s15 + $0xa8] sm:$0xf] }
 0x334   : > { %8271 = vmatpush.bf16.msrb.mxu1 %v11921_v5  ;;  %v9589_v5 = vor.u32 %v12632_v21, %v9588_v38  ;;  %v13357_v19 = vld [vmem:[%s14435_s15 + $0x18a4] sm:$0xf]  ;;  %v12592_v31 = vld [vmem:[%s14435_s15 + $0xb4] sm:$0xf0]  ;;  %v12478_v54 = vld [vmem:[%s14435_s15 + $0x1890] sm:$0xf0] }
 0x335   : > { %8285 = vmatpush.bf16.msrb.mxu2 %v12049_v1  ;;  %v12510_v1 = vld [vmem:[%s14435_s15 + $0x18d0] sm:$0xf0]  ;;  %v12497_v38 = vor.u32 %v13357_v19, %v12494_v61  ;;  %v9429_v21 = vor.u32 %v12592_v31, %v9428_v28  ;;  %v9412_v50 = vld [vmem:[%s14435_s15 + $0x88] sm:$0xf]  ;;  %v12616_v28 = vld [vmem:[%s14435_s15 + $0x174] sm:$0xf0] }
 0x336   : > { %8299 = vmatpush.bf16.msrb.mxu3 %v12177_v53  ;;  %v12628_v53 = vld [vmem:[%s14435_s15 + $0x1d4] sm:$0xf0]  ;;  %v12513_v0 = vor.u32 %v13361_v7, %v12510_v1  ;;  %v9556_v7 = vld [vmem:[%s14435_s15 + $0x1a8] sm:$0xf] }
 0x337   : > { %8258 = vmatpush.bf16.msrb.mxu0 %v11777_v25  ;;  %v9573_v25 = vor.u32 %v12628_v53, %v9572_v46  ;;  %v9540_v1 = vld [vmem:[%s14435_s15 + $0x188] sm:$0xf] }
 0x338   : > { %8272 = vmatpush.bf16.msrb.mxu1 %v11905_v6  ;;  %v12624_v6 = vld [vmem:[%s14435_s15 + $0x1b4] sm:$0xf0]  ;;  %v9396_v19 = vld [vmem:[%s14435_s15 + $0x68] sm:$0xf] }
 0x339   : > { %8286 = vmatpush.bf16.msrb.mxu2 %v12033_v2  ;;  %v12369_v2 = vor.u32 %v13325_v14, %v12366_v16  ;;  %v9541_v14 = vor.u32 %v12620_v34, %v9540_v1  ;;  %v12462_v16 = vld [vmem:[%s14435_s15 + $0x1870] sm:$0xf0]  ;;  %v9524_v61 = vld [vmem:[%s14435_s15 + $0x168] sm:$0xf] }
 0x33a   : > { %8300 = vmatpush.bf16.msrb.mxu3 %v12161_v49  ;;  %8259 = vmatmul.bf16.vlgmr.msrb.gmra.mxu0 %v14947_v12  ;;  %v13321_v49 = vld [vmem:[%s14435_s15 + $0x1784] sm:$0xf] }
 0x33b   : > { %8307 = vmatpush.bf16.msra.mxu0 %v12401_v37  ;;  %8273 = vmatmul.bf16.vlgmr.msrb.gmra.mxu1 %v15040_v35  ;;  %v12350_v37 = vld [vmem:[%s14435_s15 + $0x1790] sm:$0xf0]  ;;  %v12860_v35 = vld [vmem:[%s14435_s15 + $0x914] sm:$0xf0] }
 0x33c   : > { %8321 = vmatpush.bf16.msra.mxu1 %v12529_v27  ;;  %8287 = vmatmul.bf16.vlgmr.msrb.gmra.mxu2 %v15047_v41  ;;  %v13353_v27 = vld [vmem:[%s14435_s15 + $0x1884] sm:$0xf]  ;;  %v12353_v42 = vor.u32 %v13321_v49, %v12350_v37  ;;  %v9525_v49 = vor.u32 %v12616_v28, %v9524_v61  ;;  %v12446_v37 = vld [vmem:[%s14435_s15 + $0x1850] sm:$0xf0]  ;;  %v10340_v41 = vld [vmem:[%s14435_s15 + $0x7c8] sm:$0xf] }
 0x33d   : > { %8335 = vmatpush.bf16.msra.mxu2 %v9461_v32  ;;  %8301 = vmatmul.bf16.vlgmr.msrb.gmra.mxu3 %v15045_v39  ;;  %v9557_v32 = vor.u32 %v12624_v6, %v9556_v7  ;;  %v12481_v46 = vor.u32 %v13353_v27, %v12478_v54  ;;  %v9380_v27 = vld [vmem:[%s14435_s15 + $0x48] sm:$0xf]  ;;  %v13305_v61 = vld [vmem:[%s14435_s15 + $0x1704] sm:$0xf]  ;;  %v12286_v28 = vld [vmem:[%s14435_s15 + $0x1710] sm:$0xf0] }
 0x33e   : > { %8349 = vmatpush.bf16.msra.mxu3 %v9589_v5  ;;  %v12588_v5 = vld [vmem:[%s14435_s15 + $0x94] sm:$0xf0]  ;;  %v9508_v54 = vld [vmem:[%s14435_s15 + $0x148] sm:$0xf] }
 0x33f   : > { %8308 = vmatpush.bf16.msra.mxu0 %v12385_v58  ;;  %v9413_v53 = vor.u32 %v12588_v5, %v9412_v50  ;;  %v13317_v58 = vld [vmem:[%s14435_s15 + $0x1764] sm:$0xf]  ;;  %v12612_v50 = vld [vmem:[%s14435_s15 + $0x154] sm:$0xf0] }
 0x340   : > { %8322 = vmatpush.bf16.msra.mxu1 %v12513_v0  ;;  %v12334_v0 = vld [vmem:[%s14435_s15 + $0x1770] sm:$0xf0]  ;;  %v12788_v39 = vld [vmem:[%s14435_s15 + $0x6d4] sm:$0xf0] }
 0x341   : > { %8336 = vmatpush.bf16.msra.mxu2 %v9445_v22  ;;  %v13349_v22 = vld [vmem:[%s14435_s15 + $0x1864] sm:$0xf]  ;;  %v12337_v31 = vor.u32 %v13317_v58, %v12334_v0  ;;  %v9509_v58 = vor.u32 %v12612_v50, %v9508_v54  ;;  %v12430_v0 = vld [vmem:[%s14435_s15 + $0x1830] sm:$0xf0]  ;;  %v12664_v54 = vld [vmem:[%s14435_s15 + $0x2f4] sm:$0xf0] }
 0x342   : > { %8350 = vmatpush.bf16.msra.mxu3 %v9573_v25  ;;  %v12584_v25 = vld [vmem:[%s14435_s15 + $0x74] sm:$0xf0]  ;;  %v12465_v7 = vor.u32 %v13349_v22, %v12462_v16  ;;  %v9364_v22 = vld [vmem:[%s14435_s15 + $0x28] sm:$0xf] }
 0x343   : > { %8309 = vmatpush.bf16.msra.mxu0 %v12369_v2  ;;  %v9397_v6 = vor.u32 %v12584_v25, %v9396_v19  ;;  %v13313_v2 = vld [vmem:[%s14435_s15 + $0x1744] sm:$0xf]  ;;  %v9492_v16 = vld [vmem:[%s14435_s15 + $0x128] sm:$0xf]  ;;  %v12608_v19 = vld [vmem:[%s14435_s15 + $0x134] sm:$0xf0] }
 0x344   : > { %8323 = vmatpush.bf16.msra.mxu1 %v12497_v38  ;;  %v12318_v38 = vld [vmem:[%s14435_s15 + $0x1750] sm:$0xf0]  ;;  %v9844_v50 = vld [vmem:[%s14435_s15 + $0x3e8] sm:$0xf] }
 0x345   : > { %8337 = vmatpush.bf16.msra.mxu2 %v9429_v21  ;;  %v13345_v21 = vld [vmem:[%s14435_s15 + $0x1844] sm:$0xf]  ;;  %v12321_v5 = vor.u32 %v13313_v2, %v12318_v38  ;;  %v12414_v2 = vld [vmem:[%s14435_s15 + $0x1810] sm:$0xf0]  ;;  %v9348_v38 = vld [vmem:[%s14435_s15 + $0x8] sm:$0xf] }
 0x346   : > { %8351 = vmatpush.bf16.msra.mxu3 %v9557_v32  ;;  %v12580_v32 = vld [vmem:[%s14435_s15 + $0x54] sm:$0xf0]  ;;  %v12449_v1 = vor.u32 %v13345_v21, %v12446_v37  ;;  %v9493_v21 = vor.u32 %v12608_v19, %v9492_v16  ;;  %v9476_v37 = vld [vmem:[%s14435_s15 + $0x108] sm:$0xf] }
 0x347   : > { %8310 = vmatpush.bf16.msra.mxu0 %v12353_v42  ;;  %v9381_v34 = vor.u32 %v12580_v32, %v9380_v27  ;;  %v13309_v42 = vld [vmem:[%s14435_s15 + $0x1724] sm:$0xf]  ;;  %v12604_v27 = vld [vmem:[%s14435_s15 + $0x114] sm:$0xf0]  ;;  %v9716_v32 = vld [vmem:[%s14435_s15 + $0x2e8] sm:$0xf] }
 0x348   : > { %8324 = vmatpush.bf16.msra.mxu1 %v12481_v46  ;;  %v12302_v46 = vld [vmem:[%s14435_s15 + $0x1730] sm:$0xf0] }
 0x349   : > { %8338 = vmatpush.bf16.msra.mxu2 %v9413_v53  ;;  %v13341_v53 = vld [vmem:[%s14435_s15 + $0x1824] sm:$0xf]  ;;  %v12305_v25 = vor.u32 %v13309_v42, %v12302_v46  ;;  %v12728_v42 = vld [vmem:[%s14435_s15 + $0x4f4] sm:$0xf0] }
 0x34a   : > { %8352 = vmatpush.bf16.msra.mxu3 %v9541_v14  ;;  %v12576_v14 = vld [vmem:[%s14435_s15 + $0x34] sm:$0xf0] }
 0x34b   : > { %8311 = vmatpush.bf16.msra.mxu0 %v12337_v31  ;;  %v12433_v31 = vor.u32 %v13341_v53, %v12430_v0  ;;  %v12760_v0 = vld [vmem:[%s14435_s15 + $0x5f4] sm:$0xf0] }
 0x34c   : > { %8325 = vmatpush.bf16.msra.mxu1 %v12465_v7  ;;  %v9365_v7 = vor.u32 %v12576_v14, %v9364_v22  ;;  %v9477_v22 = vor.u32 %v12604_v27, %v9476_v37  ;;  %v9717_v14 = vor.u32 %v12664_v54, %v9716_v32  ;;  %v9684_v32 = vld [vmem:[%s14435_s15 + $0x2a8] sm:$0xf]  ;;  %v12656_v54 = vld [vmem:[%s14435_s15 + $0x2b4] sm:$0xf0] }
 0x34d   : > { %8339 = vmatpush.bf16.msra.mxu2 %v9397_v6  ;;  %v13337_v6 = vld [vmem:[%s14435_s15 + $0x1804] sm:$0xf] }
 0x34e   : > { %8353 = vmatpush.bf16.msra.mxu3 %v9525_v49  ;;  %v12572_v49 = vld [vmem:[%s14435_s15 + $0x14] sm:$0xf0]  ;;  %v12417_v46 = vor.u32 %v13337_v6, %v12414_v2  ;;  %v9956_v6 = vld [vmem:[%s14435_s15 + $0x4c8] sm:$0xf] }
 0x34f   : > { %8312 = vmatpush.bf16.msra.mxu0 %v12321_v5  ;;  %v12289_v5 = vor.u32 %v13305_v61, %v12286_v28  ;;  %v9349_v53 = vor.u32 %v12572_v49, %v9348_v38  ;;  %v12660_v61 = vld [vmem:[%s14435_s15 + $0x2d4] sm:$0xf0]  ;;  %v9828_v28 = vld [vmem:[%s14435_s15 + $0x3c8] sm:$0xf] }
 0x350   : > { %8326 = vmatpush.bf16.msra.mxu1 %v12449_v1  ;;  %v12696_v1 = vld [vmem:[%s14435_s15 + $0x3f4] sm:$0xf0]  ;;  %v10084_v38 = vld [vmem:[%s14435_s15 + $0x5c8] sm:$0xf] }
 0x351   : > { %8340 = vmatpush.bf16.msra.mxu2 %v9381_v34  ;;  %v9972_v34 = vld [vmem:[%s14435_s15 + $0x4e8] sm:$0xf]  ;;  %v9845_v16 = vor.u32 %v12696_v1, %v9844_v50  ;;  %v12724_v2 = vld [vmem:[%s14435_s15 + $0x4d4] sm:$0xf0] }
 0x352   : > { %8354 = vmatpush.bf16.msra.mxu3 %v9509_v58  ;;  %v10100_v58 = vld [vmem:[%s14435_s15 + $0x5e8] sm:$0xf]  ;;  %v9973_v19 = vor.u32 %v12728_v42, %v9972_v34  ;;  %v9957_v27 = vor.u32 %v12724_v2, %v9956_v6  ;;  %v12688_v1 = vld [vmem:[%s14435_s15 + $0x3b4] sm:$0xf0] }
 0x353   : > { %8313 = vmatpush.bf16.msra.mxu0 %v12305_v25  ;;  %v9700_v25 = vld [vmem:[%s14435_s15 + $0x2c8] sm:$0xf]  ;;  %v12720_v42 = vld [vmem:[%s14435_s15 + $0x4b4] sm:$0xf0] }
 0x354   : > { %8327 = vmatpush.bf16.msra.mxu1 %v12433_v31  ;;  %v10101_v31 = vor.u32 %v12760_v0, %v10100_v58  ;;  %v9701_v49 = vor.u32 %v12660_v61, %v9700_v25  ;;  %v9812_v50 = vld [vmem:[%s14435_s15 + $0x3a8] sm:$0xf]  ;;  %v9685_v58 = vor.u32 %v12656_v54, %v9684_v32  ;;  %v12684_v61 = vld [vmem:[%s14435_s15 + $0x394] sm:$0xf0]  ;;  %v15618_v32 = vpop.f32.mrf.mxu1 }
 0x355   : > { %8341 = vmatpush.bf16.msra.mxu2 %v9365_v7  ;;  %v12692_v7 = vld [vmem:[%s14435_s15 + $0x3d4] sm:$0xf0]  ;;  %v9940_v34 = vld [vmem:[%s14435_s15 + $0x4a8] sm:$0xf]  ;;  %v9813_v0 = vor.u32 %v12688_v1, %v9812_v50  ;;  %16676 = vst [vmem:[#allocation30_spill] sm:$0xff] %v15618_v32 }
 0x356   : > { %8355 = vmatpush.bf16.msra.mxu3 %v9493_v21  ;;  %v12756_v21 = vld [vmem:[%s14435_s15 + $0x5d4] sm:$0xf0]  ;;  %v9829_v37 = vor.u32 %v12692_v7, %v9828_v28  ;;  %v9924_v28 = vld [vmem:[%s14435_s15 + $0x488] sm:$0xf] }
 0x357   : > { %8314 = vmatpush.bf16.msra.mxu0 %v12289_v5  ;;  %v10085_v5 = vor.u32 %v12756_v21, %v10084_v38  ;;  %v10052_v7 = vld [vmem:[%s14435_s15 + $0x588] sm:$0xf]  ;;  %v12748_v6 = vld [vmem:[%s14435_s15 + $0x594] sm:$0xf0] }
 0x358   : > { %8328 = vmatpush.bf16.msra.mxu1 %v12417_v46  ;;  %v10068_v46 = vld [vmem:[%s14435_s15 + $0x5a8] sm:$0xf]  ;;  %v10053_v54 = vor.u32 %v12748_v6, %v10052_v7  ;;  %v12680_v50 = vld [vmem:[%s14435_s15 + $0x374] sm:$0xf0]  ;;  %v15633_v7 = vpop.f32.mrf.mxu2 }
 0x359   : > { %8342 = vmatpush.bf16.msra.mxu2 %v9349_v53  ;;  %v12752_v53 = vld [vmem:[%s14435_s15 + $0x5b4] sm:$0xf0]  ;;  %16677 = vst [vmem:[#allocation31_spill] sm:$0xff] %v15633_v7 }
 0x35a   : > { %8356 = vmatpush.bf16.msra.mxu3 %v9477_v22  ;;  %8315 = vmatmul.bf16.vlgmr.msra.gmra.mxu0 %v15053_v45  ;;  %v9941_v22 = vor.u32 %v12720_v42, %v9940_v34  ;;  %v10069_v25 = vor.u32 %v12752_v53, %v10068_v46  ;;  %v12712_v1 = vld [vmem:[%s14435_s15 + $0x474] sm:$0xf0]  ;;  %v10036_v34 = vld [vmem:[%s14435_s15 + $0x568] sm:$0xf] }
 0x35b   : > { %8363 = vmatpush.bf16.msrb.mxu0 %v9717_v14  ;;  %8329 = vmatmul.bf16.vlgmr.msra.gmra.mxu1 %v15131_v36  ;;  %v9668_v14 = vld [vmem:[%s14435_s15 + $0x288] sm:$0xf]  ;;  %v12744_v42 = vld [vmem:[%s14435_s15 + $0x574] sm:$0xf0] }
 0x35c   : > { %8377 = vmatpush.bf16.msrb.mxu1 %v9845_v16  ;;  %8343 = vmatmul.bf16.vlgmr.msra.gmra.mxu2 %v14528_v10  ;;  %v12652_v16 = vld [vmem:[%s14435_s15 + $0x294] sm:$0xf0]  ;;  %v10212_v36 = vld [vmem:[%s14435_s15 + $0x6c8] sm:$0xf] }
 0x35d   : > { %8391 = vmatpush.bf16.msrb.mxu2 %v9973_v19  ;;  %8357 = vmatmul.bf16.vlgmr.msra.gmra.mxu3 %v14552_v26  ;;  %v9796_v19 = vld [vmem:[%s14435_s15 + $0x388] sm:$0xf]  ;;  %v9669_v2 = vor.u32 %v12652_v16, %v9668_v14  ;;  %v10037_v16 = vor.u32 %v12744_v42, %v10036_v34  ;;  %v12704_v34 = vld [vmem:[%s14435_s15 + $0x434] sm:$0xf0] }
 0x35e   : > { %8405 = vmatpush.bf16.msrb.mxu3 %v10101_v31  ;;  %v12716_v31 = vld [vmem:[%s14435_s15 + $0x494] sm:$0xf0]  ;;  %v9797_v38 = vor.u32 %v12684_v61, %v9796_v19  ;;  %v9764_v14 = vld [vmem:[%s14435_s15 + $0x348] sm:$0xf] }
 0x35f   : > { %8364 = vmatpush.bf16.msrb.mxu0 %v9701_v49  ;;  %v9925_v21 = vor.u32 %v12716_v31, %v9924_v28  ;;  %v9652_v49 = vld [vmem:[%s14435_s15 + $0x268] sm:$0xf]  ;;  %v12676_v19 = vld [vmem:[%s14435_s15 + $0x354] sm:$0xf0] }
 0x360   : > { %8378 = vmatpush.bf16.msrb.mxu1 %v9829_v37  ;;  %v12648_v37 = vld [vmem:[%s14435_s15 + $0x274] sm:$0xf0]  ;;  %v10020_v28 = vld [vmem:[%s14435_s15 + $0x548] sm:$0xf] }
 0x361   : > { %8392 = vmatpush.bf16.msrb.mxu2 %v9957_v27  ;;  %v9780_v27 = vld [vmem:[%s14435_s15 + $0x368] sm:$0xf]  ;;  %v9653_v46 = vor.u32 %v12648_v37, %v9652_v49  ;;  %v12708_v61 = vld [vmem:[%s14435_s15 + $0x454] sm:$0xf0] }
 0x362   : > { %8406 = vmatpush.bf16.msrb.mxu3 %v10085_v5  ;;  %v9908_v5 = vld [vmem:[%s14435_s15 + $0x468] sm:$0xf]  ;;  %v9781_v53 = vor.u32 %v12680_v50, %v9780_v27  ;;  %v12740_v31 = vld [vmem:[%s14435_s15 + $0x554] sm:$0xf0] }
 0x363   : > { %8365 = vmatpush.bf16.msrb.mxu0 %v9685_v58  ;;  %v9909_v58 = vor.u32 %v12712_v1, %v9908_v5  ;;  %v9620_v49 = vld [vmem:[%s14435_s15 + $0x228] sm:$0xf]  ;;  %v12640_v37 = vld [vmem:[%s14435_s15 + $0x234] sm:$0xf0]  ;;  %v10021_v50 = vor.u32 %v12740_v31, %v10020_v28 }
 0x364   : > { %8379 = vmatpush.bf16.msrb.mxu1 %v9813_v0  ;;  %v9636_v0 = vld [vmem:[%s14435_s15 + $0x248] sm:$0xf]  ;;  %v12672_v5 = vld [vmem:[%s14435_s15 + $0x334] sm:$0xf0] }
 0x365   : > { %8393 = vmatpush.bf16.msrb.mxu2 %v9941_v22  ;;  %v12644_v22 = vld [vmem:[%s14435_s15 + $0x254] sm:$0xf0]  ;;  %v9748_v27 = vld [vmem:[%s14435_s15 + $0x328] sm:$0xf] }
 0x366   : > { %8407 = vmatpush.bf16.msrb.mxu3 %v10069_v25  ;;  %v9892_v25 = vld [vmem:[%s14435_s15 + $0x448] sm:$0xf]  ;;  %v9637_v6 = vor.u32 %v12644_v22, %v9636_v0  ;;  %v12636_v0 = vld [vmem:[%s14435_s15 + $0x214] sm:$0xf0]  ;;  %v9749_v22 = vor.u32 %v12672_v5, %v9748_v27 }
 0x367   : > { %8366 = vmatpush.bf16.msrb.mxu0 %v9669_v2  ;;  %v15635_v2 = vpop.f32.mrf.mxu3  ;;  %v9876_v1 = vld [vmem:[%s14435_s15 + $0x428] sm:$0xf]  ;;  %v12700_v28 = vld [vmem:[%s14435_s15 + $0x414] sm:$0xf0] }
 0x368   : > { %8380 = vmatpush.bf16.msrb.mxu1 %v9797_v38  ;;  %16678 = vst [vmem:[#allocation32_spill] sm:$0xff] %v15635_v2  ;;  %v9765_v38 = vor.u32 %v12676_v19, %v9764_v14  ;;  %v10004_v42 = vld [vmem:[%s14435_s15 + $0x528] sm:$0xf]  ;;  %v9877_v14 = vor.u32 %v12704_v34, %v9876_v1  ;;  %v12668_v19 = vld [vmem:[%s14435_s15 + $0x314] sm:$0xf0] }
 0x369   : > { %8394 = vmatpush.bf16.msrb.mxu2 %v9925_v21  ;;  %v9893_v21 = vor.u32 %v12708_v61, %v9892_v25  ;;  %v9860_v25 = vld [vmem:[%s14435_s15 + $0x408] sm:$0xf]  ;;  %v12824_v27 = vld [vmem:[%s14435_s15 + $0x7f4] sm:$0xf0] }
 0x36a   : > { %8408 = vmatpush.bf16.msrb.mxu3 %v10053_v54  ;;  %v15640_v54 = vpop.f32.mrf.mxu1  ;;  %v9988_v31 = vld [vmem:[%s14435_s15 + $0x508] sm:$0xf]  ;;  %v12856_v1 = vld [vmem:[%s14435_s15 + $0x8f4] sm:$0xf0] }
 0x36b   : > { %8367 = vmatpush.bf16.msrb.mxu0 %v9653_v46  ;;  %v12736_v46 = vld [vmem:[%s14435_s15 + $0x534] sm:$0xf0]  ;;  %v10356_v26 = vld [vmem:[%s14435_s15 + $0x7e8] sm:$0xf] }
 0x36c   : > { %8381 = vmatpush.bf16.msrb.mxu1 %v9781_v53  ;;  %v9621_v53 = vor.u32 %v12640_v37, %v9620_v49  ;;  %v10005_v61 = vor.u32 %v12736_v46, %v10004_v42  ;;  %v10228_v49 = vld [vmem:[%s14435_s15 + $0x6e8] sm:$0xf]  ;;  %v12792_v37 = vld [vmem:[%s14435_s15 + $0x6f4] sm:$0xf0]  ;;  %v9861_v42 = vor.u32 %v12700_v28, %v9860_v25  ;;  %v15675_v25 = vpop.f32.mrf.mxu0  ;;  %v10213_v28 = vor.u32 %v12788_v39, %v10212_v36 }
 0x36d   : > { %8395 = vmatpush.bf16.msrb.mxu2 %v9909_v58  ;;  %v9604_v58 = vld [vmem:[%s14435_s15 + $0x208] sm:$0xf]  ;;  %v12888_v10 = vld [vmem:[%s14435_s15 + $0x9f4] sm:$0xf0]  ;;  %16679 = vst [vmem:[#allocation33_spill] sm:$0xff] %v15675_v25 }
 0x36e   : > { %8409 = vmatpush.bf16.msrb.mxu3 %v10037_v16  ;;  %v9732_v16 = vld [vmem:[%s14435_s15 + $0x308] sm:$0xf] }
 0x36f   : > { %8368 = vmatpush.bf16.msrb.mxu0 %v9637_v6  ;;  %v12732_v6 = vld [vmem:[%s14435_s15 + $0x514] sm:$0xf0]  ;;  %v10484_v5 = vld [vmem:[%s14435_s15 + $0x8e8] sm:$0xf]  ;;  %v9733_v34 = vor.u32 %v12668_v19, %v9732_v16 }
 0x370   : > { %8382 = vmatpush.bf16.msrb.mxu1 %v9765_v38  ;;  %v15658_v38 = vpop.f32.mrf.mxu2  ;;  %v10612_v46 = vld [vmem:[%s14435_s15 + $0x9e8] sm:$0xf]  ;;  %v10485_v45 = vor.u32 %v12856_v1, %v10484_v5  ;;  %v12852_v19 = vld [vmem:[%s14435_s15 + $0x8d4] sm:$0xf0] }
 0x371   : > { %8396 = vmatpush.bf16.msrb.mxu2 %v9893_v21  ;;  %v9605_v21 = vor.u32 %v12636_v0, %v9604_v58  ;;  %v10229_v58 = vor.u32 %v12792_v37, %v10228_v49  ;;  %v10357_v0 = vor.u32 %v12824_v27, %v10356_v26  ;;  %v10468_v16 = vld [vmem:[%s14435_s15 + $0x8c8] sm:$0xf]  ;;  %v12784_v49 = vld [vmem:[%s14435_s15 + $0x6b4] sm:$0xf0] }
 0x372   : > { %8410 = vmatpush.bf16.msrb.mxu3 %v10021_v50  ;;  %v15663_v50 = vpop.f32.mrf.mxu3  ;;  %v15670_v12 = vpop.f32.mrf.mxu1  ;;  %v10596_v26 = vld [vmem:[%s14435_s15 + $0x9c8] sm:$0xf]  ;;  %v12816_v27 = vld [vmem:[%s14435_s15 + $0x7b4] sm:$0xf0] }
 0x373   : > { %8369 = vmatpush.bf16.msrb.mxu0 %v9621_v53  ;;  %v9989_v53 = vor.u32 %v12732_v6, %v9988_v31  ;;  %v10469_v31 = vor.u32 %v12852_v19, %v10468_v16  ;;  %v10196_v6 = vld [vmem:[%s14435_s15 + $0x6a8] sm:$0xf]  ;;  %v12848_v1 = vld [vmem:[%s14435_s15 + $0x8b4] sm:$0xf0] }
 0x374   : > { %8383 = vmatpush.bf16.msrb.mxu1 %v9749_v22  ;;  %v10613_v22 = vor.u32 %v12888_v10, %v10612_v46  ;;  %v10324_v37 = vld [vmem:[%s14435_s15 + $0x7a8] sm:$0xf]  ;;  %v10197_v36 = vor.u32 %v12784_v49, %v10196_v6  ;;  %v12844_v19 = vld [vmem:[%s14435_s15 + $0x894] sm:$0xf0] }
 0x375   : > { %8397 = vmatpush.bf16.msrb.mxu2 %v9877_v14  ;;  %v12820_v14 = vld [vmem:[%s14435_s15 + $0x7d4] sm:$0xf0]  ;;  %v10452_v5 = vld [vmem:[%s14435_s15 + $0x8a8] sm:$0xf] }
 0x376   : > { %8411 = vmatpush.bf16.msrb.mxu3 %v10005_v61  ;;  %v12884_v61 = vld [vmem:[%s14435_s15 + $0x9d4] sm:$0xf0]  ;;  %v10341_v10 = vor.u32 %v12820_v14, %v10340_v41  ;;  %v10580_v39 = vld [vmem:[%s14435_s15 + $0x9a8] sm:$0xf]  ;;  %v10453_v46 = vor.u32 %v12848_v1, %v10452_v5 }
 0x377   : > { %8370 = vmatpush.bf16.msrb.mxu0 %v9605_v21  ;;  %v10597_v21 = vor.u32 %v12884_v61, %v10596_v26  ;;  %v12880_v41 = vld [vmem:[%s14435_s15 + $0x9b4] sm:$0xf0]  ;;  %v10436_v16 = vld [vmem:[%s14435_s15 + $0x888] sm:$0xf]  ;;  %v15701_v26 = vpop.f32.mrf.mxu0 }
 0x378   : > { %8384 = vmatpush.bf16.msrb.mxu1 %v9733_v34  ;;  %v12812_v14 = vld [vmem:[%s14435_s15 + $0x794] sm:$0xf0]  ;;  %v10564_v61 = vld [vmem:[%s14435_s15 + $0x988] sm:$0xf]  ;;  %v10437_v49 = vor.u32 %v12844_v19, %v10436_v16 }
 0x379   : > { %8398 = vmatpush.bf16.msrb.mxu2 %v9861_v42  ;;  %v10325_v42 = vor.u32 %v12816_v27, %v10324_v37  ;;  %v10164_v37 = vld [vmem:[%s14435_s15 + $0x668] sm:$0xf]  ;;  %v12808_v1 = vld [vmem:[%s14435_s15 + $0x774] sm:$0xf0] }
 0x37a   : > { %8412 = vmatpush.bf16.msrb.mxu3 %v9989_v53  ;;  %8371 = vmatmul.bf16.vlgmr.msrb.gmra.mxu0 %v14536_v17  ;;  %v15693_v34 = vpop.f32.mrf.mxu3  ;;  %v10180_v53 = vld [vmem:[%s14435_s15 + $0x688] sm:$0xf]  ;;  %v12804_v19 = vld [vmem:[%s14435_s15 + $0x754] sm:$0xf0] }
 0x37b   : > { %8419 = vmatpush.bf16.msra.mxu0 %v10229_v58  ;;  %8385 = vmatmul.bf16.vlgmr.msrb.gmra.mxu1 %v14560_v33  ;;  %v12780_v58 = vld [vmem:[%s14435_s15 + $0x694] sm:$0xf0]  ;;  %v10292_v27 = vld [vmem:[%s14435_s15 + $0x768] sm:$0xf] }
 0x37c   : > { %8433 = vmatpush.bf16.msra.mxu1 %v10357_v0  ;;  %8399 = vmatmul.bf16.vlgmr.msrb.gmra.mxu2 %v14636_v55  ;;  %v10308_v0 = vld [vmem:[%s14435_s15 + $0x788] sm:$0xf]  ;;  %v12828_v33 = vld [vmem:[%s14435_s15 + $0x814] sm:$0xf0] }
 0x37d   : > { %8447 = vmatpush.bf16.msra.mxu2 %v10485_v45  ;;  %v15690_v45 = vpop.f32.mrf.mxu2  ;;  %8413 = vmatmul.bf16.vlgmr.msrb.gmra.mxu3 %v14643_v60  ;;  %v10309_v6 = vor.u32 %v12812_v14, %v10308_v0  ;;  %v10548_v60 = vld [vmem:[%s14435_s15 + $0x968] sm:$0xf]  ;;  %v12772_v0 = vld [vmem:[%s14435_s15 + $0x654] sm:$0xf0] }
 0x37e   : > { %8461 = vmatpush.bf16.msra.mxu3 %v10613_v22  ;;  %v10581_v22 = vor.u32 %v12880_v41, %v10580_v39  ;;  %v10420_v39 = vld [vmem:[%s14435_s15 + $0x868] sm:$0xf]  ;;  %v12840_v41 = vld [vmem:[%s14435_s15 + $0x874] sm:$0xf0] }
 0x37f   : > { %8420 = vmatpush.bf16.msra.mxu0 %v10213_v28  ;;  %v12876_v28 = vld [vmem:[%s14435_s15 + $0x994] sm:$0xf0]  ;;  %v10372_v55 = vld [vmem:[%s14435_s15 + $0x808] sm:$0xf] }
 0x380   : > { %8434 = vmatpush.bf16.msra.mxu1 %v10341_v10  ;;  %v15705_v10 = vpop.f32.mrf.mxu1  ;;  %v10565_v5 = vor.u32 %v12876_v28, %v10564_v61  ;;  %v10404_v61 = vld [vmem:[%s14435_s15 + $0x848] sm:$0xf]  ;;  %v12836_v28 = vld [vmem:[%s14435_s15 + $0x854] sm:$0xf0] }
 0x381   : > { %8448 = vmatpush.bf16.msra.mxu2 %v10469_v31  ;;  %v10181_v31 = vor.u32 %v12780_v58, %v10180_v53  ;;  %v10421_v53 = vor.u32 %v12840_v41, %v10420_v39  ;;  %v10148_v58 = vld [vmem:[%s14435_s15 + $0x648] sm:$0xf] }
 0x382   : > { %8462 = vmatpush.bf16.msra.mxu3 %v10597_v21  ;;  %v12776_v21 = vld [vmem:[%s14435_s15 + $0x674] sm:$0xf0]  ;;  %v10260_v39 = vld [vmem:[%s14435_s15 + $0x728] sm:$0xf] }
 0x383   : > { %8421 = vmatpush.bf16.msra.mxu0 %v10197_v36  ;;  %v12872_v36 = vld [vmem:[%s14435_s15 + $0x974] sm:$0xf0]  ;;  %v10868_v25 = vld [vmem:[%s14435_s15 + $0xbe8] sm:$0xf] }
 0x384   : > { %8435 = vmatpush.bf16.msra.mxu1 %v10325_v42  ;;  %v10165_v42 = vor.u32 %v12776_v21, %v10164_v37  ;;  %v10549_v16 = vor.u32 %v12872_v36, %v10548_v60  ;;  %v10149_v37 = vor.u32 %v12772_v0, %v10148_v58  ;;  %v15727_v21 = vpop.f32.mrf.mxu0  ;;  %v10388_v58 = vld [vmem:[%s14435_s15 + $0x828] sm:$0xf]  ;;  %v12832_v0 = vld [vmem:[%s14435_s15 + $0x834] sm:$0xf0] }
 0x385   : > { %8449 = vmatpush.bf16.msra.mxu2 %v10453_v46  ;;  %v10293_v46 = vor.u32 %v12808_v1, %v10292_v27  ;;  %v15718_v14 = vpop.f32.mrf.mxu2  ;;  %v10405_v27 = vor.u32 %v12836_v28, %v10404_v61  ;;  %v12768_v1 = vld [vmem:[%s14435_s15 + $0x634] sm:$0xf0]  ;;  %v10389_v28 = vor.u32 %v12832_v0, %v10388_v58  ;;  %v11124_v2 = vld [vmem:[%s14435_s15 + $0xde8] sm:$0xf] }
 0x386   : > { %8463 = vmatpush.bf16.msra.mxu3 %v10581_v22  ;;  %v10276_v22 = vld [vmem:[%s14435_s15 + $0x748] sm:$0xf]  ;;  %v12764_v61 = vld [vmem:[%s14435_s15 + $0x614] sm:$0xf0] }
 0x387   : > { %8422 = vmatpush.bf16.msra.mxu0 %v10181_v31  ;;  %v15723_v31 = vpop.f32.mrf.mxu3  ;;  %v10277_v60 = vor.u32 %v12804_v19, %v10276_v22  ;;  %v10116_v19 = vld [vmem:[%s14435_s15 + $0x608] sm:$0xf]  ;;  %v12984_v58 = vld [vmem:[%s14435_s15 + $0xcf4] sm:$0xf0] }
 0x388   : > { %8436 = vmatpush.bf16.msra.mxu1 %v10309_v6  ;;  %v10532_v6 = vld [vmem:[%s14435_s15 + $0x948] sm:$0xf]  ;;  %v15732_v41 = vpop.f32.mrf.mxu1 }
 0x389   : > { %8450 = vmatpush.bf16.msra.mxu2 %v10437_v49  ;;  %v12868_v49 = vld [vmem:[%s14435_s15 + $0x954] sm:$0xf0] }
 0x38a   : > { %8464 = vmatpush.bf16.msra.mxu3 %v10565_v5  ;;  %v10132_v5 = vld [vmem:[%s14435_s15 + $0x628] sm:$0xf]  ;;  %v10533_v36 = vor.u32 %v12868_v49, %v10532_v6  ;;  %v12796_v49 = vld [vmem:[%s14435_s15 + $0x714] sm:$0xf0] }
 0x38b   : > { %8423 = vmatpush.bf16.msra.mxu0 %v10165_v42  ;;  %v12800_v42 = vld [vmem:[%s14435_s15 + $0x734] sm:$0xf0]  ;;  %v10133_v22 = vor.u32 %v12768_v1, %v10132_v5  ;;  %v10244_v6 = vld [vmem:[%s14435_s15 + $0x708] sm:$0xf] }
 0x38c   : > { %8437 = vmatpush.bf16.msra.mxu1 %v10293_v46  ;;  %v10516_v46 = vld [vmem:[%s14435_s15 + $0x928] sm:$0xf]  ;;  %v12920_v1 = vld [vmem:[%s14435_s15 + $0xaf4] sm:$0xf0] }
 0x38d   : > { %8451 = vmatpush.bf16.msra.mxu2 %v10421_v53  ;;  %v12864_v53 = vld [vmem:[%s14435_s15 + $0x934] sm:$0xf0]  ;;  %v10740_v5 = vld [vmem:[%s14435_s15 + $0xae8] sm:$0xf] }
 0x38e   : > { %8465 = vmatpush.bf16.msra.mxu3 %v10549_v16  ;;  %v10261_v16 = vor.u32 %v12800_v42, %v10260_v39  ;;  %v10517_v17 = vor.u32 %v12864_v53, %v10516_v46  ;;  %v12952_v39 = vld [vmem:[%s14435_s15 + $0xbf4] sm:$0xf0]  ;;  %v10996_v42 = vld [vmem:[%s14435_s15 + $0xce8] sm:$0xf]  ;;  %v10245_v46 = vor.u32 %v12796_v49, %v10244_v6  ;;  %v10373_v53 = vor.u32 %v12828_v33, %v10372_v55 }
 0x38f   : > { %8424 = vmatpush.bf16.msra.mxu0 %v10149_v37  ;;  %v10500_v37 = vld [vmem:[%s14435_s15 + $0x908] sm:$0xf]  ;;  %v15755_v0 = vpop.f32.mrf.mxu3  ;;  %v10741_v4 = vor.u32 %v12920_v1, %v10740_v5  ;;  %v10869_v7 = vor.u32 %v12952_v39, %v10868_v25  ;;  %v10997_v32 = vor.u32 %v12984_v58, %v10996_v42  ;;  %v12948_v55 = vld [vmem:[%s14435_s15 + $0xbd4] sm:$0xf0]  ;;  %v10725_v25 = vor.u32 %v12916_v62, %v10724_v8 }
 0x390   : > { %8438 = vmatpush.bf16.msra.mxu1 %v10277_v60  ;;  %v15750_v60 = vpop.f32.mrf.mxu2  ;;  %v10980_v6 = vld [vmem:[%s14435_s15 + $0xcc8] sm:$0xf]  ;;  %v13012_v49 = vld [vmem:[%s14435_s15 + $0xdd4] sm:$0xf0]  ;;  %v7661_v58 = vadd.f32 %v15051_v44, %v15035_v29 }
 0x391   : > { %8452 = vmatpush.bf16.msra.mxu2 %v10405_v27  ;;  %v10117_v27 = vor.u32 %v12764_v61, %v10116_v19  ;;  %v15761_v19 = vpop.f32.mrf.mxu1  ;;  %v10501_v61 = vor.u32 %v12860_v35, %v10500_v37  ;;  %v11108_v35 = vld [vmem:[%s14435_s15 + $0xdc8] sm:$0xf]  ;;  %v12912_v37 = vld [vmem:[%s14435_s15 + $0xab4] sm:$0xf0] }
 0x392   : > { %8466 = vmatpush.bf16.msra.mxu3 %v10533_v36  ;;  %v15757_v36 = vpop.f32.mrf.mxu0  ;;  %v10836_v5 = vld [vmem:[%s14435_s15 + $0xba8] sm:$0xf]  ;;  %v11109_v39 = vor.u32 %v13012_v49, %v11108_v35  ;;  %v12976_v62 = vld [vmem:[%s14435_s15 + $0xcb4] sm:$0xf0] }
 0x393   : > { %8425 = vmatpush.bf16.msra.mxu0 %v10133_v22  ;;  %v13016_v22 = vld [vmem:[%s14435_s15 + $0xdf4] sm:$0xf0]  ;;  %v10964_v42 = vld [vmem:[%s14435_s15 + $0xca8] sm:$0xf] }
 0x394   : > { %8439 = vmatpush.bf16.msra.mxu1 %v10261_v16  ;;  %v10852_v16 = vld [vmem:[%s14435_s15 + $0xbc8] sm:$0xf]  ;;  %v11125_v33 = vor.u32 %v13016_v22, %v11124_v2  ;;  %v10965_v22 = vor.u32 %v12976_v62, %v10964_v42  ;;  %v12940_v44 = vld [vmem:[%s14435_s15 + $0xb94] sm:$0xf0] }
 0x395   : > { %8453 = vmatpush.bf16.msra.mxu2 %v10389_v28  ;;  %v8009_v28 = vadd.f32 %v15658_v38, %v15640_v54  ;;  %v10853_v54 = vor.u32 %v12948_v55, %v10852_v16  ;;  %v10708_v38 = vld [vmem:[%s14435_s15 + $0xaa8] sm:$0xf]  ;;  %v12908_v16 = vld [vmem:[%s14435_s15 + $0xa94] sm:$0xf0] }
 0x396   : > { %8467 = vmatpush.bf16.msra.mxu3 %v10517_v17  ;;  %v12980_v17 = vld [vmem:[%s14435_s15 + $0xcd4] sm:$0xf0]  ;;  %v11076_v35 = vld [vmem:[%s14435_s15 + $0xd88] sm:$0xf] }
 0x397   : > { %8426 = vmatpush.bf16.msra.mxu0 %v10117_v27  ;;  %v10981_v2 = vor.u32 %v12980_v17, %v10980_v6  ;;  %v8023_v1 = vadd.f32 %v15663_v50, %v8009_v28  ;;  %v15783_v8 = vpop.f32.mrf.mxu3  ;;  %v10709_v50 = vor.u32 %v12912_v37, %v10708_v38  ;;  %v10820_v28 = vld [vmem:[%s14435_s15 + $0xb88] sm:$0xf]  ;;  %v12972_v17 = vld [vmem:[%s14435_s15 + $0xc94] sm:$0xf0] }
 0x398   : > { %8440 = vmatpush.bf16.msra.mxu1 %v10245_v46  ;;  %v15777_v27 = vpop.f32.mrf.mxu2  ;;  %v10948_v6 = vld [vmem:[%s14435_s15 + $0xc88] sm:$0xf]  ;;  %v13004_v49 = vld [vmem:[%s14435_s15 + $0xd94] sm:$0xf0] }
 0x399   : > { %8454 = vmatpush.bf16.msra.mxu2 %v10373_v53  ;;  %v15798_v55 = vpop.f32.mrf.mxu1  ;;  %v10676_v38 = vld [vmem:[%s14435_s15 + $0xa68] sm:$0xf]  ;;  %v12904_v37 = vld [vmem:[%s14435_s15 + $0xa74] sm:$0xf0] }
 0x39a   : > { %8468 = vmatpush.bf16.msra.mxu3 %v10501_v61  ;;  %8427 = vmatmul.bf16.vlgmr.msra.gmra.mxu0 %v14641_v59  ;;  %v15792_v46 = vpop.f32.mrf.mxu0  ;;  %v10692_v61 = vld [vmem:[%s14435_s15 + $0xa88] sm:$0xf]  ;;  %v12936_v42 = vld [vmem:[%s14435_s15 + $0xb74] sm:$0xf0] }
 0x39b   : > { %8475 = vmatpush.bf16.msrb.mxu0 %v10741_v4  ;;  %v12944_v4 = vld [vmem:[%s14435_s15 + $0xbb4] sm:$0xf0]  ;;  %8441 = vmatmul.bf16.vlgmr.msra.gmra.mxu1 %v14647_v63  ;;  %v10932_v62 = vld [vmem:[%s14435_s15 + $0xc68] sm:$0xf] }
 0x39c   : > { %8489 = vmatpush.bf16.msrb.mxu1 %v10869_v7  ;;  %8455 = vmatmul.bf16.vlgmr.msra.gmra.mxu2 %v14736_v47  ;;  %v13008_v7 = vld [vmem:[%s14435_s15 + $0xdb4] sm:$0xf0]  ;;  %v10837_v53 = vor.u32 %v12944_v4, %v10836_v5  ;;  %v10804_v5 = vld [vmem:[%s14435_s15 + $0xb68] sm:$0xf]  ;;  %v11077_v4 = vor.u32 %v13004_v49, %v11076_v35 }
 0x39d   : > { %8503 = vmatpush.bf16.msrb.mxu2 %v10997_v32  ;;  %v11092_v32 = vld [vmem:[%s14435_s15 + $0xda8] sm:$0xf]  ;;  %8469 = vmatmul.bf16.vlgmr.msra.gmra.mxu3 %v14743_v52  ;;  %v12964_v35 = vld [vmem:[%s14435_s15 + $0xc54] sm:$0xf0] }
 0x39e   : > { %8517 = vmatpush.bf16.msrb.mxu3 %v11125_v33  ;;  %v8037_v33 = vadd.f32 %v15701_v26, %v8023_v1  ;;  %v11093_v29 = vor.u32 %v13008_v7, %v11092_v32  ;;  %v7675_v26 = vadd.f32 %v15067_v11, %v7661_v58  ;;  %v8011_v1 = vadd.f32 %v15690_v45, %v15670_v12  ;;  %v12968_v11 = vld [vmem:[%s14435_s15 + $0xc74] sm:$0xf0]  ;;  %v11060_v32 = vld [vmem:[%s14435_s15 + $0xd68] sm:$0xf] }
 0x39f   : > { %8476 = vmatpush.bf16.msrb.mxu0 %v10725_v25  ;;  %v10693_v25 = vor.u32 %v12908_v16, %v10692_v61  ;;  %v13000_v7 = vld [vmem:[%s14435_s15 + $0xd74] sm:$0xf0]  ;;  %v10677_v58 = vor.u32 %v12904_v37, %v10676_v38  ;;  %v15820_v12 = vpop.f32.mrf.mxu3  ;;  %v10660_v61 = vld [vmem:[%s14435_s15 + $0xa48] sm:$0xf] }
 0x3a0   : > { %8490 = vmatpush.bf16.msrb.mxu1 %v10853_v54  ;;  %v10821_v54 = vor.u32 %v12940_v44, %v10820_v28  ;;  %v12900_v16 = vld [vmem:[%s14435_s15 + $0xa54] sm:$0xf0]  ;;  %v10788_v28 = vld [vmem:[%s14435_s15 + $0xb48] sm:$0xf]  ;;  %v11061_v44 = vor.u32 %v13000_v7, %v11060_v32 }
 0x3a1   : > { %8504 = vmatpush.bf16.msrb.mxu2 %v10981_v2  ;;  %v10949_v2 = vor.u32 %v12972_v17, %v10948_v6  ;;  %v12932_v6 = vld [vmem:[%s14435_s15 + $0xb54] sm:$0xf0]  ;;  %v10916_v17 = vld [vmem:[%s14435_s15 + $0xc48] sm:$0xf] }
 0x3a2   : > { %8518 = vmatpush.bf16.msrb.mxu3 %v11109_v39  ;;  %v8051_v39 = vadd.f32 %v15705_v10, %v8037_v33  ;;  %v15822_v45 = vpop.f32.mrf.mxu0  ;;  %v10805_v10 = vor.u32 %v12936_v42, %v10804_v5  ;;  %v8025_v33 = vadd.f32 %v15693_v34, %v8011_v1  ;;  %v10644_v38 = vld [vmem:[%s14435_s15 + $0xa28] sm:$0xf]  ;;  %v12896_v37 = vld [vmem:[%s14435_s15 + $0xa34] sm:$0xf0] }
 0x3a3   : > { %8477 = vmatpush.bf16.msrb.mxu0 %v10709_v50  ;;  %v15817_v50 = vpop.f32.mrf.mxu2  ;;  %v10772_v5 = vld [vmem:[%s14435_s15 + $0xb28] sm:$0xf] }
 0x3a4   : > { %8491 = vmatpush.bf16.msrb.mxu1 %v10837_v53  ;;  %v7689_v53 = vadd.f32 %v15072_v20, %v7675_v26  ;;  %v15829_v20 = vpop.f32.mrf.mxu1  ;;  %v12996_v26 = vld [vmem:[%s14435_s15 + $0xd54] sm:$0xf0]  ;;  %v8039_v34 = vadd.f32 %v15727_v21, %v8025_v33 }
 0x3a5   : > { %8505 = vmatpush.bf16.msrb.mxu2 %v10965_v22  ;;  %v10933_v22 = vor.u32 %v12968_v11, %v10932_v62  ;;  %v12960_v21 = vld [vmem:[%s14435_s15 + $0xc34] sm:$0xf0]  ;;  %v11028_v62 = vld [vmem:[%s14435_s15 + $0xd28] sm:$0xf] }
 0x3a6   : > { %8519 = vmatpush.bf16.msrb.mxu3 %v11093_v29  ;;  %v8065_v29 = vadd.f32 %v15718_v14, %v8051_v39  ;;  %v7703_v49 = vadd.f32 %v15136_v43, %v7689_v53  ;;  %v10661_v14 = vor.u32 %v12900_v16, %v10660_v61  ;;  %v12928_v39 = vld [vmem:[%s14435_s15 + $0xb34] sm:$0xf0]  ;;  %v8053_v32 = vadd.f32 %v15732_v41, %v8039_v34  ;;  %v10628_v53 = vld [vmem:[%s14435_s15 + $0xa08] sm:$0xf] }
 0x3a7   : > { %8478 = vmatpush.bf16.msrb.mxu0 %v10693_v25  ;;  %v11044_v25 = vld [vmem:[%s14435_s15 + $0xd48] sm:$0xf]  ;;  %v12992_v11 = vld [vmem:[%s14435_s15 + $0xd34] sm:$0xf0]  ;;  %v10773_v41 = vor.u32 %v12928_v39, %v10772_v5 }
 0x3a8   : > { %8492 = vmatpush.bf16.msrb.mxu1 %v10821_v54  ;;  %v10789_v54 = vor.u32 %v12932_v6, %v10788_v28  ;;  %v8079_v43 = vadd.f32 %v15723_v31, %v8065_v29  ;;  %v11045_v1 = vor.u32 %v12996_v26, %v11044_v25  ;;  %v7717_v42 = vadd.f32 %v15140_v40, %v7703_v49  ;;  %v10756_v61 = vld [vmem:[%s14435_s15 + $0xb08] sm:$0xf]  ;;  %v12924_v16 = vld [vmem:[%s14435_s15 + $0xb14] sm:$0xf0] }
 0x3a9   : > { %8506 = vmatpush.bf16.msrb.mxu2 %v10949_v2  ;;  %v10917_v2 = vor.u32 %v12964_v35, %v10916_v17  ;;  %v10645_v31 = vor.u32 %v12896_v37, %v10644_v38  ;;  %v10884_v28 = vld [vmem:[%s14435_s15 + $0xc08] sm:$0xf]  ;;  %v8067_v33 = vadd.f32 %v15750_v60, %v8053_v32  ;;  %v11029_v29 = vor.u32 %v12992_v11, %v11028_v62  ;;  %v12988_v6 = vld [vmem:[%s14435_s15 + $0xd14] sm:$0xf0] }
 0x3aa   : > { %8520 = vmatpush.bf16.msrb.mxu3 %v11077_v4  ;;  %v10900_v4 = vld [vmem:[%s14435_s15 + $0xc28] sm:$0xf]  ;;  %v8093_v7 = vadd.f32 %v15757_v36, %v8079_v43  ;;  %v7731_v40 = vadd.f32 %v15157_v23, %v7717_v42  ;;  %v12956_v23 = vld [vmem:[%s14435_s15 + $0xc14] sm:$0xf0]  ;;  %v15864_v17 = vpop.f32.mrf.mxu0  ;;  %v10757_v37 = vor.u32 %v12924_v16, %v10756_v61 }
 0x3ab   : > { %8479 = vmatpush.bf16.msrb.mxu0 %v10677_v58  ;;  %v15850_v58 = vpop.f32.mrf.mxu2  ;;  %v10901_v36 = vor.u32 %v12960_v21, %v10900_v4  ;;  %v11252_v35 = vld [vmem:[%s14435_s15 + $0xee8] sm:$0xf]  ;;  %v13048_v49 = vld [vmem:[%s14435_s15 + $0xef4] sm:$0xf0]  ;;  %v10885_v5 = vor.u32 %v12956_v23, %v10884_v28 }
 0x3ac   : > { %8493 = vmatpush.bf16.msrb.mxu1 %v10805_v10  ;;  %v12892_v10 = vld [vmem:[%s14435_s15 + $0xa14] sm:$0xf0]  ;;  %v11380_v25 = vld [vmem:[%s14435_s15 + $0xfe8] sm:$0xf]  ;;  %v8107_v26 = vadd.f32 %v15761_v19, %v8093_v7  ;;  %v15870_v34 = vpop.f32.mrf.mxu1  ;;  %v7745_v38 = vadd.f32 %v15162_v30, %v7731_v40  ;;  %v8081_v19 = vadd.f32 %v15755_v0, %v8067_v33  ;;  %v11253_v21 = vor.u32 %v13048_v49, %v11252_v35 }
 0x3ad   : > { %8507 = vmatpush.bf16.msrb.mxu2 %v10933_v22  ;;  %v15855_v22 = vpop.f32.mrf.mxu3  ;;  %v13080_v60 = vld [vmem:[%s14435_s15 + $0xff4] sm:$0xf0]  ;;  %v11636_v43 = vld [vmem:[%s14435_s15 + $0x11e8] sm:$0xf] }
 0x3ae   : > { %8521 = vmatpush.bf16.msrb.mxu3 %v11061_v44  ;;  %v11012_v44 = vld [vmem:[%s14435_s15 + $0xd08] sm:$0xf]  ;;  %v8121_v39 = vadd.f32 %v15777_v27, %v8107_v26  ;;  %v7759_v30 = vadd.f32 %v15215_v9, %v7745_v38  ;;  %v11381_v42 = vor.u32 %v13080_v60, %v11380_v25  ;;  %v13044_v32 = vld [vmem:[%s14435_s15 + $0xed4] sm:$0xf0]  ;;  %v16680_v60 = vld [vmem:[#allocation21_spill] sm:$0xff] }
 0x3af   : > { %8480 = vmatpush.bf16.msrb.mxu0 %v10661_v14  ;;  %v10629_v14 = vor.u32 %v12892_v10, %v10628_v53  ;;  %v11013_v4 = vor.u32 %v12988_v6, %v11012_v44  ;;  %v11236_v11 = vld [vmem:[%s14435_s15 + $0xec8] sm:$0xf]  ;;  %v13076_v0 = vld [vmem:[%s14435_s15 + $0xfd4] sm:$0xf0] }
 0x3b0   : > { %8494 = vmatpush.bf16.msrb.mxu1 %v10789_v54  ;;  %v11508_v54 = vld [vmem:[%s14435_s15 + $0x10e8] sm:$0xf]  ;;  %v13108_v40 = vld [vmem:[%s14435_s15 + $0x10d4] sm:$0xf0]  ;;  %v8135_v9 = vadd.f32 %v15783_v8, %v8121_v39  ;;  %v11237_v61 = vor.u32 %v13044_v32, %v11236_v11 }
 0x3b1   : > { %8508 = vmatpush.bf16.msrb.mxu2 %v10917_v2  ;;  %v13112_v2 = vld [vmem:[%s14435_s15 + $0x10f4] sm:$0xf0]  ;;  %v11364_v7 = vld [vmem:[%s14435_s15 + $0xfc8] sm:$0xf] }
 0x3b2   : > { %8522 = vmatpush.bf16.msrb.mxu3 %v11045_v1  ;;  %v13144_v1 = vld [vmem:[%s14435_s15 + $0x11f4] sm:$0xf0]  ;;  %v11509_v62 = vor.u32 %v13112_v2, %v11508_v54  ;;  %v11492_v10 = vld [vmem:[%s14435_s15 + $0x10c8] sm:$0xf]  ;;  %v15896_v28 = vpop.f32.mrf.mxu0  ;;  %v11365_v33 = vor.u32 %v13076_v0, %v11364_v7  ;;  %v16682_v0 = vld [vmem:[#allocation23_spill] sm:$0xff] }
 0x3b3   : > { %8481 = vmatpush.bf16.msrb.mxu0 %v10645_v31  ;;  %v8095_v31 = vadd.f32 %v15792_v46, %v8081_v19  ;;  %v11637_v53 = vor.u32 %v13144_v1, %v11636_v43  ;;  %v11620_v27 = vld [vmem:[%s14435_s15 + $0x11c8] sm:$0xf]  ;;  %v7773_v46 = vadd.f32 %v15219_v15, %v7759_v30  ;;  %v13040_v23 = vld [vmem:[%s14435_s15 + $0xeb4] sm:$0xf0]  ;;  %v8149_v15 = vadd.f32 %v15822_v45, %v8135_v9 }
 0x3b4   : > { %8495 = vmatpush.bf16.msrb.mxu1 %v10773_v41  ;;  %v13140_v41 = vld [vmem:[%s14435_s15 + $0x11d4] sm:$0xf0]  ;;  %v11220_v8 = vld [vmem:[%s14435_s15 + $0xea8] sm:$0xf]  ;;  %v15903_v35 = vpop.f32.mrf.mxu1 }
 0x3b5   : > { %8509 = vmatpush.bf16.msrb.mxu2 %v10901_v36  ;;  %v15891_v36 = vpop.f32.mrf.mxu2  ;;  %v15894_v16 = vpop.f32.mrf.mxu3  ;;  %v11348_v44 = vld [vmem:[%s14435_s15 + $0xfa8] sm:$0xf]  ;;  %v8109_v6 = vadd.f32 %v15798_v55, %v8095_v31  ;;  %v11621_v49 = vor.u32 %v13140_v41, %v11620_v27  ;;  %v13072_v25 = vld [vmem:[%s14435_s15 + $0xfb4] sm:$0xf0]  ;;  %v7787_v54 = vadd.f32 %v16680_v60, %v7773_v46  ;;  %v11221_v38 = vor.u32 %v13040_v23, %v11220_v8 }
 0x3b6   : > { %8523 = vmatpush.bf16.msrb.mxu3 %v11029_v29  ;;  %v11493_v29 = vor.u32 %v13108_v40, %v11492_v10  ;;  %v11476_v26 = vld [vmem:[%s14435_s15 + $0x10a8] sm:$0xf]  ;;  %v13136_v45 = vld [vmem:[%s14435_s15 + $0x11b4] sm:$0xf0]  ;;  %v8163_v39 = vadd.f32 %v15829_v20, %v8149_v15 }
 0x3b7   : > { %8482 = vmatpush.bf16.msrb.mxu0 %v10629_v14  ;;  %v13104_v14 = vld [vmem:[%s14435_s15 + $0x10b4] sm:$0xf0]  ;;  %v11604_v55 = vld [vmem:[%s14435_s15 + $0x11a8] sm:$0xf]  ;;  %v8123_v2 = vadd.f32 %v15817_v50, %v8109_v6 }
 0x3b8   : > { %8496 = vmatpush.bf16.msrb.mxu1 %v10757_v37  ;;  %v11349_v37 = vor.u32 %v13072_v25, %v11348_v44  ;;  %v11204_v43 = vld [vmem:[%s14435_s15 + $0xe88] sm:$0xf]  ;;  %v13036_v1 = vld [vmem:[%s14435_s15 + $0xe94] sm:$0xf0]  ;;  %v8177_v31 = vadd.f32 %v15850_v58, %v8163_v39 }
 0x3b9   : > { %8510 = vmatpush.bf16.msrb.mxu2 %v10885_v5  ;;  %v11477_v5 = vor.u32 %v13104_v14, %v11476_v26  ;;  %v11332_v19 = vld [vmem:[%s14435_s15 + $0xf88] sm:$0xf]  ;;  %v13100_v30 = vld [vmem:[%s14435_s15 + $0x1094] sm:$0xf0]  ;;  %v8137_v7 = vadd.f32 %v15820_v12, %v8123_v2  ;;  %v11205_v20 = vor.u32 %v13036_v1, %v11204_v43  ;;  %v16684_v1 = vld [vmem:[#allocation25_spill] sm:$0xff] }
 0x3ba   : > { %8524 = vmatpush.bf16.msrb.mxu3 %v11013_v4  ;;  %8483 = vmatmul.bf16.vlgmr.msrb.gmra.mxu0 %v14741_v51  ;;  %v11605_v4 = vor.u32 %v13136_v45, %v11604_v55  ;;  %v11460_v50 = vld [vmem:[%s14435_s15 + $0x1088] sm:$0xf]  ;;  %v13132_v32 = vld [vmem:[%s14435_s15 + $0x1194] sm:$0xf0]  ;;  %v8206_v23 = vpop.f32.mrf.mxu0  ;;  %v8191_v15 = vadd.f32 %v15855_v22, %v8177_v31 }
 0x3bb   : > { %8531 = vmatpush.bf16.msra.mxu0 %v11253_v21  ;;  %8497 = vmatmul.bf16.vlgmr.msrb.gmra.mxu1 %v14747_v56  ;;  %v13068_v21 = vld [vmem:[%s14435_s15 + $0xf94] sm:$0xf0]  ;;  %v11588_v11 = vld [vmem:[%s14435_s15 + $0x1188] sm:$0xf]  ;;  %v11461_v41 = vor.u32 %v13100_v30, %v11460_v50 }
 0x3bc   : > { %8545 = vmatpush.bf16.msra.mxu1 %v11381_v42  ;;  %8511 = vmatmul.bf16.vlgmr.msrb.gmra.mxu2 %v14836_v48  ;;  %v16681_v42 = vld [vmem:[#allocation22_spill] sm:$0xff]  ;;  %v11333_v27 = vor.u32 %v13068_v21, %v11332_v19  ;;  %v13032_v9 = vld [vmem:[%s14435_s15 + $0xe74] sm:$0xf0]  ;;  %v11589_v46 = vor.u32 %v13132_v32, %v11588_v11  ;;  %v8205_v2 = vadd.f32 %v15896_v28, %v8191_v15 }
 0x3bd   : > { %8559 = vmatpush.bf16.msra.mxu2 %v11509_v62  ;;  %8525 = vmatmul.bf16.vlgmr.msrb.gmra.mxu3 %v14843_v57  ;;  %v7801_v62 = vadd.f32 %v16681_v42, %v7787_v54  ;;  %v15931_v40 = vpop.f32.mrf.mxu3  ;;  %v11188_v12 = vld [vmem:[%s14435_s15 + $0xe68] sm:$0xf]  ;;  %v13096_v8 = vld [vmem:[%s14435_s15 + $0x1074] sm:$0xf0] }
 0x3be   : > { %8573 = vmatpush.bf16.msra.mxu3 %v11637_v53  ;;  %v15928_v53 = vpop.f32.mrf.mxu2  ;;  %v11316_v58 = vld [vmem:[%s14435_s15 + $0xf68] sm:$0xf]  ;;  %v13128_v6 = vld [vmem:[%s14435_s15 + $0x1174] sm:$0xf0]  ;;  %v8219_v11 = vadd.f32 %v15903_v35, %v8205_v2 }
 0x3bf   : > { %8532 = vmatpush.bf16.msra.mxu0 %v11237_v61  ;;  %v7815_v10 = vadd.f32 %v16682_v0, %v7801_v62  ;;  %v8151_v61 = vadd.f32 %v15864_v17, %v8137_v7  ;;  %v11572_v44 = vld [vmem:[%s14435_s15 + $0x1168] sm:$0xf]  ;;  %v11189_v17 = vor.u32 %v13032_v9, %v11188_v12  ;;  %v16683_v25 = vld [vmem:[#allocation24_spill] sm:$0xff] }
 0x3c0   : > { %8546 = vmatpush.bf16.msra.mxu1 %v11365_v33  ;;  %v13064_v33 = vld [vmem:[%s14435_s15 + $0xf74] sm:$0xf0]  ;;  %v11172_v54 = vld [vmem:[%s14435_s15 + $0xe48] sm:$0xf] }
 0x3c1   : > { %8560 = vmatpush.bf16.msra.mxu2 %v11493_v29  ;;  %v11444_v29 = vld [vmem:[%s14435_s15 + $0x1068] sm:$0xf]  ;;  %v7829_v26 = vadd.f32 %v16683_v25, %v7815_v10  ;;  %v11317_v14 = vor.u32 %v13064_v33, %v11316_v58  ;;  %v13028_v55 = vld [vmem:[%s14435_s15 + $0xe54] sm:$0xf0]  ;;  %v8165_v22 = vadd.f32 %v15870_v34, %v8151_v61  ;;  %v8233_v58 = vadd.f32 %v15928_v53, %v8219_v11 }
 0x3c2   : > { %8574 = vmatpush.bf16.msra.mxu3 %v11621_v49  ;;  %v15943_v49 = vpop.f32.mrf.mxu1  ;;  %v11445_v60 = vor.u32 %v13096_v8, %v11444_v29  ;;  %v11300_v45 = vld [vmem:[%s14435_s15 + $0xf48] sm:$0xf]  ;;  %v13092_v43 = vld [vmem:[%s14435_s15 + $0x1054] sm:$0xf0]  ;;  %v11173_v34 = vor.u32 %v13028_v55, %v11172_v54 }
 0x3c3   : > { %8533 = vmatpush.bf16.msra.mxu0 %v11221_v38  ;;  %v11573_v38 = vor.u32 %v13128_v6, %v11572_v44  ;;  %v7843_v19 = vadd.f32 %v16684_v1, %v7829_v26  ;;  %v11556_v39 = vld [vmem:[%s14435_s15 + $0x1148] sm:$0xf]  ;;  %v8179_v21 = vadd.f32 %v15891_v36, %v8165_v22  ;;  %v13024_v42 = vld [vmem:[%s14435_s15 + $0xe34] sm:$0xf0] }
 0x3c4   : > { %8547 = vmatpush.bf16.msra.mxu1 %v11349_v37  ;;  %v13060_v37 = vld [vmem:[%s14435_s15 + $0xf54] sm:$0xf0]  ;;  %v11156_v30 = vld [vmem:[%s14435_s15 + $0xe28] sm:$0xf] }
 0x3c5   : > { %8561 = vmatpush.bf16.msra.mxu2 %v11477_v5  ;;  %v11428_v5 = vld [vmem:[%s14435_s15 + $0x1048] sm:$0xf]  ;;  %v11301_v28 = vor.u32 %v13060_v37, %v11300_v45  ;;  %v13056_v36 = vld [vmem:[%s14435_s15 + $0xf34] sm:$0xf0]  ;;  %v8193_v35 = vadd.f32 %v15894_v16, %v8179_v21  ;;  %v8247_v45 = vadd.f32 %v15931_v40, %v8233_v58 }
 0x3c6   : > { %8575 = vmatpush.bf16.msra.mxu3 %v11605_v4  ;;  %v13124_v4 = vld [vmem:[%s14435_s15 + $0x1154] sm:$0xf0]  ;;  %v11429_v50 = vor.u32 %v13092_v43, %v11428_v5  ;;  %v11284_v62 = vld [vmem:[%s14435_s15 + $0xf28] sm:$0xf]  ;;  %v8234_v32 = vpop.f32.mrf.mxu2 }
 0x3c7   : > { %8534 = vmatpush.bf16.msra.mxu0 %v11205_v20  ;;  %v11557_v7 = vor.u32 %v13124_v4, %v11556_v39  ;;  %v11412_v31 = vld [vmem:[%s14435_s15 + $0x1028] sm:$0xf]  ;;  %v13088_v20 = vld [vmem:[%s14435_s15 + $0x1034] sm:$0xf0]  ;;  %v11285_v44 = vor.u32 %v13056_v36, %v11284_v62 }
 0x3c8   : > { %8548 = vmatpush.bf16.msra.mxu1 %v11333_v27  ;;  %v16685_v0 = vld [vmem:[#allocation26_spill] sm:$0xff]  ;;  %v15966_v27 = vpop.f32.mrf.mxu3  ;;  %v13120_v9 = vld [vmem:[%s14435_s15 + $0x1134] sm:$0xf0]  ;;  %v11413_v6 = vor.u32 %v13088_v20, %v11412_v31 }
 0x3c9   : > { %8562 = vmatpush.bf16.msra.mxu2 %v11461_v41  ;;  %v7857_v10 = vadd.f32 %v16685_v0, %v7843_v19  ;;  %v8260_v41 = vpop.f32.mrf.mxu0  ;;  %v11540_v12 = vld [vmem:[%s14435_s15 + $0x1128] sm:$0xf]  ;;  %v13020_v29 = vld [vmem:[%s14435_s15 + $0xe14] sm:$0xf0] }
 0x3ca   : > { %8576 = vmatpush.bf16.msra.mxu3 %v11589_v46  ;;  %v8274_v61 = vpop.f32.mrf.mxu1  ;;  %v11157_v46 = vor.u32 %v13024_v42, %v11156_v30  ;;  %v11140_v33 = vld [vmem:[%s14435_s15 + $0xe08] sm:$0xf]  ;;  %v13052_v53 = vld [vmem:[%s14435_s15 + $0xf14] sm:$0xf0]  ;;  %v11541_v25 = vor.u32 %v13120_v9, %v11540_v12  ;;  %v8261_v40 = vadd.f32 %v8260_v41, %v8247_v45 }
 0x3cb   : > { %8535 = vmatpush.bf16.msra.mxu0 %v11189_v17  ;;  %v7871_v8 = vadd.f32 %v15373_v13, %v7857_v10  ;;  %v11268_v16 = vld [vmem:[%s14435_s15 + $0xf08] sm:$0xf]  ;;  %v8207_v17 = vadd.f32 %v8206_v23, %v8193_v35  ;;  %v13084_v26 = vld [vmem:[%s14435_s15 + $0x1014] sm:$0xf0]  ;;  %v11141_v22 = vor.u32 %v13020_v29, %v11140_v33 }
 0x3cc   : > { %8549 = vmatpush.bf16.msra.mxu1 %v11317_v14  ;;  %v11396_v15 = vld [vmem:[%s14435_s15 + $0x1008] sm:$0xf]  ;;  %v13176_v54 = vld [vmem:[%s14435_s15 + $0x12f4] sm:$0xf0]  ;;  %v11269_v23 = vor.u32 %v13052_v53, %v11268_v16  ;;  %v8275_v9 = vadd.f32 %v8274_v61, %v8261_v40  ;;  %v16688_v53 = vld [vmem:[#allocation11_spill] sm:$0xff] }
 0x3cd   : > { %8563 = vmatpush.bf16.msra.mxu2 %v11445_v60  ;;  %v11524_v14 = vld [vmem:[%s14435_s15 + $0x1108] sm:$0xf]  ;;  %v13116_v60 = vld [vmem:[%s14435_s15 + $0x1114] sm:$0xf0]  ;;  %v7885_v5 = vadd.f32 %v15377_v18, %v7871_v8  ;;  %v11397_v43 = vor.u32 %v13084_v26, %v11396_v15  ;;  %v8221_v39 = vadd.f32 %v15943_v49, %v8207_v17  ;;  %v16686_v18 = vld [vmem:[#allocation27_spill] sm:$0xff] }
 0x3ce   : > { %8577 = vmatpush.bf16.msra.mxu3 %v11573_v38  ;;  %v11764_v13 = vld [vmem:[%s14435_s15 + $0x12e8] sm:$0xf]  ;;  %v13208_v2 = vld [vmem:[%s14435_s15 + $0x13f4] sm:$0xf0]  ;;  %v8288_v4 = vpop.f32.mrf.mxu2  ;;  %v11525_v21 = vor.u32 %v13116_v60, %v11524_v14 }
 0x3cf   : > { %8536 = vmatpush.bf16.msra.mxu0 %v11173_v34  ;;  %v11892_v55 = vld [vmem:[%s14435_s15 + $0x13e8] sm:$0xf]  ;;  %v13240_v37 = vld [vmem:[%s14435_s15 + $0x14f4] sm:$0xf0]  ;;  %v11765_v34 = vor.u32 %v13176_v54, %v11764_v13  ;;  %v8235_v36 = vadd.f32 %v8234_v32, %v8221_v39  ;;  %v8289_v16 = vadd.f32 %v8288_v4, %v8275_v9 }
 0x3d0   : > { %8550 = vmatpush.bf16.msra.mxu1 %v11301_v28  ;;  %v12020_v38 = vld [vmem:[%s14435_s15 + $0x14e8] sm:$0xf]  ;;  %v13272_v19 = vld [vmem:[%s14435_s15 + $0x15f4] sm:$0xf0]  ;;  %v7899_v28 = vadd.f32 %v16686_v18, %v7885_v5  ;;  %v11893_v30 = vor.u32 %v13208_v2, %v11892_v55 }
 0x3d1   : > { %8564 = vmatpush.bf16.msra.mxu2 %v11429_v50  ;;  %v12148_v1 = vld [vmem:[%s14435_s15 + $0x15e8] sm:$0xf]  ;;  %v8302_v50 = vpop.f32.mrf.mxu3  ;;  %v12021_v42 = vor.u32 %v13240_v37, %v12020_v38  ;;  %v13172_v11 = vld [vmem:[%s14435_s15 + $0x12d4] sm:$0xf0]  ;;  %v8262_v10 = vpop.f32.mrf.mxu0  ;;  %v8249_v61 = vadd.f32 %v15966_v27, %v8235_v36 }
 0x3d2   : > { %8578 = vmatpush.bf16.msra.mxu3 %v11557_v7  ;;  %v11748_v62 = vld [vmem:[%s14435_s15 + $0x12c8] sm:$0xf]  ;;  %v12149_v49 = vor.u32 %v13272_v19, %v12148_v1  ;;  %v13204_v31 = vld [vmem:[%s14435_s15 + $0x13d4] sm:$0xf0]  ;;  %v8276_v35 = vpop.f32.mrf.mxu1  ;;  %v8303_v5 = vadd.f32 %v8302_v50, %v8289_v16 }
 0x3d3   : > { %8537 = vmatpush.bf16.msra.mxu0 %v11157_v46  ;;  %v11876_v7 = vld [vmem:[%s14435_s15 + $0x13c8] sm:$0xf]  ;;  %v13236_v0 = vld [vmem:[%s14435_s15 + $0x14d4] sm:$0xf0]  ;;  %v11749_v32 = vor.u32 %v13172_v11, %v11748_v62  ;;  %v8263_v27 = vadd.f32 %v8262_v10, %v8249_v61  ;;  %v16692_v11 = vld [vmem:[#allocation31_spill] sm:$0xff] }
 0x3d4   : > { %8551 = vmatpush.bf16.msra.mxu1 %v11285_v44  ;;  %v12004_v20 = vld [vmem:[%s14435_s15 + $0x14c8] sm:$0xf]  ;;  %v13268_v12 = vld [vmem:[%s14435_s15 + $0x15d4] sm:$0xf0]  ;;  %v11877_v33 = vor.u32 %v13204_v31, %v11876_v7 }
 0x3d5   : > { %8565 = vmatpush.bf16.msra.mxu2 %v11413_v6  ;;  %v12132_v41 = vld [vmem:[%s14435_s15 + $0x15c8] sm:$0xf]  ;;  %v16687_v58 = vld [vmem:[#allocation28_spill] sm:$0xff]  ;;  %v12005_v29 = vor.u32 %v13236_v0, %v12004_v20 }
 0x3d6   : > { %8579 = vmatpush.bf16.msra.mxu3 %v11541_v25  ;;  %v7913_v46 = vadd.f32 %v16687_v58, %v7899_v28  ;;  %v11732_v8 = vld [vmem:[%s14435_s15 + $0x12a8] sm:$0xf]  ;;  %v13168_v44 = vld [vmem:[%s14435_s15 + $0x12b4] sm:$0xf0]  ;;  %v12133_v15 = vor.u32 %v13268_v12, %v12132_v41 }
 0x3d7   : > { %8538 = vmatpush.bf16.msra.mxu0 %v11141_v22  ;;  %v11860_v6 = vld [vmem:[%s14435_s15 + $0x13a8] sm:$0xf]  ;;  %v13200_v17 = vld [vmem:[%s14435_s15 + $0x13b4] sm:$0xf0]  ;;  %v11733_v45 = vor.u32 %v13168_v44, %v11732_v8 }
 0x3d8   : > { %8552 = vmatpush.bf16.msra.mxu1 %v11269_v23  ;;  %v11988_v25 = vld [vmem:[%s14435_s15 + $0x14a8] sm:$0xf]  ;;  %v13232_v26 = vld [vmem:[%s14435_s15 + $0x14b4] sm:$0xf0]  ;;  %v7927_v14 = vadd.f32 %v15452_v24, %v7913_v46  ;;  %v11861_v22 = vor.u32 %v13200_v17, %v11860_v6  ;;  %v8290_v23 = vpop.f32.mrf.mxu2 }
 0x3d9   : > { %8566 = vmatpush.bf16.msra.mxu2 %v11397_v43  ;;  %v16689_v60 = vld [vmem:[#allocation12_spill] sm:$0xff]  ;;  %v12116_v13 = vld [vmem:[%s14435_s15 + $0x15a8] sm:$0xf]  ;;  %v11989_v24 = vor.u32 %v13232_v26, %v11988_v25 }
 0x3da   : > { %8580 = vmatpush.bf16.msra.mxu3 %v11525_v21  ;;  %8539 = vmatmul.bf16.vlgmr.msra.gmra.mxu0 %v16688_v53  ;;  %v13264_v54 = vld [vmem:[%s14435_s15 + $0x15b4] sm:$0xf0]  ;;  %v16690_v55 = vld [vmem:[#allocation14_spill] sm:$0xff]  ;;  %v8304_v21 = vpop.f32.mrf.mxu3  ;;  %v8330_v62 = vpop.f32.mrf.mxu1 }
 0x3db   : > { %8587 = vmatpush.bf16.msrb.mxu0 %v11765_v34  ;;  %8553 = vmatmul.bf16.vlgmr.msra.gmra.mxu1 %v16689_v60  ;;  %v11716_v2 = vld [vmem:[%s14435_s15 + $0x1288] sm:$0xf]  ;;  %v13164_v38 = vld [vmem:[%s14435_s15 + $0x1294] sm:$0xf0]  ;;  %v12117_v43 = vor.u32 %v13264_v54, %v12116_v13  ;;  %v8316_v34 = vpop.f32.mrf.mxu0 }
 0x3dc   : > { %8601 = vmatpush.bf16.msrb.mxu1 %v11893_v30  ;;  %8567 = vmatmul.bf16.vlgmr.msra.gmra.mxu2 %v14936_v3  ;;  %v11844_v37 = vld [vmem:[%s14435_s15 + $0x1388] sm:$0xf]  ;;  %v13196_v1 = vld [vmem:[%s14435_s15 + $0x1394] sm:$0xf0]  ;;  %v8277_v30 = vadd.f32 %v8276_v35, %v8263_v27  ;;  %v11717_v50 = vor.u32 %v13164_v38, %v11716_v2  ;;  %v16695_v2 = vld [vmem:[#allocation33_spill] sm:$0xff] }
 0x3dd   : > { %8615 = vmatpush.bf16.msrb.mxu2 %v12021_v42  ;;  %8581 = vmatmul.bf16.vlgmr.msra.gmra.mxu3 %v16690_v55  ;;  %v11972_v19 = vld [vmem:[%s14435_s15 + $0x1488] sm:$0xf]  ;;  %v13228_v39 = vld [vmem:[%s14435_s15 + $0x1494] sm:$0xf0]  ;;  %v8317_v42 = vadd.f32 %v8316_v34, %v8303_v5  ;;  %v11845_v36 = vor.u32 %v13196_v1, %v11844_v37 }
 0x3de   : > { %8629 = vmatpush.bf16.msrb.mxu3 %v12149_v49  ;;  %v16691_v40 = vld [vmem:[#allocation30_spill] sm:$0xff]  ;;  %v13260_v28 = vld [vmem:[%s14435_s15 + $0x1594] sm:$0xf0]  ;;  %v11973_v49 = vor.u32 %v13228_v39, %v11972_v19  ;;  %v8291_v10 = vadd.f32 %v8290_v23, %v8277_v30 }
 0x3df   : > { %8588 = vmatpush.bf16.msrb.mxu0 %v11749_v32  ;;  %v7941_v4 = vadd.f32 %v16691_v40, %v7927_v14  ;;  %v12100_v18 = vld [vmem:[%s14435_s15 + $0x1588] sm:$0xf]  ;;  %v13160_v20 = vld [vmem:[%s14435_s15 + $0x1274] sm:$0xf0]  ;;  %v8331_v12 = vadd.f32 %v8330_v62, %v8317_v42 }
 0x3e0   : > { %8602 = vmatpush.bf16.msrb.mxu1 %v11877_v33  ;;  %v11700_v31 = vld [vmem:[%s14435_s15 + $0x1268] sm:$0xf]  ;;  %v12101_v41 = vor.u32 %v13260_v28, %v12100_v18  ;;  %v13192_v9 = vld [vmem:[%s14435_s15 + $0x1374] sm:$0xf0]  ;;  %v16693_v33 = vld [vmem:[#allocation29_spill] sm:$0xff]  ;;  %v8305_v14 = vadd.f32 %v8304_v21, %v8291_v10 }
 0x3e1   : > { %8616 = vmatpush.bf16.msrb.mxu2 %v12005_v29  ;;  %v7955_v7 = vadd.f32 %v16692_v11, %v7941_v4  ;;  %v11828_v0 = vld [vmem:[%s14435_s15 + $0x1368] sm:$0xf]  ;;  %v13224_v32 = vld [vmem:[%s14435_s15 + $0x1474] sm:$0xf0]  ;;  %v9062_v29 = vmax.f32 %v16693_v33, 0.0  ;;  %v9063_v8 = vmax.f32 %v8331_v12, 0.0  ;;  %v11701_v44 = vor.u32 %v13160_v20, %v11700_v31 }
 0x3e2   : > { %8630 = vmatpush.bf16.msrb.mxu3 %v12133_v15  ;;  %v11956_v35 = vld [vmem:[%s14435_s15 + $0x1468] sm:$0xf]  ;;  %v13256_v46 = vld [vmem:[%s14435_s15 + $0x1574] sm:$0xf0]  ;;  %v11829_v16 = vor.u32 %v13192_v9, %v11828_v0  ;;  %v8332_v39 = vpop.f32.mrf.mxu1 }
 0x3e3   : > { %8589 = vmatpush.bf16.msrb.mxu0 %v11733_v45  ;;  %v12084_v58 = vld [vmem:[%s14435_s15 + $0x1568] sm:$0xf]  ;;  %v16694_v6 = vld [vmem:[#allocation32_spill] sm:$0xff]  ;;  %v11957_v15 = vor.u32 %v13224_v32, %v11956_v35  ;;  %v9070_v13 = vpack.c.bf16 %v9063_v8, %v9062_v29  ;;  %v8318_v37 = vpop.f32.mrf.mxu0 }
 0x3e4   : > { %8603 = vmatpush.bf16.msrb.mxu1 %v11861_v22  ;;  %v7969_v61 = vadd.f32 %v16694_v6, %v7955_v7  ;;  %v11684_v17 = vld [vmem:[%s14435_s15 + $0x1248] sm:$0xf]  ;;  %v13156_v25 = vld [vmem:[%s14435_s15 + $0x1254] sm:$0xf0]  ;;  %v12085_v54 = vor.u32 %v13256_v46, %v12084_v58  ;;  %v8319_v1 = vadd.f32 %v8318_v37, %v8305_v14 }
 0x3e5   : > { %8617 = vmatpush.bf16.msrb.mxu2 %v11989_v24  ;;  %v11812_v26 = vld [vmem:[%s14435_s15 + $0x1348] sm:$0xf]  ;;  %v13188_v27 = vld [vmem:[%s14435_s15 + $0x1354] sm:$0xf0]  ;;  %v8344_v24 = vpop.f32.mrf.mxu2  ;;  %9074 = vst [vmem:[%s16050_s9] sm:$0xff] %v9070_v13  ;;  %v11685_v19 = vor.u32 %v13156_v25, %v11684_v17  ;;  %v12598_v13 = vld [vmem:[%s14435_s15 + $0xec] sm:$0xf] }
 0x3e6   : > { %8631 = vmatpush.bf16.msrb.mxu3 %v12117_v43  ;;  %v11940_v45 = vld [vmem:[%s14435_s15 + $0x1448] sm:$0xf]  ;;  %v13220_v22 = vld [vmem:[%s14435_s15 + $0x1454] sm:$0xf0]  ;;  %v7983_v38 = vadd.f32 %v16695_v2, %v7969_v61  ;;  %v8358_v43 = vpop.f32.mrf.mxu3  ;;  %v11813_v4 = vor.u32 %v13188_v27, %v11812_v26  ;;  %v8333_v42 = vadd.f32 %v8332_v39, %v8319_v1  ;;  %v9446_v39 = vld [vmem:[%s14435_s15 + $0xd8] sm:$0xf0] }
 0x3e7   : > { %8590 = vmatpush.bf16.msrb.mxu0 %v11717_v50  ;;  %v12068_v5 = vld [vmem:[%s14435_s15 + $0x1548] sm:$0xf]  ;;  %v13252_v23 = vld [vmem:[%s14435_s15 + $0x1554] sm:$0xf0]  ;;  %v16053_v40 = vadd.f32 %v8358_v43, %v8344_v24  ;;  %v11941_v21 = vor.u32 %v13220_v22, %v11940_v45 }
 0x3e8   : > { %8604 = vmatpush.bf16.msrb.mxu1 %v11845_v36  ;;  %v11668_v34 = vld [vmem:[%s14435_s15 + $0x1228] sm:$0xf]  ;;  %v13152_v18 = vld [vmem:[%s14435_s15 + $0x1234] sm:$0xf0]  ;;  %v12069_v30 = vor.u32 %v13252_v23, %v12068_v5  ;;  %v9066_v31 = vmax.f32 %v7983_v38, 0.0  ;;  %v9067_v20 = vmax.f32 %v8333_v42, 0.0 }
 0x3e9   : > { %8618 = vmatpush.bf16.msrb.mxu2 %v11973_v49  ;;  %v11796_v28 = vld [vmem:[%s14435_s15 + $0x1328] sm:$0xf]  ;;  %v13184_v50 = vld [vmem:[%s14435_s15 + $0x1334] sm:$0xf0]  ;;  %v11669_v0 = vor.u32 %v13152_v18, %v11668_v34  ;;  %v16696_v42 = vld [vmem:[#allocation13_spill] sm:$0xff] }
 0x3ea   : > { %8632 = vmatpush.bf16.msrb.mxu3 %v12101_v41  ;;  %v11924_v62 = vld [vmem:[%s14435_s15 + $0x1428] sm:$0xf]  ;;  %v13216_v11 = vld [vmem:[%s14435_s15 + $0x1434] sm:$0xf0]  ;;  %v11797_v12 = vor.u32 %v13184_v50, %v11796_v28  ;;  %v9072_v46 = vpack.c.bf16 %v9067_v20, %v9066_v31  ;;  %v12590_v31 = vld [vmem:[%s14435_s15 + $0xac] sm:$0xf] }
 0x3eb   : > { %8591 = vmatpush.bf16.msrb.mxu0 %v11701_v44  ;;  %v12052_v7 = vld [vmem:[%s14435_s15 + $0x1528] sm:$0xf]  ;;  %v13248_v36 = vld [vmem:[%s14435_s15 + $0x1534] sm:$0xf0]  ;;  %v11925_v9 = vor.u32 %v13216_v11, %v11924_v62  ;;  %v9430_v20 = vld [vmem:[%s14435_s15 + $0xb8] sm:$0xf0] }
 0x3ec   : > { %8605 = vmatpush.bf16.msrb.mxu1 %v11829_v16  ;;  %v11652_v49 = vld [vmem:[%s14435_s15 + $0x1208] sm:$0xf]  ;;  %v13148_v10 = vld [vmem:[%s14435_s15 + $0x1214] sm:$0xf0]  ;;  %v12053_v33 = vor.u32 %v13248_v36, %v12052_v7  ;;  %9076 = vst [vmem:[%s16050_s9 + $0x10] sm:$0xff] %v9072_v46 }
 0x3ed   : > { %8619 = vmatpush.bf16.msrb.mxu2 %v11957_v15  ;;  %v11780_v41 = vld [vmem:[%s14435_s15 + $0x1308] sm:$0xf]  ;;  %v13180_v35 = vld [vmem:[%s14435_s15 + $0x1314] sm:$0xf0]  ;;  %v11653_v15 = vor.u32 %v13148_v10, %v11652_v49  ;;  %v16698_v49 = vld [vmem:[#allocation15_spill] sm:$0xff] }
 0x3ee   : > { %8633 = vmatpush.bf16.msrb.mxu3 %v12085_v54  ;;  %v11908_v32 = vld [vmem:[%s14435_s15 + $0x1408] sm:$0xf]  ;;  %v13212_v58 = vld [vmem:[%s14435_s15 + $0x1414] sm:$0xf0]  ;;  %v11781_v26 = vor.u32 %v13180_v35, %v11780_v41  ;;  %v9462_v54 = vld [vmem:[%s14435_s15 + $0xf8] sm:$0xf0]  ;;  %v8346_v41 = vpop.f32.mrf.mxu2  ;;  %v8360_v35 = vpop.f32.mrf.mxu3 }
 0x3ef   : > { %8592 = vmatpush.bf16.msrb.mxu0 %v11685_v19  ;;  %v12036_v29 = vld [vmem:[%s14435_s15 + $0x1508] sm:$0xf]  ;;  %v13244_v8 = vld [vmem:[%s14435_s15 + $0x1514] sm:$0xf0]  ;;  %v11909_v14 = vor.u32 %v13212_v58, %v11908_v32  ;;  %v9465_v5 = vor.u32 %v12598_v13, %v9462_v54  ;;  %v12594_v19 = vld [vmem:[%s14435_s15 + $0xcc] sm:$0xf] }
 0x3f0   : > { %8606 = vmatpush.bf16.msrb.mxu1 %v11813_v4  ;;  %v12276_v44 = vld [vmem:[%s14435_s15 + $0x16e8] sm:$0xf]  ;;  %v13304_v6 = vld [vmem:[%s14435_s15 + $0x16f4] sm:$0xf0]  ;;  %v12037_v27 = vor.u32 %v13244_v8, %v12036_v29  ;;  %v9449_v50 = vor.u32 %v12594_v19, %v9446_v39 }
 0x3f1   : > { %8620 = vmatpush.bf16.msrb.mxu2 %v11941_v21  ;;  %v12404_v61 = vld [vmem:[%s14435_s15 + $0x17e8] sm:$0xf]  ;;  %v13336_v16 = vld [vmem:[%s14435_s15 + $0x17f4] sm:$0xf0]  ;;  %v12277_v45 = vor.u32 %v13304_v6, %v12276_v44 }
 0x3f2   : > { %8634 = vmatpush.bf16.msrb.mxu3 %v12069_v30  ;;  %v12532_v17 = vld [vmem:[%s14435_s15 + $0x18e8] sm:$0xf]  ;;  %v13368_v25 = vld [vmem:[%s14435_s15 + $0x18f4] sm:$0xf0]  ;;  %v12405_v22 = vor.u32 %v13336_v16, %v12404_v61  ;;  %v12586_v61 = vld [vmem:[%s14435_s15 + $0x8c] sm:$0xf] }
 0x3f3   : > { %8593 = vmatpush.bf16.msrb.mxu0 %v11669_v0  ;;  %v12533_v24 = vor.u32 %v13368_v25, %v12532_v17  ;;  %v12260_v2 = vld [vmem:[%s14435_s15 + $0x16c8] sm:$0xf]  ;;  %v13300_v38 = vld [vmem:[%s14435_s15 + $0x16d4] sm:$0xf0]  ;;  %v9414_v16 = vld [vmem:[%s14435_s15 + $0x98] sm:$0xf0] }
 0x3f4   : > { %8607 = vmatpush.bf16.msrb.mxu1 %v11797_v12  ;;  %v12388_v37 = vld [vmem:[%s14435_s15 + $0x17c8] sm:$0xf]  ;;  %v13332_v23 = vld [vmem:[%s14435_s15 + $0x17d4] sm:$0xf0]  ;;  %v12261_v4 = vor.u32 %v13300_v38, %v12260_v2  ;;  %v12582_v38 = vld [vmem:[%s14435_s15 + $0x6c] sm:$0xf] }
 0x3f5   : > { %8621 = vmatpush.bf16.msrb.mxu2 %v11925_v9  ;;  %v12516_v43 = vld [vmem:[%s14435_s15 + $0x18c8] sm:$0xf]  ;;  %v13364_v1 = vld [vmem:[%s14435_s15 + $0x18d4] sm:$0xf0]  ;;  %v12389_v21 = vor.u32 %v13332_v23, %v12388_v37  ;;  %v9398_v37 = vld [vmem:[%s14435_s15 + $0x78] sm:$0xf0] }
 0x3f6   : > { %8635 = vmatpush.bf16.msrb.mxu3 %v12053_v33  ;;  %v12517_v34 = vor.u32 %v13364_v1, %v12516_v43  ;;  %v12244_v18 = vld [vmem:[%s14435_s15 + $0x16a8] sm:$0xf]  ;;  %v13296_v28 = vld [vmem:[%s14435_s15 + $0x16b4] sm:$0xf0]  ;;  %v9433_v33 = vor.u32 %v12590_v31, %v9430_v20  ;;  %v9382_v31 = vld [vmem:[%s14435_s15 + $0x58] sm:$0xf0] }
 0x3f7   : > { %8594 = vmatpush.bf16.msrb.mxu0 %v11653_v15  ;;  %v12372_v30 = vld [vmem:[%s14435_s15 + $0x17a8] sm:$0xf]  ;;  %v13328_v62 = vld [vmem:[%s14435_s15 + $0x17b4] sm:$0xf0]  ;;  %v12245_v10 = vor.u32 %v13296_v28, %v12244_v18  ;;  %v8372_v6 = vpop.f32.mrf.mxu0 }
 0x3f8   : > { %8608 = vmatpush.bf16.msrb.mxu1 %v11781_v26  ;;  %v12500_v11 = vld [vmem:[%s14435_s15 + $0x18a8] sm:$0xf]  ;;  %v13360_v7 = vld [vmem:[%s14435_s15 + $0x18b4] sm:$0xf0]  ;;  %v12373_v12 = vor.u32 %v13328_v62, %v12372_v30  ;;  %v8373_v15 = vadd.f32 %v8372_v6, %v16053_v40  ;;  %v8386_v25 = vpop.f32.mrf.mxu1 }
 0x3f9   : > { %8622 = vmatpush.bf16.msrb.mxu2 %v11909_v14  ;;  %v16697_v36 = vld [vmem:[#allocation16_spill] sm:$0xff]  ;;  %v16699_v0 = vld [vmem:[#allocation18_spill] sm:$0xff]  ;;  %v12501_v9 = vor.u32 %v13360_v7, %v12500_v11 }
 0x3fa   : > { %8636 = vmatpush.bf16.msrb.mxu3 %v12037_v27  ;;  %8595 = vmatmul.bf16.vlgmr.msrb.gmra.mxu0 %v16696_v42  ;;  %v12228_v32 = vld [vmem:[%s14435_s15 + $0x1688] sm:$0xf]  ;;  %v13292_v58 = vld [vmem:[%s14435_s15 + $0x1694] sm:$0xf0]  ;;  %v12578_v7 = vld [vmem:[%s14435_s15 + $0x4c] sm:$0xf] }
 0x3fb   : > { %8643 = vmatpush.bf16.msra.mxu0 %v12277_v45  ;;  %8609 = vmatmul.bf16.vlgmr.msrb.gmra.mxu1 %v16698_v49  ;;  %v12356_v46 = vld [vmem:[%s14435_s15 + $0x1788] sm:$0xf]  ;;  %v13324_v29 = vld [vmem:[%s14435_s15 + $0x1794] sm:$0xf0]  ;;  %v12229_v17 = vor.u32 %v13292_v58, %v12228_v32  ;;  %v9417_v45 = vor.u32 %v12586_v61, %v9414_v16  ;;  %v12574_v61 = vld [vmem:[%s14435_s15 + $0x2c] sm:$0xf] }
 0x3fc   : > { %8657 = vmatpush.bf16.msra.mxu1 %v12405_v22  ;;  %8623 = vmatmul.bf16.vlgmr.msrb.gmra.mxu2 %v16697_v36  ;;  %v12484_v8 = vld [vmem:[%s14435_s15 + $0x1888] sm:$0xf]  ;;  %v13356_v44 = vld [vmem:[%s14435_s15 + $0x1894] sm:$0xf0]  ;;  %v12357_v26 = vor.u32 %v13324_v29, %v12356_v46  ;;  %v8387_v22 = vadd.f32 %v8386_v25, %v8373_v15  ;;  %v9366_v16 = vld [vmem:[%s14435_s15 + $0x38] sm:$0xf0] }
 0x3fd   : > { %8671 = vmatpush.bf16.msra.mxu2 %v12533_v24  ;;  %8637 = vmatmul.bf16.vlgmr.msrb.gmra.mxu3 %v16699_v0  ;;  %v12485_v14 = vor.u32 %v13356_v44, %v12484_v8  ;;  %v12212_v13 = vld [vmem:[%s14435_s15 + $0x1668] sm:$0xf]  ;;  %v13288_v54 = vld [vmem:[%s14435_s15 + $0x1674] sm:$0xf0] }
 0x3fe   : > { %8685 = vmatpush.bf16.msra.mxu3 %v9465_v5  ;;  %v12340_v27 = vld [vmem:[%s14435_s15 + $0x1768] sm:$0xf]  ;;  %v13320_v24 = vld [vmem:[%s14435_s15 + $0x1774] sm:$0xf0]  ;;  %v12213_v5 = vor.u32 %v13288_v54, %v12212_v13 }
 0x3ff   : > { %8644 = vmatpush.bf16.msra.mxu0 %v12261_v4  ;;  %v12468_v2 = vld [vmem:[%s14435_s15 + $0x1868] sm:$0xf]  ;;  %v13352_v40 = vld [vmem:[%s14435_s15 + $0x1874] sm:$0xf0]  ;;  %v12341_v23 = vor.u32 %v13320_v24, %v12340_v27  ;;  %v8361_v4 = vadd.f32 %v8360_v35, %v8346_v41  ;;  %v8374_v62 = vpop.f32.mrf.mxu0 }
 0x400   : > { %8658 = vmatpush.bf16.msra.mxu1 %v12389_v21  ;;  %v12469_v43 = vor.u32 %v13352_v40, %v12468_v2  ;;  %v12196_v1 = vld [vmem:[%s14435_s15 + $0x1648] sm:$0xf]  ;;  %v13284_v19 = vld [vmem:[%s14435_s15 + $0x1654] sm:$0xf0]  ;;  %v9401_v21 = vor.u32 %v12582_v38, %v9398_v37  ;;  %v8414_v11 = vpop.f32.mrf.mxu3  ;;  %v8388_v41 = vpop.f32.mrf.mxu1  ;;  %v12570_v2 = vld [vmem:[%s14435_s15 + $0xc] sm:$0xf] }
 0x401   : > { %8672 = vmatpush.bf16.msra.mxu2 %v12517_v34  ;;  %v12324_v39 = vld [vmem:[%s14435_s15 + $0x1748] sm:$0xf]  ;;  %v8400_v34 = vpop.f32.mrf.mxu2  ;;  %v13316_v18 = vld [vmem:[%s14435_s15 + $0x1754] sm:$0xf0]  ;;  %v8375_v20 = vadd.f32 %v8374_v62, %v8361_v4  ;;  %v9350_v40 = vld [vmem:[%s14435_s15 + $0x18] sm:$0xf0] }
 0x402   : > { %8686 = vmatpush.bf16.msra.mxu3 %v9449_v50  ;;  %v12452_v28 = vld [vmem:[%s14435_s15 + $0x1848] sm:$0xf]  ;;  %v13348_v30 = vld [vmem:[%s14435_s15 + $0x1854] sm:$0xf0]  ;;  %v8401_v50 = vadd.f32 %v8400_v34, %v8387_v22  ;;  %v9846_v4 = vld [vmem:[%s14435_s15 + $0x3f8] sm:$0xf0] }
 0x403   : > { %8645 = vmatpush.bf16.msra.mxu0 %v12245_v10  ;;  %v12197_v10 = vor.u32 %v13284_v19, %v12196_v1  ;;  %v12453_v35 = vor.u32 %v13348_v30, %v12452_v28  ;;  %v12180_v32 = vld [vmem:[%s14435_s15 + $0x1628] sm:$0xf]  ;;  %v13280_v58 = vld [vmem:[%s14435_s15 + $0x1634] sm:$0xf0]  ;;  %v8389_v29 = vadd.f32 %v8388_v41, %v8375_v20  ;;  %v9718_v19 = vld [vmem:[%s14435_s15 + $0x2f8] sm:$0xf0] }
 0x404   : > { %8659 = vmatpush.bf16.msra.mxu1 %v12373_v12  ;;  %v16125_v12 = vadd.f32 %v8414_v11, %v8401_v50  ;;  %v12308_v46 = vld [vmem:[%s14435_s15 + $0x1728] sm:$0xf]  ;;  %v13312_v8 = vld [vmem:[%s14435_s15 + $0x1734] sm:$0xf0]  ;;  %v12181_v15 = vor.u32 %v13280_v58, %v12180_v32  ;;  %v12726_v28 = vld [vmem:[%s14435_s15 + $0x4ec] sm:$0xf]  ;;  %v9353_v50 = vor.u32 %v12570_v2, %v9350_v40 }
 0x405   : > { %8673 = vmatpush.bf16.msra.mxu2 %v12501_v9  ;;  %v12325_v9 = vor.u32 %v13316_v18, %v12324_v39  ;;  %v12436_v44 = vld [vmem:[%s14435_s15 + $0x1828] sm:$0xf]  ;;  %v13344_v6 = vld [vmem:[%s14435_s15 + $0x1834] sm:$0xf0]  ;;  %v12694_v39 = vld [vmem:[%s14435_s15 + $0x3ec] sm:$0xf] }
 0x406   : > { %8687 = vmatpush.bf16.msra.mxu3 %v9433_v33  ;;  %v9385_v33 = vor.u32 %v12578_v7, %v9382_v31  ;;  %v13276_v25 = vld [vmem:[%s14435_s15 + $0x1614] sm:$0xf0]  ;;  %v12292_v13 = vld [vmem:[%s14435_s15 + $0x1708] sm:$0xf]  ;;  %v9974_v30 = vld [vmem:[%s14435_s15 + $0x4f8] sm:$0xf0]  ;;  %v9849_v7 = vor.u32 %v12694_v39, %v9846_v4 }
 0x407   : > { %8646 = vmatpush.bf16.msra.mxu0 %v12229_v17  ;;  %v12164_v17 = vld [vmem:[%s14435_s15 + $0x1608] sm:$0xf]  ;;  %v13308_v54 = vld [vmem:[%s14435_s15 + $0x1714] sm:$0xf0]  ;;  %v12626_v31 = vld [vmem:[%s14435_s15 + $0x1cc] sm:$0xf]  ;;  %v9977_v41 = vor.u32 %v12726_v28, %v9974_v30 }
 0x408   : > { %8660 = vmatpush.bf16.msra.mxu1 %v12357_v26  ;;  %v12309_v26 = vor.u32 %v13312_v8, %v12308_v46  ;;  %v12420_v27 = vld [vmem:[%s14435_s15 + $0x1808] sm:$0xf]  ;;  %v13340_v24 = vld [vmem:[%s14435_s15 + $0x1814] sm:$0xf0]  ;;  %v8416_v37 = vpop.f32.mrf.mxu3  ;;  %v12165_v1 = vor.u32 %v13276_v25, %v12164_v17  ;;  %v12293_v34 = vor.u32 %v13308_v54, %v12292_v13  ;;  %v9574_v20 = vld [vmem:[%s14435_s15 + $0x1d8] sm:$0xf0] }
 0x409   : > { %8674 = vmatpush.bf16.msra.mxu2 %v12485_v14  ;;  %v12437_v14 = vor.u32 %v13344_v6, %v12436_v44  ;;  %v8402_v22 = vpop.f32.mrf.mxu2  ;;  %v12421_v18 = vor.u32 %v13340_v24, %v12420_v27  ;;  %v9830_v32 = vld [vmem:[%s14435_s15 + $0x3d8] sm:$0xf0]  ;;  %v12722_v58 = vld [vmem:[%s14435_s15 + $0x4cc] sm:$0xf]  ;;  %v16702_v13 = vld [vmem:[#allocation19_spill] sm:$0xff] }
 0x40a   : > { %8688 = vmatpush.bf16.msra.mxu3 %v9417_v45  ;;  %v9369_v45 = vor.u32 %v12574_v61, %v9366_v16  ;;  %v8403_v38 = vadd.f32 %v8402_v22, %v8389_v29  ;;  %v9958_v46 = vld [vmem:[%s14435_s15 + $0x4d8] sm:$0xf0]  ;;  %v12622_v44 = vld [vmem:[%s14435_s15 + $0x1ac] sm:$0xf]  ;;  %v16700_v16 = vld [vmem:[#allocation17_spill] sm:$0xff] }
 0x40b   : > { %8647 = vmatpush.bf16.msra.mxu0 %v12213_v5  ;;  %v12630_v5 = vld [vmem:[%s14435_s15 + $0x1ec] sm:$0xf]  ;;  %v9558_v6 = vld [vmem:[%s14435_s15 + $0x1b8] sm:$0xf0]  ;;  %v16703_v22 = vld [vmem:[#allocation5_spill] sm:$0xff] }
 0x40c   : > { %8661 = vmatpush.bf16.msra.mxu1 %v12341_v23  ;;  %v9590_v23 = vld [vmem:[%s14435_s15 + $0x1f8] sm:$0xf0]  ;;  %v12654_v61 = vld [vmem:[%s14435_s15 + $0x2ac] sm:$0xf] }
 0x40d   : > { %8675 = vmatpush.bf16.msra.mxu2 %v12469_v43  ;;  %v12662_v43 = vld [vmem:[%s14435_s15 + $0x2ec] sm:$0xf]  ;;  %v9593_v62 = vor.u32 %v12630_v5, %v9590_v23  ;;  %v9686_v17 = vld [vmem:[%s14435_s15 + $0x2b8] sm:$0xf0] }
 0x40e   : > { %8689 = vmatpush.bf16.msra.mxu3 %v9401_v21  ;;  %v16149_v21 = vadd.f32 %v8416_v37, %v8403_v38  ;;  %v9721_v11 = vor.u32 %v12662_v43, %v9718_v19  ;;  %v12686_v25 = vld [vmem:[%s14435_s15 + $0x3ac] sm:$0xf]  ;;  %v9942_v27 = vld [vmem:[%s14435_s15 + $0x4b8] sm:$0xf0]  ;;  %v9689_v24 = vor.u32 %v12654_v61, %v9686_v17 }
 0x40f   : > { %8648 = vmatpush.bf16.msra.mxu0 %v12197_v10  ;;  %v12658_v10 = vld [vmem:[%s14435_s15 + $0x2cc] sm:$0xf]  ;;  %v9542_v38 = vld [vmem:[%s14435_s15 + $0x198] sm:$0xf0] }
 0x410   : > { %8662 = vmatpush.bf16.msra.mxu1 %v12325_v9  ;;  %v9702_v9 = vld [vmem:[%s14435_s15 + $0x2d8] sm:$0xf0]  ;;  %v12718_v54 = vld [vmem:[%s14435_s15 + $0x4ac] sm:$0xf] }
 0x411   : > { %8676 = vmatpush.bf16.msra.mxu2 %v12453_v35  ;;  %v12690_v35 = vld [vmem:[%s14435_s15 + $0x3cc] sm:$0xf]  ;;  %v9705_v29 = vor.u32 %v12658_v10, %v9702_v9  ;;  %v9945_v5 = vor.u32 %v12718_v54, %v9942_v27  ;;  %v9670_v23 = vld [vmem:[%s14435_s15 + $0x298] sm:$0xf0] }
 0x412   : > { %8690 = vmatpush.bf16.msra.mxu3 %v9385_v33  ;;  %v9577_v33 = vor.u32 %v12626_v31, %v9574_v20  ;;  %v9833_v8 = vor.u32 %v12690_v35, %v9830_v32  ;;  %v12618_v40 = vld [vmem:[%s14435_s15 + $0x18c] sm:$0xf]  ;;  %v9926_v4 = vld [vmem:[%s14435_s15 + $0x498] sm:$0xf0] }
 0x413   : > { %8649 = vmatpush.bf16.msra.mxu0 %v12181_v15  ;;  %v9961_v15 = vor.u32 %v12722_v58, %v9958_v46  ;;  %v12650_v37 = vld [vmem:[%s14435_s15 + $0x28c] sm:$0xf]  ;;  %v9654_v10 = vld [vmem:[%s14435_s15 + $0x278] sm:$0xf0] }
 0x414   : > { %8663 = vmatpush.bf16.msra.mxu1 %v12309_v26  ;;  %v9814_v26 = vld [vmem:[%s14435_s15 + $0x3b8] sm:$0xf0]  ;;  %v12682_v43 = vld [vmem:[%s14435_s15 + $0x38c] sm:$0xf]  ;;  %v9673_v30 = vor.u32 %v12650_v37, %v9670_v23 }
 0x415   : > { %8677 = vmatpush.bf16.msra.mxu2 %v12437_v14  ;;  %v16701_v14 = vld [vmem:[#allocation20_spill] sm:$0xff]  ;;  %v9817_v2 = vor.u32 %v12686_v25, %v9814_v26  ;;  %v12714_v39 = vld [vmem:[%s14435_s15 + $0x48c] sm:$0xf] }
 0x416   : > { %8691 = vmatpush.bf16.msra.mxu3 %v9369_v45  ;;  %v9561_v45 = vor.u32 %v12622_v44, %v9558_v6  ;;  %v9929_v31 = vor.u32 %v12714_v39, %v9926_v4  ;;  %v12710_v9 = vld [vmem:[%s14435_s15 + $0x46c] sm:$0xf]  ;;  %v9910_v35 = vld [vmem:[%s14435_s15 + $0x478] sm:$0xf0] }
 0x417   : > { %8650 = vmatpush.bf16.msra.mxu0 %v12165_v1  ;;  %v9798_v1 = vld [vmem:[%s14435_s15 + $0x398] sm:$0xf0]  ;;  %v8428_v19 = vpop.f32.mrf.mxu0  ;;  %v9913_v44 = vor.u32 %v12710_v9, %v9910_v35  ;;  %v12706_v27 = vld [vmem:[%s14435_s15 + $0x44c] sm:$0xf] }
 0x418   : > { %8664 = vmatpush.bf16.msra.mxu1 %v12293_v34  ;;  %v8429_v34 = vadd.f32 %v8428_v19, %v16125_v12  ;;  %v8442_v28 = vpop.f32.mrf.mxu1  ;;  %v9782_v12 = vld [vmem:[%s14435_s15 + $0x378] sm:$0xf0]  ;;  %v12670_v39 = vld [vmem:[%s14435_s15 + $0x32c] sm:$0xf] }
 0x419   : > { %8678 = vmatpush.bf16.msra.mxu2 %v12421_v18  ;;  %v9545_v18 = vor.u32 %v12618_v40, %v9542_v38  ;;  %v9638_v61 = vld [vmem:[%s14435_s15 + $0x258] sm:$0xf0]  ;;  %v12698_v9 = vld [vmem:[%s14435_s15 + $0x40c] sm:$0xf] }
 0x41a   : > { %8692 = vmatpush.bf16.msra.mxu3 %v9353_v50  ;;  %8651 = vmatmul.bf16.vlgmr.msra.gmra.mxu0 %v16700_v16  ;;  %v9801_v50 = vor.u32 %v12682_v43, %v9798_v1  ;;  %v8443_v20 = vadd.f32 %v8442_v28, %v8429_v34  ;;  %v9766_v17 = vld [vmem:[%s14435_s15 + $0x358] sm:$0xf0]  ;;  %v12638_v43 = vld [vmem:[%s14435_s15 + $0x22c] sm:$0xf] }
 0x41b   : > { %8699 = vmatpush.bf16.msrb.mxu0 %v9593_v62  ;;  %8665 = vmatmul.bf16.vlgmr.msra.gmra.mxu1 %v16702_v13  ;;  %v12614_v62 = vld [vmem:[%s14435_s15 + $0x16c] sm:$0xf]  ;;  %v9494_v23 = vld [vmem:[%s14435_s15 + $0x138] sm:$0xf0] }
 0x41c   : > { %8713 = vmatpush.bf16.msrb.mxu1 %v9721_v11  ;;  %8679 = vmatmul.bf16.vlgmr.msra.gmra.mxu2 %v16701_v14  ;;  %v9526_v11 = vld [vmem:[%s14435_s15 + $0x178] sm:$0xf0]  ;;  %v12702_v34 = vld [vmem:[%s14435_s15 + $0x42c] sm:$0xf] }
 0x41d   : > { %8727 = vmatpush.bf16.msrb.mxu2 %v9849_v7  ;;  %8693 = vmatmul.bf16.vlgmr.msra.gmra.mxu3 %v16703_v22  ;;  %v12646_v7 = vld [vmem:[%s14435_s15 + $0x26c] sm:$0xf]  ;;  %v9529_v32 = vor.u32 %v12614_v62, %v9526_v11  ;;  %v9622_v19 = vld [vmem:[%s14435_s15 + $0x238] sm:$0xf0] }
 0x41e   : > { %8741 = vmatpush.bf16.msrb.mxu3 %v9977_v41  ;;  %v12678_v41 = vld [vmem:[%s14435_s15 + $0x36c] sm:$0xf]  ;;  %v9657_v58 = vor.u32 %v12646_v7, %v9654_v10  ;;  %v9750_v4 = vld [vmem:[%s14435_s15 + $0x338] sm:$0xf0]  ;;  %v9625_v62 = vor.u32 %v12638_v43, %v9622_v19 }
 0x41f   : > { %8700 = vmatpush.bf16.msrb.mxu0 %v9577_v33  ;;  %v9785_v46 = vor.u32 %v12678_v41, %v9782_v12  ;;  %v12610_v33 = vld [vmem:[%s14435_s15 + $0x14c] sm:$0xf]  ;;  %v8456_v6 = vpop.f32.mrf.mxu2  ;;  %v8430_v26 = vpop.f32.mrf.mxu0  ;;  %v9753_v11 = vor.u32 %v12670_v39, %v9750_v4  ;;  %v9734_v12 = vld [vmem:[%s14435_s15 + $0x318] sm:$0xf0] }
 0x420   : > { %8714 = vmatpush.bf16.msrb.mxu1 %v9705_v29  ;;  %v9510_v29 = vld [vmem:[%s14435_s15 + $0x158] sm:$0xf0]  ;;  %v8457_v25 = vadd.f32 %v8456_v6, %v8443_v20  ;;  %v8470_v54 = vpop.f32.mrf.mxu3  ;;  %v8431_v22 = vadd.f32 %v8430_v26, %v16149_v21  ;;  %v12634_v7 = vld [vmem:[%s14435_s15 + $0x20c] sm:$0xf] }
 0x421   : > { %8728 = vmatpush.bf16.msrb.mxu2 %v9833_v8  ;;  %v12642_v8 = vld [vmem:[%s14435_s15 + $0x24c] sm:$0xf]  ;;  %v9862_v35 = vld [vmem:[%s14435_s15 + $0x418] sm:$0xf0] }
 0x422   : > { %8742 = vmatpush.bf16.msrb.mxu3 %v9961_v15  ;;  %v12674_v15 = vld [vmem:[%s14435_s15 + $0x34c] sm:$0xf]  ;;  %v16199_v40 = vadd.f32 %v8470_v54, %v8457_v25  ;;  %v9641_v38 = vor.u32 %v12642_v8, %v9638_v61  ;;  %v10358_v61 = vld [vmem:[%s14435_s15 + $0x7f8] sm:$0xf0] }
 0x423   : > { %8701 = vmatpush.bf16.msrb.mxu0 %v9561_v45  ;;  %v9894_v45 = vld [vmem:[%s14435_s15 + $0x458] sm:$0xf0]  ;;  %v9769_v37 = vor.u32 %v12674_v15, %v9766_v17  ;;  %v12666_v20 = vld [vmem:[%s14435_s15 + $0x30c] sm:$0xf] }
 0x424   : > { %8715 = vmatpush.bf16.msrb.mxu1 %v9689_v24  ;;  %v9513_v24 = vor.u32 %v12610_v33, %v9510_v29  ;;  %v9897_v1 = vor.u32 %v12706_v27, %v9894_v45  ;;  %v10102_v33 = vld [vmem:[%s14435_s15 + $0x5f8] sm:$0xf0]  ;;  %v12790_v29 = vld [vmem:[%s14435_s15 + $0x6ec] sm:$0xf]  ;;  %v9737_v25 = vor.u32 %v12666_v20, %v9734_v12  ;;  %v9865_v27 = vor.u32 %v12698_v9, %v9862_v35  ;;  %v16707_v9 = vld [vmem:[#allocation9_spill] sm:$0xff] }
 0x425   : > { %8729 = vmatpush.bf16.msrb.mxu2 %v9817_v2  ;;  %v8444_v2 = vpop.f32.mrf.mxu1  ;;  %v12822_v6 = vld [vmem:[%s14435_s15 + $0x7ec] sm:$0xf]  ;;  %v10486_v54 = vld [vmem:[%s14435_s15 + $0x8f8] sm:$0xf0] }
 0x426   : > { %8743 = vmatpush.bf16.msrb.mxu3 %v9945_v5  ;;  %v12606_v5 = vld [vmem:[%s14435_s15 + $0x12c] sm:$0xf]  ;;  %v8445_v21 = vadd.f32 %v8444_v2, %v8431_v22  ;;  %v10470_v19 = vld [vmem:[%s14435_s15 + $0x8d8] sm:$0xf0] }
 0x427   : > { %8702 = vmatpush.bf16.msrb.mxu0 %v9545_v18  ;;  %v9878_v18 = vld [vmem:[%s14435_s15 + $0x438] sm:$0xf0]  ;;  %v9497_v28 = vor.u32 %v12606_v5, %v9494_v23  ;;  %v8458_v41 = vpop.f32.mrf.mxu2  ;;  %v12854_v26 = vld [vmem:[%s14435_s15 + $0x8ec] sm:$0xf] }
 0x428   : > { %8716 = vmatpush.bf16.msrb.mxu1 %v9673_v30  ;;  %v12602_v30 = vld [vmem:[%s14435_s15 + $0x10c] sm:$0xf]  ;;  %v9881_v10 = vor.u32 %v12702_v34, %v9878_v18  ;;  %v10489_v5 = vor.u32 %v12854_v26, %v10486_v54  ;;  %v10214_v23 = vld [vmem:[%s14435_s15 + $0x6d8] sm:$0xf0] }
 0x429   : > { %8730 = vmatpush.bf16.msrb.mxu2 %v9801_v50  ;;  %v9478_v50 = vld [vmem:[%s14435_s15 + $0x118] sm:$0xf0]  ;;  %v12754_v2 = vld [vmem:[%s14435_s15 + $0x5cc] sm:$0xf] }
 0x42a   : > { %8744 = vmatpush.bf16.msrb.mxu3 %v9929_v31  ;;  %v9606_v31 = vld [vmem:[%s14435_s15 + $0x218] sm:$0xf0]  ;;  %v9481_v8 = vor.u32 %v12602_v30, %v9478_v50  ;;  %v12818_v43 = vld [vmem:[%s14435_s15 + $0x7cc] sm:$0xf]  ;;  %v16704_v50 = vld [vmem:[#allocation7_spill] sm:$0xff] }
 0x42b   : > { %8703 = vmatpush.bf16.msrb.mxu0 %v9529_v32  ;;  %v8459_v32 = vadd.f32 %v8458_v41, %v8445_v21  ;;  %v9609_v17 = vor.u32 %v12634_v7, %v9606_v31  ;;  %v12850_v21 = vld [vmem:[%s14435_s15 + $0x8cc] sm:$0xf]  ;;  %v10326_v31 = vld [vmem:[%s14435_s15 + $0x7b8] sm:$0xf0] }
 0x42c   : > { %8717 = vmatpush.bf16.msrb.mxu1 %v9657_v58  ;;  %v8472_v58 = vpop.f32.mrf.mxu3  ;;  %v12750_v18 = vld [vmem:[%s14435_s15 + $0x5ac] sm:$0xf]  ;;  %v16705_v20 = vld [vmem:[#allocation8_spill] sm:$0xff] }
 0x42d   : > { %8731 = vmatpush.bf16.msrb.mxu2 %v9785_v46  ;;  %v12758_v46 = vld [vmem:[%s14435_s15 + $0x5ec] sm:$0xf]  ;;  %v16223_v15 = vadd.f32 %v8472_v58, %v8459_v32  ;;  %v10454_v12 = vld [vmem:[%s14435_s15 + $0x8b8] sm:$0xf0] }
 0x42e   : > { %8745 = vmatpush.bf16.msrb.mxu3 %v9913_v44  ;;  %v10230_v44 = vld [vmem:[%s14435_s15 + $0x6f8] sm:$0xf0]  ;;  %v10105_v45 = vor.u32 %v12758_v46, %v10102_v33  ;;  %v12782_v30 = vld [vmem:[%s14435_s15 + $0x6ac] sm:$0xf] }
 0x42f   : > { %8704 = vmatpush.bf16.msrb.mxu0 %v9513_v24  ;;  %v10233_v22 = vor.u32 %v12790_v29, %v10230_v44  ;;  %v10361_v24 = vor.u32 %v12822_v6, %v10358_v61  ;;  %v12814_v7 = vld [vmem:[%s14435_s15 + $0x7ac] sm:$0xf]  ;;  %v10054_v33 = vld [vmem:[%s14435_s15 + $0x598] sm:$0xf0] }
 0x430   : > { %8718 = vmatpush.bf16.msrb.mxu1 %v9641_v38  ;;  %v10086_v38 = vld [vmem:[%s14435_s15 + $0x5d8] sm:$0xf0]  ;;  %v12846_v41 = vld [vmem:[%s14435_s15 + $0x8ac] sm:$0xf]  ;;  %v10329_v58 = vor.u32 %v12814_v7, %v10326_v31 }
 0x431   : > { %8732 = vmatpush.bf16.msrb.mxu2 %v9769_v37  ;;  %v12786_v37 = vld [vmem:[%s14435_s15 + $0x6cc] sm:$0xf]  ;;  %v10089_v39 = vor.u32 %v12754_v2, %v10086_v38  ;;  %v10182_v44 = vld [vmem:[%s14435_s15 + $0x698] sm:$0xf0] }
 0x432   : > { %8746 = vmatpush.bf16.msrb.mxu3 %v9897_v1  ;;  %v10342_v1 = vld [vmem:[%s14435_s15 + $0x7d8] sm:$0xf0]  ;;  %v10217_v4 = vor.u32 %v12786_v37, %v10214_v23  ;;  %v12746_v46 = vld [vmem:[%s14435_s15 + $0x58c] sm:$0xf] }
 0x433   : > { %8705 = vmatpush.bf16.msrb.mxu0 %v9497_v28  ;;  %v10345_v34 = vor.u32 %v12818_v43, %v10342_v1  ;;  %v10070_v28 = vld [vmem:[%s14435_s15 + $0x5b8] sm:$0xf0]  ;;  %v12778_v29 = vld [vmem:[%s14435_s15 + $0x68c] sm:$0xf] }
 0x434   : > { %8719 = vmatpush.bf16.msrb.mxu1 %v9625_v62  ;;  %v10473_v62 = vor.u32 %v12850_v21, %v10470_v19  ;;  %v10073_v35 = vor.u32 %v12750_v18, %v10070_v28  ;;  %v12810_v6 = vld [vmem:[%s14435_s15 + $0x78c] sm:$0xf]  ;;  %v10310_v61 = vld [vmem:[%s14435_s15 + $0x798] sm:$0xf0] }
 0x435   : > { %8733 = vmatpush.bf16.msrb.mxu2 %v9753_v11  ;;  %v10198_v11 = vld [vmem:[%s14435_s15 + $0x6b8] sm:$0xf0]  ;;  %v12742_v2 = vld [vmem:[%s14435_s15 + $0x56c] sm:$0xf] }
 0x436   : > { %8747 = vmatpush.bf16.msrb.mxu3 %v9881_v10  ;;  %v16706_v10 = vld [vmem:[#allocation6_spill] sm:$0xff]  ;;  %v10201_v32 = vor.u32 %v12782_v30, %v10198_v11  ;;  %v10438_v26 = vld [vmem:[%s14435_s15 + $0x898] sm:$0xf0] }
 0x437   : > { %8706 = vmatpush.bf16.msrb.mxu0 %v9481_v8  ;;  %v10457_v8 = vor.u32 %v12846_v41, %v10454_v12  ;;  %v10038_v38 = vld [vmem:[%s14435_s15 + $0x578] sm:$0xf0]  ;;  %v12774_v37 = vld [vmem:[%s14435_s15 + $0x66c] sm:$0xf] }
 0x438   : > { %8720 = vmatpush.bf16.msrb.mxu1 %v9609_v17  ;;  %v8484_v17 = vpop.f32.mrf.mxu0  ;;  %v10166_v43 = vld [vmem:[%s14435_s15 + $0x678] sm:$0xf0]  ;;  %v12806_v1 = vld [vmem:[%s14435_s15 + $0x76c] sm:$0xf] }
 0x439   : > { %8734 = vmatpush.bf16.msrb.mxu2 %v9737_v25  ;;  %v12842_v25 = vld [vmem:[%s14435_s15 + $0x88c] sm:$0xf]  ;;  %v8485_v54 = vadd.f32 %v8484_v17, %v16199_v40  ;;  %v10294_v40 = vld [vmem:[%s14435_s15 + $0x778] sm:$0xf0] }
 0x43a   : > { %8748 = vmatpush.bf16.msrb.mxu3 %v9865_v27  ;;  %8707 = vmatmul.bf16.vlgmr.msrb.gmra.mxu0 %v16704_v50  ;;  %v10057_v27 = vor.u32 %v12746_v46, %v10054_v33  ;;  %v12838_v21 = vld [vmem:[%s14435_s15 + $0x86c] sm:$0xf]  ;;  %v10422_v19 = vld [vmem:[%s14435_s15 + $0x878] sm:$0xf0] }
 0x43b   : > { %8755 = vmatpush.bf16.msra.mxu0 %v10105_v45  ;;  %8721 = vmatmul.bf16.vlgmr.msrb.gmra.mxu1 %v16706_v10  ;;  %v8498_v45 = vpop.f32.mrf.mxu1  ;;  %v12738_v18 = vld [vmem:[%s14435_s15 + $0x54c] sm:$0xf]  ;;  %v10022_v28 = vld [vmem:[%s14435_s15 + $0x558] sm:$0xf0]  ;;  %v10425_v50 = vor.u32 %v12838_v21, %v10422_v19 }
 0x43c   : > { %8769 = vmatpush.bf16.msra.mxu1 %v10233_v22  ;;  %8735 = vmatmul.bf16.vlgmr.msrb.gmra.mxu2 %v16705_v20  ;;  %v10185_v22 = vor.u32 %v12778_v29, %v10182_v44  ;;  %v8499_v23 = vadd.f32 %v8498_v45, %v8485_v54  ;;  %v12770_v30 = vld [vmem:[%s14435_s15 + $0x64c] sm:$0xf]  ;;  %v10150_v11 = vld [vmem:[%s14435_s15 + $0x658] sm:$0xf0] }
 0x43d   : > { %8783 = vmatpush.bf16.msra.mxu2 %v10361_v24  ;;  %8749 = vmatmul.bf16.vlgmr.msrb.gmra.mxu3 %v16707_v9  ;;  %v10313_v24 = vor.u32 %v12810_v6, %v10310_v61  ;;  %v12802_v7 = vld [vmem:[%s14435_s15 + $0x74c] sm:$0xf]  ;;  %v10278_v31 = vld [vmem:[%s14435_s15 + $0x758] sm:$0xf0]  ;;  %v10153_v33 = vor.u32 %v12770_v30, %v10150_v11 }
 0x43e   : > { %8797 = vmatpush.bf16.msra.mxu3 %v10489_v5  ;;  %v10441_v5 = vor.u32 %v12842_v25, %v10438_v26  ;;  %v12834_v12 = vld [vmem:[%s14435_s15 + $0x84c] sm:$0xf]  ;;  %v10406_v9 = vld [vmem:[%s14435_s15 + $0x858] sm:$0xf0]  ;;  %v10281_v29 = vor.u32 %v12802_v7, %v10278_v31 }
 0x43f   : > { %8756 = vmatpush.bf16.msra.mxu0 %v10089_v39  ;;  %v10041_v39 = vor.u32 %v12742_v2, %v10038_v38  ;;  %v10006_v44 = vld [vmem:[%s14435_s15 + $0x538] sm:$0xf0]  ;;  %v12766_v6 = vld [vmem:[%s14435_s15 + $0x62c] sm:$0xf]  ;;  %v10409_v61 = vor.u32 %v12834_v12, %v10406_v9 }
 0x440   : > { %8770 = vmatpush.bf16.msra.mxu1 %v10217_v4  ;;  %v10169_v4 = vor.u32 %v12774_v37, %v10166_v43  ;;  %v8486_v10 = vpop.f32.mrf.mxu0  ;;  %v8526_v41 = vpop.f32.mrf.mxu3  ;;  %v10134_v17 = vld [vmem:[%s14435_s15 + $0x638] sm:$0xf0]  ;;  %v12798_v25 = vld [vmem:[%s14435_s15 + $0x72c] sm:$0xf] }
 0x441   : > { %8784 = vmatpush.bf16.msra.mxu2 %v10345_v34  ;;  %v10297_v34 = vor.u32 %v12806_v1, %v10294_v40  ;;  %v10262_v26 = vld [vmem:[%s14435_s15 + $0x738] sm:$0xf0]  ;;  %v12830_v54 = vld [vmem:[%s14435_s15 + $0x82c] sm:$0xf]  ;;  %v10137_v2 = vor.u32 %v12766_v6, %v10134_v17 }
 0x442   : > { %8798 = vmatpush.bf16.msra.mxu3 %v10473_v62  ;;  %v8512_v62 = vpop.f32.mrf.mxu2  ;;  %v10265_v38 = vor.u32 %v12798_v25, %v10262_v26  ;;  %v12762_v37 = vld [vmem:[%s14435_s15 + $0x60c] sm:$0xf]  ;;  %v10246_v40 = vld [vmem:[%s14435_s15 + $0x718] sm:$0xf0] }
 0x443   : > { %8757 = vmatpush.bf16.msra.mxu0 %v10073_v35  ;;  %v8513_v20 = vadd.f32 %v8512_v62, %v8499_v23  ;;  %v8487_v35 = vadd.f32 %v8486_v10, %v16223_v15  ;;  %v12794_v23 = vld [vmem:[%s14435_s15 + $0x70c] sm:$0xf]  ;;  %v10374_v19 = vld [vmem:[%s14435_s15 + $0x818] sm:$0xf0] }
 0x444   : > { %8771 = vmatpush.bf16.msra.mxu1 %v10201_v32  ;;  %v10025_v32 = vor.u32 %v12738_v18, %v10022_v28  ;;  %v12826_v21 = vld [vmem:[%s14435_s15 + $0x80c] sm:$0xf]  ;;  %v10614_v18 = vld [vmem:[%s14435_s15 + $0x9f8] sm:$0xf0] }
 0x445   : > { %8785 = vmatpush.bf16.msra.mxu2 %v10329_v58  ;;  %v8500_v58 = vpop.f32.mrf.mxu1  ;;  %v16273_v46 = vadd.f32 %v8526_v41, %v8513_v20  ;;  %v12918_v28 = vld [vmem:[%s14435_s15 + $0xaec] sm:$0xf]  ;;  %v10870_v11 = vld [vmem:[%s14435_s15 + $0xbf8] sm:$0xf0]  ;;  %v10249_v20 = vor.u32 %v12794_v23, %v10246_v40  ;;  %v10377_v12 = vor.u32 %v12826_v21, %v10374_v19 }
 0x446   : > { %8799 = vmatpush.bf16.msra.mxu3 %v10457_v8  ;;  %v12734_v8 = vld [vmem:[%s14435_s15 + $0x52c] sm:$0xf]  ;;  %v8501_v15 = vadd.f32 %v8500_v58, %v8487_v35  ;;  %v10998_v41 = vld [vmem:[%s14435_s15 + $0xcf8] sm:$0xf0] }
 0x447   : > { %8758 = vmatpush.bf16.msra.mxu0 %v10057_v27  ;;  %v10390_v27 = vld [vmem:[%s14435_s15 + $0x838] sm:$0xf0]  ;;  %v10009_v45 = vor.u32 %v12734_v8, %v10006_v44  ;;  %v12950_v62 = vld [vmem:[%s14435_s15 + $0xbec] sm:$0xf] }
 0x448   : > { %8772 = vmatpush.bf16.msra.mxu1 %v10185_v22  ;;  %v12730_v22 = vld [vmem:[%s14435_s15 + $0x50c] sm:$0xf]  ;;  %v10393_v43 = vor.u32 %v12830_v54, %v10390_v27  ;;  %v10726_v44 = vld [vmem:[%s14435_s15 + $0xad8] sm:$0xf0] }
 0x449   : > { %8786 = vmatpush.bf16.msra.mxu2 %v10313_v24  ;;  %v9990_v24 = vld [vmem:[%s14435_s15 + $0x518] sm:$0xf0]  ;;  %v12982_v10 = vld [vmem:[%s14435_s15 + $0xcec] sm:$0xf] }
 0x44a   : > { %8800 = vmatpush.bf16.msra.mxu3 %v10441_v5  ;;  %v10118_v5 = vld [vmem:[%s14435_s15 + $0x618] sm:$0xf0]  ;;  %v8514_v1 = vpop.f32.mrf.mxu2  ;;  %v9993_v30 = vor.u32 %v12730_v22, %v9990_v24  ;;  %v12882_v58 = vld [vmem:[%s14435_s15 + $0x9cc] sm:$0xf]  ;;  %v11001_v8 = vor.u32 %v12982_v10, %v10998_v41 }
 0x44b   : > { %8759 = vmatpush.bf16.msra.mxu0 %v10041_v39  ;;  %v8515_v39 = vadd.f32 %v8514_v1, %v8501_v15  ;;  %v10121_v31 = vor.u32 %v12762_v37, %v10118_v5  ;;  %v12946_v6 = vld [vmem:[%s14435_s15 + $0xbcc] sm:$0xf]  ;;  %v10982_v17 = vld [vmem:[%s14435_s15 + $0xcd8] sm:$0xf0] }
 0x44c   : > { %8773 = vmatpush.bf16.msra.mxu1 %v10169_v4  ;;  %v8528_v4 = vpop.f32.mrf.mxu3  ;;  %v12978_v15 = vld [vmem:[%s14435_s15 + $0xccc] sm:$0xf]  ;;  %v10838_v5 = vld [vmem:[%s14435_s15 + $0xbb8] sm:$0xf0] }
 0x44d   : > { %8787 = vmatpush.bf16.msra.mxu2 %v10297_v34  ;;  %v12886_v34 = vld [vmem:[%s14435_s15 + $0x9ec] sm:$0xf]  ;;  %v16297_v7 = vadd.f32 %v8528_v4, %v8515_v39  ;;  %v10566_v39 = vld [vmem:[%s14435_s15 + $0x998] sm:$0xf0] }
 0x44e   : > { %8801 = vmatpush.bf16.msra.mxu3 %v10425_v50  ;;  %v10742_v50 = vld [vmem:[%s14435_s15 + $0xaf8] sm:$0xf0]  ;;  %v10617_v9 = vor.u32 %v12886_v34, %v10614_v18  ;;  %v12878_v27 = vld [vmem:[%s14435_s15 + $0x9ac] sm:$0xf] }
 0x44f   : > { %8760 = vmatpush.bf16.msra.mxu0 %v10025_v32  ;;  %v10745_v35 = vor.u32 %v12918_v28, %v10742_v50  ;;  %v10873_v32 = vor.u32 %v12950_v62, %v10870_v11  ;;  %v12910_v22 = vld [vmem:[%s14435_s15 + $0xaac] sm:$0xf]  ;;  %v10694_v4 = vld [vmem:[%s14435_s15 + $0xa98] sm:$0xf0] }
 0x450   : > { %8774 = vmatpush.bf16.msra.mxu1 %v10153_v33  ;;  %v10598_v33 = vld [vmem:[%s14435_s15 + $0x9d8] sm:$0xf0]  ;;  %v16708_v24 = vld [vmem:[#allocation10_spill] sm:$0xff] }
 0x451   : > { %8788 = vmatpush.bf16.msra.mxu2 %v10281_v29  ;;  %v12914_v29 = vld [vmem:[%s14435_s15 + $0xacc] sm:$0xf]  ;;  %v10601_v25 = vor.u32 %v12882_v58, %v10598_v33  ;;  %v10822_v18 = vld [vmem:[%s14435_s15 + $0xb98] sm:$0xf0] }
 0x452   : > { %8802 = vmatpush.bf16.msra.mxu3 %v10409_v61  ;;  %v10854_v61 = vld [vmem:[%s14435_s15 + $0xbd8] sm:$0xf0]  ;;  %v10729_v26 = vor.u32 %v12914_v29, %v10726_v44  ;;  %v12942_v37 = vld [vmem:[%s14435_s15 + $0xbac] sm:$0xf] }
 0x453   : > { %8761 = vmatpush.bf16.msra.mxu0 %v10009_v45  ;;  %v10857_v54 = vor.u32 %v12946_v6, %v10854_v61  ;;  %v10582_v45 = vld [vmem:[%s14435_s15 + $0x9b8] sm:$0xf0]  ;;  %v12974_v23 = vld [vmem:[%s14435_s15 + $0xcac] sm:$0xf]  ;;  %v10841_v21 = vor.u32 %v12942_v37, %v10838_v5 }
 0x454   : > { %8775 = vmatpush.bf16.msra.mxu1 %v10137_v2  ;;  %v10985_v2 = vor.u32 %v12978_v15, %v10982_v17  ;;  %v10585_v1 = vor.u32 %v12878_v27, %v10582_v45  ;;  %v12874_v19 = vld [vmem:[%s14435_s15 + $0x98c] sm:$0xf]  ;;  %v10550_v41 = vld [vmem:[%s14435_s15 + $0x978] sm:$0xf0] }
 0x455   : > { %8789 = vmatpush.bf16.msra.mxu2 %v10265_v38  ;;  %v10710_v38 = vld [vmem:[%s14435_s15 + $0xab8] sm:$0xf0]  ;;  %v12938_v34 = vld [vmem:[%s14435_s15 + $0xb8c] sm:$0xf]  ;;  %v10569_v62 = vor.u32 %v12874_v19, %v10566_v39 }
 0x456   : > { %8803 = vmatpush.bf16.msra.mxu3 %v10393_v43  ;;  %v10966_v43 = vld [vmem:[%s14435_s15 + $0xcb8] sm:$0xf0]  ;;  %v10713_v40 = vor.u32 %v12910_v22, %v10710_v38  ;;  %v12970_v28 = vld [vmem:[%s14435_s15 + $0xc8c] sm:$0xf] }
 0x457   : > { %8762 = vmatpush.bf16.msra.mxu0 %v9993_v30  ;;  %v10950_v30 = vld [vmem:[%s14435_s15 + $0xc98] sm:$0xf0]  ;;  %v12870_v10 = vld [vmem:[%s14435_s15 + $0x96c] sm:$0xf] }
 0x458   : > { %8776 = vmatpush.bf16.msra.mxu1 %v10121_v31  ;;  %v8554_v11 = vpop.f32.mrf.mxu1  ;;  %v12934_v58 = vld [vmem:[%s14435_s15 + $0xb6c] sm:$0xf]  ;;  %v10934_v29 = vld [vmem:[%s14435_s15 + $0xc78] sm:$0xf0] }
 0x459   : > { %8790 = vmatpush.bf16.msra.mxu2 %v10249_v20  ;;  %v10825_v20 = vor.u32 %v12938_v34, %v10822_v18  ;;  %v12966_v33 = vld [vmem:[%s14435_s15 + $0xc6c] sm:$0xf]  ;;  %v10534_v15 = vld [vmem:[%s14435_s15 + $0x958] sm:$0xf0] }
 0x45a   : > { %8804 = vmatpush.bf16.msra.mxu3 %v10377_v12  ;;  %8763 = vmatmul.bf16.vlgmr.msra.gmra.mxu0 %v16708_v24  ;;  %v12902_v12 = vld [vmem:[%s14435_s15 + $0xa6c] sm:$0xf]  ;;  %v10790_v45 = vld [vmem:[%s14435_s15 + $0xb58] sm:$0xf0] }
 0x45b   : > { %8811 = vmatpush.bf16.msrb.mxu0 %v10617_v9  ;;  %8777 = vmatmul.bf16.vlgmr.msra.gmra.mxu1 %v14641_v59  ;;  %v10969_v59 = vor.u32 %v12974_v23, %v10966_v43  ;;  %v10953_v9 = vor.u32 %v12970_v28, %v10950_v30  ;;  %v12866_v61 = vld [vmem:[%s14435_s15 + $0x94c] sm:$0xf]  ;;  %v10918_v37 = vld [vmem:[%s14435_s15 + $0xc58] sm:$0xf0] }
 0x45c   : > { %8825 = vmatpush.bf16.msrb.mxu1 %v10745_v35  ;;  %8791 = vmatmul.bf16.vlgmr.msra.gmra.mxu2 %v14647_v63  ;;  %v12906_v63 = vld [vmem:[%s14435_s15 + $0xa8c] sm:$0xf]  ;;  %v10537_v23 = vor.u32 %v12866_v61, %v10534_v15  ;;  %v10518_v39 = vld [vmem:[%s14435_s15 + $0x938] sm:$0xf0] }
 0x45d   : > { %8839 = vmatpush.bf16.msrb.mxu2 %v10873_v32  ;;  %8805 = vmatmul.bf16.vlgmr.msra.gmra.mxu3 %v14736_v47  ;;  %v8540_v47 = vpop.f32.mrf.mxu0  ;;  %v10697_v31 = vor.u32 %v12906_v63, %v10694_v4  ;;  %v10678_v32 = vld [vmem:[%s14435_s15 + $0xa78] sm:$0xf0]  ;;  %v12898_v17 = vld [vmem:[%s14435_s15 + $0xa4c] sm:$0xf] }
 0x45e   : > { %8853 = vmatpush.bf16.msrb.mxu3 %v11001_v8  ;;  %v8541_v50 = vadd.f32 %v8540_v47, %v16273_v46  ;;  %v10806_v46 = vld [vmem:[%s14435_s15 + $0xb78] sm:$0xf0]  ;;  %v10553_v8 = vor.u32 %v12870_v10, %v10550_v41  ;;  %v10681_v44 = vor.u32 %v12902_v12, %v10678_v32  ;;  %v12930_v27 = vld [vmem:[%s14435_s15 + $0xb4c] sm:$0xf] }
 0x45f   : > { %8812 = vmatpush.bf16.msrb.mxu0 %v10601_v25  ;;  %v10809_v6 = vor.u32 %v12934_v58, %v10806_v46  ;;  %v10937_v25 = vor.u32 %v12966_v33, %v10934_v29  ;;  %v12962_v38 = vld [vmem:[%s14435_s15 + $0xc4c] sm:$0xf]  ;;  %v10646_v4 = vld [vmem:[%s14435_s15 + $0xa38] sm:$0xf0] }
 0x460   : > { %8826 = vmatpush.bf16.msrb.mxu1 %v10729_v26  ;;  %v8555_v35 = vadd.f32 %v8554_v11, %v8541_v50  ;;  %v8568_v26 = vpop.f32.mrf.mxu2  ;;  %v8556_v43 = vpop.f32.mrf.mxu1  ;;  %v12862_v19 = vld [vmem:[%s14435_s15 + $0x92c] sm:$0xf]  ;;  %v10774_v18 = vld [vmem:[%s14435_s15 + $0xb38] sm:$0xf0] }
 0x461   : > { %8840 = vmatpush.bf16.msrb.mxu2 %v10857_v54  ;;  %v10662_v54 = vld [vmem:[%s14435_s15 + $0xa58] sm:$0xf0]  ;;  %v12894_v63 = vld [vmem:[%s14435_s15 + $0xa2c] sm:$0xf]  ;;  %v10521_v30 = vor.u32 %v12862_v19, %v10518_v39 }
 0x462   : > { %8854 = vmatpush.bf16.msrb.mxu3 %v10985_v2  ;;  %v8569_v22 = vadd.f32 %v8568_v26, %v8555_v35  ;;  %v8582_v2 = vpop.f32.mrf.mxu3  ;;  %v12926_v34 = vld [vmem:[%s14435_s15 + $0xb2c] sm:$0xf]  ;;  %v10902_v28 = vld [vmem:[%s14435_s15 + $0xc38] sm:$0xf0]  ;;  %v10649_v11 = vor.u32 %v12894_v63, %v10646_v4 }
 0x463   : > { %8813 = vmatpush.bf16.msrb.mxu0 %v10585_v1  ;;  %v12958_v47 = vld [vmem:[%s14435_s15 + $0xc2c] sm:$0xf]  ;;  %v10630_v10 = vld [vmem:[%s14435_s15 + $0xa18] sm:$0xf0] }
 0x464   : > { %8827 = vmatpush.bf16.msrb.mxu1 %v10713_v40  ;;  %v16347_v1 = vadd.f32 %v8582_v2, %v8569_v22  ;;  %v10665_v40 = vor.u32 %v12898_v17, %v10662_v54  ;;  %v12858_v50 = vld [vmem:[%s14435_s15 + $0x90c] sm:$0xf]  ;;  %v10905_v12 = vor.u32 %v12958_v47, %v10902_v28  ;;  %v10758_v35 = vld [vmem:[%s14435_s15 + $0xb18] sm:$0xf0] }
 0x465   : > { %8841 = vmatpush.bf16.msrb.mxu2 %v10841_v21  ;;  %v8542_v24 = vpop.f32.mrf.mxu0  ;;  %v10793_v21 = vor.u32 %v12930_v27, %v10790_v45  ;;  %v12922_v41 = vld [vmem:[%s14435_s15 + $0xb0c] sm:$0xf]  ;;  %v10886_v58 = vld [vmem:[%s14435_s15 + $0xc18] sm:$0xf0] }
 0x466   : > { %8855 = vmatpush.bf16.msrb.mxu3 %v10969_v59  ;;  %v8543_v5 = vadd.f32 %v8542_v24, %v16297_v7  ;;  %v10921_v59 = vor.u32 %v12962_v38, %v10918_v37  ;;  %v12954_v32 = vld [vmem:[%s14435_s15 + $0xc0c] sm:$0xf]  ;;  %v11254_v61 = vld [vmem:[%s14435_s15 + $0xef8] sm:$0xf0]  ;;  %v10761_v54 = vor.u32 %v12922_v41, %v10758_v35 }
 0x467   : > { %8814 = vmatpush.bf16.msrb.mxu0 %v10569_v62  ;;  %v10502_v62 = vld [vmem:[%s14435_s15 + $0x918] sm:$0xf0]  ;;  %v13014_v29 = vld [vmem:[%s14435_s15 + $0xdec] sm:$0xf]  ;;  %v10889_v22 = vor.u32 %v12954_v32, %v10886_v58 }
 0x468   : > { %8828 = vmatpush.bf16.msrb.mxu1 %v10697_v31  ;;  %v8557_v7 = vadd.f32 %v8556_v43, %v8543_v5  ;;  %v10777_v31 = vor.u32 %v12926_v34, %v10774_v18  ;;  %v13078_v15 = vld [vmem:[%s14435_s15 + $0xfec] sm:$0xf]  ;;  %v11382_v17 = vld [vmem:[%s14435_s15 + $0xff8] sm:$0xf0] }
 0x469   : > { %8842 = vmatpush.bf16.msrb.mxu2 %v10825_v20  ;;  %v12890_v20 = vld [vmem:[%s14435_s15 + $0xa0c] sm:$0xf]  ;;  %v11510_v45 = vld [vmem:[%s14435_s15 + $0x10f8] sm:$0xf0]  ;;  %v11385_v38 = vor.u32 %v13078_v15, %v11382_v17 }
 0x46a   : > { %8856 = vmatpush.bf16.msrb.mxu3 %v10953_v9  ;;  %v8570_v9 = vpop.f32.mrf.mxu2  ;;  %v8584_v33 = vpop.f32.mrf.mxu3  ;;  %v10633_v26 = vor.u32 %v12890_v20, %v10630_v10  ;;  %v13110_v27 = vld [vmem:[%s14435_s15 + $0x10ec] sm:$0xf]  ;;  %v11110_v5 = vld [vmem:[%s14435_s15 + $0xdd8] sm:$0xf0] }
 0x46b   : > { %8815 = vmatpush.bf16.msrb.mxu0 %v10553_v8  ;;  %v8571_v46 = vadd.f32 %v8570_v9, %v8557_v7  ;;  %v11126_v8 = vld [vmem:[%s14435_s15 + $0xdf8] sm:$0xf0]  ;;  %v13010_v37 = vld [vmem:[%s14435_s15 + $0xdcc] sm:$0xf]  ;;  %v11513_v43 = vor.u32 %v13110_v27, %v11510_v45 }
 0x46c   : > { %8829 = vmatpush.bf16.msrb.mxu1 %v10681_v44  ;;  %v13046_v44 = vld [vmem:[%s14435_s15 + $0xeec] sm:$0xf]  ;;  %v11129_v24 = vor.u32 %v13014_v29, %v11126_v8  ;;  %v11366_v19 = vld [vmem:[%s14435_s15 + $0xfd8] sm:$0xf0] }
 0x46d   : > { %8843 = vmatpush.bf16.msrb.mxu2 %v10809_v6  ;;  %v10505_v6 = vor.u32 %v12858_v50, %v10502_v62  ;;  %v11257_v2 = vor.u32 %v13046_v44, %v11254_v61  ;;  %v13106_v39 = vld [vmem:[%s14435_s15 + $0x10cc] sm:$0xf]  ;;  %v11494_v63 = vld [vmem:[%s14435_s15 + $0x10d8] sm:$0xf0] }
 0x46e   : > { %8857 = vmatpush.bf16.msrb.mxu3 %v10937_v25  ;;  %v16371_v25 = vadd.f32 %v8584_v33, %v8571_v46  ;;  %v13006_v34 = vld [vmem:[%s14435_s15 + $0xdac] sm:$0xf]  ;;  %v11094_v18 = vld [vmem:[%s14435_s15 + $0xdb8] sm:$0xf0]  ;;  %v11497_v28 = vor.u32 %v13106_v39, %v11494_v63 }
 0x46f   : > { %8816 = vmatpush.bf16.msrb.mxu0 %v10537_v23  ;;  %v13042_v23 = vld [vmem:[%s14435_s15 + $0xecc] sm:$0xf]  ;;  %v11350_v62 = vld [vmem:[%s14435_s15 + $0xfb8] sm:$0xf0] }
 0x470   : > { %8830 = vmatpush.bf16.msrb.mxu1 %v10665_v40  ;;  %v11238_v40 = vld [vmem:[%s14435_s15 + $0xed8] sm:$0xf0]  ;;  %v13038_v47 = vld [vmem:[%s14435_s15 + $0xeac] sm:$0xf] }
 0x471   : > { %8844 = vmatpush.bf16.msrb.mxu2 %v10793_v21  ;;  %v13074_v21 = vld [vmem:[%s14435_s15 + $0xfcc] sm:$0xf]  ;;  %v11241_v7 = vor.u32 %v13042_v23, %v11238_v40  ;;  %v11206_v9 = vld [vmem:[%s14435_s15 + $0xe98] sm:$0xf0] }
 0x472   : > { %8858 = vmatpush.bf16.msrb.mxu3 %v10921_v59  ;;  %v11113_v59 = vor.u32 %v13010_v37, %v11110_v5  ;;  %v11369_v4 = vor.u32 %v13074_v21, %v11366_v19  ;;  %v13070_v50 = vld [vmem:[%s14435_s15 + $0xfac] sm:$0xf]  ;;  %v11334_v32 = vld [vmem:[%s14435_s15 + $0xf98] sm:$0xf0] }
 0x473   : > { %8817 = vmatpush.bf16.msrb.mxu0 %v10521_v30  ;;  %v11222_v30 = vld [vmem:[%s14435_s15 + $0xeb8] sm:$0xf0]  ;;  %v11353_v10 = vor.u32 %v13070_v50, %v11350_v62  ;;  %v13002_v41 = vld [vmem:[%s14435_s15 + $0xd8c] sm:$0xf] }
 0x474   : > { %8831 = vmatpush.bf16.msrb.mxu1 %v10649_v11  ;;  %v13102_v11 = vld [vmem:[%s14435_s15 + $0x10ac] sm:$0xf]  ;;  %v11225_v20 = vor.u32 %v13038_v47, %v11222_v30  ;;  %v11462_v46 = vld [vmem:[%s14435_s15 + $0x1098] sm:$0xf0] }
 0x475   : > { %8845 = vmatpush.bf16.msrb.mxu2 %v10777_v31  ;;  %v11478_v31 = vld [vmem:[%s14435_s15 + $0x10b8] sm:$0xf0]  ;;  %v13066_v35 = vld [vmem:[%s14435_s15 + $0xf8c] sm:$0xf] }
 0x476   : > { %8859 = vmatpush.bf16.msrb.mxu3 %v10905_v12  ;;  %v11078_v12 = vld [vmem:[%s14435_s15 + $0xd98] sm:$0xf0]  ;;  %v13098_v58 = vld [vmem:[%s14435_s15 + $0x108c] sm:$0xf] }
 0x477   : > { %8818 = vmatpush.bf16.msrb.mxu0 %v10505_v6  ;;  %v11081_v29 = vor.u32 %v13002_v41, %v11078_v12  ;;  %v11337_v6 = vor.u32 %v13066_v35, %v11334_v32  ;;  %v12998_v61 = vld [vmem:[%s14435_s15 + $0xd6c] sm:$0xf]  ;;  %v11062_v15 = vld [vmem:[%s14435_s15 + $0xd78] sm:$0xf0] }
 0x478   : > { %8832 = vmatpush.bf16.msrb.mxu1 %v10633_v26  ;;  %v8610_v8 = vpop.f32.mrf.mxu1  ;;  %v13030_v17 = vld [vmem:[%s14435_s15 + $0xe6c] sm:$0xf]  ;;  %v11465_v26 = vor.u32 %v13098_v58, %v11462_v46  ;;  %v11190_v27 = vld [vmem:[%s14435_s15 + $0xe78] sm:$0xf0] }
 0x479   : > { %8846 = vmatpush.bf16.msrb.mxu2 %v10761_v54  ;;  %v13062_v45 = vld [vmem:[%s14435_s15 + $0xf6c] sm:$0xf]  ;;  %v11046_v23 = vld [vmem:[%s14435_s15 + $0xd58] sm:$0xf0] }
 0x47a   : > { %8860 = vmatpush.bf16.msrb.mxu3 %v10889_v22  ;;  %8819 = vmatmul.bf16.vlgmr.msrb.gmra.mxu0 %v14743_v52  ;;  %v11097_v52 = vor.u32 %v13006_v34, %v11094_v18  ;;  %v13094_v22 = vld [vmem:[%s14435_s15 + $0x106c] sm:$0xf]  ;;  %v11174_v19 = vld [vmem:[%s14435_s15 + $0xe58] sm:$0xf0] }
 0x47b   : > { %8867 = vmatpush.bf16.msra.mxu0 %v11129_v24  ;;  %8833 = vmatmul.bf16.vlgmr.msrb.gmra.mxu1 %v14741_v51  ;;  %v11481_v51 = vor.u32 %v13102_v11, %v11478_v31  ;;  %v11446_v24 = vld [vmem:[%s14435_s15 + $0x1078] sm:$0xf0]  ;;  %v12994_v5 = vld [vmem:[%s14435_s15 + $0xd4c] sm:$0xf] }
 0x47c   : > { %8881 = vmatpush.bf16.msra.mxu1 %v11257_v2  ;;  %8847 = vmatmul.bf16.vlgmr.msrb.gmra.mxu2 %v14747_v56  ;;  %v13034_v56 = vld [vmem:[%s14435_s15 + $0xe8c] sm:$0xf]  ;;  %v11065_v2 = vor.u32 %v12998_v61, %v11062_v15  ;;  %v11449_v40 = vor.u32 %v13094_v22, %v11446_v24  ;;  %v11302_v63 = vld [vmem:[%s14435_s15 + $0xf58] sm:$0xf0] }
 0x47d   : > { %8895 = vmatpush.bf16.msra.mxu2 %v11385_v38  ;;  %8861 = vmatmul.bf16.vlgmr.msrb.gmra.mxu3 %v14836_v48  ;;  %v8596_v48 = vpop.f32.mrf.mxu0  ;;  %v11209_v44 = vor.u32 %v13034_v56, %v11206_v9  ;;  %v11193_v38 = vor.u32 %v13030_v17, %v11190_v27  ;;  %v13058_v39 = vld [vmem:[%s14435_s15 + $0xf4c] sm:$0xf]  ;;  %v11430_v18 = vld [vmem:[%s14435_s15 + $0x1058] sm:$0xf0] }
 0x47e   : > { %8909 = vmatpush.bf16.msra.mxu3 %v11513_v43  ;;  %v8597_v33 = vadd.f32 %v8596_v48, %v16347_v1  ;;  %v11318_v1 = vld [vmem:[%s14435_s15 + $0xf78] sm:$0xf0]  ;;  %v13026_v43 = vld [vmem:[%s14435_s15 + $0xe4c] sm:$0xf]  ;;  %v11305_v11 = vor.u32 %v13058_v39, %v11302_v63 }
 0x47f   : > { %8868 = vmatpush.bf16.msra.mxu0 %v11113_v59  ;;  %v11321_v37 = vor.u32 %v13062_v45, %v11318_v1  ;;  %v8624_v21 = vpop.f32.mrf.mxu2  ;;  %v13090_v34 = vld [vmem:[%s14435_s15 + $0x104c] sm:$0xf]  ;;  %v11177_v62 = vor.u32 %v13026_v43, %v11174_v19  ;;  %v11158_v41 = vld [vmem:[%s14435_s15 + $0xe38] sm:$0xf0] }
 0x480   : > { %8882 = vmatpush.bf16.msra.mxu1 %v11241_v7  ;;  %v8611_v54 = vadd.f32 %v8610_v8, %v8597_v33  ;;  %v8612_v30 = vpop.f32.mrf.mxu1  ;;  %v12990_v31 = vld [vmem:[%s14435_s15 + $0xd2c] sm:$0xf]  ;;  %v11286_v56 = vld [vmem:[%s14435_s15 + $0xf38] sm:$0xf0] }
 0x481   : > { %8896 = vmatpush.bf16.msra.mxu2 %v11369_v4  ;;  %v8638_v4 = vpop.f32.mrf.mxu3  ;;  %v13054_v12 = vld [vmem:[%s14435_s15 + $0xf2c] sm:$0xf]  ;;  %v11414_v9 = vld [vmem:[%s14435_s15 + $0x1038] sm:$0xf0] }
 0x482   : > { %8910 = vmatpush.bf16.msra.mxu3 %v11497_v28  ;;  %v8625_v59 = vadd.f32 %v8624_v21, %v8611_v54  ;;  %v11049_v28 = vor.u32 %v12994_v5, %v11046_v23  ;;  %v12986_v32 = vld [vmem:[%s14435_s15 + $0xd0c] sm:$0xf]  ;;  %v11014_v48 = vld [vmem:[%s14435_s15 + $0xd18] sm:$0xf0]  ;;  %v11289_v46 = vor.u32 %v13054_v12, %v11286_v56 }
 0x483   : > { %8869 = vmatpush.bf16.msra.mxu0 %v11097_v52  ;;  %v11030_v52 = vld [vmem:[%s14435_s15 + $0xd38] sm:$0xf0]  ;;  %v13018_v33 = vld [vmem:[%s14435_s15 + $0xe0c] sm:$0xf]  ;;  %v11017_v22 = vor.u32 %v12986_v32, %v11014_v48 }
 0x484   : > { %8883 = vmatpush.bf16.msra.mxu1 %v11225_v20  ;;  %v16421_v50 = vadd.f32 %v8638_v4, %v8625_v59  ;;  %v13022_v20 = vld [vmem:[%s14435_s15 + $0xe2c] sm:$0xf]  ;;  %v11033_v35 = vor.u32 %v12990_v31, %v11030_v52  ;;  %v11270_v61 = vld [vmem:[%s14435_s15 + $0xf18] sm:$0xf0] }
 0x485   : > { %8897 = vmatpush.bf16.msra.mxu2 %v11353_v10  ;;  %v8598_v7 = vpop.f32.mrf.mxu0  ;;  %v11433_v10 = vor.u32 %v13090_v34, %v11430_v18  ;;  %v11161_v58 = vor.u32 %v13022_v20, %v11158_v41  ;;  %v13050_v8 = vld [vmem:[%s14435_s15 + $0xf0c] sm:$0xf]  ;;  %v11398_v17 = vld [vmem:[%s14435_s15 + $0x1018] sm:$0xf0] }
 0x486   : > { %8911 = vmatpush.bf16.msra.mxu3 %v11481_v51  ;;  %v8599_v47 = vadd.f32 %v8598_v7, %v16371_v25  ;;  %v13086_v51 = vld [vmem:[%s14435_s15 + $0x102c] sm:$0xf]  ;;  %v11638_v45 = vld [vmem:[%s14435_s15 + $0x11f8] sm:$0xf0]  ;;  %v11273_v23 = vor.u32 %v13050_v8, %v11270_v61 }
 0x487   : > { %8870 = vmatpush.bf16.msra.mxu0 %v11081_v29  ;;  %v11142_v29 = vld [vmem:[%s14435_s15 + $0xe18] sm:$0xf0]  ;;  %v13082_v15 = vld [vmem:[%s14435_s15 + $0x100c] sm:$0xf] }
 0x488   : > { %8884 = vmatpush.bf16.msra.mxu1 %v11209_v44  ;;  %v8613_v25 = vadd.f32 %v8612_v30, %v8599_v47  ;;  %v11417_v44 = vor.u32 %v13086_v51, %v11414_v9  ;;  %v13142_v27 = vld [vmem:[%s14435_s15 + $0x11ec] sm:$0xf]  ;;  %v11766_v24 = vld [vmem:[%s14435_s15 + $0x12f8] sm:$0xf0]  ;;  %v11145_v5 = vor.u32 %v13018_v33, %v11142_v29  ;;  %v11401_v21 = vor.u32 %v13082_v15, %v11398_v17 }
 0x489   : > { %8898 = vmatpush.bf16.msra.mxu2 %v11337_v6  ;;  %v8626_v6 = vpop.f32.mrf.mxu2  ;;  %v8640_v54 = vpop.f32.mrf.mxu3  ;;  %v13174_v1 = vld [vmem:[%s14435_s15 + $0x12ec] sm:$0xf]  ;;  %v11641_v19 = vor.u32 %v13142_v27, %v11638_v45  ;;  %v11622_v7 = vld [vmem:[%s14435_s15 + $0x11d8] sm:$0xf0] }
 0x48a   : > { %8912 = vmatpush.bf16.msra.mxu3 %v11465_v26  ;;  %v8627_v26 = vadd.f32 %v8626_v6, %v8613_v25  ;;  %v13238_v43 = vld [vmem:[%s14435_s15 + $0x14ec] sm:$0xf]  ;;  %v11769_v39 = vor.u32 %v13174_v1, %v11766_v24  ;;  %v11750_v18 = vld [vmem:[%s14435_s15 + $0x12d8] sm:$0xf0] }
 0x48b   : > { %8871 = vmatpush.bf16.msra.mxu0 %v11065_v2  ;;  %v13206_v2 = vld [vmem:[%s14435_s15 + $0x13ec] sm:$0xf]  ;;  %v11734_v12 = vld [vmem:[%s14435_s15 + $0x12b8] sm:$0xf0] }
 0x48c   : > { %8885 = vmatpush.bf16.msra.mxu1 %v11193_v38  ;;  %v11894_v38 = vld [vmem:[%s14435_s15 + $0x13f8] sm:$0xf0]  ;;  %v13138_v59 = vld [vmem:[%s14435_s15 + $0x11cc] sm:$0xf] }
 0x48d   : > { %8899 = vmatpush.bf16.msra.mxu2 %v11321_v37  ;;  %v16445_v37 = vadd.f32 %v8640_v54, %v8627_v26  ;;  %v11897_v63 = vor.u32 %v13206_v2, %v11894_v38  ;;  %v13170_v4 = vld [vmem:[%s14435_s15 + $0x12cc] sm:$0xf]  ;;  %v11862_v51 = vld [vmem:[%s14435_s15 + $0x13b8] sm:$0xf0] }
 0x48e   : > { %8913 = vmatpush.bf16.msra.mxu3 %v11449_v40  ;;  %v12022_v40 = vld [vmem:[%s14435_s15 + $0x14f8] sm:$0xf0]  ;;  %v13202_v47 = vld [vmem:[%s14435_s15 + $0x13cc] sm:$0xf]  ;;  %v11753_v31 = vor.u32 %v13170_v4, %v11750_v18 }
 0x48f   : > { %8872 = vmatpush.bf16.msra.mxu0 %v11049_v28  ;;  %v12025_v34 = vor.u32 %v13238_v43, %v12022_v40  ;;  %v11878_v28 = vld [vmem:[%s14435_s15 + $0x13d8] sm:$0xf0]  ;;  %v13234_v30 = vld [vmem:[%s14435_s15 + $0x14cc] sm:$0xf] }
 0x490   : > { %8886 = vmatpush.bf16.msra.mxu1 %v11177_v62  ;;  %v12006_v62 = vld [vmem:[%s14435_s15 + $0x14d8] sm:$0xf0]  ;;  %v11881_v52 = vor.u32 %v13202_v47, %v11878_v28  ;;  %v13134_v20 = vld [vmem:[%s14435_s15 + $0x11ac] sm:$0xf] }
 0x491   : > { %8900 = vmatpush.bf16.msra.mxu2 %v11305_v11  ;;  %v11625_v11 = vor.u32 %v13138_v59, %v11622_v7  ;;  %v13166_v25 = vld [vmem:[%s14435_s15 + $0x12ac] sm:$0xf]  ;;  %v12009_v41 = vor.u32 %v13234_v30, %v12006_v62  ;;  %v11718_v33 = vld [vmem:[%s14435_s15 + $0x1298] sm:$0xf0] }
 0x492   : > { %8914 = vmatpush.bf16.msra.mxu3 %v11433_v10  ;;  %v11606_v10 = vld [vmem:[%s14435_s15 + $0x11b8] sm:$0xf0]  ;;  %v13198_v56 = vld [vmem:[%s14435_s15 + $0x13ac] sm:$0xf]  ;;  %v11737_v32 = vor.u32 %v13166_v25, %v11734_v12 }
 0x493   : > { %8873 = vmatpush.bf16.msra.mxu0 %v11033_v35  ;;  %v13230_v9 = vld [vmem:[%s14435_s15 + $0x14ac] sm:$0xf]  ;;  %v11990_v35 = vld [vmem:[%s14435_s15 + $0x14b8] sm:$0xf0]  ;;  %v11865_v48 = vor.u32 %v13198_v56, %v11862_v51 }
 0x494   : > { %8887 = vmatpush.bf16.msra.mxu1 %v11161_v58  ;;  %v13130_v58 = vld [vmem:[%s14435_s15 + $0x118c] sm:$0xf]  ;;  %v11846_v8 = vld [vmem:[%s14435_s15 + $0x1398] sm:$0xf0] }
 0x495   : > { %8901 = vmatpush.bf16.msra.mxu2 %v11289_v46  ;;  %v11590_v46 = vld [vmem:[%s14435_s15 + $0x1198] sm:$0xf0]  ;;  %v13194_v29 = vld [vmem:[%s14435_s15 + $0x138c] sm:$0xf] }
 0x496   : > { %8915 = vmatpush.bf16.msra.mxu3 %v11417_v44  ;;  %v13226_v44 = vld [vmem:[%s14435_s15 + $0x148c] sm:$0xf]  ;;  %v11974_v6 = vld [vmem:[%s14435_s15 + $0x1498] sm:$0xf0]  ;;  %v11593_v15 = vor.u32 %v13130_v58, %v11590_v46  ;;  %v11849_v54 = vor.u32 %v13194_v29, %v11846_v8 }
 0x497   : > { %8874 = vmatpush.bf16.msra.mxu0 %v11017_v22  ;;  %v13126_v27 = vld [vmem:[%s14435_s15 + $0x116c] sm:$0xf]  ;;  %v11574_v45 = vld [vmem:[%s14435_s15 + $0x1178] sm:$0xf0]  ;;  %v11977_v22 = vor.u32 %v13226_v44, %v11974_v6 }
 0x498   : > { %8888 = vmatpush.bf16.msra.mxu1 %v11145_v5  ;;  %v8666_v17 = vpop.f32.mrf.mxu1  ;;  %v13158_v1 = vld [vmem:[%s14435_s15 + $0x126c] sm:$0xf]  ;;  %v11702_v2 = vld [vmem:[%s14435_s15 + $0x1278] sm:$0xf0]  ;;  %v11577_v43 = vor.u32 %v13126_v27, %v11574_v45 }
 0x499   : > { %8902 = vmatpush.bf16.msra.mxu2 %v11273_v23  ;;  %v13190_v38 = vld [vmem:[%s14435_s15 + $0x136c] sm:$0xf]  ;;  %v11958_v23 = vld [vmem:[%s14435_s15 + $0x1478] sm:$0xf0]  ;;  %v11705_v40 = vor.u32 %v13158_v1, %v11702_v2 }
 0x49a   : > { %8916 = vmatpush.bf16.msra.mxu3 %v11401_v21  ;;  %8875 = vmatmul.bf16.vlgmr.msra.gmra.mxu0 %v14843_v57  ;;  %v11609_v57 = vor.u32 %v13134_v20, %v11606_v10  ;;  %v13222_v5 = vld [vmem:[%s14435_s15 + $0x146c] sm:$0xf]  ;;  %v11686_v4 = vld [vmem:[%s14435_s15 + $0x1258] sm:$0xf0] }
 0x49b   : > { %8923 = vmatpush.bf16.msrb.mxu0 %v11641_v19  ;;  %8889 = vmatmul.bf16.vlgmr.msra.gmra.mxu1 %v16688_v53  ;;  %v11993_v53 = vor.u32 %v13230_v9, %v11990_v35  ;;  %v13122_v19 = vld [vmem:[%s14435_s15 + $0x114c] sm:$0xf]  ;;  %v11961_v59 = vor.u32 %v13222_v5, %v11958_v23  ;;  %v11814_v18 = vld [vmem:[%s14435_s15 + $0x1358] sm:$0xf0] }
 0x49c   : > { %8937 = vmatpush.bf16.msrb.mxu1 %v11769_v39  ;;  %8903 = vmatmul.bf16.vlgmr.msra.gmra.mxu2 %v16689_v60  ;;  %v13162_v60 = vld [vmem:[%s14435_s15 + $0x128c] sm:$0xf]  ;;  %v11558_v39 = vld [vmem:[%s14435_s15 + $0x1158] sm:$0xf0] }
 0x49d   : > { %8951 = vmatpush.bf16.msrb.mxu2 %v11897_v63  ;;  %8917 = vmatmul.bf16.vlgmr.msra.gmra.mxu3 %v14936_v3  ;;  %v8652_v3 = vpop.f32.mrf.mxu0  ;;  %v11721_v26 = vor.u32 %v13162_v60, %v11718_v33  ;;  %v13154_v63 = vld [vmem:[%s14435_s15 + $0x124c] sm:$0xf]  ;;  %v11942_v62 = vld [vmem:[%s14435_s15 + $0x1458] sm:$0xf0] }
 0x49e   : > { %8965 = vmatpush.bf16.msrb.mxu3 %v12025_v34  ;;  %v8653_v61 = vadd.f32 %v8652_v3, %v16421_v50  ;;  %v11830_v50 = vld [vmem:[%s14435_s15 + $0x1378] sm:$0xf0]  ;;  %v13186_v34 = vld [vmem:[%s14435_s15 + $0x134c] sm:$0xf]  ;;  %v11689_v20 = vor.u32 %v13154_v63, %v11686_v4 }
 0x49f   : > { %8924 = vmatpush.bf16.msrb.mxu0 %v11625_v11  ;;  %v11833_v21 = vor.u32 %v13190_v38, %v11830_v50  ;;  %v8680_v7 = vpop.f32.mrf.mxu2  ;;  %v13218_v30 = vld [vmem:[%s14435_s15 + $0x144c] sm:$0xf]  ;;  %v11817_v10 = vor.u32 %v13186_v34, %v11814_v18  ;;  %v11798_v35 = vld [vmem:[%s14435_s15 + $0x1338] sm:$0xf0] }
 0x4a0   : > { %8938 = vmatpush.bf16.msrb.mxu1 %v11753_v31  ;;  %v8667_v24 = vadd.f32 %v8666_v17, %v8653_v61  ;;  %v11561_v31 = vor.u32 %v13122_v19, %v11558_v39  ;;  %v13118_v25 = vld [vmem:[%s14435_s15 + $0x112c] sm:$0xf]  ;;  %v11945_v56 = vor.u32 %v13218_v30, %v11942_v62  ;;  %v11526_v46 = vld [vmem:[%s14435_s15 + $0x1118] sm:$0xf0] }
 0x4a1   : > { %8952 = vmatpush.bf16.msrb.mxu2 %v11881_v52  ;;  %v8668_v52 = vpop.f32.mrf.mxu1  ;;  %v13150_v12 = vld [vmem:[%s14435_s15 + $0x122c] sm:$0xf]  ;;  %v11654_v29 = vld [vmem:[%s14435_s15 + $0x1218] sm:$0xf0] }
 0x4a2   : > { %8966 = vmatpush.bf16.msrb.mxu3 %v12009_v41  ;;  %v16492_v47 = vadd.f32 %v8680_v7, %v8667_v24  ;;  %v11542_v41 = vld [vmem:[%s14435_s15 + $0x1138] sm:$0xf0]  ;;  %v13182_v9 = vld [vmem:[%s14435_s15 + $0x132c] sm:$0xf] }
 0x4a3   : > { %8925 = vmatpush.bf16.msrb.mxu0 %v11609_v57  ;;  %v13214_v57 = vld [vmem:[%s14435_s15 + $0x142c] sm:$0xf]  ;;  %v11782_v6 = vld [vmem:[%s14435_s15 + $0x1318] sm:$0xf0] }
 0x4a4   : > { %8939 = vmatpush.bf16.msrb.mxu1 %v11737_v32  ;;  %v11926_v32 = vld [vmem:[%s14435_s15 + $0x1438] sm:$0xf0]  ;;  %v13114_v58 = vld [vmem:[%s14435_s15 + $0x110c] sm:$0xf] }
 0x4a5   : > { %8953 = vmatpush.bf16.msrb.mxu2 %v11865_v48  ;;  %v8654_v28 = vpop.f32.mrf.mxu0  ;;  %v11545_v48 = vor.u32 %v13118_v25, %v11542_v41  ;;  %v13146_v33 = vld [vmem:[%s14435_s15 + $0x120c] sm:$0xf]  ;;  %v11929_v3 = vor.u32 %v13214_v57, %v11926_v32  ;;  %v11529_v45 = vor.u32 %v13114_v58, %v11526_v46  ;;  %v12278_v1 = vld [vmem:[%s14435_s15 + $0x16f8] sm:$0xf0] }
 0x4a6   : > { %8967 = vmatpush.bf16.msrb.mxu3 %v11993_v53  ;;  %v8655_v11 = vadd.f32 %v8654_v28, %v16445_v37  ;;  %v11670_v37 = vld [vmem:[%s14435_s15 + $0x1238] sm:$0xf0]  ;;  %v11801_v53 = vor.u32 %v13182_v9, %v11798_v35  ;;  %v13178_v8 = vld [vmem:[%s14435_s15 + $0x130c] sm:$0xf]  ;;  %v11657_v2 = vor.u32 %v13146_v33, %v11654_v29 }
 0x4a7   : > { %8926 = vmatpush.bf16.msrb.mxu0 %v11593_v15  ;;  %v11673_v60 = vor.u32 %v13150_v12, %v11670_v37  ;;  %v8682_v44 = vpop.f32.mrf.mxu2  ;;  %v13210_v61 = vld [vmem:[%s14435_s15 + $0x140c] sm:$0xf]  ;;  %v11910_v15 = vld [vmem:[%s14435_s15 + $0x1418] sm:$0xf0]  ;;  %v11785_v38 = vor.u32 %v13178_v8, %v11782_v6 }
 0x4a8   : > { %8940 = vmatpush.bf16.msrb.mxu1 %v11721_v26  ;;  %v8669_v51 = vadd.f32 %v8668_v52, %v8655_v11  ;;  %v13270_v26 = vld [vmem:[%s14435_s15 + $0x15ec] sm:$0xf]  ;;  %v12406_v24 = vld [vmem:[%s14435_s15 + $0x17f8] sm:$0xf0]  ;;  %v11913_v23 = vor.u32 %v13210_v61, %v11910_v15 }
 0x4a9   : > { %8954 = vmatpush.bf16.msrb.mxu2 %v11849_v54  ;;  %v12150_v54 = vld [vmem:[%s14435_s15 + $0x15f8] sm:$0xf0]  ;;  %v13302_v27 = vld [vmem:[%s14435_s15 + $0x16ec] sm:$0xf] }
 0x4aa   : > { %8968 = vmatpush.bf16.msrb.mxu3 %v11977_v22  ;;  %v16513_v17 = vadd.f32 %v8682_v44, %v8669_v51  ;;  %v13334_v22 = vld [vmem:[%s14435_s15 + $0x17ec] sm:$0xf]  ;;  %v12534_v5 = vld [vmem:[%s14435_s15 + $0x18f8] sm:$0xf0] }
 0x4ab   : > { %8927 = vmatpush.bf16.msrb.mxu0 %v11577_v43  ;;  %v13366_v50 = vld [vmem:[%s14435_s15 + $0x18ec] sm:$0xf]  ;;  %v12153_v43 = vor.u32 %v13270_v26, %v12150_v54  ;;  %v12134_v39 = vld [vmem:[%s14435_s15 + $0x15d8] sm:$0xf0] }
 0x4ac   : > { %8941 = vmatpush.bf16.msrb.mxu1 %v11705_v40  ;;  %v12281_v40 = vor.u32 %v13302_v27, %v12278_v1  ;;  %v13266_v19 = vld [vmem:[%s14435_s15 + $0x15cc] sm:$0xf]  ;;  %v12262_v7 = vld [vmem:[%s14435_s15 + $0x16d8] sm:$0xf0] }
 0x4ad   : > { %8955 = vmatpush.bf16.msrb.mxu2 %v11833_v21  ;;  %v12409_v21 = vor.u32 %v13334_v22, %v12406_v24  ;;  %v13298_v63 = vld [vmem:[%s14435_s15 + $0x16cc] sm:$0xf]  ;;  %v12390_v34 = vld [vmem:[%s14435_s15 + $0x17d8] sm:$0xf0]  ;;  %v12137_v30 = vor.u32 %v13266_v19, %v12134_v39 }
 0x4ae   : > { %8969 = vmatpush.bf16.msrb.mxu3 %v11961_v59  ;;  %v12537_v59 = vor.u32 %v13366_v50, %v12534_v5  ;;  %v13330_v4 = vld [vmem:[%s14435_s15 + $0x17cc] sm:$0xf]  ;;  %v12518_v28 = vld [vmem:[%s14435_s15 + $0x18d8] sm:$0xf0]  ;;  %v12265_v62 = vor.u32 %v13298_v63, %v12262_v7 }
 0x4af   : > { %8928 = vmatpush.bf16.msrb.mxu0 %v11561_v31  ;;  %v13362_v18 = vld [vmem:[%s14435_s15 + $0x18cc] sm:$0xf]  ;;  %v12393_v11 = vor.u32 %v13330_v4, %v12390_v34  ;;  %v12118_v52 = vld [vmem:[%s14435_s15 + $0x15b8] sm:$0xf0] }
 0x4b0   : > { %8942 = vmatpush.bf16.msrb.mxu1 %v11689_v20  ;;  %v13262_v31 = vld [vmem:[%s14435_s15 + $0x15ac] sm:$0xf]  ;;  %v12246_v25 = vld [vmem:[%s14435_s15 + $0x16b8] sm:$0xf0] }
 0x4b1   : > { %8956 = vmatpush.bf16.msrb.mxu2 %v11817_v10  ;;  %v13294_v20 = vld [vmem:[%s14435_s15 + $0x16ac] sm:$0xf]  ;;  %v12521_v10 = vor.u32 %v13362_v18, %v12518_v28  ;;  %v12374_v12 = vld [vmem:[%s14435_s15 + $0x17b8] sm:$0xf0] }
 0x4b2   : > { %8970 = vmatpush.bf16.msrb.mxu3 %v11945_v56  ;;  %v13326_v41 = vld [vmem:[%s14435_s15 + $0x17ac] sm:$0xf]  ;;  %v12502_v51 = vld [vmem:[%s14435_s15 + $0x18b8] sm:$0xf0]  ;;  %v12249_v37 = vor.u32 %v13294_v20, %v12246_v25 }
 0x4b3   : > { %8929 = vmatpush.bf16.msrb.mxu0 %v11545_v48  ;;  %v13358_v56 = vld [vmem:[%s14435_s15 + $0x18ac] sm:$0xf]  ;;  %v12377_v9 = vor.u32 %v13326_v41, %v12374_v12  ;;  %v12230_v32 = vld [vmem:[%s14435_s15 + $0x1698] sm:$0xf0] }
 0x4b4   : > { %8943 = vmatpush.bf16.msrb.mxu1 %v11673_v60  ;;  %v13258_v35 = vld [vmem:[%s14435_s15 + $0x158c] sm:$0xf]  ;;  %v12486_v46 = vld [vmem:[%s14435_s15 + $0x1898] sm:$0xf0] }
 0x4b5   : > { %8957 = vmatpush.bf16.msrb.mxu2 %v11801_v53  ;;  %v13290_v57 = vld [vmem:[%s14435_s15 + $0x168c] sm:$0xf]  ;;  %v12086_v8 = vld [vmem:[%s14435_s15 + $0x1578] sm:$0xf0] }
 0x4b6   : > { %8971 = vmatpush.bf16.msrb.mxu3 %v11929_v3  ;;  %v13322_v48 = vld [vmem:[%s14435_s15 + $0x178c] sm:$0xf]  ;;  %v12233_v53 = vor.u32 %v13290_v57, %v12230_v32  ;;  %v12214_v6 = vld [vmem:[%s14435_s15 + $0x1678] sm:$0xf0] }
 0x4b7   : > { %8930 = vmatpush.bf16.msrb.mxu0 %v11529_v45  ;;  %v13354_v58 = vld [vmem:[%s14435_s15 + $0x188c] sm:$0xf]  ;;  %v12342_v15 = vld [vmem:[%s14435_s15 + $0x1778] sm:$0xf0] }
 0x4b8   : > { %8944 = vmatpush.bf16.msrb.mxu1 %v11657_v2  ;;  %v13254_v29 = vld [vmem:[%s14435_s15 + $0x156c] sm:$0xf]  ;;  %v12489_v44 = vor.u32 %v13354_v58, %v12486_v46  ;;  %v12470_v54 = vld [vmem:[%s14435_s15 + $0x1878] sm:$0xf0] }
 0x4b9   : > { %8958 = vmatpush.bf16.msrb.mxu2 %v11785_v38  ;;  %v13286_v3 = vld [vmem:[%s14435_s15 + $0x166c] sm:$0xf]  ;;  %v12089_v27 = vor.u32 %v13254_v29, %v12086_v8  ;;  %v12070_v24 = vld [vmem:[%s14435_s15 + $0x1558] sm:$0xf0] }
 0x4ba   : > { %8972 = vmatpush.bf16.msrb.mxu3 %v11913_v23  ;;  %8931 = vmatmul.bf16.vlgmr.msrb.gmra.mxu0 %v16690_v55  ;;  %v12121_v55 = vor.u32 %v13262_v31, %v12118_v52  ;;  %v13318_v61 = vld [vmem:[%s14435_s15 + $0x176c] sm:$0xf]  ;;  %v12217_v45 = vor.u32 %v13286_v3, %v12214_v6  ;;  %v12198_v50 = vld [vmem:[%s14435_s15 + $0x1658] sm:$0xf0] }
 0x4bb   : > { %8979 = vmatpush.bf16.msra.mxu0 %v12153_v43  ;;  %8945 = vmatmul.bf16.vlgmr.msrb.gmra.mxu1 %v16696_v42  ;;  %v12505_v42 = vor.u32 %v13358_v56, %v12502_v51  ;;  %v13350_v26 = vld [vmem:[%s14435_s15 + $0x186c] sm:$0xf]  ;;  %v12345_v1 = vor.u32 %v13318_v61, %v12342_v15  ;;  %v12326_v23 = vld [vmem:[%s14435_s15 + $0x1758] sm:$0xf0] }
 0x4bc   : > { %8993 = vmatpush.bf16.msra.mxu1 %v12281_v40  ;;  %8959 = vmatmul.bf16.vlgmr.msrb.gmra.mxu2 %v16698_v49  ;;  %v12102_v49 = vld [vmem:[%s14435_s15 + $0x1598] sm:$0xf0]  ;;  %v13250_v22 = vld [vmem:[%s14435_s15 + $0x154c] sm:$0xf]  ;;  %v12473_v38 = vor.u32 %v13350_v26, %v12470_v54 }
 0x4bd   : > { %9007 = vmatpush.bf16.msra.mxu2 %v12409_v21  ;;  %8973 = vmatmul.bf16.vlgmr.msrb.gmra.mxu3 %v16697_v36  ;;  %v12358_v36 = vld [vmem:[%s14435_s15 + $0x1798] sm:$0xf0]  ;;  %v12105_v60 = vor.u32 %v13258_v35, %v12102_v49  ;;  %v13282_v2 = vld [vmem:[%s14435_s15 + $0x164c] sm:$0xf]  ;;  %v12073_v21 = vor.u32 %v13250_v22, %v12070_v24 }
 0x4be   : > { %9021 = vmatpush.bf16.msra.mxu3 %v12537_v59  ;;  %v12361_v33 = vor.u32 %v13322_v48, %v12358_v36  ;;  %v13314_v5 = vld [vmem:[%s14435_s15 + $0x174c] sm:$0xf]  ;;  %v12454_v40 = vld [vmem:[%s14435_s15 + $0x1858] sm:$0xf0]  ;;  %v12201_v19 = vor.u32 %v13282_v2, %v12198_v50  ;;  %v8708_v48 = vpop.f32.mrf.mxu0  ;;  %v8722_v36 = vpop.f32.mrf.mxu1 }
 0x4bf   : > { %8980 = vmatpush.bf16.msra.mxu0 %v12137_v30  ;;  %v13346_v43 = vld [vmem:[%s14435_s15 + $0x184c] sm:$0xf]  ;;  %v12329_v39 = vor.u32 %v13314_v5, %v12326_v23  ;;  %v12054_v59 = vld [vmem:[%s14435_s15 + $0x1538] sm:$0xf0]  ;;  %v8736_v58 = vpop.f32.mrf.mxu2 }
 0x4c0   : > { %8994 = vmatpush.bf16.msra.mxu1 %v12265_v62  ;;  %v13246_v63 = vld [vmem:[%s14435_s15 + $0x152c] sm:$0xf]  ;;  %v12457_v4 = vor.u32 %v13346_v43, %v12454_v40  ;;  %v12182_v34 = vld [vmem:[%s14435_s15 + $0x1638] sm:$0xf0] }
 0x4c1   : > { %9008 = vmatpush.bf16.msra.mxu2 %v12393_v11  ;;  %v13278_v7 = vld [vmem:[%s14435_s15 + $0x162c] sm:$0xf]  ;;  %v12310_v28 = vld [vmem:[%s14435_s15 + $0x1738] sm:$0xf0]  ;;  %v12057_v11 = vor.u32 %v13246_v63, %v12054_v59 }
 0x4c2   : > { %9022 = vmatpush.bf16.msra.mxu3 %v12521_v10  ;;  %v13310_v18 = vld [vmem:[%s14435_s15 + $0x172c] sm:$0xf]  ;;  %v12438_v62 = vld [vmem:[%s14435_s15 + $0x1838] sm:$0xf0]  ;;  %v12185_v31 = vor.u32 %v13278_v7, %v12182_v34 }
 0x4c3   : > { %8981 = vmatpush.bf16.msra.mxu0 %v12121_v55  ;;  %v13342_v30 = vld [vmem:[%s14435_s15 + $0x182c] sm:$0xf]  ;;  %v12313_v52 = vor.u32 %v13310_v18, %v12310_v28  ;;  %v12038_v10 = vld [vmem:[%s14435_s15 + $0x1518] sm:$0xf0] }
 0x4c4   : > { %8995 = vmatpush.bf16.msra.mxu1 %v12249_v37  ;;  %v13242_v20 = vld [vmem:[%s14435_s15 + $0x150c] sm:$0xf]  ;;  %v12441_v41 = vor.u32 %v13342_v30, %v12438_v62  ;;  %v12166_v12 = vld [vmem:[%s14435_s15 + $0x1618] sm:$0xf0] }
 0x4c5   : > { %9009 = vmatpush.bf16.msra.mxu2 %v12377_v9  ;;  %v13274_v25 = vld [vmem:[%s14435_s15 + $0x160c] sm:$0xf]  ;;  %v12294_v51 = vld [vmem:[%s14435_s15 + $0x1718] sm:$0xf0]  ;;  %v12041_v9 = vor.u32 %v13242_v20, %v12038_v10 }
 0x4c6   : > { %9023 = vmatpush.bf16.msra.mxu3 %v12505_v42  ;;  %v13306_v56 = vld [vmem:[%s14435_s15 + $0x170c] sm:$0xf]  ;;  %v12422_v37 = vld [vmem:[%s14435_s15 + $0x1818] sm:$0xf0]  ;;  %v12169_v35 = vor.u32 %v13274_v25, %v12166_v12  ;;  %v8694_v42 = vpop.f32.mrf.mxu3 }
 0x4c7   : > { %8982 = vmatpush.bf16.msra.mxu0 %v12105_v60  ;;  %v13338_v55 = vld [vmem:[%s14435_s15 + $0x180c] sm:$0xf]  ;;  %v12297_v49 = vor.u32 %v13306_v56, %v12294_v51  ;;  %v8710_v60 = vpop.f32.mrf.mxu0 }
 0x4c8   : > { %8996 = vmatpush.bf16.msra.mxu1 %v12233_v53  ;;  %v12425_v57 = vor.u32 %v13338_v55, %v12422_v37  ;;  %v8724_v53 = vpop.f32.mrf.mxu1 }
 0x4c9   : > { %9010 = vmatpush.bf16.msra.mxu2 %v12361_v33  ;;  %v8738_v33 = vpop.f32.mrf.mxu2 }
 0x4ca   : > { %9024 = vmatpush.bf16.msra.mxu3 %v12489_v44 }
 0x4cb   : > { %8983 = vmatpush.bf16.msra.mxu0 %v12089_v27 }
 0x4cc   : > { %8997 = vmatpush.bf16.msra.mxu1 %v12217_v45 }
 0x4cd   : > { %9011 = vmatpush.bf16.msra.mxu2 %v12345_v1 }
 0x4ce   : > { %9025 = vmatpush.bf16.msra.mxu3 %v12473_v38  ;;  %v8696_v32 = vpop.f32.mrf.mxu3 }
 0x4cf   : > { %8984 = vmatpush.bf16.msra.mxu0 %v12073_v21  ;;  %v8711_v45 = vadd.f32 %v8710_v60, %v8696_v32 }
 0x4d0   : > { %8998 = vmatpush.bf16.msra.mxu1 %v12201_v19 }
 0x4d1   : > { %9012 = vmatpush.bf16.msra.mxu2 %v12329_v39  ;;  %v8725_v24 = vadd.f32 %v8724_v53, %v8711_v45 }
 0x4d2   : > { %9026 = vmatpush.bf16.msra.mxu3 %v12457_v4 }
 0x4d3   : > { %8985 = vmatpush.bf16.msra.mxu0 %v12057_v11  ;;  %v8739_v50 = vadd.f32 %v8738_v33, %v8725_v24 }
 0x4d4   : > { %8999 = vmatpush.bf16.msra.mxu1 %v12185_v31 }
 0x4d5   : > { %9013 = vmatpush.bf16.msra.mxu2 %v12313_v52 }
 0x4d6   : > { %9027 = vmatpush.bf16.msra.mxu3 %v12441_v41  ;;  %v8750_v46 = vpop.f32.mrf.mxu3 }
 0x4d7   : > { %8986 = vmatpush.bf16.msra.mxu0 %v12041_v9  ;;  %v8764_v8 = vpop.f32.mrf.mxu0 }
 0x4d8   : > { %9000 = vmatpush.bf16.msra.mxu1 %v12169_v35  ;;  %v8778_v3 = vpop.f32.mrf.mxu1 }
 0x4d9   : > { %9014 = vmatpush.bf16.msra.mxu2 %v12297_v49 }
 0x4da   : > { %9028 = vmatpush.bf16.msra.mxu3 %v12425_v57  ;;  %8987 = vmatmul.bf16.vlgmr.msra.gmra.mxu0 %v16699_v0 }
 0x4db   : > { %9001 = vmatmul.bf16.vlgmr.msra.gmra.mxu1 %v16700_v16  ;;  %v8709_v16 = vadd.f32 %v8708_v48, %v8694_v42 }
 0x4dc   : > { %9015 = vmatmul.bf16.vlgmr.msra.gmra.mxu2 %v16702_v13 }
 0x4dd   : > { %9029 = vmatmul.bf16.vlgmr.msra.gmra.mxu3 %v16701_v14  ;;  %v8723_v13 = vadd.f32 %v8722_v36, %v8709_v16 }
 0x4de   : > { %v8752_v29 = vpop.f32.mrf.mxu3 }
 0x4df   : > { %v8792_v44 = vpop.f32.mrf.mxu2  ;;  %v8766_v6 = vpop.f32.mrf.mxu0  ;;  %v8737_v54 = vadd.f32 %v8736_v58, %v8723_v13  ;;  %v8753_v40 = vadd.f32 %v8752_v29, %v8739_v50 }
 0x4e0   : > { %v8780_v61 = vpop.f32.mrf.mxu1 }
 0x4e1   : > { %v8751_v1 = vadd.f32 %v8750_v46, %v8737_v54  ;;  %v8767_v19 = vadd.f32 %v8766_v6, %v8753_v40 }
 0x4e3   : > { %v8765_v2 = vadd.f32 %v8764_v8, %v8751_v1  ;;  %v8781_v4 = vadd.f32 %v8780_v61, %v8767_v19 }
 0x4e5   : > { %v8779_v23 = vadd.f32 %v8778_v3, %v8765_v2 }
 0x4e6   : > { %v8806_v0 = vpop.f32.mrf.mxu3 }
 0x4e7   : > { %v8794_v15 = vpop.f32.mrf.mxu2  ;;  %v8793_v21 = vadd.f32 %v8792_v44, %v8779_v23 }
 0x4e8   : > { %v8795_v28 = vadd.f32 %v8794_v15, %v8781_v4 }
 0x4e9   : > { %v8807_v63 = vadd.f32 %v8806_v0, %v8793_v21 }
 0x4ee   : > { %v8808_v14 = vpop.f32.mrf.mxu3 }
 0x4ef   : > { %v8809_v11 = vadd.f32 %v8808_v14, %v8795_v28  ;;  %v9107_v28 = vld [vmem:[%s16050_s9 + $0x10] sm:$0xff] (%p13566_p6) }
 0x4f0   : > { %9108 = vst [vmem:[%s9090_s30 + $0x40] sm:$0xff] (%p13566_p6), %v9107_v28 }
 0x4f7   : > { %v8820_v26 = vpop.f32.mrf.mxu0 }
 0x4f8   : > { %v8834_v27 = vpop.f32.mrf.mxu1  ;;  %v8821_v34 = vadd.f32 %v8820_v26, %v8807_v63 }
 0x4fa   : > { %v8835_v30 = vadd.f32 %v8834_v27, %v8821_v34 }
 0x4ff   : > { %v8848_v22 = vpop.f32.mrf.mxu2  ;;  %v8822_v5 = vpop.f32.mrf.mxu0 }
 0x500   : > { %v8862_v38 = vpop.f32.mrf.mxu3  ;;  %v8836_v43 = vpop.f32.mrf.mxu1  ;;  %v8849_v31 = vadd.f32 %v8848_v22, %v8835_v30  ;;  %v8823_v20 = vadd.f32 %v8822_v5, %v8809_v11  ;;  %v9064_v5 = vmax.f32 %v16492_v47, 0.0  ;;  %v9103_v47 = vld [vmem:[%s16050_s9] sm:$0xff] (%p13566_p6) }
 0x501   : > { %9104 = vst [vmem:[%s9090_s30] sm:$0xff] (%p13566_p6), %v9103_v47 }
 0x502   : > { %v8863_v25 = vadd.f32 %v8862_v38, %v8849_v31  ;;  %v8837_v12 = vadd.f32 %v8836_v43, %v8823_v20 }
 0x507   : > { %v8850_v39 = vpop.f32.mrf.mxu2 }
 0x508   : > { %v8864_v59 = vpop.f32.mrf.mxu3  ;;  %v8851_v51 = vadd.f32 %v8850_v39, %v8837_v12 }
 0x50a   : > { %v8865_v49 = vadd.f32 %v8864_v59, %v8851_v51 }
 0x517   : > { %v8876_v7 = vpop.f32.mrf.mxu0 }
 0x518   : > { %v8890_v18 = vpop.f32.mrf.mxu1  ;;  %v8877_v56 = vadd.f32 %v8876_v7, %v8863_v25  ;;  %v9068_v7 = vmax.f32 %v16513_v17, 0.0 }
 0x51a   : > { %v8891_v37 = vadd.f32 %v8890_v18, %v8877_v56 }
 0x51f   : > { %v8904_v62 = vpop.f32.mrf.mxu2  ;;  %v8878_v10 = vpop.f32.mrf.mxu0 }
 0x520   : > { %v8918_v52 = vpop.f32.mrf.mxu3  ;;  %v8892_v41 = vpop.f32.mrf.mxu1  ;;  %v8905_v57 = vadd.f32 %v8904_v62, %v8891_v37  ;;  %v8879_v32 = vadd.f32 %v8878_v10, %v8865_v49 }
 0x522   : > { %v8919_v48 = vadd.f32 %v8918_v52, %v8905_v57  ;;  %v8893_v58 = vadd.f32 %v8892_v41, %v8879_v32 }
 0x527   : > { %v8906_v55 = vpop.f32.mrf.mxu2 }
 0x528   : > { %v8920_v9 = vpop.f32.mrf.mxu3  ;;  %v8907_v53 = vadd.f32 %v8906_v55, %v8893_v58 }
 0x52a   : > { %v8921_v3 = vadd.f32 %v8920_v9, %v8907_v53 }
 0x537   : > { %v8932_v35 = vpop.f32.mrf.mxu0 }
 0x538   : > { %v8946_v42 = vpop.f32.mrf.mxu1  ;;  %v8933_v46 = vadd.f32 %v8932_v35, %v8919_v48 }
 0x53a   : > { %v8947_v29 = vadd.f32 %v8946_v42, %v8933_v46 }
 0x53f   : > { %v8960_v36 = vpop.f32.mrf.mxu2  ;;  %v8934_v33 = vpop.f32.mrf.mxu0 }
 0x540   : > { %v8974_v60 = vpop.f32.mrf.mxu3  ;;  %v8948_v8 = vpop.f32.mrf.mxu1  ;;  %v8961_v44 = vadd.f32 %v8960_v36, %v8947_v29  ;;  %v8935_v0 = vadd.f32 %v8934_v33, %v8921_v3 }
 0x542   : > { %v8975_v16 = vadd.f32 %v8974_v60, %v8961_v44  ;;  %v8949_v15 = vadd.f32 %v8948_v8, %v8935_v0 }
 0x547   : > { %v8962_v6 = vpop.f32.mrf.mxu2 }
 0x548   : > { %v8976_v61 = vpop.f32.mrf.mxu3  ;;  %v8963_v54 = vadd.f32 %v8962_v6, %v8949_v15 }
 0x54a   : > { %v8977_v1 = vadd.f32 %v8976_v61, %v8963_v54 }
 0x557   : > { %v8988_v13 = vpop.f32.mrf.mxu0 }
 0x558   : > { %v8989_v14 = vadd.f32 %v8988_v13, %v8975_v16  ;;  %v9002_v26 = vpop.f32.mrf.mxu1 }
 0x55a   : > { %v9003_v27 = vadd.f32 %v9002_v26, %v8989_v14 }
 0x55f   : > { %v9016_v45 = vpop.f32.mrf.mxu2  ;;  %v8990_v2 = vpop.f32.mrf.mxu0 }
 0x560   : > { %v9017_v22 = vadd.f32 %v9016_v45, %v9003_v27  ;;  %v9030_v24 = vpop.f32.mrf.mxu3  ;;  %v8991_v50 = vadd.f32 %v8990_v2, %v8977_v1  ;;  %v9004_v43 = vpop.f32.mrf.mxu1 }
 0x562   : > { %v9031_v38 = vadd.f32 %v9030_v24, %v9017_v22  ;;  %v9005_v21 = vadd.f32 %v9004_v43, %v8991_v50 }
 0x564   : > { %v9065_v23 = vmax.f32 %v9031_v38, 0.0 }
 0x566   : > { %v9071_v40 = vpack.c.bf16 %v9065_v23, %v9064_v5 }
 0x567   : > { %v9018_v19 = vpop.f32.mrf.mxu2 }
 0x568   : > { %9075 = vst [vmem:[%s16050_s9 + $0x8] sm:$0xff] %v9071_v40  ;;  %v9019_v39 = vadd.f32 %v9018_v19, %v9005_v21  ;;  %v9032_v63 = vpop.f32.mrf.mxu3 }
 0x56a   : > { %v9033_v59 = vadd.f32 %v9032_v63, %v9019_v39 }
 0x56c   : > { %v9069_v4 = vmax.f32 %v9033_v59, 0.0  ;;  %9084 = sbr.rel (!%p13566_p6) target bundleno = 1401 (0x579), region = 77 }
 0x56e   : > { %v9073_v34 = vpack.c.bf16 %v9069_v4, %v9068_v7 }
 0x56f   : > { %v9105_v18 = vld [vmem:[%s16050_s9 + $0x8] sm:$0xff] (%p13566_p6) }
 0x570   : > { %9077 = vst [vmem:[%s16050_s9 + $0x18] sm:$0xff] %v9073_v34 }
 0x571   : > { %9106 = vst [vmem:[%s9090_s30 + $0x8] sm:$0xff] %v9105_v18 }
 0x577   : > { %v9109_v17 = vld [vmem:[%s16050_s9 + $0x18] sm:$0xff] }
 0x578   : > { %9110 = vst [vmem:[%s9090_s30 + $0x48] sm:$0xff] %v9109_v17 }
 0x579 PF: > { %s12_s13 = sadd.s32 1, %s13498_s13   ;;  %s16709_s9 = smov %s13486_s10 }
 0x57a   : > { %p9_p13 = scmp.ge.s32.totalorder %s12_s13, 6   ;;  %s16710_s10 = smov %s13571_s19 }
 0x57b   : > { %s16711_s11 = smov %s13494_s12  ;;  %s16712_s12 = smov %s16714_s14 }
 0x57c   :  { %11 = sbr.rel (!%p9_p13) target bundleno = 3 (0x3), region = 147 }

</bundles_post_ra>
